<compile_context>
chip_gen: v6e
topology: v6e:2x2x1
jax: 0.10.0
libtpu: 0.0.40
codegen_flags: <defaults>
</compile_context>

<pallas_src>
import jax
import jax.numpy as jnp
from jax.experimental import pallas as pl
from jax.experimental.pallas import tpu as pltpu

# -------------------- configuration (module defaults, small test shapes) --------------------
DMODEL = 32                      # dmodel
MODALITIES = 8                   # modalities (default 8)
HEADS = 8                        # Seq_Small_Attention default
DIM_HEAD = 64                    # Seq_Small_Attention default
INNER = HEADS * DIM_HEAD         # 512
MD = DMODEL * MODALITIES         # 256   flattened feature dim (dmodel * modalities)
INNER_M = INNER * MODALITIES     # 4096  to_q / per-chunk to_kv output width
DH = INNER_M // HEADS            # 512   per-head width after 'b n (h d) -> (b h) n d'
SCALE = DIM_HEAD ** -0.5
LN_EPS = 1e-5
B = 2
SEQ = 8


# -------------------- small math helpers (usable inside Pallas) --------------------
def _erf(x):
    # TODO(synk): exact erf-based F.gelu approximated with the A&S 7.1.26 polynomial
    # (|abs err| < 1.5e-7, i.e. f32-accurate); lax.erf lowering on Mosaic is not guaranteed.
    a1, a2, a3, a4, a5 = 0.254829592, -0.284496736, 1.421413741, -1.453152027, 1.061405429
    p = 0.3275911
    ax = jnp.abs(x)
    t = 1.0 / (1.0 + p * ax)
    poly = ((((a5 * t + a4) * t + a3) * t + a2) * t + a1) * t
    y = 1.0 - poly * jnp.exp(-ax * ax)
    return jnp.where(x >= 0, y, -y)


def _gelu(x):
    # PyTorch F.gelu default (erf formulation)
    return x * 0.5 * (1.0 + _erf(x * 0.7071067811865476))


def _layer_norm(x, g, b):
    mu = jnp.mean(x, axis=-1, keepdims=True)
    var = jnp.mean((x - mu) ** 2, axis=-1, keepdims=True)
    return (x - mu) * jax.lax.rsqrt(var + LN_EPS) * g + b


# -------------------- single fused kernel: whole transformer layer --------------------
# grid = (1,): one step, whole flattened (B*N, MD) activation, all weights loaded once.
def _fused_layer_kernel(x_ref, wproj_ref, w1_ref, w2_ref,
                        bout_ref, g1_ref, bt1_ref, b1_ref, b2_ref, g2_ref, bt2_ref,
                        o_ref):
    f32 = jnp.float32
    bf16 = jnp.bfloat16

    bn, md = x_ref.shape                 # (B*N, MD) = (16, 256)
    nb = bn // SEQ                       # number of batch elements

    x = x_ref[...]                       # (B*N, MD) f32
    xb = x.astype(bf16)

    # ---- one fused projection against the pre-folded weight (bf16 MXU, f32 acc) ----
    #   cols [0,       H*MD) : per-head  x @ (SCALE * Wq_h Wk_h^T)    ("qk-folded")
    #   cols [H*MD, 2*H*MD) : per-head  x @ (Wv_h folded with to_out per modality)
    proj = jnp.dot(xb, wproj_ref[...], preferred_element_type=f32)   # (B*N, 2*H*MD)
    qk_t = proj[:, : HEADS * md]                                     # (B*N, H*MD)
    v_p = proj[:, HEADS * md:]                                       # (B*N, H*MD)

    # ---- per-batch, per-head attention; softmax over keys (torch softmax(dim=-1)) ----
    att_rows = []
    for b in range(nb):
        rs = slice(b * SEQ, (b + 1) * SEQ)
        x_b = x[rs, :]                                               # (N, MD) key-side operand
        acc = jnp.zeros((SEQ, md), f32)
        for h in range(HEADS):
            cs = slice(h * md, (h + 1) * md)
            t_bh = qk_t[rs, cs]                                      # (N, MD)
            s = jax.lax.dot_general(t_bh, x_b, (((1,), (1,)), ((), ())),
                                    preferred_element_type=f32)      # (N, N) = q @ k^T * scale
            s = s - jnp.max(s, axis=-1, keepdims=True)
            e = jnp.exp(s)
            p = e / jnp.sum(e, axis=-1, keepdims=True)               # exact softmax (f32)
            # to_out already folded into v_p, so p @ v_p IS the projected attention output
            acc = acc + jnp.dot(p, v_p[rs, cs], preferred_element_type=f32)   # (N, MD)
        att_rows.append(acc)
    x_att = jnp.concatenate(att_rows, axis=0) + bout_ref[...]        # (B*N, MD)

    # ---- x = x + dropout(x) -> 2*x (eval), then norm1 ----
    y = _layer_norm(2.0 * x_att, g1_ref[...], bt1_ref[...])

    # ---- FeedForward: Linear(MD, 8*MD) -> GEGLU -> Linear(4*MD, MD) ----
    hmid = jnp.dot(y.astype(bf16), w1_ref[...],
                   preferred_element_type=f32) + b1_ref[...]         # (B*N, 8*MD)
    half = hmid.shape[-1] // 2
    u = hmid[:, :half] * _gelu(hmid[:, half:])                       # GEGLU
    f = jnp.dot(u.astype(bf16), w2_ref[...],
                preferred_element_type=f32) + b2_ref[...]            # (B*N, MD)

    # ---- x = x + dropout(x) -> 2*x (eval), then normff1 ----
    o_ref[...] = _layer_norm(2.0 * f, g2_ref[...], bt2_ref[...])     # lane-dense (16, 256)


# -------------------- wrapper --------------------
@jax.jit
def transformer_layer(x, kp):
    bsz, d, m, n = x.shape
    md = m * d
    # (B, D, M, N) -> (B, N, M, D) -> (B*N, M*D): rows ordered (b, n), cols (m, d)
    xf = jnp.transpose(x, (0, 3, 2, 1)).reshape(bsz * n, md)

    args = (xf, kp["wproj"], kp["w1"], kp["w2"], kp["bout_t"],
            kp["g1"], kp["bt1"], kp["b1"], kp["b2"], kp["g2"], kp["bt2"])
    in_specs = [pl.BlockSpec(a.shape, lambda i: (0, 0)) for a in args]

    out = pl.pallas_call(
        _fused_layer_kernel,
        grid=(1,),                                   # single step: weights DMA'd exactly once
        in_specs=in_specs,
        out_specs=pl.BlockSpec((bsz * n, md), lambda i: (0, 0)),
        out_shape=jax.ShapeDtypeStruct((bsz * n, md), jnp.float32),
        compiler_params=pltpu.CompilerParams(
            dimension_semantics=("arbitrary",),
            # ~3.5 MiB bf16 weights (<8 MiB even if double-buffered) + tiny activations.
            vmem_limit_bytes=16 * 1024 * 1024,
        ),
    )(*args)

    # torch: x.view(x_shape) -- a raw memory reinterpretation back to (B, D, M, N)
    return out.reshape(bsz, d, m, n)


# -------------------- one-time weight packing (outside jit: no per-call HBM round trip) ----
def pack_kernel_params(p):
    f32 = jnp.float32
    # (a) q/k fold:  per head  M_h = SCALE * Wq_h @ Wk_h^T   -> (MD, H*MD) = 1 MiB bf16
    #     (fold done in f32, then one bf16 rounding of the composed matrix)
    wq = p["wq"].astype(f32).reshape(MD, HEADS, DH) * SCALE
    wk = p["wk"].astype(f32).reshape(MD, HEADS, DH)
    m_all = jnp.einsum("chd,khd->chk", wq, wk).reshape(MD, HEADS * MD)        # (256, 2048)
    # (b) v / to_out fold (exact, per modality block):
    #     wv'[:, h*MD + mi*DMODEL + e] = sum_dd wv[:, h*DH + mi*64 + dd] * wout[h*64 + dd, e]
    wv = p["wv"].astype(f32).reshape(MD, HEADS, MODALITIES, DIM_HEAD)
    wout = p["wout"].astype(f32).reshape(HEADS, DIM_HEAD, DMODEL)
    wvp = jnp.einsum("chmd,hde->chme", wv, wout).reshape(MD, HEADS * MD)      # (256, 2048)
    # (c) fuse into one streamed weight
    wproj = jnp.concatenate([m_all, wvp], axis=1).astype(jnp.bfloat16)        # (256, 4096)
    return {
        "wproj": wproj,
        "w1": p["w1"], "w2": p["w2"],
        "bout_t": jnp.tile(p["bout"], MODALITIES).reshape(1, MD),
        "g1": p["g1"].reshape(1, MD), "bt1": p["bt1"].reshape(1, MD),
        "b1": p["b1"].reshape(1, 8 * MD), "b2": p["b2"].reshape(1, MD),
        "g2": p["g2"].reshape(1, MD), "bt2": p["bt2"].reshape(1, MD),
    }


# -------------------- parameters (deterministic, PyTorch-Linear-like init) --------------------
def init_params(key):
    d, m = DMODEL, MODALITIES
    md = d * m
    ks = jax.random.split(key, 13)

    def uni(k, shape, fan_in):
        bound = 1.0 / (fan_in ** 0.5)
        return jax.random.uniform(k, shape, jnp.float32, -bound, bound)

    return {
        # big weights stored in bf16 (kernel streams folded bf16; reference upcasts)
        "wq": uni(ks[0], (md, INNER_M), md).astype(jnp.bfloat16),          # to_q (no bias)
        "wk": uni(ks[1], (md, INNER_M), md).astype(jnp.bfloat16),          # to_kv (k half)
        "wv": uni(ks[2], (md, INNER_M), md).astype(jnp.bfloat16),          # to_kv (v half)
        "wout": uni(ks[3], (INNER, d), INNER).astype(jnp.bfloat16),        # to_out Linear
        "bout": uni(ks[4], (d,), INNER),
        "g1": 1.0 + 0.02 * jax.random.normal(ks[5], (md,), jnp.float32),   # norm1
        "bt1": 0.02 * jax.random.normal(ks[6], (md,), jnp.float32),
        "w1": uni(ks[7], (md, 8 * md), md).astype(jnp.bfloat16),           # ff Linear(MD, 8MD)
        "b1": uni(ks[8], (8 * md,), md),
        "w2": uni(ks[9], (4 * md, md), 4 * md).astype(jnp.bfloat16),       # ff Linear(4MD, MD)
        "b2": uni(ks[10], (md,), 4 * md),
        "g2": 1.0 + 0.02 * jax.random.normal(ks[11], (md,), jnp.float32),  # normff1
        "bt2": 0.02 * jax.random.normal(ks[12], (md,), jnp.float32),
    }


# -------------------- pure-JAX f32 reference (same math as the torch module) --------------------
def reference_forward(x, p):
    bsz, d, m, n = x.shape
    md = m * d
    xp = jnp.transpose(x, (0, 3, 2, 1)).reshape(bsz, n, md)

    wq = p["wq"].astype(jnp.float32)
    wk = p["wk"].astype(jnp.float32)
    wv = p["wv"].astype(jnp.float32)
    q, k, v = xp @ wq, xp @ wk, xp @ wv                      # (B, N, INNER_M)

    dh = q.shape[-1] // HEADS                                 # 512

    def split_heads(t):                                       # 'b n (h d) -> (b h) n d'
        return (t.reshape(bsz, n, HEADS, dh)
                 .transpose(0, 2, 1, 3)
                 .reshape(bsz * HEADS, n, dh))

    qh, kh, vh = split_heads(q), split_heads(k), split_heads(v)
    sim = jnp.einsum("bid,bjd->bij", qh, kh) * SCALE
    attn = jax.nn.softmax(sim, axis=-1)
    out = jnp.einsum("bij,bjd->bid", attn, vh)                # (B*H, N, dh)

    d64 = dh // m                                             # dim_head
    out = (out.reshape(bsz, HEADS, n, m, d64)                 # '(b h) n (m d) -> b n m (h d)'
              .transpose(0, 2, 3, 1, 4)
              .reshape(bsz, n, m, HEADS * d64))
    x_att = out @ p["wout"].astype(jnp.float32) + p["bout"]   # (B, N, M, D)
    x_att = x_att.reshape(bsz, n, md)

    xx = x_att + x_att                                        # x + dropout(x), eval
    y = _layer_norm(xx, p["g1"], p["bt1"])                    # norm1
    h = y @ p["w1"].astype(jnp.float32) + p["b1"]
    a, g = h[..., : 4 * md], h[..., 4 * md:]
    u = a * _gelu(g)                                          # GEGLU
    f = u @ p["w2"].astype(jnp.float32) + p["b2"]
    o = _layer_norm(f + f, p["g2"], p["bt2"])                 # normff1
    return o.reshape(bsz, d, m, n)


# -------------------- main --------------------
if __name__ == "__main__":
    key = jax.random.PRNGKey(0)
    pkey, xkey = jax.random.split(key)
    params = init_params(pkey)
    kparams = pack_kernel_params(params)                      # one-time packing, outside jit
    x = jax.random.normal(xkey, (B, DMODEL, MODALITIES, SEQ), jnp.float32)

    out = jax.block_until_ready(transformer_layer(x, kparams))

    assert out.shape == x.shape
    assert bool(jnp.isfinite(out).all())

    ref = reference_forward(x, params)
    err = jnp.abs(out - ref)
    max_err = float(jnp.max(err))
    mean_err = float(jnp.mean(err))
    # Kernel uses bf16 MXU inputs and bf16-folded weight products (f32 accumulation,
    # f32 softmax/LN/GELU); reference is f32, so allow a bf16-sized tolerance on the
    # unit-scale (post-LayerNorm) output.
    assert max_err < 1e-1 and mean_err < 2e-2, \
        f"error too large: max={max_err} mean={mean_err}"

    print("KERNEL_OK")
</pallas_src>

<mosaic_0001>
module attributes {stable_mosaic.version = 11 : i64} {
  func.func @_fused_layer_kernel(%arg0: i32, %arg1: memref<16x256xf32, #tpu.memory_space<vmem>>, %arg2: memref<256x4096xbf16, #tpu.memory_space<vmem>>, %arg3: memref<256x2048xbf16, #tpu.memory_space<vmem>>, %arg4: memref<1024x256xbf16, #tpu.memory_space<vmem>>, %arg5: memref<1x256xf32, #tpu.memory_space<vmem>>, %arg6: memref<1x256xf32, #tpu.memory_space<vmem>>, %arg7: memref<1x256xf32, #tpu.memory_space<vmem>>, %arg8: memref<1x2048xf32, #tpu.memory_space<vmem>>, %arg9: memref<1x256xf32, #tpu.memory_space<vmem>>, %arg10: memref<1x256xf32, #tpu.memory_space<vmem>>, %arg11: memref<1x256xf32, #tpu.memory_space<vmem>>, %arg12: memref<16x256xf32, #tpu.memory_space<vmem>>) attributes {dimension_semantics = [#tpu.dimension_semantics<arbitrary>], iteration_bounds = array<i64: 1>, scalar_prefetch = 0 : i64, scratch_operands = 0 : i64, tpu.core_type = #tpu.core_type<tc>, window_params = [{pipeline_mode = #tpu.pipeline_mode<synchronous>, transform_indices = @transform_0, window_bounds = array<i64: 16, 256>}, {pipeline_mode = #tpu.pipeline_mode<synchronous>, transform_indices = @transform_1, window_bounds = array<i64: 256, 4096>}, {pipeline_mode = #tpu.pipeline_mode<synchronous>, transform_indices = @transform_2, window_bounds = array<i64: 256, 2048>}, {pipeline_mode = #tpu.pipeline_mode<synchronous>, transform_indices = @transform_3, window_bounds = array<i64: 1024, 256>}, {pipeline_mode = #tpu.pipeline_mode<synchronous>, transform_indices = @transform_4, window_bounds = array<i64: 1, 256>}, {pipeline_mode = #tpu.pipeline_mode<synchronous>, transform_indices = @transform_5, window_bounds = array<i64: 1, 256>}, {pipeline_mode = #tpu.pipeline_mode<synchronous>, transform_indices = @transform_6, window_bounds = array<i64: 1, 256>}, {pipeline_mode = #tpu.pipeline_mode<synchronous>, transform_indices = @transform_7, window_bounds = array<i64: 1, 2048>}, {pipeline_mode = #tpu.pipeline_mode<synchronous>, transform_indices = @transform_8, window_bounds = array<i64: 1, 256>}, {pipeline_mode = #tpu.pipeline_mode<synchronous>, transform_indices = @transform_9, window_bounds = array<i64: 1, 256>}, {pipeline_mode = #tpu.pipeline_mode<synchronous>, transform_indices = @transform_10, window_bounds = array<i64: 1, 256>}, {pipeline_mode = #tpu.pipeline_mode<synchronous>, transform_indices = @transform_11, window_bounds = array<i64: 16, 256>}]} {
    %c0 = arith.constant 0 : index
    %c0_0 = arith.constant 0 : index
    %0 = vector.load %arg1[%c0, %c0_0] : memref<16x256xf32, #tpu.memory_space<vmem>>, vector<16x256xf32>
    %1 = arith.truncf %0 : vector<16x256xf32> to vector<16x256xbf16>
    %c0_1 = arith.constant 0 : index
    %c0_2 = arith.constant 0 : index
    %2 = vector.load %arg2[%c0_1, %c0_2] : memref<256x4096xbf16, #tpu.memory_space<vmem>>, vector<256x4096xbf16>
    %cst = arith.constant dense<0.000000e+00> : vector<16x4096xf32>
    %3 = tpu.matmul %1, %2, %cst {dimension_numbers = #tpu.dot_dimension_numbers<[1], [0], [0], [1], [0, 0, 1, 1], [], []>} : vector<16x256xbf16>, vector<256x4096xbf16>, vector<16x4096xf32> -> vector<16x4096xf32>
    %4 = vector.extract_strided_slice %3 {offsets = [0, 0], sizes = [16, 2048], strides = [1, 1]} : vector<16x4096xf32> to vector<16x2048xf32>
    %5 = vector.extract_strided_slice %3 {offsets = [0, 2048], sizes = [16, 2048], strides = [1, 1]} : vector<16x4096xf32> to vector<16x2048xf32>
    %6 = vector.extract_strided_slice %0 {offsets = [0, 0], sizes = [8, 256], strides = [1, 1]} : vector<16x256xf32> to vector<8x256xf32>
    %cst_3 = arith.constant 0.000000e+00 : f32
    %7 = vector.broadcast %cst_3 : f32 to vector<8x256xf32>
    %8 = vector.extract_strided_slice %4 {offsets = [0, 0], sizes = [8, 256], strides = [1, 1]} : vector<16x2048xf32> to vector<8x256xf32>
    %cst_4 = arith.constant dense<0.000000e+00> : vector<8x8xf32>
    %9 = tpu.matmul %8, %6, %cst_4 {dimension_numbers = #tpu.dot_dimension_numbers<[1], [1], [0], [0], [0, 0, 1, 0], [], []>} : vector<8x256xf32>, vector<8x256xf32>, vector<8x8xf32> -> vector<8x8xf32>
    %cst_5 = arith.constant dense<0xFF800000> : vector<8xf32>
    %10 = vector.multi_reduction <maximumf>, %9, %cst_5 [1] : vector<8x8xf32> to vector<8xf32>
    %11 = vector.shape_cast %10 : vector<8xf32> to vector<8x1xf32>
    %12 = vector.broadcast %11 : vector<8x1xf32> to vector<8x8xf32>
    %13 = arith.subf %9, %12 : vector<8x8xf32>
    %14 = math.exp %13 : vector<8x8xf32>
    %cst_6 = arith.constant dense<0.000000e+00> : vector<8xf32>
    %15 = vector.multi_reduction <add>, %14, %cst_6 [1] : vector<8x8xf32> to vector<8xf32>
    %16 = vector.shape_cast %15 : vector<8xf32> to vector<8x1xf32>
    %17 = vector.broadcast %16 : vector<8x1xf32> to vector<8x8xf32>
    %18 = arith.divf %14, %17 : vector<8x8xf32>
    %19 = vector.extract_strided_slice %5 {offsets = [0, 0], sizes = [8, 256], strides = [1, 1]} : vector<16x2048xf32> to vector<8x256xf32>
    %cst_7 = arith.constant dense<0.000000e+00> : vector<8x256xf32>
    %20 = tpu.matmul %18, %19, %cst_7 {dimension_numbers = #tpu.dot_dimension_numbers<[1], [0], [0], [1], [0, 0, 1, 1], [], []>} : vector<8x8xf32>, vector<8x256xf32>, vector<8x256xf32> -> vector<8x256xf32>
    %21 = arith.addf %7, %20 : vector<8x256xf32>
    %22 = vector.extract_strided_slice %4 {offsets = [0, 256], sizes = [8, 256], strides = [1, 1]} : vector<16x2048xf32> to vector<8x256xf32>
    %cst_8 = arith.constant dense<0.000000e+00> : vector<8x8xf32>
    %23 = tpu.matmul %22, %6, %cst_8 {dimension_numbers = #tpu.dot_dimension_numbers<[1], [1], [0], [0], [0, 0, 1, 0], [], []>} : vector<8x256xf32>, vector<8x256xf32>, vector<8x8xf32> -> vector<8x8xf32>
    %cst_9 = arith.constant dense<0xFF800000> : vector<8xf32>
    %24 = vector.multi_reduction <maximumf>, %23, %cst_9 [1] : vector<8x8xf32> to vector<8xf32>
    %25 = vector.shape_cast %24 : vector<8xf32> to vector<8x1xf32>
    %26 = vector.broadcast %25 : vector<8x1xf32> to vector<8x8xf32>
    %27 = arith.subf %23, %26 : vector<8x8xf32>
    %28 = math.exp %27 : vector<8x8xf32>
    %cst_10 = arith.constant dense<0.000000e+00> : vector<8xf32>
    %29 = vector.multi_reduction <add>, %28, %cst_10 [1] : vector<8x8xf32> to vector<8xf32>
    %30 = vector.shape_cast %29 : vector<8xf32> to vector<8x1xf32>
    %31 = vector.broadcast %30 : vector<8x1xf32> to vector<8x8xf32>
    %32 = arith.divf %28, %31 : vector<8x8xf32>
    %33 = vector.extract_strided_slice %5 {offsets = [0, 256], sizes = [8, 256], strides = [1, 1]} : vector<16x2048xf32> to vector<8x256xf32>
    %cst_11 = arith.constant dense<0.000000e+00> : vector<8x256xf32>
    %34 = tpu.matmul %32, %33, %cst_11 {dimension_numbers = #tpu.dot_dimension_numbers<[1], [0], [0], [1], [0, 0, 1, 1], [], []>} : vector<8x8xf32>, vector<8x256xf32>, vector<8x256xf32> -> vector<8x256xf32>
    %35 = arith.addf %21, %34 : vector<8x256xf32>
    %36 = vector.extract_strided_slice %4 {offsets = [0, 512], sizes = [8, 256], strides = [1, 1]} : vector<16x2048xf32> to vector<8x256xf32>
    %cst_12 = arith.constant dense<0.000000e+00> : vector<8x8xf32>
    %37 = tpu.matmul %36, %6, %cst_12 {dimension_numbers = #tpu.dot_dimension_numbers<[1], [1], [0], [0], [0, 0, 1, 0], [], []>} : vector<8x256xf32>, vector<8x256xf32>, vector<8x8xf32> -> vector<8x8xf32>
    %cst_13 = arith.constant dense<0xFF800000> : vector<8xf32>
    %38 = vector.multi_reduction <maximumf>, %37, %cst_13 [1] : vector<8x8xf32> to vector<8xf32>
    %39 = vector.shape_cast %38 : vector<8xf32> to vector<8x1xf32>
    %40 = vector.broadcast %39 : vector<8x1xf32> to vector<8x8xf32>
    %41 = arith.subf %37, %40 : vector<8x8xf32>
    %42 = math.exp %41 : vector<8x8xf32>
    %cst_14 = arith.constant dense<0.000000e+00> : vector<8xf32>
    %43 = vector.multi_reduction <add>, %42, %cst_14 [1] : vector<8x8xf32> to vector<8xf32>
    %44 = vector.shape_cast %43 : vector<8xf32> to vector<8x1xf32>
    %45 = vector.broadcast %44 : vector<8x1xf32> to vector<8x8xf32>
    %46 = arith.divf %42, %45 : vector<8x8xf32>
    %47 = vector.extract_strided_slice %5 {offsets = [0, 512], sizes = [8, 256], strides = [1, 1]} : vector<16x2048xf32> to vector<8x256xf32>
    %cst_15 = arith.constant dense<0.000000e+00> : vector<8x256xf32>
    %48 = tpu.matmul %46, %47, %cst_15 {dimension_numbers = #tpu.dot_dimension_numbers<[1], [0], [0], [1], [0, 0, 1, 1], [], []>} : vector<8x8xf32>, vector<8x256xf32>, vector<8x256xf32> -> vector<8x256xf32>
    %49 = arith.addf %35, %48 : vector<8x256xf32>
    %50 = vector.extract_strided_slice %4 {offsets = [0, 768], sizes = [8, 256], strides = [1, 1]} : vector<16x2048xf32> to vector<8x256xf32>
    %cst_16 = arith.constant dense<0.000000e+00> : vector<8x8xf32>
    %51 = tpu.matmul %50, %6, %cst_16 {dimension_numbers = #tpu.dot_dimension_numbers<[1], [1], [0], [0], [0, 0, 1, 0], [], []>} : vector<8x256xf32>, vector<8x256xf32>, vector<8x8xf32> -> vector<8x8xf32>
    %cst_17 = arith.constant dense<0xFF800000> : vector<8xf32>
    %52 = vector.multi_reduction <maximumf>, %51, %cst_17 [1] : vector<8x8xf32> to vector<8xf32>
    %53 = vector.shape_cast %52 : vector<8xf32> to vector<8x1xf32>
    %54 = vector.broadcast %53 : vector<8x1xf32> to vector<8x8xf32>
    %55 = arith.subf %51, %54 : vector<8x8xf32>
    %56 = math.exp %55 : vector<8x8xf32>
    %cst_18 = arith.constant dense<0.000000e+00> : vector<8xf32>
    %57 = vector.multi_reduction <add>, %56, %cst_18 [1] : vector<8x8xf32> to vector<8xf32>
    %58 = vector.shape_cast %57 : vector<8xf32> to vector<8x1xf32>
    %59 = vector.broadcast %58 : vector<8x1xf32> to vector<8x8xf32>
    %60 = arith.divf %56, %59 : vector<8x8xf32>
    %61 = vector.extract_strided_slice %5 {offsets = [0, 768], sizes = [8, 256], strides = [1, 1]} : vector<16x2048xf32> to vector<8x256xf32>
    %cst_19 = arith.constant dense<0.000000e+00> : vector<8x256xf32>
    %62 = tpu.matmul %60, %61, %cst_19 {dimension_numbers = #tpu.dot_dimension_numbers<[1], [0], [0], [1], [0, 0, 1, 1], [], []>} : vector<8x8xf32>, vector<8x256xf32>, vector<8x256xf32> -> vector<8x256xf32>
    %63 = arith.addf %49, %62 : vector<8x256xf32>
    %64 = vector.extract_strided_slice %4 {offsets = [0, 1024], sizes = [8, 256], strides = [1, 1]} : vector<16x2048xf32> to vector<8x256xf32>
    %cst_20 = arith.constant dense<0.000000e+00> : vector<8x8xf32>
    %65 = tpu.matmul %64, %6, %cst_20 {dimension_numbers = #tpu.dot_dimension_numbers<[1], [1], [0], [0], [0, 0, 1, 0], [], []>} : vector<8x256xf32>, vector<8x256xf32>, vector<8x8xf32> -> vector<8x8xf32>
    %cst_21 = arith.constant dense<0xFF800000> : vector<8xf32>
    %66 = vector.multi_reduction <maximumf>, %65, %cst_21 [1] : vector<8x8xf32> to vector<8xf32>
    %67 = vector.shape_cast %66 : vector<8xf32> to vector<8x1xf32>
    %68 = vector.broadcast %67 : vector<8x1xf32> to vector<8x8xf32>
    %69 = arith.subf %65, %68 : vector<8x8xf32>
    %70 = math.exp %69 : vector<8x8xf32>
    %cst_22 = arith.constant dense<0.000000e+00> : vector<8xf32>
    %71 = vector.multi_reduction <add>, %70, %cst_22 [1] : vector<8x8xf32> to vector<8xf32>
    %72 = vector.shape_cast %71 : vector<8xf32> to vector<8x1xf32>
    %73 = vector.broadcast %72 : vector<8x1xf32> to vector<8x8xf32>
    %74 = arith.divf %70, %73 : vector<8x8xf32>
    %75 = vector.extract_strided_slice %5 {offsets = [0, 1024], sizes = [8, 256], strides = [1, 1]} : vector<16x2048xf32> to vector<8x256xf32>
    %cst_23 = arith.constant dense<0.000000e+00> : vector<8x256xf32>
    %76 = tpu.matmul %74, %75, %cst_23 {dimension_numbers = #tpu.dot_dimension_numbers<[1], [0], [0], [1], [0, 0, 1, 1], [], []>} : vector<8x8xf32>, vector<8x256xf32>, vector<8x256xf32> -> vector<8x256xf32>
    %77 = arith.addf %63, %76 : vector<8x256xf32>
    %78 = vector.extract_strided_slice %4 {offsets = [0, 1280], sizes = [8, 256], strides = [1, 1]} : vector<16x2048xf32> to vector<8x256xf32>
    %cst_24 = arith.constant dense<0.000000e+00> : vector<8x8xf32>
    %79 = tpu.matmul %78, %6, %cst_24 {dimension_numbers = #tpu.dot_dimension_numbers<[1], [1], [0], [0], [0, 0, 1, 0], [], []>} : vector<8x256xf32>, vector<8x256xf32>, vector<8x8xf32> -> vector<8x8xf32>
    %cst_25 = arith.constant dense<0xFF800000> : vector<8xf32>
    %80 = vector.multi_reduction <maximumf>, %79, %cst_25 [1] : vector<8x8xf32> to vector<8xf32>
    %81 = vector.shape_cast %80 : vector<8xf32> to vector<8x1xf32>
    %82 = vector.broadcast %81 : vector<8x1xf32> to vector<8x8xf32>
    %83 = arith.subf %79, %82 : vector<8x8xf32>
    %84 = math.exp %83 : vector<8x8xf32>
    %cst_26 = arith.constant dense<0.000000e+00> : vector<8xf32>
    %85 = vector.multi_reduction <add>, %84, %cst_26 [1] : vector<8x8xf32> to vector<8xf32>
    %86 = vector.shape_cast %85 : vector<8xf32> to vector<8x1xf32>
    %87 = vector.broadcast %86 : vector<8x1xf32> to vector<8x8xf32>
    %88 = arith.divf %84, %87 : vector<8x8xf32>
    %89 = vector.extract_strided_slice %5 {offsets = [0, 1280], sizes = [8, 256], strides = [1, 1]} : vector<16x2048xf32> to vector<8x256xf32>
    %cst_27 = arith.constant dense<0.000000e+00> : vector<8x256xf32>
    %90 = tpu.matmul %88, %89, %cst_27 {dimension_numbers = #tpu.dot_dimension_numbers<[1], [0], [0], [1], [0, 0, 1, 1], [], []>} : vector<8x8xf32>, vector<8x256xf32>, vector<8x256xf32> -> vector<8x256xf32>
    %91 = arith.addf %77, %90 : vector<8x256xf32>
    %92 = vector.extract_strided_slice %4 {offsets = [0, 1536], sizes = [8, 256], strides = [1, 1]} : vector<16x2048xf32> to vector<8x256xf32>
    %cst_28 = arith.constant dense<0.000000e+00> : vector<8x8xf32>
    %93 = tpu.matmul %92, %6, %cst_28 {dimension_numbers = #tpu.dot_dimension_numbers<[1], [1], [0], [0], [0, 0, 1, 0], [], []>} : vector<8x256xf32>, vector<8x256xf32>, vector<8x8xf32> -> vector<8x8xf32>
    %cst_29 = arith.constant dense<0xFF800000> : vector<8xf32>
    %94 = vector.multi_reduction <maximumf>, %93, %cst_29 [1] : vector<8x8xf32> to vector<8xf32>
    %95 = vector.shape_cast %94 : vector<8xf32> to vector<8x1xf32>
    %96 = vector.broadcast %95 : vector<8x1xf32> to vector<8x8xf32>
    %97 = arith.subf %93, %96 : vector<8x8xf32>
    %98 = math.exp %97 : vector<8x8xf32>
    %cst_30 = arith.constant dense<0.000000e+00> : vector<8xf32>
    %99 = vector.multi_reduction <add>, %98, %cst_30 [1] : vector<8x8xf32> to vector<8xf32>
    %100 = vector.shape_cast %99 : vector<8xf32> to vector<8x1xf32>
    %101 = vector.broadcast %100 : vector<8x1xf32> to vector<8x8xf32>
    %102 = arith.divf %98, %101 : vector<8x8xf32>
    %103 = vector.extract_strided_slice %5 {offsets = [0, 1536], sizes = [8, 256], strides = [1, 1]} : vector<16x2048xf32> to vector<8x256xf32>
    %cst_31 = arith.constant dense<0.000000e+00> : vector<8x256xf32>
    %104 = tpu.matmul %102, %103, %cst_31 {dimension_numbers = #tpu.dot_dimension_numbers<[1], [0], [0], [1], [0, 0, 1, 1], [], []>} : vector<8x8xf32>, vector<8x256xf32>, vector<8x256xf32> -> vector<8x256xf32>
    %105 = arith.addf %91, %104 : vector<8x256xf32>
    %106 = vector.extract_strided_slice %4 {offsets = [0, 1792], sizes = [8, 256], strides = [1, 1]} : vector<16x2048xf32> to vector<8x256xf32>
    %cst_32 = arith.constant dense<0.000000e+00> : vector<8x8xf32>
    %107 = tpu.matmul %106, %6, %cst_32 {dimension_numbers = #tpu.dot_dimension_numbers<[1], [1], [0], [0], [0, 0, 1, 0], [], []>} : vector<8x256xf32>, vector<8x256xf32>, vector<8x8xf32> -> vector<8x8xf32>
    %cst_33 = arith.constant dense<0xFF800000> : vector<8xf32>
    %108 = vector.multi_reduction <maximumf>, %107, %cst_33 [1] : vector<8x8xf32> to vector<8xf32>
    %109 = vector.shape_cast %108 : vector<8xf32> to vector<8x1xf32>
    %110 = vector.broadcast %109 : vector<8x1xf32> to vector<8x8xf32>
    %111 = arith.subf %107, %110 : vector<8x8xf32>
    %112 = math.exp %111 : vector<8x8xf32>
    %cst_34 = arith.constant dense<0.000000e+00> : vector<8xf32>
    %113 = vector.multi_reduction <add>, %112, %cst_34 [1] : vector<8x8xf32> to vector<8xf32>
    %114 = vector.shape_cast %113 : vector<8xf32> to vector<8x1xf32>
    %115 = vector.broadcast %114 : vector<8x1xf32> to vector<8x8xf32>
    %116 = arith.divf %112, %115 : vector<8x8xf32>
    %117 = vector.extract_strided_slice %5 {offsets = [0, 1792], sizes = [8, 256], strides = [1, 1]} : vector<16x2048xf32> to vector<8x256xf32>
    %cst_35 = arith.constant dense<0.000000e+00> : vector<8x256xf32>
    %118 = tpu.matmul %116, %117, %cst_35 {dimension_numbers = #tpu.dot_dimension_numbers<[1], [0], [0], [1], [0, 0, 1, 1], [], []>} : vector<8x8xf32>, vector<8x256xf32>, vector<8x256xf32> -> vector<8x256xf32>
    %119 = arith.addf %105, %118 : vector<8x256xf32>
    %120 = vector.extract_strided_slice %0 {offsets = [8, 0], sizes = [8, 256], strides = [1, 1]} : vector<16x256xf32> to vector<8x256xf32>
    %cst_36 = arith.constant 0.000000e+00 : f32
    %121 = vector.broadcast %cst_36 : f32 to vector<8x256xf32>
    %122 = vector.extract_strided_slice %4 {offsets = [8, 0], sizes = [8, 256], strides = [1, 1]} : vector<16x2048xf32> to vector<8x256xf32>
    %cst_37 = arith.constant dense<0.000000e+00> : vector<8x8xf32>
    %123 = tpu.matmul %122, %120, %cst_37 {dimension_numbers = #tpu.dot_dimension_numbers<[1], [1], [0], [0], [0, 0, 1, 0], [], []>} : vector<8x256xf32>, vector<8x256xf32>, vector<8x8xf32> -> vector<8x8xf32>
    %cst_38 = arith.constant dense<0xFF800000> : vector<8xf32>
    %124 = vector.multi_reduction <maximumf>, %123, %cst_38 [1] : vector<8x8xf32> to vector<8xf32>
    %125 = vector.shape_cast %124 : vector<8xf32> to vector<8x1xf32>
    %126 = vector.broadcast %125 : vector<8x1xf32> to vector<8x8xf32>
    %127 = arith.subf %123, %126 : vector<8x8xf32>
    %128 = math.exp %127 : vector<8x8xf32>
    %cst_39 = arith.constant dense<0.000000e+00> : vector<8xf32>
    %129 = vector.multi_reduction <add>, %128, %cst_39 [1] : vector<8x8xf32> to vector<8xf32>
    %130 = vector.shape_cast %129 : vector<8xf32> to vector<8x1xf32>
    %131 = vector.broadcast %130 : vector<8x1xf32> to vector<8x8xf32>
    %132 = arith.divf %128, %131 : vector<8x8xf32>
    %133 = vector.extract_strided_slice %5 {offsets = [8, 0], sizes = [8, 256], strides = [1, 1]} : vector<16x2048xf32> to vector<8x256xf32>
    %cst_40 = arith.constant dense<0.000000e+00> : vector<8x256xf32>
    %134 = tpu.matmul %132, %133, %cst_40 {dimension_numbers = #tpu.dot_dimension_numbers<[1], [0], [0], [1], [0, 0, 1, 1], [], []>} : vector<8x8xf32>, vector<8x256xf32>, vector<8x256xf32> -> vector<8x256xf32>
    %135 = arith.addf %121, %134 : vector<8x256xf32>
    %136 = vector.extract_strided_slice %4 {offsets = [8, 256], sizes = [8, 256], strides = [1, 1]} : vector<16x2048xf32> to vector<8x256xf32>
    %cst_41 = arith.constant dense<0.000000e+00> : vector<8x8xf32>
    %137 = tpu.matmul %136, %120, %cst_41 {dimension_numbers = #tpu.dot_dimension_numbers<[1], [1], [0], [0], [0, 0, 1, 0], [], []>} : vector<8x256xf32>, vector<8x256xf32>, vector<8x8xf32> -> vector<8x8xf32>
    %cst_42 = arith.constant dense<0xFF800000> : vector<8xf32>
    %138 = vector.multi_reduction <maximumf>, %137, %cst_42 [1] : vector<8x8xf32> to vector<8xf32>
    %139 = vector.shape_cast %138 : vector<8xf32> to vector<8x1xf32>
    %140 = vector.broadcast %139 : vector<8x1xf32> to vector<8x8xf32>
    %141 = arith.subf %137, %140 : vector<8x8xf32>
    %142 = math.exp %141 : vector<8x8xf32>
    %cst_43 = arith.constant dense<0.000000e+00> : vector<8xf32>
    %143 = vector.multi_reduction <add>, %142, %cst_43 [1] : vector<8x8xf32> to vector<8xf32>
    %144 = vector.shape_cast %143 : vector<8xf32> to vector<8x1xf32>
    %145 = vector.broadcast %144 : vector<8x1xf32> to vector<8x8xf32>
    %146 = arith.divf %142, %145 : vector<8x8xf32>
    %147 = vector.extract_strided_slice %5 {offsets = [8, 256], sizes = [8, 256], strides = [1, 1]} : vector<16x2048xf32> to vector<8x256xf32>
    %cst_44 = arith.constant dense<0.000000e+00> : vector<8x256xf32>
    %148 = tpu.matmul %146, %147, %cst_44 {dimension_numbers = #tpu.dot_dimension_numbers<[1], [0], [0], [1], [0, 0, 1, 1], [], []>} : vector<8x8xf32>, vector<8x256xf32>, vector<8x256xf32> -> vector<8x256xf32>
    %149 = arith.addf %135, %148 : vector<8x256xf32>
    %150 = vector.extract_strided_slice %4 {offsets = [8, 512], sizes = [8, 256], strides = [1, 1]} : vector<16x2048xf32> to vector<8x256xf32>
    %cst_45 = arith.constant dense<0.000000e+00> : vector<8x8xf32>
    %151 = tpu.matmul %150, %120, %cst_45 {dimension_numbers = #tpu.dot_dimension_numbers<[1], [1], [0], [0], [0, 0, 1, 0], [], []>} : vector<8x256xf32>, vector<8x256xf32>, vector<8x8xf32> -> vector<8x8xf32>
    %cst_46 = arith.constant dense<0xFF800000> : vector<8xf32>
    %152 = vector.multi_reduction <maximumf>, %151, %cst_46 [1] : vector<8x8xf32> to vector<8xf32>
    %153 = vector.shape_cast %152 : vector<8xf32> to vector<8x1xf32>
    %154 = vector.broadcast %153 : vector<8x1xf32> to vector<8x8xf32>
    %155 = arith.subf %151, %154 : vector<8x8xf32>
    %156 = math.exp %155 : vector<8x8xf32>
    %cst_47 = arith.constant dense<0.000000e+00> : vector<8xf32>
    %157 = vector.multi_reduction <add>, %156, %cst_47 [1] : vector<8x8xf32> to vector<8xf32>
    %158 = vector.shape_cast %157 : vector<8xf32> to vector<8x1xf32>
    %159 = vector.broadcast %158 : vector<8x1xf32> to vector<8x8xf32>
    %160 = arith.divf %156, %159 : vector<8x8xf32>
    %161 = vector.extract_strided_slice %5 {offsets = [8, 512], sizes = [8, 256], strides = [1, 1]} : vector<16x2048xf32> to vector<8x256xf32>
    %cst_48 = arith.constant dense<0.000000e+00> : vector<8x256xf32>
    %162 = tpu.matmul %160, %161, %cst_48 {dimension_numbers = #tpu.dot_dimension_numbers<[1], [0], [0], [1], [0, 0, 1, 1], [], []>} : vector<8x8xf32>, vector<8x256xf32>, vector<8x256xf32> -> vector<8x256xf32>
    %163 = arith.addf %149, %162 : vector<8x256xf32>
    %164 = vector.extract_strided_slice %4 {offsets = [8, 768], sizes = [8, 256], strides = [1, 1]} : vector<16x2048xf32> to vector<8x256xf32>
    %cst_49 = arith.constant dense<0.000000e+00> : vector<8x8xf32>
    %165 = tpu.matmul %164, %120, %cst_49 {dimension_numbers = #tpu.dot_dimension_numbers<[1], [1], [0], [0], [0, 0, 1, 0], [], []>} : vector<8x256xf32>, vector<8x256xf32>, vector<8x8xf32> -> vector<8x8xf32>
    %cst_50 = arith.constant dense<0xFF800000> : vector<8xf32>
    %166 = vector.multi_reduction <maximumf>, %165, %cst_50 [1] : vector<8x8xf32> to vector<8xf32>
    %167 = vector.shape_cast %166 : vector<8xf32> to vector<8x1xf32>
    %168 = vector.broadcast %167 : vector<8x1xf32> to vector<8x8xf32>
    %169 = arith.subf %165, %168 : vector<8x8xf32>
    %170 = math.exp %169 : vector<8x8xf32>
    %cst_51 = arith.constant dense<0.000000e+00> : vector<8xf32>
    %171 = vector.multi_reduction <add>, %170, %cst_51 [1] : vector<8x8xf32> to vector<8xf32>
    %172 = vector.shape_cast %171 : vector<8xf32> to vector<8x1xf32>
    %173 = vector.broadcast %172 : vector<8x1xf32> to vector<8x8xf32>
    %174 = arith.divf %170, %173 : vector<8x8xf32>
    %175 = vector.extract_strided_slice %5 {offsets = [8, 768], sizes = [8, 256], strides = [1, 1]} : vector<16x2048xf32> to vector<8x256xf32>
    %cst_52 = arith.constant dense<0.000000e+00> : vector<8x256xf32>
    %176 = tpu.matmul %174, %175, %cst_52 {dimension_numbers = #tpu.dot_dimension_numbers<[1], [0], [0], [1], [0, 0, 1, 1], [], []>} : vector<8x8xf32>, vector<8x256xf32>, vector<8x256xf32> -> vector<8x256xf32>
    %177 = arith.addf %163, %176 : vector<8x256xf32>
    %178 = vector.extract_strided_slice %4 {offsets = [8, 1024], sizes = [8, 256], strides = [1, 1]} : vector<16x2048xf32> to vector<8x256xf32>
    %cst_53 = arith.constant dense<0.000000e+00> : vector<8x8xf32>
    %179 = tpu.matmul %178, %120, %cst_53 {dimension_numbers = #tpu.dot_dimension_numbers<[1], [1], [0], [0], [0, 0, 1, 0], [], []>} : vector<8x256xf32>, vector<8x256xf32>, vector<8x8xf32> -> vector<8x8xf32>
    %cst_54 = arith.constant dense<0xFF800000> : vector<8xf32>
    %180 = vector.multi_reduction <maximumf>, %179, %cst_54 [1] : vector<8x8xf32> to vector<8xf32>
    %181 = vector.shape_cast %180 : vector<8xf32> to vector<8x1xf32>
    %182 = vector.broadcast %181 : vector<8x1xf32> to vector<8x8xf32>
    %183 = arith.subf %179, %182 : vector<8x8xf32>
    %184 = math.exp %183 : vector<8x8xf32>
    %cst_55 = arith.constant dense<0.000000e+00> : vector<8xf32>
    %185 = vector.multi_reduction <add>, %184, %cst_55 [1] : vector<8x8xf32> to vector<8xf32>
    %186 = vector.shape_cast %185 : vector<8xf32> to vector<8x1xf32>
    %187 = vector.broadcast %186 : vector<8x1xf32> to vector<8x8xf32>
    %188 = arith.divf %184, %187 : vector<8x8xf32>
    %189 = vector.extract_strided_slice %5 {offsets = [8, 1024], sizes = [8, 256], strides = [1, 1]} : vector<16x2048xf32> to vector<8x256xf32>
    %cst_56 = arith.constant dense<0.000000e+00> : vector<8x256xf32>
    %190 = tpu.matmul %188, %189, %cst_56 {dimension_numbers = #tpu.dot_dimension_numbers<[1], [0], [0], [1], [0, 0, 1, 1], [], []>} : vector<8x8xf32>, vector<8x256xf32>, vector<8x256xf32> -> vector<8x256xf32>
    %191 = arith.addf %177, %190 : vector<8x256xf32>
    %192 = vector.extract_strided_slice %4 {offsets = [8, 1280], sizes = [8, 256], strides = [1, 1]} : vector<16x2048xf32> to vector<8x256xf32>
    %cst_57 = arith.constant dense<0.000000e+00> : vector<8x8xf32>
    %193 = tpu.matmul %192, %120, %cst_57 {dimension_numbers = #tpu.dot_dimension_numbers<[1], [1], [0], [0], [0, 0, 1, 0], [], []>} : vector<8x256xf32>, vector<8x256xf32>, vector<8x8xf32> -> vector<8x8xf32>
    %cst_58 = arith.constant dense<0xFF800000> : vector<8xf32>
    %194 = vector.multi_reduction <maximumf>, %193, %cst_58 [1] : vector<8x8xf32> to vector<8xf32>
    %195 = vector.shape_cast %194 : vector<8xf32> to vector<8x1xf32>
    %196 = vector.broadcast %195 : vector<8x1xf32> to vector<8x8xf32>
    %197 = arith.subf %193, %196 : vector<8x8xf32>
    %198 = math.exp %197 : vector<8x8xf32>
    %cst_59 = arith.constant dense<0.000000e+00> : vector<8xf32>
    %199 = vector.multi_reduction <add>, %198, %cst_59 [1] : vector<8x8xf32> to vector<8xf32>
    %200 = vector.shape_cast %199 : vector<8xf32> to vector<8x1xf32>
    %201 = vector.broadcast %200 : vector<8x1xf32> to vector<8x8xf32>
    %202 = arith.divf %198, %201 : vector<8x8xf32>
    %203 = vector.extract_strided_slice %5 {offsets = [8, 1280], sizes = [8, 256], strides = [1, 1]} : vector<16x2048xf32> to vector<8x256xf32>
    %cst_60 = arith.constant dense<0.000000e+00> : vector<8x256xf32>
    %204 = tpu.matmul %202, %203, %cst_60 {dimension_numbers = #tpu.dot_dimension_numbers<[1], [0], [0], [1], [0, 0, 1, 1], [], []>} : vector<8x8xf32>, vector<8x256xf32>, vector<8x256xf32> -> vector<8x256xf32>
    %205 = arith.addf %191, %204 : vector<8x256xf32>
    %206 = vector.extract_strided_slice %4 {offsets = [8, 1536], sizes = [8, 256], strides = [1, 1]} : vector<16x2048xf32> to vector<8x256xf32>
    %cst_61 = arith.constant dense<0.000000e+00> : vector<8x8xf32>
    %207 = tpu.matmul %206, %120, %cst_61 {dimension_numbers = #tpu.dot_dimension_numbers<[1], [1], [0], [0], [0, 0, 1, 0], [], []>} : vector<8x256xf32>, vector<8x256xf32>, vector<8x8xf32> -> vector<8x8xf32>
    %cst_62 = arith.constant dense<0xFF800000> : vector<8xf32>
    %208 = vector.multi_reduction <maximumf>, %207, %cst_62 [1] : vector<8x8xf32> to vector<8xf32>
    %209 = vector.shape_cast %208 : vector<8xf32> to vector<8x1xf32>
    %210 = vector.broadcast %209 : vector<8x1xf32> to vector<8x8xf32>
    %211 = arith.subf %207, %210 : vector<8x8xf32>
    %212 = math.exp %211 : vector<8x8xf32>
    %cst_63 = arith.constant dense<0.000000e+00> : vector<8xf32>
    %213 = vector.multi_reduction <add>, %212, %cst_63 [1] : vector<8x8xf32> to vector<8xf32>
    %214 = vector.shape_cast %213 : vector<8xf32> to vector<8x1xf32>
    %215 = vector.broadcast %214 : vector<8x1xf32> to vector<8x8xf32>
    %216 = arith.divf %212, %215 : vector<8x8xf32>
    %217 = vector.extract_strided_slice %5 {offsets = [8, 1536], sizes = [8, 256], strides = [1, 1]} : vector<16x2048xf32> to vector<8x256xf32>
    %cst_64 = arith.constant dense<0.000000e+00> : vector<8x256xf32>
    %218 = tpu.matmul %216, %217, %cst_64 {dimension_numbers = #tpu.dot_dimension_numbers<[1], [0], [0], [1], [0, 0, 1, 1], [], []>} : vector<8x8xf32>, vector<8x256xf32>, vector<8x256xf32> -> vector<8x256xf32>
    %219 = arith.addf %205, %218 : vector<8x256xf32>
    %220 = vector.extract_strided_slice %4 {offsets = [8, 1792], sizes = [8, 256], strides = [1, 1]} : vector<16x2048xf32> to vector<8x256xf32>
    %cst_65 = arith.constant dense<0.000000e+00> : vector<8x8xf32>
    %221 = tpu.matmul %220, %120, %cst_65 {dimension_numbers = #tpu.dot_dimension_numbers<[1], [1], [0], [0], [0, 0, 1, 0], [], []>} : vector<8x256xf32>, vector<8x256xf32>, vector<8x8xf32> -> vector<8x8xf32>
    %cst_66 = arith.constant dense<0xFF800000> : vector<8xf32>
    %222 = vector.multi_reduction <maximumf>, %221, %cst_66 [1] : vector<8x8xf32> to vector<8xf32>
    %223 = vector.shape_cast %222 : vector<8xf32> to vector<8x1xf32>
    %224 = vector.broadcast %223 : vector<8x1xf32> to vector<8x8xf32>
    %225 = arith.subf %221, %224 : vector<8x8xf32>
    %226 = math.exp %225 : vector<8x8xf32>
    %cst_67 = arith.constant dense<0.000000e+00> : vector<8xf32>
    %227 = vector.multi_reduction <add>, %226, %cst_67 [1] : vector<8x8xf32> to vector<8xf32>
    %228 = vector.shape_cast %227 : vector<8xf32> to vector<8x1xf32>
    %229 = vector.broadcast %228 : vector<8x1xf32> to vector<8x8xf32>
    %230 = arith.divf %226, %229 : vector<8x8xf32>
    %231 = vector.extract_strided_slice %5 {offsets = [8, 1792], sizes = [8, 256], strides = [1, 1]} : vector<16x2048xf32> to vector<8x256xf32>
    %cst_68 = arith.constant dense<0.000000e+00> : vector<8x256xf32>
    %232 = tpu.matmul %230, %231, %cst_68 {dimension_numbers = #tpu.dot_dimension_numbers<[1], [0], [0], [1], [0, 0, 1, 1], [], []>} : vector<8x8xf32>, vector<8x256xf32>, vector<8x256xf32> -> vector<8x256xf32>
    %233 = arith.addf %219, %232 : vector<8x256xf32>
    %234 = tpu.concatenate %119, %233 in 0 : vector<8x256xf32>, vector<8x256xf32> -> vector<16x256xf32>
    %c0_69 = arith.constant 0 : index
    %c0_70 = arith.constant 0 : index
    %235 = vector.load %arg5[%c0_69, %c0_70] : memref<1x256xf32, #tpu.memory_space<vmem>>, vector<1x256xf32>
    %236 = vector.broadcast %235 : vector<1x256xf32> to vector<16x256xf32>
    %237 = arith.addf %234, %236 : vector<16x256xf32>
    %cst_71 = arith.constant 2.000000e+00 : f32
    %238 = vector.broadcast %cst_71 : f32 to vector<16x256xf32>
    %239 = arith.mulf %238, %237 : vector<16x256xf32>
    %c0_72 = arith.constant 0 : index
    %c0_73 = arith.constant 0 : index
    %240 = vector.load %arg6[%c0_72, %c0_73] : memref<1x256xf32, #tpu.memory_space<vmem>>, vector<1x256xf32>
    %c0_74 = arith.constant 0 : index
    %c0_75 = arith.constant 0 : index
    %241 = vector.load %arg7[%c0_74, %c0_75] : memref<1x256xf32, #tpu.memory_space<vmem>>, vector<1x256xf32>
    %cst_76 = arith.constant dense<0.000000e+00> : vector<16xf32>
    %242 = vector.multi_reduction <add>, %239, %cst_76 [1] : vector<16x256xf32> to vector<16xf32>
    %243 = vector.shape_cast %242 : vector<16xf32> to vector<16x1xf32>
    %cst_77 = arith.constant 2.560000e+02 : f32
    %244 = vector.broadcast %cst_77 : f32 to vector<16x1xf32>
    %245 = arith.divf %243, %244 : vector<16x1xf32>
    %246 = vector.broadcast %245 : vector<16x1xf32> to vector<16x256xf32>
    %247 = arith.subf %239, %246 : vector<16x256xf32>
    %248 = arith.mulf %247, %247 : vector<16x256xf32>
    %cst_78 = arith.constant dense<0.000000e+00> : vector<16xf32>
    %249 = vector.multi_reduction <add>, %248, %cst_78 [1] : vector<16x256xf32> to vector<16xf32>
    %250 = vector.shape_cast %249 : vector<16xf32> to vector<16x1xf32>
    %cst_79 = arith.constant 2.560000e+02 : f32
    %251 = vector.broadcast %cst_79 : f32 to vector<16x1xf32>
    %252 = arith.divf %250, %251 : vector<16x1xf32>
    %253 = vector.broadcast %245 : vector<16x1xf32> to vector<16x256xf32>
    %254 = arith.subf %239, %253 : vector<16x256xf32>
    %cst_80 = arith.constant 9.99999974E-6 : f32
    %255 = vector.broadcast %cst_80 : f32 to vector<16x1xf32>
    %256 = arith.addf %252, %255 : vector<16x1xf32>
    %257 = math.rsqrt %256 : vector<16x1xf32>
    %258 = vector.broadcast %257 : vector<16x1xf32> to vector<16x256xf32>
    %259 = arith.mulf %254, %258 : vector<16x256xf32>
    %260 = vector.broadcast %240 : vector<1x256xf32> to vector<16x256xf32>
    %261 = arith.mulf %259, %260 : vector<16x256xf32>
    %262 = vector.broadcast %241 : vector<1x256xf32> to vector<16x256xf32>
    %263 = arith.addf %261, %262 : vector<16x256xf32>
    %264 = arith.truncf %263 : vector<16x256xf32> to vector<16x256xbf16>
    %c0_81 = arith.constant 0 : index
    %c0_82 = arith.constant 0 : index
    %265 = vector.load %arg3[%c0_81, %c0_82] : memref<256x2048xbf16, #tpu.memory_space<vmem>>, vector<256x2048xbf16>
    %cst_83 = arith.constant dense<0.000000e+00> : vector<16x2048xf32>
    %266 = tpu.matmul %264, %265, %cst_83 {dimension_numbers = #tpu.dot_dimension_numbers<[1], [0], [0], [1], [0, 0, 1, 1], [], []>} : vector<16x256xbf16>, vector<256x2048xbf16>, vector<16x2048xf32> -> vector<16x2048xf32>
    %c0_84 = arith.constant 0 : index
    %c0_85 = arith.constant 0 : index
    %267 = vector.load %arg8[%c0_84, %c0_85] : memref<1x2048xf32, #tpu.memory_space<vmem>>, vector<1x2048xf32>
    %268 = vector.broadcast %267 : vector<1x2048xf32> to vector<16x2048xf32>
    %269 = arith.addf %266, %268 : vector<16x2048xf32>
    %270 = vector.extract_strided_slice %269 {offsets = [0, 0], sizes = [16, 1024], strides = [1, 1]} : vector<16x2048xf32> to vector<16x1024xf32>
    %271 = vector.extract_strided_slice %269 {offsets = [0, 1024], sizes = [16, 1024], strides = [1, 1]} : vector<16x2048xf32> to vector<16x1024xf32>
    %cst_86 = arith.constant 5.000000e-01 : f32
    %272 = vector.broadcast %cst_86 : f32 to vector<16x1024xf32>
    %273 = arith.mulf %271, %272 : vector<16x1024xf32>
    %cst_87 = arith.constant 0.707106769 : f32
    %274 = vector.broadcast %cst_87 : f32 to vector<16x1024xf32>
    %275 = arith.mulf %271, %274 : vector<16x1024xf32>
    %276 = math.absf %275 : vector<16x1024xf32>
    %cst_88 = arith.constant 0.327591091 : f32
    %277 = vector.broadcast %cst_88 : f32 to vector<16x1024xf32>
    %278 = arith.mulf %277, %276 : vector<16x1024xf32>
    %cst_89 = arith.constant 1.000000e+00 : f32
    %279 = vector.broadcast %cst_89 : f32 to vector<16x1024xf32>
    %280 = arith.addf %279, %278 : vector<16x1024xf32>
    %cst_90 = arith.constant 1.000000e+00 : f32
    %281 = vector.broadcast %cst_90 : f32 to vector<16x1024xf32>
    %282 = arith.divf %281, %280 : vector<16x1024xf32>
    %cst_91 = arith.constant 1.06140542 : f32
    %283 = vector.broadcast %cst_91 : f32 to vector<16x1024xf32>
    %284 = arith.mulf %283, %282 : vector<16x1024xf32>
    %cst_92 = arith.constant -1.45315206 : f32
    %285 = vector.broadcast %cst_92 : f32 to vector<16x1024xf32>
    %286 = arith.addf %284, %285 : vector<16x1024xf32>
    %287 = arith.mulf %286, %282 : vector<16x1024xf32>
    %cst_93 = arith.constant 1.42141378 : f32
    %288 = vector.broadcast %cst_93 : f32 to vector<16x1024xf32>
    %289 = arith.addf %287, %288 : vector<16x1024xf32>
    %290 = arith.mulf %289, %282 : vector<16x1024xf32>
    %cst_94 = arith.constant -0.284496725 : f32
    %291 = vector.broadcast %cst_94 : f32 to vector<16x1024xf32>
    %292 = arith.addf %290, %291 : vector<16x1024xf32>
    %293 = arith.mulf %292, %282 : vector<16x1024xf32>
    %cst_95 = arith.constant 0.254829586 : f32
    %294 = vector.broadcast %cst_95 : f32 to vector<16x1024xf32>
    %295 = arith.addf %293, %294 : vector<16x1024xf32>
    %296 = arith.mulf %295, %282 : vector<16x1024xf32>
    %cst_96 = arith.constant 0.000000e+00 : f32
    %297 = vector.broadcast %cst_96 : f32 to vector<16x1024xf32>
    %298 = arith.subf %297, %276 : vector<16x1024xf32>
    %299 = arith.mulf %298, %276 : vector<16x1024xf32>
    %300 = math.exp %299 : vector<16x1024xf32>
    %301 = arith.mulf %296, %300 : vector<16x1024xf32>
    %cst_97 = arith.constant 1.000000e+00 : f32
    %302 = vector.broadcast %cst_97 : f32 to vector<16x1024xf32>
    %303 = arith.subf %302, %301 : vector<16x1024xf32>
    %cst_98 = arith.constant 0.000000e+00 : f32
    %304 = vector.broadcast %cst_98 : f32 to vector<16x1024xf32>
    %305 = arith.cmpf oge, %275, %304 : vector<16x1024xf32>
    %cst_99 = arith.constant 0.000000e+00 : f32
    %306 = vector.broadcast %cst_99 : f32 to vector<16x1024xf32>
    %307 = arith.subf %306, %303 : vector<16x1024xf32>
    %308 = arith.select %305, %303, %307 : vector<16x1024xi1>, vector<16x1024xf32>
    %cst_100 = arith.constant 1.000000e+00 : f32
    %309 = vector.broadcast %cst_100 : f32 to vector<16x1024xf32>
    %310 = arith.addf %309, %308 : vector<16x1024xf32>
    %311 = arith.mulf %273, %310 : vector<16x1024xf32>
    %312 = arith.mulf %270, %311 : vector<16x1024xf32>
    %313 = arith.truncf %312 : vector<16x1024xf32> to vector<16x1024xbf16>
    %c0_101 = arith.constant 0 : index
    %c0_102 = arith.constant 0 : index
    %314 = vector.load %arg4[%c0_101, %c0_102] : memref<1024x256xbf16, #tpu.memory_space<vmem>>, vector<1024x256xbf16>
    %cst_103 = arith.constant dense<0.000000e+00> : vector<16x256xf32>
    %315 = tpu.matmul %313, %314, %cst_103 {dimension_numbers = #tpu.dot_dimension_numbers<[1], [0], [0], [1], [0, 0, 1, 1], [], []>} : vector<16x1024xbf16>, vector<1024x256xbf16>, vector<16x256xf32> -> vector<16x256xf32>
    %c0_104 = arith.constant 0 : index
    %c0_105 = arith.constant 0 : index
    %316 = vector.load %arg9[%c0_104, %c0_105] : memref<1x256xf32, #tpu.memory_space<vmem>>, vector<1x256xf32>
    %317 = vector.broadcast %316 : vector<1x256xf32> to vector<16x256xf32>
    %318 = arith.addf %315, %317 : vector<16x256xf32>
    %cst_106 = arith.constant 2.000000e+00 : f32
    %319 = vector.broadcast %cst_106 : f32 to vector<16x256xf32>
    %320 = arith.mulf %319, %318 : vector<16x256xf32>
    %c0_107 = arith.constant 0 : index
    %c0_108 = arith.constant 0 : index
    %321 = vector.load %arg10[%c0_107, %c0_108] : memref<1x256xf32, #tpu.memory_space<vmem>>, vector<1x256xf32>
    %c0_109 = arith.constant 0 : index
    %c0_110 = arith.constant 0 : index
    %322 = vector.load %arg11[%c0_109, %c0_110] : memref<1x256xf32, #tpu.memory_space<vmem>>, vector<1x256xf32>
    %cst_111 = arith.constant dense<0.000000e+00> : vector<16xf32>
    %323 = vector.multi_reduction <add>, %320, %cst_111 [1] : vector<16x256xf32> to vector<16xf32>
    %324 = vector.shape_cast %323 : vector<16xf32> to vector<16x1xf32>
    %cst_112 = arith.constant 2.560000e+02 : f32
    %325 = vector.broadcast %cst_112 : f32 to vector<16x1xf32>
    %326 = arith.divf %324, %325 : vector<16x1xf32>
    %327 = vector.broadcast %326 : vector<16x1xf32> to vector<16x256xf32>
    %328 = arith.subf %320, %327 : vector<16x256xf32>
    %329 = arith.mulf %328, %328 : vector<16x256xf32>
    %cst_113 = arith.constant dense<0.000000e+00> : vector<16xf32>
    %330 = vector.multi_reduction <add>, %329, %cst_113 [1] : vector<16x256xf32> to vector<16xf32>
    %331 = vector.shape_cast %330 : vector<16xf32> to vector<16x1xf32>
    %cst_114 = arith.constant 2.560000e+02 : f32
    %332 = vector.broadcast %cst_114 : f32 to vector<16x1xf32>
    %333 = arith.divf %331, %332 : vector<16x1xf32>
    %334 = vector.broadcast %326 : vector<16x1xf32> to vector<16x256xf32>
    %335 = arith.subf %320, %334 : vector<16x256xf32>
    %cst_115 = arith.constant 9.99999974E-6 : f32
    %336 = vector.broadcast %cst_115 : f32 to vector<16x1xf32>
    %337 = arith.addf %333, %336 : vector<16x1xf32>
    %338 = math.rsqrt %337 : vector<16x1xf32>
    %339 = vector.broadcast %338 : vector<16x1xf32> to vector<16x256xf32>
    %340 = arith.mulf %335, %339 : vector<16x256xf32>
    %341 = vector.broadcast %321 : vector<1x256xf32> to vector<16x256xf32>
    %342 = arith.mulf %340, %341 : vector<16x256xf32>
    %343 = vector.broadcast %322 : vector<1x256xf32> to vector<16x256xf32>
    %344 = arith.addf %342, %343 : vector<16x256xf32>
    %c0_116 = arith.constant 0 : index
    %c0_117 = arith.constant 0 : index
    %345 = vector.load %arg12[%c0_116, %c0_117] : memref<16x256xf32, #tpu.memory_space<vmem>>, vector<16x256xf32>
    tpu.vector_store %arg12[%c0_116, %c0_117], %344 {strides = array<i32>} : memref<16x256xf32, #tpu.memory_space<vmem>>, vector<16x256xf32>,
    return
  }
  func.func @transform_0(%arg0: i32) -> (i32, i32) {
    %c0_i32 = arith.constant 0 : i32
    %c0_i32_0 = arith.constant 0 : i32
    %c0_i32_1 = arith.constant 0 : i32
    return %c0_i32, %c0_i32_0 : i32, i32
  }
  func.func @transform_1(%arg0: i32) -> (i32, i32) {
    %c0_i32 = arith.constant 0 : i32
    %c0_i32_0 = arith.constant 0 : i32
    %c0_i32_1 = arith.constant 0 : i32
    return %c0_i32, %c0_i32_0 : i32, i32
  }
  func.func @transform_2(%arg0: i32) -> (i32, i32) {
    %c0_i32 = arith.constant 0 : i32
    %c0_i32_0 = arith.constant 0 : i32
    %c0_i32_1 = arith.constant 0 : i32
    return %c0_i32, %c0_i32_0 : i32, i32
  }
  func.func @transform_3(%arg0: i32) -> (i32, i32) {
    %c0_i32 = arith.constant 0 : i32
    %c0_i32_0 = arith.constant 0 : i32
    %c0_i32_1 = arith.constant 0 : i32
    return %c0_i32, %c0_i32_0 : i32, i32
  }
  func.func @transform_4(%arg0: i32) -> (i32, i32) {
    %c0_i32 = arith.constant 0 : i32
    %c0_i32_0 = arith.constant 0 : i32
    %c0_i32_1 = arith.constant 0 : i32
    return %c0_i32, %c0_i32_0 : i32, i32
  }
  func.func @transform_5(%arg0: i32) -> (i32, i32) {
    %c0_i32 = arith.constant 0 : i32
    %c0_i32_0 = arith.constant 0 : i32
    %c0_i32_1 = arith.constant 0 : i32
    return %c0_i32, %c0_i32_0 : i32, i32
  }
  func.func @transform_6(%arg0: i32) -> (i32, i32) {
    %c0_i32 = arith.constant 0 : i32
    %c0_i32_0 = arith.constant 0 : i32
    %c0_i32_1 = arith.constant 0 : i32
    return %c0_i32, %c0_i32_0 : i32, i32
  }
  func.func @transform_7(%arg0: i32) -> (i32, i32) {
    %c0_i32 = arith.constant 0 : i32
    %c0_i32_0 = arith.constant 0 : i32
    %c0_i32_1 = arith.constant 0 : i32
    return %c0_i32, %c0_i32_0 : i32, i32
  }
  func.func @transform_8(%arg0: i32) -> (i32, i32) {
    %c0_i32 = arith.constant 0 : i32
    %c0_i32_0 = arith.constant 0 : i32
    %c0_i32_1 = arith.constant 0 : i32
    return %c0_i32, %c0_i32_0 : i32, i32
  }
  func.func @transform_9(%arg0: i32) -> (i32, i32) {
    %c0_i32 = arith.constant 0 : i32
    %c0_i32_0 = arith.constant 0 : i32
    %c0_i32_1 = arith.constant 0 : i32
    return %c0_i32, %c0_i32_0 : i32, i32
  }
  func.func @transform_10(%arg0: i32) -> (i32, i32) {
    %c0_i32 = arith.constant 0 : i32
    %c0_i32_0 = arith.constant 0 : i32
    %c0_i32_1 = arith.constant 0 : i32
    return %c0_i32, %c0_i32_0 : i32, i32
  }
  func.func @transform_11(%arg0: i32) -> (i32, i32) {
    %c0_i32 = arith.constant 0 : i32
    %c0_i32_0 = arith.constant 0 : i32
    %c0_i32_1 = arith.constant 0 : i32
    return %c0_i32, %c0_i32_0 : i32, i32
  }
}

</mosaic_0001>

<bundles_post_ra>
// kernel: transformer_layer.1
= control target key start
LH: loop header
LB: loop body
LE: loop exit
PB: predicated region body
PF: predicated region fallthrough
CT: control target
= control target key end

     0   :  { %16 = vsyncpa [#allocation3], 0  ;;  %s12470_s0 = inlined_call_operand.vmem [shape: f32[16,256], index: 0, kind: input, shape index: {}]   ;;  %s12471_s1 = inlined_call_operand.hbm [shape: bf16[256,4096], index: 1, kind: input, shape index: {}]   ;;  %s12472_s2 = inlined_call_operand.hbm [shape: bf16[256,2048], index: 2, kind: input, shape index: {}]   ;;  %s12473_s3 = inlined_call_operand.hbm [shape: bf16[1024,256], index: 3, kind: input, shape index: {}]   ;;  %s12474_s4 = inlined_call_operand.hbm [shape: f32[1,256], index: 4, kind: input, shape index: {}]   ;;  %s12475_s5 = inlined_call_operand.hbm [shape: f32[1,256], index: 5, kind: input, shape index: {}]   ;;  %s12476_s6 = inlined_call_operand.hbm [shape: f32[1,256], index: 6, kind: input, shape index: {}]   ;;  %s12477_s7 = inlined_call_operand.hbm [shape: f32[1,2048], index: 7, kind: input, shape index: {}]   ;;  %s12478_s8 = inlined_call_operand.hbm [shape: f32[1,256], index: 8, kind: input, shape index: {}]   ;;  %s12479_s9 = inlined_call_operand.hbm [shape: f32[1,256], index: 9, kind: input, shape index: {}]   ;;  %s12480_s10 = inlined_call_operand.hbm [shape: f32[1,256], index: 10, kind: input, shape index: {}]   ;;  %s12481_s11 = inlined_call_operand.vmem [shape: f32[16,256], index: 11, kind: output, shape index: {}]  }
   0x1   :  { %17 = vsyncpa [#allocation5], 0 }
   0x2   :  { %18 = vsyncpa [#allocation8], 0 }
   0x3   :  { %19 = vsyncpa [#allocation11], 0 }
   0x4   :  { %20 = vsyncpa [#allocation14], 0 }
   0x5   :  { %21 = vsyncpa [#allocation17], 0  ;;  %s11445_s17 = smov [#allocation4]  }
   0x6   :  { %s41_s18 = sshll.u32 %s11445_s17, 4  ;;  %s42_s18 = int_to_ptr.vmem [resolvable:$true] %s41_s18 }
   0x7   :  { %s11241_s19 = scalar_lea.vmem %s42_s18, 32768  ;;  %p11246_p1 = scmp.lt.s32.totalorder %s42_s18, %s42_s18 }
   0x8   :  { %p11242_p0 = scmp.ne.s32.totalorder %s42_s18, %s11241_s19  ;;  %p11247_p2 = scmp.lt.s32.totalorder %s11241_s19, %s11241_s19 }
   0xa   :  { %p11248_p3 = por %p11247_p2, %p11246_p1 }
   0xc   :  { %p11249_p4 = pnand %p11248_p3, %p11242_p0 }
   0xe   :  { %11252 = shalt.err (!%p11249_p4)
}
   0xf   :  { %s11446_s20 = smov 1024   ;;  %s11447_s21 = smov 64  }
  0x10   :  { %47 = dma.hbm_to_vmem [thread:$0]  %s12472_s2, 32768, %s42_s18, [#allocation5], %s11446_s20, %s11446_s20, %s11447_s21  }
  0x11   :  { %s11448_s24 = smov [#allocation7]   ;;  %s11449_s26 = smov [#allocation10]  }
  0x12   :  { %s66_s25 = sshll.u32 %s11448_s24, 4  ;;  %s86_s27 = sshll.u32 %s11449_s26, 4  ;;  %s67_s25 = int_to_ptr.vmem [resolvable:$true] %s66_s25  ;;  %s87_s27 = int_to_ptr.vmem [resolvable:$true] %s86_s27 }
  0x13   :  { %s11261_s28 = scalar_lea.vmem %s67_s25, 32  ;;  %p11266_p6 = scmp.lt.s32.totalorder %s67_s25, %s67_s25 }
  0x14   :  { %p11262_p5 = scmp.ne.s32.totalorder %s67_s25, %s11261_s28  ;;  %p11267_p7 = scmp.lt.s32.totalorder %s11261_s28, %s11261_s28 }
  0x16   :  { %p11268_p8 = por %p11267_p7, %p11266_p6 }
  0x18   :  { %p11269_p9 = pnand %p11268_p8, %p11262_p5 }
  0x1a   :  { %11272 = shalt.err (!%p11269_p9)
}
  0x1b   :  { %69 = dma.hbm_to_vmem [thread:$0]  %s12474_s4, 32, %s67_s25, [#allocation8]  }
  0x1c   :  { %s11281_s12 = scalar_lea.vmem %s87_s27, 32  ;;  %p11286_p11 = scmp.lt.s32.totalorder %s87_s27, %s87_s27 }
  0x1d   :  { %p11282_p10 = scmp.ne.s32.totalorder %s87_s27, %s11281_s12  ;;  %p11287_p12 = scmp.lt.s32.totalorder %s11281_s12, %s11281_s12 }
  0x1f   :  { %p11288_p13 = por %p11287_p12, %p11286_p11 }
  0x21   :  { %p11289_p0 = pnand %p11288_p13, %p11282_p10 }
  0x23   :  { %11292 = shalt.err (!%p11289_p0)
}
  0x24   :  { %89 = dma.hbm_to_vmem [thread:$0]  %s12476_s6, 32, %s87_s27, [#allocation11]  }
  0x25   :  { %s11450_s14 = smov [#allocation13]   ;;  %s11451_s16 = smov [#allocation2]  }
  0x26   :  { %s106_s15 = sshll.u32 %s11450_s14, 4  ;;  %s29_s17 = sshll.u32 %s11451_s16, 4  ;;  %s107_s15 = int_to_ptr.vmem [resolvable:$true] %s106_s15  ;;  %s30_s17 = int_to_ptr.vmem [resolvable:$true] %s29_s17 }
  0x27   :  { %s11301_s18 = scalar_lea.vmem %s107_s15, 32  ;;  %p11306_p2 = scmp.lt.s32.totalorder %s107_s15, %s107_s15 }
  0x28   :  { %p11302_p1 = scmp.ne.s32.totalorder %s107_s15, %s11301_s18  ;;  %p11307_p3 = scmp.lt.s32.totalorder %s11301_s18, %s11301_s18 }
  0x2a   :  { %p11308_p4 = por %p11307_p3, %p11306_p2 }
  0x2c   :  { %p11309_p5 = pnand %p11308_p4, %p11302_p1 }
  0x2e   :  { %11312 = shalt.err (!%p11309_p5)
}
  0x2f   :  { %109 = dma.hbm_to_vmem [thread:$0]  %s12478_s8, 32, %s107_s15, [#allocation14]  }
  0x30   :  { %s11321_s20 = scalar_lea.vmem %s30_s17, 65536  ;;  %p11326_p7 = scmp.lt.s32.totalorder %s30_s17, %s30_s17 }
  0x31   :  { %p11322_p6 = scmp.ne.s32.totalorder %s30_s17, %s11321_s20  ;;  %p11327_p8 = scmp.lt.s32.totalorder %s11321_s20, %s11321_s20 }
  0x33   :  { %p11328_p9 = por %p11327_p8, %p11326_p7 }
  0x35   :  { %p11329_p10 = pnand %p11328_p9, %p11322_p6 }
  0x37   :  { %11332 = shalt.err (!%p11329_p10)
}
  0x38   :  { %s11452_s6 = smov 2048   ;;  %s11453_s21 = smov 128  }
  0x39   :  { %35 = dma.hbm_to_vmem [thread:$0]  %s12471_s1, 65536, %s30_s17, [#allocation3], %s11452_s6, %s11452_s6, %s11453_s21  }
  0x3a   :  { %s11454_s24 = smov [#allocation6]  }
  0x3b   :  { %s53_s25 = sshll.u32 %s11454_s24, 4  ;;  %s54_s25 = int_to_ptr.vmem [resolvable:$true] %s53_s25 }
  0x3c   :  { %s11341_s26 = scalar_lea.vmem %s54_s25, 16384  ;;  %p11346_p12 = scmp.lt.s32.totalorder %s54_s25, %s54_s25 }
  0x3d   :  { %p11342_p11 = scmp.ne.s32.totalorder %s54_s25, %s11341_s26  ;;  %p11347_p13 = scmp.lt.s32.totalorder %s11341_s26, %s11341_s26 }
  0x3f   :  { %p11348_p0 = por %p11347_p13, %p11346_p12 }
  0x41   :  { %p11349_p1 = pnand %p11348_p0, %p11342_p11 }
  0x43   :  { %11352 = shalt.err (!%p11349_p1)
}
  0x44   :  { %s11455_s8 = smov 8   ;;  %s11456_s29 = smov [#allocation9]  }
  0x45   :  { %59 = dma.hbm_to_vmem [thread:$0]  %s12473_s3, 16384, %s54_s25, [#allocation5], %s11453_s21, %s11453_s21, %s11455_s8  }
  0x46   :  { %s76_s30 = sshll.u32 %s11456_s29, 4  ;;  %s11457_s12 = smov [#allocation12]   ;;  %s77_s30 = int_to_ptr.vmem [resolvable:$true] %s76_s30 }
  0x47   :  { %s96_s1 = sshll.u32 %s11457_s12, 4  ;;  %s11361_s2 = scalar_lea.vmem %s77_s30, 32  ;;  %s97_s1 = int_to_ptr.vmem [resolvable:$true] %s96_s1 }
  0x48   :  { %p11362_p2 = scmp.ne.s32.totalorder %s77_s30, %s11361_s2  ;;  %p11366_p3 = scmp.lt.s32.totalorder %s77_s30, %s77_s30 }
  0x49   :  { %p11367_p4 = scmp.lt.s32.totalorder %s11361_s2, %s11361_s2 }
  0x4b   :  { %p11368_p5 = por %p11367_p4, %p11366_p3 }
  0x4d   :  { %p11369_p6 = pnand %p11368_p5, %p11362_p2 }
  0x4f   :  { %11372 = shalt.err (!%p11369_p6)
}
  0x50   :  { %79 = dma.hbm_to_vmem [thread:$0]  %s12475_s5, 32, %s77_s30, [#allocation8]  }
  0x51   :  { %s11381_s15 = scalar_lea.vmem %s97_s1, 256  ;;  %p11386_p8 = scmp.lt.s32.totalorder %s97_s1, %s97_s1 }
  0x52   :  { %p11382_p7 = scmp.ne.s32.totalorder %s97_s1, %s11381_s15  ;;  %p11387_p9 = scmp.lt.s32.totalorder %s11381_s15, %s11381_s15 }
  0x54   :  { %p11388_p10 = por %p11387_p9, %p11386_p8 }
  0x56   :  { %p11389_p11 = pnand %p11388_p10, %p11382_p7 }
  0x58   :  { %11392 = shalt.err (!%p11389_p11)
}
  0x59   :  { %99 = dma.hbm_to_vmem [thread:$0]  %s12477_s7, 256, %s97_s1, [#allocation11]  }
  0x5a   :  { %s11458_s17 = smov [#allocation15]   ;;  %s11459_s4 = smov [#allocation16]  }
  0x5b   :  { %s116_s18 = sshll.u32 %s11458_s17, 4  ;;  %s126_s19 = sshll.u32 %s11459_s4, 4  ;;  %s117_s18 = int_to_ptr.vmem [resolvable:$true] %s116_s18  ;;  %s127_s19 = int_to_ptr.vmem [resolvable:$true] %s126_s19 }
  0x5c   :  { %s11401_s20 = scalar_lea.vmem %s117_s18, 32  ;;  %p11406_p13 = scmp.lt.s32.totalorder %s117_s18, %s117_s18 }
  0x5d   :  { %p11402_p12 = scmp.ne.s32.totalorder %s117_s18, %s11401_s20  ;;  %p11407_p0 = scmp.lt.s32.totalorder %s11401_s20, %s11401_s20 }
  0x5f   :  { %p11408_p1 = por %p11407_p0, %p11406_p13 }
  0x61   :  { %p11409_p2 = pnand %p11408_p1, %p11402_p12 }
  0x63   :  { %11412 = shalt.err (!%p11409_p2)
}
  0x64   :  { %119 = dma.hbm_to_vmem [thread:$0]  %s12479_s9, 32, %s117_s18, [#allocation14]  }
  0x65   :  { %s11421_s21 = scalar_lea.vmem %s127_s19, 32  ;;  %p11426_p4 = scmp.lt.s32.totalorder %s127_s19, %s127_s19 }
  0x66   :  { %p11422_p3 = scmp.ne.s32.totalorder %s127_s19, %s11421_s21  ;;  %p11427_p5 = scmp.lt.s32.totalorder %s11421_s21, %s11421_s21 }
  0x68   :  { %p11428_p6 = por %p11427_p5, %p11426_p4 }
  0x6a   :  { %p11429_p7 = pnand %p11428_p6, %p11422_p3 }
  0x6c   :  { %11432 = shalt.err (!%p11429_p7)
}
  0x6d   :  { %129 = dma.hbm_to_vmem [thread:$0]  %s12480_s10, 32, %s127_s19, [#allocation17]  }
  0x6e   :  { %11433 = dma.done.wait [#allocation3], 65536  }
  0x6f   :  { %11434 = vsyncadd [#allocation3], 4294901760 }
  0x70   :  { %11435 = dma.done.wait [#allocation5], 49152  }
  0x71   :  { %11436 = vsyncadd [#allocation5], 4294918144 }
  0x72   :  { %11437 = dma.done.wait [#allocation8], 64  }
  0x73   :  { %11438 = vsyncadd [#allocation8], 4294967232 }
  0x74   :  { %11439 = dma.done.wait [#allocation11], 288  }
  0x75   :  { %11440 = vsyncadd [#allocation11], 4294967008 }
  0x76   :  { %11441 = dma.done.wait [#allocation14], 64  }
  0x77   :  { %11442 = vsyncadd [#allocation14], 4294967232 }
  0x78   :  { %11443 = dma.done.wait [#allocation17], 32  }
  0x79   :  { %11444 = vsyncadd [#allocation17], 4294967264  ;;  %v390_v0 = vld [vmem:[#allocation2 + $0x700] sm:$0xff]  ;;  %v391_v2 = vld [vmem:[#allocation2 + $0x708] sm:$0xff]  ;;  %vm3996_vm0 = vcmask 64512  }
  0x7a   :  { %v406_v1 = vld [vmem:[#allocation2 + $0x780] sm:$0xff]  ;;  %v407_v4 = vld [vmem:[#allocation2 + $0x788] sm:$0xff]  ;;  %v163_v54 = vld [vmem:[%s12470_s0 + $0x18] sm:$0xff] }
  0x7b   :  { %v10197_v3 = vcombine.high %v390_v0, %v406_v1  ;;  %v10196_v5 = vcombine.low %v390_v0, %v406_v1  ;;  %v358_v6 = vld [vmem:[#allocation2 + $0x600] sm:$0xff]  ;;  %v10199_v8 = vcombine.high %v391_v2, %v407_v4  ;;  %v10198_v9 = vcombine.low %v391_v2, %v407_v4  ;;  %v359_v11 = vld [vmem:[#allocation2 + $0x608] sm:$0xff] }
  0x7c   :  { %v374_v7 = vld [vmem:[#allocation2 + $0x680] sm:$0xff]  ;;  %v375_v12 = vld [vmem:[#allocation2 + $0x688] sm:$0xff] }
  0x7d   :  { %v10165_v10 = vcombine.high %v358_v6, %v374_v7  ;;  %v326_v13 = vld [vmem:[#allocation2 + $0x500] sm:$0xff]  ;;  %3238 = vmatprep.subr.bf16.mxu0 %v10197_v3  ;;  %v10167_v14 = vcombine.high %v359_v11, %v375_v12  ;;  %v327_v16 = vld [vmem:[#allocation2 + $0x508] sm:$0xff]  ;;  %3281 = vmatprep.subr.bf16.mxu1 %v10199_v8  ;;  %v10164_v18 = vcombine.low %v358_v6, %v374_v7 }
  0x7e   :  { %v342_v15 = vld [vmem:[#allocation2 + $0x580] sm:$0xff]  ;;  %v343_v17 = vld [vmem:[#allocation2 + $0x588] sm:$0xff]  ;;  %3239 = vmatpush1.bf16.msra.mxu0 %v10196_v5  ;;  %3282 = vmatpush1.bf16.msra.mxu1 %v10198_v9  ;;  %v10166_v19 = vcombine.low %v359_v11, %v375_v12 }
  0x7f   :  { %3240 = vmatprep.subr.bf16.mxu0 %v10165_v10  ;;  %v10133_v20 = vcombine.high %v326_v13, %v342_v15  ;;  %3283 = vmatprep.subr.bf16.mxu1 %v10167_v14  ;;  %v10135_v21 = vcombine.high %v327_v16, %v343_v17  ;;  %v294_v22 = vld [vmem:[#allocation2 + $0x400] sm:$0xff]  ;;  %v295_v24 = vld [vmem:[#allocation2 + $0x408] sm:$0xff]  ;;  %v10132_v26 = vcombine.low %v326_v13, %v342_v15 }
  0x80   :  { %v310_v23 = vld [vmem:[#allocation2 + $0x480] sm:$0xff]  ;;  %v311_v25 = vld [vmem:[#allocation2 + $0x488] sm:$0xff]  ;;  %v10134_v27 = vcombine.low %v327_v16, %v343_v17 }
  0x81   :  { %v10101_v28 = vcombine.high %v294_v22, %v310_v23  ;;  %v10103_v29 = vcombine.high %v295_v24, %v311_v25  ;;  %v262_v30 = vld [vmem:[#allocation2 + $0x300] sm:$0xff]  ;;  %v263_v32 = vld [vmem:[#allocation2 + $0x308] sm:$0xff]  ;;  %v10100_v34 = vcombine.low %v294_v22, %v310_v23  ;;  %v10102_v35 = vcombine.low %v295_v24, %v311_v25 }
  0x82   :  { %3241 = vmatpush1.bf16.msra.mxu0 %v10164_v18  ;;  %3284 = vmatpush1.bf16.msra.mxu1 %v10166_v19  ;;  %v278_v31 = vld [vmem:[#allocation2 + $0x380] sm:$0xff]  ;;  %v279_v33 = vld [vmem:[#allocation2 + $0x388] sm:$0xff] }
  0x83   :  { %3242 = vmatprep.subr.bf16.mxu0 %v10133_v20  ;;  %3285 = vmatprep.subr.bf16.mxu1 %v10135_v21  ;;  %v10069_v36 = vcombine.high %v262_v30, %v278_v31  ;;  %v10071_v37 = vcombine.high %v263_v32, %v279_v33  ;;  %v230_v38 = vld [vmem:[#allocation2 + $0x200] sm:$0xff]  ;;  %v231_v40 = vld [vmem:[#allocation2 + $0x208] sm:$0xff]  ;;  %v10068_v42 = vcombine.low %v262_v30, %v278_v31 }
  0x84   :  { %v246_v39 = vld [vmem:[#allocation2 + $0x280] sm:$0xff]  ;;  %v247_v41 = vld [vmem:[#allocation2 + $0x288] sm:$0xff]  ;;  %v10070_v43 = vcombine.low %v263_v32, %v279_v33 }
  0x85   :  { %v10037_v44 = vcombine.high %v230_v38, %v246_v39  ;;  %v10039_v45 = vcombine.high %v231_v40, %v247_v41  ;;  %v198_v46 = vld [vmem:[#allocation2 + $0x100] sm:$0xff]  ;;  %v199_v48 = vld [vmem:[#allocation2 + $0x108] sm:$0xff]  ;;  %v10036_v50 = vcombine.low %v230_v38, %v246_v39  ;;  %v10038_v51 = vcombine.low %v231_v40, %v247_v41 }
  0x86   :  { %3243 = vmatpush1.bf16.msra.mxu0 %v10132_v26  ;;  %3286 = vmatpush1.bf16.msra.mxu1 %v10134_v27  ;;  %v214_v47 = vld [vmem:[#allocation2 + $0x180] sm:$0xff]  ;;  %v215_v49 = vld [vmem:[#allocation2 + $0x188] sm:$0xff] }
  0x87   :  { %3244 = vmatprep.subr.bf16.mxu0 %v10101_v28  ;;  %3287 = vmatprep.subr.bf16.mxu1 %v10103_v29  ;;  %v10005_v52 = vcombine.high %v198_v46, %v214_v47  ;;  %v161_v53 = vld [vmem:[%s12470_s0 + $0x8] sm:$0xff]  ;;  %v10007_v55 = vcombine.high %v199_v48, %v215_v49  ;;  %v166_v56 = vld [vmem:[#allocation2] sm:$0xff]  ;;  %v10004_v61 = vcombine.low %v198_v46, %v214_v47 }
  0x88   :  { %v182_v57 = vld [vmem:[#allocation2 + $0x80] sm:$0xff]  ;;  %v11557_v58 = vpack.c.bf16 %v163_v54, %v161_v53  ;;  %v167_v59 = vld [vmem:[#allocation2 + $0x8] sm:$0xff]  ;;  %v10006_v62 = vcombine.low %v199_v48, %v215_v49 }
  0x89   :  { %v183_v60 = vld [vmem:[#allocation2 + $0x88] sm:$0xff]  ;;  %v9973_v63 = vcombine.high %v166_v56, %v182_v57  ;;  %v646_v1 = vld [vmem:[#allocation2 + $0xf00] sm:$0xff]  ;;  %v9972_v5 = vcombine.low %v166_v56, %v182_v57 }
  0x8a   :  { %3245 = vmatpush1.bf16.msra.mxu0 %v10100_v34  ;;  %3288 = vmatpush1.bf16.msra.mxu1 %v10102_v35  ;;  %v9975_v0 = vcombine.high %v167_v59, %v183_v60  ;;  %v662_v2 = vld [vmem:[#allocation2 + $0xf80] sm:$0xff]  ;;  %v647_v3 = vld [vmem:[#allocation2 + $0xf08] sm:$0xff]  ;;  %v9974_v6 = vcombine.low %v167_v59, %v183_v60 }
  0x8b   :  { %3246 = vmatprep.subr.bf16.mxu0 %v10069_v36  ;;  %3289 = vmatprep.subr.bf16.mxu1 %v10071_v37  ;;  %v663_v4 = vld [vmem:[#allocation2 + $0xf88] sm:$0xff]  ;;  %v10453_v7 = vcombine.high %v646_v1, %v662_v2  ;;  %v614_v9 = vld [vmem:[#allocation2 + $0xe00] sm:$0xff]  ;;  %v10452_v13 = vcombine.low %v646_v1, %v662_v2  ;;  %v392_v2 = vld [vmem:[#allocation2 + $0x710] sm:$0xff] }
  0x8c   :  { %3313 = vmatprep.mubr.bf16.mxu1 %v11557_v58  ;;  %3270 = vmatprep.mubr.bf16.mxu0 %v11557_v58  ;;  %v10455_v8 = vcombine.high %v647_v3, %v663_v4  ;;  %v630_v10 = vld [vmem:[#allocation2 + $0xe80] sm:$0xff]  ;;  %v615_v11 = vld [vmem:[#allocation2 + $0xe08] sm:$0xff]  ;;  %v10454_v14 = vcombine.low %v647_v3, %v663_v4  ;;  %v408_v3 = vld [vmem:[#allocation2 + $0x790] sm:$0xff] }
  0x8d   :  { %v631_v12 = vld [vmem:[#allocation2 + $0xe88] sm:$0xff]  ;;  %v10421_v15 = vcombine.high %v614_v9, %v630_v10  ;;  %v582_v17 = vld [vmem:[#allocation2 + $0xd00] sm:$0xff]  ;;  %v10420_v21 = vcombine.low %v614_v9, %v630_v10  ;;  %v393_v4 = vld [vmem:[#allocation2 + $0x718] sm:$0xff]  ;;  %v10201_v10 = vcombine.high %v392_v2, %v408_v3 }
  0x8e   :  { %3247 = vmatpush1.bf16.msra.mxu0 %v10068_v42  ;;  %3290 = vmatpush1.bf16.msra.mxu1 %v10070_v43  ;;  %v10423_v16 = vcombine.high %v615_v11, %v631_v12  ;;  %v598_v18 = vld [vmem:[#allocation2 + $0xd80] sm:$0xff]  ;;  %v583_v19 = vld [vmem:[#allocation2 + $0xd08] sm:$0xff]  ;;  %v10422_v22 = vcombine.low %v615_v11, %v631_v12  ;;  %v360_v12 = vld [vmem:[#allocation2 + $0x610] sm:$0xff] }
  0x8f   :  { %3248 = vmatprep.subr.bf16.mxu0 %v10037_v44  ;;  %3291 = vmatprep.subr.bf16.mxu1 %v10039_v45  ;;  %v599_v20 = vld [vmem:[#allocation2 + $0xd88] sm:$0xff]  ;;  %v10389_v23 = vcombine.high %v582_v17, %v598_v18  ;;  %v550_v25 = vld [vmem:[#allocation2 + $0xc00] sm:$0xff]  ;;  %v10388_v29 = vcombine.low %v582_v17, %v598_v18  ;;  %v10200_v17 = vcombine.low %v392_v2, %v408_v3 }
  0x90   :  { %v10391_v24 = vcombine.high %v583_v19, %v599_v20  ;;  %v566_v26 = vld [vmem:[#allocation2 + $0xc80] sm:$0xff]  ;;  %v551_v27 = vld [vmem:[#allocation2 + $0xc08] sm:$0xff]  ;;  %v10390_v30 = vcombine.low %v583_v19, %v599_v20  ;;  %v328_v20 = vld [vmem:[#allocation2 + $0x510] sm:$0xff] }
  0x91   :  { %v567_v28 = vld [vmem:[#allocation2 + $0xc88] sm:$0xff]  ;;  %v10357_v31 = vcombine.high %v550_v25, %v566_v26  ;;  %v518_v33 = vld [vmem:[#allocation2 + $0xb00] sm:$0xff]  ;;  %v10356_v37 = vcombine.low %v550_v25, %v566_v26 }
  0x92   :  { %3249 = vmatpush1.bf16.msra.mxu0 %v10036_v50  ;;  %3292 = vmatpush1.bf16.msra.mxu1 %v10038_v51  ;;  %v10359_v32 = vcombine.high %v551_v27, %v567_v28  ;;  %v534_v34 = vld [vmem:[#allocation2 + $0xb80] sm:$0xff]  ;;  %v519_v35 = vld [vmem:[#allocation2 + $0xb08] sm:$0xff]  ;;  %v10358_v38 = vcombine.low %v551_v27, %v567_v28  ;;  %v296_v28 = vld [vmem:[#allocation2 + $0x410] sm:$0xff] }
  0x93   :  { %3250 = vmatprep.subr.bf16.mxu0 %v10005_v52  ;;  %3293 = vmatprep.subr.bf16.mxu1 %v10007_v55  ;;  %v535_v36 = vld [vmem:[#allocation2 + $0xb88] sm:$0xff]  ;;  %v10325_v39 = vcombine.high %v518_v33, %v534_v34  ;;  %v486_v41 = vld [vmem:[#allocation2 + $0xa00] sm:$0xff]  ;;  %v10324_v45 = vcombine.low %v518_v33, %v534_v34 }
  0x94   :  { %v10327_v40 = vcombine.high %v519_v35, %v535_v36  ;;  %v502_v42 = vld [vmem:[#allocation2 + $0xa80] sm:$0xff]  ;;  %v487_v43 = vld [vmem:[#allocation2 + $0xa08] sm:$0xff]  ;;  %v10326_v46 = vcombine.low %v519_v35, %v535_v36  ;;  %v264_v36 = vld [vmem:[#allocation2 + $0x310] sm:$0xff] }
  0x95   :  { %v503_v44 = vld [vmem:[#allocation2 + $0xa88] sm:$0xff]  ;;  %v10293_v47 = vcombine.high %v486_v41, %v502_v42  ;;  %v454_v49 = vld [vmem:[#allocation2 + $0x900] sm:$0xff]  ;;  %v10292_v53 = vcombine.low %v486_v41, %v502_v42 }
  0x96   :  { %3251 = vmatpush1.bf16.msra.mxu0 %v10004_v61  ;;  %3294 = vmatpush1.bf16.msra.mxu1 %v10006_v62  ;;  %v10295_v48 = vcombine.high %v487_v43, %v503_v44  ;;  %v470_v50 = vld [vmem:[#allocation2 + $0x980] sm:$0xff]  ;;  %v455_v51 = vld [vmem:[#allocation2 + $0x908] sm:$0xff]  ;;  %v10294_v54 = vcombine.low %v487_v43, %v503_v44  ;;  %v232_v44 = vld [vmem:[#allocation2 + $0x210] sm:$0xff] }
  0x97   :  { %3252 = vmatprep.subr.bf16.mxu0 %v9973_v63  ;;  %3295 = vmatprep.subr.bf16.mxu1 %v9975_v0  ;;  %v471_v52 = vld [vmem:[#allocation2 + $0x988] sm:$0xff]  ;;  %v10261_v55 = vcombine.high %v454_v49, %v470_v50  ;;  %v422_v57 = vld [vmem:[#allocation2 + $0x800] sm:$0xff]  ;;  %v10260_v62 = vcombine.low %v454_v49, %v470_v50 }
  0x98   :  { %v10263_v56 = vcombine.high %v455_v51, %v471_v52  ;;  %v438_v59 = vld [vmem:[#allocation2 + $0x880] sm:$0xff]  ;;  %v423_v60 = vld [vmem:[#allocation2 + $0x808] sm:$0xff]  ;;  %v10262_v63 = vcombine.low %v455_v51, %v471_v52  ;;  %v200_v52 = vld [vmem:[#allocation2 + $0x110] sm:$0xff] }
  0x99   :  { %v439_v61 = vld [vmem:[#allocation2 + $0x888] sm:$0xff]  ;;  %v10229_v0 = vcombine.high %v422_v57, %v438_v59 }
  0x9a   :  { %3253 = vmatpush1.bf16.msra.mxu0 %v9972_v5  ;;  %3296 = vmatpush1.bf16.msra.mxu1 %v9974_v6  ;;  %v10231_v1 = vcombine.high %v423_v60, %v439_v61  ;;  %v409_v5 = vld [vmem:[#allocation2 + $0x798] sm:$0xff]  ;;  %v10228_v6 = vcombine.low %v422_v57, %v438_v59  ;;  %v10230_v9 = vcombine.low %v423_v60, %v439_v61  ;;  %v168_v61 = vld [vmem:[#allocation2 + $0x10] sm:$0xff] }
  0x9b   :  { %3254 = vmatprep.subr.bf16.mxu0 %v10453_v7  ;;  %3297 = vmatprep.subr.bf16.mxu1 %v10455_v8  ;;  %v160_v7 = vld [vmem:[%s12470_s0] sm:$0xff]  ;;  %v162_v8 = vld [vmem:[%s12470_s0 + $0x10] sm:$0xff]  ;;  %v10203_v11 = vcombine.high %v393_v4, %v409_v5  ;;  %v10202_v18 = vcombine.low %v393_v4, %v409_v5 }
  0x9c   :  { %v648_v5 = vld [vmem:[#allocation2 + $0xf10] sm:$0xff] }
  0x9e   :  { %3255 = vmatpush2.bf16.msra.mxu0 %v10452_v13  ;;  %3298 = vmatpush2.bf16.msra.mxu1 %v10454_v14  ;;  %v376_v13 = vld [vmem:[#allocation2 + $0x690] sm:$0xff]  ;;  %v11567_v14 = vpack.c.bf16 %v162_v8, %v160_v7  ;;  %v649_v7 = vld [vmem:[#allocation2 + $0xf18] sm:$0xff] }
  0x9f   :  { %3256 = vmatprep.subr.bf16.mxu0 %v10421_v15  ;;  %3299 = vmatprep.subr.bf16.mxu1 %v10423_v16  ;;  %v361_v15 = vld [vmem:[#allocation2 + $0x618] sm:$0xff]  ;;  %v10169_v19 = vcombine.high %v360_v12, %v376_v13  ;;  %v10168_v25 = vcombine.low %v360_v12, %v376_v13  ;;  %v616_v13 = vld [vmem:[#allocation2 + $0xe10] sm:$0xff] }
  0xa0   :  { %v377_v16 = vld [vmem:[#allocation2 + $0x698] sm:$0xff] }
  0xa1   :  { %v10170_v26 = vcombine.low %v361_v15, %v377_v16 }
  0xa2   :  { %3257 = vmatpush2.bf16.msra.mxu0 %v10420_v21  ;;  %3300 = vmatpush2.bf16.msra.mxu1 %v10422_v22  ;;  %v344_v21 = vld [vmem:[#allocation2 + $0x590] sm:$0xff]  ;;  %v10171_v22 = vcombine.high %v361_v15, %v377_v16  ;;  %v617_v16 = vld [vmem:[#allocation2 + $0xe18] sm:$0xff] }
  0xa3   :  { %3258 = vmatprep.subr.bf16.mxu0 %v10389_v23  ;;  %3301 = vmatprep.subr.bf16.mxu1 %v10391_v24  ;;  %v329_v23 = vld [vmem:[#allocation2 + $0x518] sm:$0xff]  ;;  %v10137_v27 = vcombine.high %v328_v20, %v344_v21  ;;  %v10136_v33 = vcombine.low %v328_v20, %v344_v21  ;;  %v632_v15 = vld [vmem:[#allocation2 + $0xe90] sm:$0xff] }
  0xa4   :  { %v345_v24 = vld [vmem:[#allocation2 + $0x598] sm:$0xff]  ;;  %v10425_v21 = vcombine.high %v616_v13, %v632_v15 }
  0xa5   :  { %v10138_v34 = vcombine.low %v329_v23, %v345_v24 }
  0xa6   :  { %3259 = vmatpush2.bf16.msra.mxu0 %v10388_v29  ;;  %3302 = vmatpush2.bf16.msra.mxu1 %v10390_v30  ;;  %v312_v29 = vld [vmem:[#allocation2 + $0x490] sm:$0xff]  ;;  %v297_v30 = vld [vmem:[#allocation2 + $0x418] sm:$0xff] }
  0xa7   :  { %3260 = vmatprep.subr.bf16.mxu0 %v10357_v31  ;;  %3303 = vmatprep.subr.bf16.mxu1 %v10359_v32  ;;  %v10139_v31 = vcombine.high %v329_v23, %v345_v24  ;;  %v313_v32 = vld [vmem:[#allocation2 + $0x498] sm:$0xff]  ;;  %v10105_v35 = vcombine.high %v296_v28, %v312_v29  ;;  %v10104_v41 = vcombine.low %v296_v28, %v312_v29  ;;  %v600_v23 = vld [vmem:[#allocation2 + $0xd90] sm:$0xff] }
  0xa8   :  { %v10106_v42 = vcombine.low %v297_v30, %v313_v32  ;;  %v585_v24 = vld [vmem:[#allocation2 + $0xd18] sm:$0xff] }
  0xaa   :  { %3261 = vmatpush2.bf16.msra.mxu0 %v10356_v37  ;;  %3304 = vmatpush2.bf16.msra.mxu1 %v10358_v38  ;;  %v280_v37 = vld [vmem:[#allocation2 + $0x390] sm:$0xff]  ;;  %v265_v38 = vld [vmem:[#allocation2 + $0x318] sm:$0xff] }
  0xab   :  { %3262 = vmatprep.subr.bf16.mxu0 %v10325_v39  ;;  %3305 = vmatprep.subr.bf16.mxu1 %v10327_v40  ;;  %v10107_v39 = vcombine.high %v297_v30, %v313_v32  ;;  %v281_v40 = vld [vmem:[#allocation2 + $0x398] sm:$0xff]  ;;  %v10073_v43 = vcombine.high %v264_v36, %v280_v37  ;;  %v10072_v49 = vcombine.low %v264_v36, %v280_v37  ;;  %v552_v30 = vld [vmem:[#allocation2 + $0xc10] sm:$0xff] }
  0xac   :  { %v10074_v50 = vcombine.low %v265_v38, %v281_v40  ;;  %v553_v32 = vld [vmem:[#allocation2 + $0xc18] sm:$0xff] }
  0xae   :  { %3263 = vmatpush2.bf16.msra.mxu0 %v10324_v45  ;;  %3306 = vmatpush2.bf16.msra.mxu1 %v10326_v46  ;;  %v248_v45 = vld [vmem:[#allocation2 + $0x290] sm:$0xff]  ;;  %v233_v46 = vld [vmem:[#allocation2 + $0x218] sm:$0xff] }
  0xaf   :  { %3264 = vmatprep.subr.bf16.mxu0 %v10293_v47  ;;  %3307 = vmatprep.subr.bf16.mxu1 %v10295_v48  ;;  %v10075_v47 = vcombine.high %v265_v38, %v281_v40  ;;  %v249_v48 = vld [vmem:[#allocation2 + $0x298] sm:$0xff]  ;;  %v10041_v51 = vcombine.high %v232_v44, %v248_v45  ;;  %v10040_v57 = vcombine.low %v232_v44, %v248_v45  ;;  %v520_v38 = vld [vmem:[#allocation2 + $0xb10] sm:$0xff] }
  0xb0   :  { %v10042_v59 = vcombine.low %v233_v46, %v249_v48  ;;  %v521_v40 = vld [vmem:[#allocation2 + $0xb18] sm:$0xff] }
  0xb2   :  { %3265 = vmatpush2.bf16.msra.mxu0 %v10292_v53  ;;  %3308 = vmatpush2.bf16.msra.mxu1 %v10294_v54  ;;  %v216_v53 = vld [vmem:[#allocation2 + $0x190] sm:$0xff]  ;;  %v201_v54 = vld [vmem:[#allocation2 + $0x118] sm:$0xff] }
  0xb3   :  { %3266 = vmatprep.subr.bf16.mxu0 %v10261_v55  ;;  %3309 = vmatprep.subr.bf16.mxu1 %v10263_v56  ;;  %v10043_v55 = vcombine.high %v233_v46, %v249_v48  ;;  %v217_v56 = vld [vmem:[#allocation2 + $0x198] sm:$0xff]  ;;  %v10009_v60 = vcombine.high %v200_v52, %v216_v53  ;;  %v10008_v2 = vcombine.low %v200_v52, %v216_v53  ;;  %v488_v46 = vld [vmem:[#allocation2 + $0xa10] sm:$0xff] }
  0xb4   :  { %v10010_v3 = vcombine.low %v201_v54, %v217_v56  ;;  %v489_v48 = vld [vmem:[#allocation2 + $0xa18] sm:$0xff] }
  0xb6   :  { %3267 = vmatpush2.bf16.msra.mxu0 %v10260_v62  ;;  %3310 = vmatpush2.bf16.msra.mxu1 %v10262_v63  ;;  %v184_v62 = vld [vmem:[#allocation2 + $0x90] sm:$0xff]  ;;  %v169_v63 = vld [vmem:[#allocation2 + $0x18] sm:$0xff] }
  0xb7   :  { %3268 = vmatprep.subr.bf16.mxu0 %v10229_v0  ;;  %3311 = vmatprep.subr.bf16.mxu1 %v10231_v1  ;;  %v10011_v0 = vcombine.high %v201_v54, %v217_v56  ;;  %v185_v1 = vld [vmem:[#allocation2 + $0x98] sm:$0xff]  ;;  %v9977_v4 = vcombine.high %v168_v61, %v184_v62  ;;  %v456_v54 = vld [vmem:[#allocation2 + $0x910] sm:$0xff] }
  0xb8   :  { %v9979_v8 = vcombine.high %v169_v63, %v185_v1  ;;  %v457_v56 = vld [vmem:[#allocation2 + $0x918] sm:$0xff] }
  0xba   :  { %3269 = vmatpush2.bf16.msra.mxu0 %v10228_v6  ;;  %3312 = vmatpush2.bf16.msra.mxu1 %v10230_v9  ;;  %v664_v6 = vld [vmem:[#allocation2 + $0xf90] sm:$0xff]  ;;  %v665_v9 = vld [vmem:[#allocation2 + $0xf98] sm:$0xff] }
  0xbb   :  { %3324 = vmatprep.subr.bf16.mxu0 %v10201_v10  ;;  %3367 = vmatprep.subr.bf16.mxu1 %v10203_v11  ;;  %v9976_v10 = vcombine.low %v168_v61, %v184_v62  ;;  %v9978_v11 = vcombine.low %v169_v63, %v185_v1  ;;  %v10457_v12 = vcombine.high %v648_v5, %v664_v6  ;;  %v424_v63 = vld [vmem:[#allocation2 + $0x810] sm:$0xff]  ;;  %v425_v1 = vld [vmem:[#allocation2 + $0x818] sm:$0xff] }
  0xbc   :  { %v10458_v20 = vcombine.low %v649_v7, %v665_v9 }
  0xbd   :  { %3271 = vmatmul.mubr.bf16.vlgmr.msra.gmra.mxu0 %v11567_v14  ;;  %3314 = vmatmul.mubr.bf16.vlgmr.msra.gmra.mxu1 %v11567_v14 }
  0xbe   :  { %3325 = vmatpush1.bf16.msra.mxu0 %v10200_v17  ;;  %3368 = vmatpush1.bf16.msra.mxu1 %v10202_v18  ;;  %v10459_v17 = vcombine.high %v649_v7, %v665_v9  ;;  %v633_v18 = vld [vmem:[#allocation2 + $0xe98] sm:$0xff]  ;;  %v394_v7 = vld [vmem:[#allocation2 + $0x720] sm:$0xff]  ;;  %v395_v9 = vld [vmem:[#allocation2 + $0x728] sm:$0xff] }
  0xbf   :  { %3326 = vmatprep.subr.bf16.mxu0 %v10169_v19  ;;  %3369 = vmatprep.subr.bf16.mxu1 %v10171_v22  ;;  %v10456_v19 = vcombine.low %v648_v5, %v664_v6  ;;  %v584_v22 = vld [vmem:[#allocation2 + $0xd10] sm:$0xff]  ;;  %v10426_v28 = vcombine.low %v617_v16, %v633_v18 }
  0xc0   :  { %3399 = vmatprep.mubr.bf16.mxu1 %v11557_v58  ;;  %3356 = vmatprep.mubr.bf16.mxu0 %v11557_v58  ;;  %v10393_v29 = vcombine.high %v584_v22, %v600_v23 }
  0xc2   :  { %3327 = vmatpush1.bf16.msra.mxu0 %v10168_v25  ;;  %3370 = vmatpush1.bf16.msra.mxu1 %v10170_v26  ;;  %v10427_v25 = vcombine.high %v617_v16, %v633_v18  ;;  %v601_v26 = vld [vmem:[#allocation2 + $0xd98] sm:$0xff]  ;;  %v362_v16 = vld [vmem:[#allocation2 + $0x620] sm:$0xff]  ;;  %v363_v18 = vld [vmem:[#allocation2 + $0x628] sm:$0xff] }
  0xc3   :  { %3328 = vmatprep.subr.bf16.mxu0 %v10137_v27  ;;  %3371 = vmatprep.subr.bf16.mxu1 %v10139_v31  ;;  %v10424_v27 = vcombine.low %v616_v13, %v632_v15  ;;  %v568_v31 = vld [vmem:[#allocation2 + $0xc90] sm:$0xff]  ;;  %v10394_v36 = vcombine.low %v585_v24, %v601_v26 }
  0xc4   :  { %v10361_v37 = vcombine.high %v552_v30, %v568_v31 }
  0xc6   :  { %3329 = vmatpush1.bf16.msra.mxu0 %v10136_v33  ;;  %3372 = vmatpush1.bf16.msra.mxu1 %v10138_v34  ;;  %v10395_v33 = vcombine.high %v585_v24, %v601_v26  ;;  %v569_v34 = vld [vmem:[#allocation2 + $0xc98] sm:$0xff]  ;;  %v346_v26 = vld [vmem:[#allocation2 + $0x5a0] sm:$0xff] }
  0xc7   :  { %3330 = vmatprep.subr.bf16.mxu0 %v10105_v35  ;;  %3373 = vmatprep.subr.bf16.mxu1 %v10107_v39  ;;  %v10392_v35 = vcombine.low %v584_v22, %v600_v23  ;;  %v536_v39 = vld [vmem:[#allocation2 + $0xb90] sm:$0xff]  ;;  %v10362_v44 = vcombine.low %v553_v32, %v569_v34 }
  0xc8   :  { %v10329_v45 = vcombine.high %v520_v38, %v536_v39 }
  0xca   :  { %3331 = vmatpush1.bf16.msra.mxu0 %v10104_v41  ;;  %3374 = vmatpush1.bf16.msra.mxu1 %v10106_v42  ;;  %v10363_v41 = vcombine.high %v553_v32, %v569_v34  ;;  %v537_v42 = vld [vmem:[#allocation2 + $0xb98] sm:$0xff]  ;;  %v314_v34 = vld [vmem:[#allocation2 + $0x4a0] sm:$0xff] }
  0xcb   :  { %3332 = vmatprep.subr.bf16.mxu0 %v10073_v43  ;;  %3375 = vmatprep.subr.bf16.mxu1 %v10075_v47  ;;  %v10360_v43 = vcombine.low %v552_v30, %v568_v31  ;;  %v504_v47 = vld [vmem:[#allocation2 + $0xa90] sm:$0xff]  ;;  %v10330_v52 = vcombine.low %v521_v40, %v537_v42 }
  0xcc   :  { %v10297_v53 = vcombine.high %v488_v46, %v504_v47 }
  0xce   :  { %3333 = vmatpush1.bf16.msra.mxu0 %v10072_v49  ;;  %3376 = vmatpush1.bf16.msra.mxu1 %v10074_v50  ;;  %v10331_v49 = vcombine.high %v521_v40, %v537_v42  ;;  %v505_v50 = vld [vmem:[#allocation2 + $0xa98] sm:$0xff]  ;;  %v282_v42 = vld [vmem:[#allocation2 + $0x3a0] sm:$0xff] }
  0xcf   :  { %3334 = vmatprep.subr.bf16.mxu0 %v10041_v51  ;;  %3377 = vmatprep.subr.bf16.mxu1 %v10043_v55  ;;  %v10328_v51 = vcombine.low %v520_v38, %v536_v39  ;;  %v472_v55 = vld [vmem:[#allocation2 + $0x990] sm:$0xff]  ;;  %v10298_v61 = vcombine.low %v489_v48, %v505_v50 }
  0xd0   :  { %v10265_v62 = vcombine.high %v456_v54, %v472_v55 }
  0xd2   :  { %3335 = vmatpush1.bf16.msra.mxu0 %v10040_v57  ;;  %3378 = vmatpush1.bf16.msra.mxu1 %v10042_v59  ;;  %v10299_v57 = vcombine.high %v489_v48, %v505_v50  ;;  %v473_v59 = vld [vmem:[#allocation2 + $0x998] sm:$0xff]  ;;  %v250_v50 = vld [vmem:[#allocation2 + $0x2a0] sm:$0xff] }
  0xd3   :  { %3336 = vmatprep.subr.bf16.mxu0 %v10009_v60  ;;  %3379 = vmatprep.subr.bf16.mxu1 %v10011_v0  ;;  %v10296_v60 = vcombine.low %v488_v46, %v504_v47  ;;  %v440_v0 = vld [vmem:[#allocation2 + $0x890] sm:$0xff]  ;;  %v10266_v5 = vcombine.low %v457_v56, %v473_v59 }
  0xd4   :  { %v10233_v6 = vcombine.high %v424_v63, %v440_v0 }
  0xd6   :  { %3337 = vmatpush1.bf16.msra.mxu0 %v10008_v2  ;;  %3380 = vmatpush1.bf16.msra.mxu1 %v10010_v3  ;;  %v10267_v2 = vcombine.high %v457_v56, %v473_v59  ;;  %v441_v3 = vld [vmem:[#allocation2 + $0x898] sm:$0xff]  ;;  %v218_v59 = vld [vmem:[#allocation2 + $0x1a0] sm:$0xff] }
  0xd7   :  { %3338 = vmatprep.subr.bf16.mxu0 %v9977_v4  ;;  %3381 = vmatprep.subr.bf16.mxu1 %v9979_v8  ;;  %v10264_v4 = vcombine.low %v456_v54, %v472_v55  ;;  %v410_v8 = vld [vmem:[#allocation2 + $0x7a0] sm:$0xff]  ;;  %v10234_v13 = vcombine.low %v425_v1, %v441_v3 }
  0xd8   :  { %v10205_v15 = vcombine.high %v394_v7, %v410_v8 }
  0xda   :  { %3339 = vmatpush1.bf16.msra.mxu0 %v9976_v10  ;;  %3382 = vmatpush1.bf16.msra.mxu1 %v9978_v11  ;;  %v10235_v10 = vcombine.high %v425_v1, %v441_v3  ;;  %v411_v11 = vld [vmem:[#allocation2 + $0x7a8] sm:$0xff]  ;;  %v186_v3 = vld [vmem:[#allocation2 + $0xa0] sm:$0xff] }
  0xdb   :  { %3340 = vmatprep.subr.bf16.mxu0 %v10457_v12  ;;  %3383 = vmatprep.subr.bf16.mxu1 %v10459_v17  ;;  %v10232_v12 = vcombine.low %v424_v63, %v440_v0  ;;  %v378_v17 = vld [vmem:[#allocation2 + $0x6a0] sm:$0xff]  ;;  %v10206_v22 = vcombine.low %v395_v9, %v411_v11 }
  0xdc   :  { %v10173_v23 = vcombine.high %v362_v16, %v378_v17 }
  0xde   :  { %3341 = vmatpush2.bf16.msra.mxu0 %v10456_v19  ;;  %3384 = vmatpush2.bf16.msra.mxu1 %v10458_v20  ;;  %v10207_v19 = vcombine.high %v395_v9, %v411_v11  ;;  %v379_v20 = vld [vmem:[#allocation2 + $0x6a8] sm:$0xff]  ;;  %v666_v11 = vld [vmem:[#allocation2 + $0xfa0] sm:$0xff] }
  0xdf   :  { %3342 = vmatprep.subr.bf16.mxu0 %v10425_v21  ;;  %3385 = vmatprep.subr.bf16.mxu1 %v10427_v25  ;;  %v10204_v21 = vcombine.low %v394_v7, %v410_v8  ;;  %v10175_v24 = vcombine.high %v363_v18, %v379_v20  ;;  %v330_v25 = vld [vmem:[#allocation2 + $0x520] sm:$0xff]  ;;  %v10174_v30 = vcombine.low %v363_v18, %v379_v20 }
  0xe0   :  { %v10141_v31 = vcombine.high %v330_v25, %v346_v26  ;;  %v634_v20 = vld [vmem:[#allocation2 + $0xea0] sm:$0xff] }
  0xe2   :  { %3343 = vmatpush2.bf16.msra.mxu0 %v10424_v27  ;;  %3386 = vmatpush2.bf16.msra.mxu1 %v10426_v28  ;;  %v331_v27 = vld [vmem:[#allocation2 + $0x528] sm:$0xff] }
  0xe3   :  { %3344 = vmatprep.subr.bf16.mxu0 %v10393_v29  ;;  %3387 = vmatprep.subr.bf16.mxu1 %v10395_v33  ;;  %v347_v28 = vld [vmem:[#allocation2 + $0x5a8] sm:$0xff]  ;;  %v10172_v29 = vcombine.low %v362_v16, %v378_v17  ;;  %v298_v33 = vld [vmem:[#allocation2 + $0x420] sm:$0xff] }
  0xe4   :  { %v10143_v32 = vcombine.high %v331_v27, %v347_v28  ;;  %v10142_v38 = vcombine.low %v331_v27, %v347_v28  ;;  %v10109_v39 = vcombine.high %v298_v33, %v314_v34  ;;  %v586_v27 = vld [vmem:[#allocation2 + $0xd20] sm:$0xff] }
  0xe5   :  { %v602_v28 = vld [vmem:[#allocation2 + $0xda0] sm:$0xff] }
  0xe6   :  { %3345 = vmatpush2.bf16.msra.mxu0 %v10392_v35  ;;  %3388 = vmatpush2.bf16.msra.mxu1 %v10394_v36  ;;  %v299_v35 = vld [vmem:[#allocation2 + $0x428] sm:$0xff] }
  0xe7   :  { %3346 = vmatprep.subr.bf16.mxu0 %v10361_v37  ;;  %3389 = vmatprep.subr.bf16.mxu1 %v10363_v41  ;;  %v315_v36 = vld [vmem:[#allocation2 + $0x4a8] sm:$0xff]  ;;  %v10140_v37 = vcombine.low %v330_v25, %v346_v26  ;;  %v266_v41 = vld [vmem:[#allocation2 + $0x320] sm:$0xff] }
  0xe8   :  { %v10111_v40 = vcombine.high %v299_v35, %v315_v36  ;;  %v10110_v46 = vcombine.low %v299_v35, %v315_v36  ;;  %v10077_v47 = vcombine.high %v266_v41, %v282_v42  ;;  %v554_v35 = vld [vmem:[#allocation2 + $0xc20] sm:$0xff] }
  0xe9   :  { %v570_v36 = vld [vmem:[#allocation2 + $0xca0] sm:$0xff] }
  0xea   :  { %3347 = vmatpush2.bf16.msra.mxu0 %v10360_v43  ;;  %3390 = vmatpush2.bf16.msra.mxu1 %v10362_v44  ;;  %v267_v43 = vld [vmem:[#allocation2 + $0x328] sm:$0xff] }
  0xeb   :  { %3348 = vmatprep.subr.bf16.mxu0 %v10329_v45  ;;  %3391 = vmatprep.subr.bf16.mxu1 %v10331_v49  ;;  %v283_v44 = vld [vmem:[#allocation2 + $0x3a8] sm:$0xff]  ;;  %v10108_v45 = vcombine.low %v298_v33, %v314_v34  ;;  %v234_v49 = vld [vmem:[#allocation2 + $0x220] sm:$0xff]  ;;  %v10397_v33 = vcombine.high %v586_v27, %v602_v28 }
  0xec   :  { %v10079_v48 = vcombine.high %v267_v43, %v283_v44  ;;  %v10078_v54 = vcombine.low %v267_v43, %v283_v44  ;;  %v10045_v55 = vcombine.high %v234_v49, %v250_v50  ;;  %v522_v43 = vld [vmem:[#allocation2 + $0xb20] sm:$0xff] }
  0xed   :  { %v538_v44 = vld [vmem:[#allocation2 + $0xba0] sm:$0xff] }
  0xee   :  { %3349 = vmatpush2.bf16.msra.mxu0 %v10328_v51  ;;  %3392 = vmatpush2.bf16.msra.mxu1 %v10330_v52  ;;  %v235_v51 = vld [vmem:[#allocation2 + $0x228] sm:$0xff] }
  0xef   :  { %3350 = vmatprep.subr.bf16.mxu0 %v10297_v53  ;;  %3393 = vmatprep.subr.bf16.mxu1 %v10299_v57  ;;  %v251_v52 = vld [vmem:[#allocation2 + $0x2a8] sm:$0xff]  ;;  %v10076_v53 = vcombine.low %v266_v41, %v282_v42  ;;  %v202_v57 = vld [vmem:[#allocation2 + $0x120] sm:$0xff]  ;;  %v10365_v41 = vcombine.high %v554_v35, %v570_v36 }
  0xf0   :  { %v10047_v56 = vcombine.high %v235_v51, %v251_v52  ;;  %v10046_v63 = vcombine.low %v235_v51, %v251_v52  ;;  %v10013_v0 = vcombine.high %v202_v57, %v218_v59  ;;  %v490_v51 = vld [vmem:[#allocation2 + $0xa20] sm:$0xff] }
  0xf1   :  { %v506_v52 = vld [vmem:[#allocation2 + $0xaa0] sm:$0xff] }
  0xf2   :  { %3351 = vmatpush2.bf16.msra.mxu0 %v10296_v60  ;;  %3394 = vmatpush2.bf16.msra.mxu1 %v10298_v61  ;;  %v203_v60 = vld [vmem:[#allocation2 + $0x128] sm:$0xff] }
  0xf3   :  { %3352 = vmatprep.subr.bf16.mxu0 %v10265_v62  ;;  %3395 = vmatprep.subr.bf16.mxu1 %v10267_v2  ;;  %v219_v61 = vld [vmem:[#allocation2 + $0x1a8] sm:$0xff]  ;;  %v10044_v62 = vcombine.low %v234_v49, %v250_v50  ;;  %v170_v2 = vld [vmem:[#allocation2 + $0x20] sm:$0xff]  ;;  %v10333_v49 = vcombine.high %v522_v43, %v538_v44 }
  0xf4   :  { %v10015_v1 = vcombine.high %v203_v60, %v219_v61  ;;  %v10014_v7 = vcombine.low %v203_v60, %v219_v61  ;;  %v9981_v8 = vcombine.high %v170_v2, %v186_v3  ;;  %v458_v60 = vld [vmem:[#allocation2 + $0x920] sm:$0xff] }
  0xf5   :  { %v474_v61 = vld [vmem:[#allocation2 + $0x9a0] sm:$0xff] }
  0xf6   :  { %3353 = vmatpush2.bf16.msra.mxu0 %v10264_v4  ;;  %3396 = vmatpush2.bf16.msra.mxu1 %v10266_v5  ;;  %v171_v4 = vld [vmem:[#allocation2 + $0x28] sm:$0xff] }
  0xf7   :  { %3354 = vmatprep.subr.bf16.mxu0 %v10233_v6  ;;  %3397 = vmatprep.subr.bf16.mxu1 %v10235_v10  ;;  %v187_v5 = vld [vmem:[#allocation2 + $0xa8] sm:$0xff]  ;;  %v10012_v6 = vcombine.low %v202_v57, %v218_v59  ;;  %v650_v10 = vld [vmem:[#allocation2 + $0xf20] sm:$0xff]  ;;  %v10301_v57 = vcombine.high %v490_v51, %v506_v52 }
  0xf8   :  { %v9983_v9 = vcombine.high %v171_v4, %v187_v5  ;;  %v9982_v16 = vcombine.low %v171_v4, %v187_v5  ;;  %v10461_v17 = vcombine.high %v650_v10, %v666_v11  ;;  %v426_v4 = vld [vmem:[#allocation2 + $0x820] sm:$0xff] }
  0xf9   :  { %v442_v5 = vld [vmem:[#allocation2 + $0x8a0] sm:$0xff] }
  0xfa   :  { %3355 = vmatpush2.bf16.msra.mxu0 %v10232_v12  ;;  %3398 = vmatpush2.bf16.msra.mxu1 %v10234_v13  ;;  %v651_v12 = vld [vmem:[#allocation2 + $0xf28] sm:$0xff] }
  0xfb   :  { %3410 = vmatprep.subr.bf16.mxu0 %v10205_v15  ;;  %3453 = vmatprep.subr.bf16.mxu1 %v10207_v19  ;;  %v667_v13 = vld [vmem:[#allocation2 + $0xfa8] sm:$0xff]  ;;  %v9980_v15 = vcombine.low %v170_v2, %v186_v3  ;;  %v618_v19 = vld [vmem:[#allocation2 + $0xe20] sm:$0xff]  ;;  %v10269_v2 = vcombine.high %v458_v60, %v474_v61 }
  0xfc   :  { %v10463_v18 = vcombine.high %v651_v12, %v667_v13  ;;  %v10429_v25 = vcombine.high %v618_v19, %v634_v20 }
  0xfd   :  { %3357 = vmatmul.mubr.bf16.vlgmr.msra.gmra.mxu0 %v11567_v14  ;;  %3400 = vmatmul.mubr.bf16.vlgmr.msra.gmra.mxu1 %v11567_v14 }
  0xfe   :  { %3411 = vmatpush1.bf16.msra.mxu0 %v10204_v21  ;;  %3454 = vmatpush1.bf16.msra.mxu1 %v10206_v22  ;;  %v619_v21 = vld [vmem:[#allocation2 + $0xe28] sm:$0xff] }
  0xff   :  { %3412 = vmatprep.subr.bf16.mxu0 %v10173_v23  ;;  %3455 = vmatprep.subr.bf16.mxu1 %v10175_v24  ;;  %v635_v22 = vld [vmem:[#allocation2 + $0xea8] sm:$0xff]  ;;  %v10460_v23 = vcombine.low %v650_v10, %v666_v11  ;;  %v10462_v24 = vcombine.low %v651_v12, %v667_v13  ;;  %v10237_v10 = vcombine.high %v426_v4, %v442_v5  ;;  %v396_v12 = vld [vmem:[#allocation2 + $0x730] sm:$0xff] }
 0x100   :  { %3485 = vmatprep.mubr.bf16.mxu1 %v11557_v58  ;;  %3442 = vmatprep.mubr.bf16.mxu0 %v11557_v58  ;;  %v10431_v26 = vcombine.high %v619_v21, %v635_v22  ;;  %v412_v13 = vld [vmem:[#allocation2 + $0x7b0] sm:$0xff] }
 0x102   :  { %3413 = vmatpush1.bf16.msra.mxu0 %v10172_v29  ;;  %3456 = vmatpush1.bf16.msra.mxu1 %v10174_v30  ;;  %v587_v29 = vld [vmem:[#allocation2 + $0xd28] sm:$0xff] }
 0x103   :  { %3414 = vmatprep.subr.bf16.mxu0 %v10141_v31  ;;  %3457 = vmatprep.subr.bf16.mxu1 %v10143_v32  ;;  %v603_v30 = vld [vmem:[#allocation2 + $0xda8] sm:$0xff]  ;;  %v10428_v31 = vcombine.low %v618_v19, %v634_v20  ;;  %v10430_v32 = vcombine.low %v619_v21, %v635_v22  ;;  %v10209_v19 = vcombine.high %v396_v12, %v412_v13  ;;  %v364_v21 = vld [vmem:[#allocation2 + $0x630] sm:$0xff] }
 0x104   :  { %v10399_v34 = vcombine.high %v587_v29, %v603_v30  ;;  %v380_v22 = vld [vmem:[#allocation2 + $0x6b0] sm:$0xff] }
 0x106   :  { %3415 = vmatpush1.bf16.msra.mxu0 %v10140_v37  ;;  %3458 = vmatpush1.bf16.msra.mxu1 %v10142_v38  ;;  %v555_v37 = vld [vmem:[#allocation2 + $0xc28] sm:$0xff] }
 0x107   :  { %3416 = vmatprep.subr.bf16.mxu0 %v10109_v39  ;;  %3459 = vmatprep.subr.bf16.mxu1 %v10111_v40  ;;  %v571_v38 = vld [vmem:[#allocation2 + $0xca8] sm:$0xff]  ;;  %v10396_v39 = vcombine.low %v586_v27, %v602_v28  ;;  %v10398_v40 = vcombine.low %v587_v29, %v603_v30  ;;  %v10177_v27 = vcombine.high %v364_v21, %v380_v22  ;;  %v332_v29 = vld [vmem:[#allocation2 + $0x530] sm:$0xff] }
 0x108   :  { %v10367_v42 = vcombine.high %v555_v37, %v571_v38  ;;  %v348_v30 = vld [vmem:[#allocation2 + $0x5b0] sm:$0xff] }
 0x10a   :  { %3417 = vmatpush1.bf16.msra.mxu0 %v10108_v45  ;;  %3460 = vmatpush1.bf16.msra.mxu1 %v10110_v46  ;;  %v523_v45 = vld [vmem:[#allocation2 + $0xb28] sm:$0xff] }
 0x10b   :  { %3418 = vmatprep.subr.bf16.mxu0 %v10077_v47  ;;  %3461 = vmatprep.subr.bf16.mxu1 %v10079_v48  ;;  %v539_v46 = vld [vmem:[#allocation2 + $0xba8] sm:$0xff]  ;;  %v10364_v47 = vcombine.low %v554_v35, %v570_v36  ;;  %v10366_v48 = vcombine.low %v555_v37, %v571_v38  ;;  %v10145_v35 = vcombine.high %v332_v29, %v348_v30  ;;  %v300_v37 = vld [vmem:[#allocation2 + $0x430] sm:$0xff] }
 0x10c   :  { %v10335_v50 = vcombine.high %v523_v45, %v539_v46  ;;  %v316_v38 = vld [vmem:[#allocation2 + $0x4b0] sm:$0xff] }
 0x10e   :  { %3419 = vmatpush1.bf16.msra.mxu0 %v10076_v53  ;;  %3462 = vmatpush1.bf16.msra.mxu1 %v10078_v54  ;;  %v491_v53 = vld [vmem:[#allocation2 + $0xa28] sm:$0xff] }
 0x10f   :  { %3420 = vmatprep.subr.bf16.mxu0 %v10045_v55  ;;  %3463 = vmatprep.subr.bf16.mxu1 %v10047_v56  ;;  %v507_v54 = vld [vmem:[#allocation2 + $0xaa8] sm:$0xff]  ;;  %v10332_v55 = vcombine.low %v522_v43, %v538_v44  ;;  %v10334_v56 = vcombine.low %v523_v45, %v539_v46  ;;  %v10113_v43 = vcombine.high %v300_v37, %v316_v38  ;;  %v268_v45 = vld [vmem:[#allocation2 + $0x330] sm:$0xff] }
 0x110   :  { %v10303_v59 = vcombine.high %v491_v53, %v507_v54  ;;  %v284_v46 = vld [vmem:[#allocation2 + $0x3b0] sm:$0xff] }
 0x112   :  { %3421 = vmatpush1.bf16.msra.mxu0 %v10044_v62  ;;  %3464 = vmatpush1.bf16.msra.mxu1 %v10046_v63  ;;  %v459_v62 = vld [vmem:[#allocation2 + $0x928] sm:$0xff] }
 0x113   :  { %3422 = vmatprep.subr.bf16.mxu0 %v10013_v0  ;;  %3465 = vmatprep.subr.bf16.mxu1 %v10015_v1  ;;  %v475_v63 = vld [vmem:[#allocation2 + $0x9a8] sm:$0xff]  ;;  %v10300_v0 = vcombine.low %v490_v51, %v506_v52  ;;  %v10302_v1 = vcombine.low %v491_v53, %v507_v54  ;;  %v10081_v51 = vcombine.high %v268_v45, %v284_v46  ;;  %v236_v53 = vld [vmem:[#allocation2 + $0x230] sm:$0xff] }
 0x114   :  { %v10271_v3 = vcombine.high %v459_v62, %v475_v63  ;;  %v252_v54 = vld [vmem:[#allocation2 + $0x2b0] sm:$0xff] }
 0x116   :  { %3423 = vmatpush1.bf16.msra.mxu0 %v10012_v6  ;;  %3466 = vmatpush1.bf16.msra.mxu1 %v10014_v7  ;;  %v427_v6 = vld [vmem:[#allocation2 + $0x828] sm:$0xff] }
 0x117   :  { %3424 = vmatprep.subr.bf16.mxu0 %v9981_v8  ;;  %3467 = vmatprep.subr.bf16.mxu1 %v9983_v9  ;;  %v443_v7 = vld [vmem:[#allocation2 + $0x8a8] sm:$0xff]  ;;  %v10268_v8 = vcombine.low %v458_v60, %v474_v61  ;;  %v10270_v9 = vcombine.low %v459_v62, %v475_v63  ;;  %v10049_v60 = vcombine.high %v236_v53, %v252_v54  ;;  %v204_v62 = vld [vmem:[#allocation2 + $0x130] sm:$0xff] }
 0x118   :  { %v10239_v11 = vcombine.high %v427_v6, %v443_v7  ;;  %v220_v63 = vld [vmem:[#allocation2 + $0x1b0] sm:$0xff] }
 0x11a   :  { %3425 = vmatpush1.bf16.msra.mxu0 %v9980_v15  ;;  %3468 = vmatpush1.bf16.msra.mxu1 %v9982_v16  ;;  %v397_v15 = vld [vmem:[#allocation2 + $0x738] sm:$0xff] }
 0x11b   :  { %3426 = vmatprep.subr.bf16.mxu0 %v10461_v17  ;;  %3469 = vmatprep.subr.bf16.mxu1 %v10463_v18  ;;  %v413_v16 = vld [vmem:[#allocation2 + $0x7b8] sm:$0xff]  ;;  %v10236_v17 = vcombine.low %v426_v4, %v442_v5  ;;  %v10238_v18 = vcombine.low %v427_v6, %v443_v7  ;;  %v10017_v4 = vcombine.high %v204_v62, %v220_v63  ;;  %v172_v6 = vld [vmem:[#allocation2 + $0x30] sm:$0xff] }
 0x11c   :  { %v10211_v20 = vcombine.high %v397_v15, %v413_v16  ;;  %v188_v7 = vld [vmem:[#allocation2 + $0xb0] sm:$0xff] }
 0x11e   :  { %3427 = vmatpush2.bf16.msra.mxu0 %v10460_v23  ;;  %3470 = vmatpush2.bf16.msra.mxu1 %v10462_v24  ;;  %v365_v23 = vld [vmem:[#allocation2 + $0x638] sm:$0xff] }
 0x11f   :  { %3428 = vmatprep.subr.bf16.mxu0 %v10429_v25  ;;  %3471 = vmatprep.subr.bf16.mxu1 %v10431_v26  ;;  %v381_v24 = vld [vmem:[#allocation2 + $0x6b8] sm:$0xff]  ;;  %v10208_v25 = vcombine.low %v396_v12, %v412_v13  ;;  %v10210_v26 = vcombine.low %v397_v15, %v413_v16  ;;  %v9985_v12 = vcombine.high %v172_v6, %v188_v7  ;;  %v652_v15 = vld [vmem:[#allocation2 + $0xf30] sm:$0xff] }
 0x120   :  { %v10179_v28 = vcombine.high %v365_v23, %v381_v24  ;;  %v668_v16 = vld [vmem:[#allocation2 + $0xfb0] sm:$0xff] }
 0x122   :  { %3429 = vmatpush2.bf16.msra.mxu0 %v10428_v31  ;;  %3472 = vmatpush2.bf16.msra.mxu1 %v10430_v32  ;;  %v333_v31 = vld [vmem:[#allocation2 + $0x538] sm:$0xff] }
 0x123   :  { %3430 = vmatprep.subr.bf16.mxu0 %v10397_v33  ;;  %3473 = vmatprep.subr.bf16.mxu1 %v10399_v34  ;;  %v349_v32 = vld [vmem:[#allocation2 + $0x5b8] sm:$0xff]  ;;  %v10176_v33 = vcombine.low %v364_v21, %v380_v22  ;;  %v10178_v34 = vcombine.low %v365_v23, %v381_v24  ;;  %v10465_v21 = vcombine.high %v652_v15, %v668_v16  ;;  %v620_v23 = vld [vmem:[#allocation2 + $0xe30] sm:$0xff] }
 0x124   :  { %v10147_v36 = vcombine.high %v333_v31, %v349_v32  ;;  %v636_v24 = vld [vmem:[#allocation2 + $0xeb0] sm:$0xff] }
 0x126   :  { %3431 = vmatpush2.bf16.msra.mxu0 %v10396_v39  ;;  %3474 = vmatpush2.bf16.msra.mxu1 %v10398_v40  ;;  %v301_v39 = vld [vmem:[#allocation2 + $0x438] sm:$0xff] }
 0x127   :  { %3432 = vmatprep.subr.bf16.mxu0 %v10365_v41  ;;  %3475 = vmatprep.subr.bf16.mxu1 %v10367_v42  ;;  %v317_v40 = vld [vmem:[#allocation2 + $0x4b8] sm:$0xff]  ;;  %v10144_v41 = vcombine.low %v332_v29, %v348_v30  ;;  %v10146_v42 = vcombine.low %v333_v31, %v349_v32  ;;  %v10433_v29 = vcombine.high %v620_v23, %v636_v24  ;;  %v588_v31 = vld [vmem:[#allocation2 + $0xd30] sm:$0xff] }
 0x128   :  { %v10115_v44 = vcombine.high %v301_v39, %v317_v40  ;;  %v604_v32 = vld [vmem:[#allocation2 + $0xdb0] sm:$0xff] }
 0x12a   :  { %3433 = vmatpush2.bf16.msra.mxu0 %v10364_v47  ;;  %3476 = vmatpush2.bf16.msra.mxu1 %v10366_v48  ;;  %v269_v47 = vld [vmem:[#allocation2 + $0x338] sm:$0xff] }
 0x12b   :  { %3434 = vmatprep.subr.bf16.mxu0 %v10333_v49  ;;  %3477 = vmatprep.subr.bf16.mxu1 %v10335_v50  ;;  %v285_v48 = vld [vmem:[#allocation2 + $0x3b8] sm:$0xff]  ;;  %v10112_v49 = vcombine.low %v300_v37, %v316_v38  ;;  %v10114_v50 = vcombine.low %v301_v39, %v317_v40  ;;  %v10401_v37 = vcombine.high %v588_v31, %v604_v32  ;;  %v556_v39 = vld [vmem:[#allocation2 + $0xc30] sm:$0xff] }
 0x12c   :  { %v10083_v52 = vcombine.high %v269_v47, %v285_v48  ;;  %v572_v40 = vld [vmem:[#allocation2 + $0xcb0] sm:$0xff] }
 0x12e   :  { %3435 = vmatpush2.bf16.msra.mxu0 %v10332_v55  ;;  %3478 = vmatpush2.bf16.msra.mxu1 %v10334_v56  ;;  %v237_v55 = vld [vmem:[#allocation2 + $0x238] sm:$0xff] }
 0x12f   :  { %3436 = vmatprep.subr.bf16.mxu0 %v10301_v57  ;;  %3479 = vmatprep.subr.bf16.mxu1 %v10303_v59  ;;  %v253_v56 = vld [vmem:[#allocation2 + $0x2b8] sm:$0xff]  ;;  %v10080_v57 = vcombine.low %v268_v45, %v284_v46  ;;  %v10082_v59 = vcombine.low %v269_v47, %v285_v48  ;;  %v10369_v45 = vcombine.high %v556_v39, %v572_v40  ;;  %v524_v47 = vld [vmem:[#allocation2 + $0xb30] sm:$0xff] }
 0x130   :  { %v10051_v61 = vcombine.high %v237_v55, %v253_v56  ;;  %v540_v48 = vld [vmem:[#allocation2 + $0xbb0] sm:$0xff] }
 0x132   :  { %3437 = vmatpush2.bf16.msra.mxu0 %v10300_v0  ;;  %3480 = vmatpush2.bf16.msra.mxu1 %v10302_v1  ;;  %v205_v0 = vld [vmem:[#allocation2 + $0x138] sm:$0xff] }
 0x133   :  { %3438 = vmatprep.subr.bf16.mxu0 %v10269_v2  ;;  %3481 = vmatprep.subr.bf16.mxu1 %v10271_v3  ;;  %v221_v1 = vld [vmem:[#allocation2 + $0x1b8] sm:$0xff]  ;;  %v10048_v2 = vcombine.low %v236_v53, %v252_v54  ;;  %v10050_v3 = vcombine.low %v237_v55, %v253_v56  ;;  %v10337_v53 = vcombine.high %v524_v47, %v540_v48  ;;  %v492_v55 = vld [vmem:[#allocation2 + $0xa30] sm:$0xff] }
 0x134   :  { %v10019_v5 = vcombine.high %v205_v0, %v221_v1  ;;  %v508_v56 = vld [vmem:[#allocation2 + $0xab0] sm:$0xff] }
 0x136   :  { %3439 = vmatpush2.bf16.msra.mxu0 %v10268_v8  ;;  %3482 = vmatpush2.bf16.msra.mxu1 %v10270_v9  ;;  %v173_v8 = vld [vmem:[#allocation2 + $0x38] sm:$0xff] }
 0x137   :  { %3440 = vmatprep.subr.bf16.mxu0 %v10237_v10  ;;  %3483 = vmatprep.subr.bf16.mxu1 %v10239_v11  ;;  %v189_v9 = vld [vmem:[#allocation2 + $0xb8] sm:$0xff]  ;;  %v10016_v10 = vcombine.low %v204_v62, %v220_v63  ;;  %v10018_v11 = vcombine.low %v205_v0, %v221_v1  ;;  %v10305_v62 = vcombine.high %v492_v55, %v508_v56  ;;  %v460_v0 = vld [vmem:[#allocation2 + $0x930] sm:$0xff] }
 0x138   :  { %v9987_v13 = vcombine.high %v173_v8, %v189_v9  ;;  %v476_v1 = vld [vmem:[#allocation2 + $0x9b0] sm:$0xff] }
 0x13a   :  { %3441 = vmatpush2.bf16.msra.mxu0 %v10236_v17  ;;  %3484 = vmatpush2.bf16.msra.mxu1 %v10238_v18  ;;  %v653_v17 = vld [vmem:[#allocation2 + $0xf38] sm:$0xff] }
 0x13b   :  { %3496 = vmatprep.subr.bf16.mxu0 %v10209_v19  ;;  %3539 = vmatprep.subr.bf16.mxu1 %v10211_v20  ;;  %v669_v18 = vld [vmem:[#allocation2 + $0xfb8] sm:$0xff]  ;;  %v9984_v19 = vcombine.low %v172_v6, %v188_v7  ;;  %v9986_v20 = vcombine.low %v173_v8, %v189_v9  ;;  %v10273_v6 = vcombine.high %v460_v0, %v476_v1  ;;  %v428_v8 = vld [vmem:[#allocation2 + $0x830] sm:$0xff] }
 0x13c   :  { %v10467_v22 = vcombine.high %v653_v17, %v669_v18  ;;  %v444_v9 = vld [vmem:[#allocation2 + $0x8b0] sm:$0xff] }
 0x13d   :  { %3443 = vmatmul.mubr.bf16.vlgmr.msra.gmra.mxu0 %v11567_v14  ;;  %3486 = vmatmul.mubr.bf16.vlgmr.msra.gmra.mxu1 %v11567_v14 }
 0x13e   :  { %3497 = vmatpush1.bf16.msra.mxu0 %v10208_v25  ;;  %3540 = vmatpush1.bf16.msra.mxu1 %v10210_v26  ;;  %v621_v25 = vld [vmem:[#allocation2 + $0xe38] sm:$0xff] }
 0x13f   :  { %3498 = vmatprep.subr.bf16.mxu0 %v10177_v27  ;;  %3541 = vmatprep.subr.bf16.mxu1 %v10179_v28  ;;  %v637_v26 = vld [vmem:[#allocation2 + $0xeb8] sm:$0xff]  ;;  %v10464_v27 = vcombine.low %v652_v15, %v668_v16  ;;  %v10466_v28 = vcombine.low %v653_v17, %v669_v18  ;;  %v10241_v15 = vcombine.high %v428_v8, %v444_v9  ;;  %v398_v17 = vld [vmem:[#allocation2 + $0x740] sm:$0xff] }
 0x140   :  { %3571 = vmatprep.mubr.bf16.mxu1 %v11557_v58  ;;  %3528 = vmatprep.mubr.bf16.mxu0 %v11557_v58  ;;  %v10435_v30 = vcombine.high %v621_v25, %v637_v26  ;;  %v414_v18 = vld [vmem:[#allocation2 + $0x7c0] sm:$0xff] }
 0x142   :  { %3499 = vmatpush1.bf16.msra.mxu0 %v10176_v33  ;;  %3542 = vmatpush1.bf16.msra.mxu1 %v10178_v34  ;;  %v589_v33 = vld [vmem:[#allocation2 + $0xd38] sm:$0xff] }
 0x143   :  { %3500 = vmatprep.subr.bf16.mxu0 %v10145_v35  ;;  %3543 = vmatprep.subr.bf16.mxu1 %v10147_v36  ;;  %v605_v34 = vld [vmem:[#allocation2 + $0xdb8] sm:$0xff]  ;;  %v10432_v35 = vcombine.low %v620_v23, %v636_v24  ;;  %v10434_v36 = vcombine.low %v621_v25, %v637_v26  ;;  %v10213_v23 = vcombine.high %v398_v17, %v414_v18  ;;  %v366_v25 = vld [vmem:[#allocation2 + $0x640] sm:$0xff] }
 0x144   :  { %v10403_v38 = vcombine.high %v589_v33, %v605_v34  ;;  %v382_v26 = vld [vmem:[#allocation2 + $0x6c0] sm:$0xff] }
 0x146   :  { %3501 = vmatpush1.bf16.msra.mxu0 %v10144_v41  ;;  %3544 = vmatpush1.bf16.msra.mxu1 %v10146_v42  ;;  %v557_v41 = vld [vmem:[#allocation2 + $0xc38] sm:$0xff] }
 0x147   :  { %3502 = vmatprep.subr.bf16.mxu0 %v10113_v43  ;;  %3545 = vmatprep.subr.bf16.mxu1 %v10115_v44  ;;  %v573_v42 = vld [vmem:[#allocation2 + $0xcb8] sm:$0xff]  ;;  %v10400_v43 = vcombine.low %v588_v31, %v604_v32  ;;  %v10402_v44 = vcombine.low %v589_v33, %v605_v34  ;;  %v10181_v31 = vcombine.high %v366_v25, %v382_v26  ;;  %v334_v33 = vld [vmem:[#allocation2 + $0x540] sm:$0xff] }
 0x148   :  { %v10371_v46 = vcombine.high %v557_v41, %v573_v42  ;;  %v350_v34 = vld [vmem:[#allocation2 + $0x5c0] sm:$0xff] }
 0x14a   :  { %3503 = vmatpush1.bf16.msra.mxu0 %v10112_v49  ;;  %3546 = vmatpush1.bf16.msra.mxu1 %v10114_v50  ;;  %v525_v49 = vld [vmem:[#allocation2 + $0xb38] sm:$0xff] }
 0x14b   :  { %3504 = vmatprep.subr.bf16.mxu0 %v10081_v51  ;;  %3547 = vmatprep.subr.bf16.mxu1 %v10083_v52  ;;  %v541_v50 = vld [vmem:[#allocation2 + $0xbb8] sm:$0xff]  ;;  %v10368_v51 = vcombine.low %v556_v39, %v572_v40  ;;  %v10370_v52 = vcombine.low %v557_v41, %v573_v42  ;;  %v10149_v39 = vcombine.high %v334_v33, %v350_v34  ;;  %v302_v41 = vld [vmem:[#allocation2 + $0x440] sm:$0xff] }
 0x14c   :  { %v10339_v54 = vcombine.high %v525_v49, %v541_v50  ;;  %v318_v42 = vld [vmem:[#allocation2 + $0x4c0] sm:$0xff] }
 0x14e   :  { %3505 = vmatpush1.bf16.msra.mxu0 %v10080_v57  ;;  %3548 = vmatpush1.bf16.msra.mxu1 %v10082_v59  ;;  %v493_v57 = vld [vmem:[#allocation2 + $0xa38] sm:$0xff] }
 0x14f   :  { %3506 = vmatprep.subr.bf16.mxu0 %v10049_v60  ;;  %3549 = vmatprep.subr.bf16.mxu1 %v10051_v61  ;;  %v509_v59 = vld [vmem:[#allocation2 + $0xab8] sm:$0xff]  ;;  %v10336_v60 = vcombine.low %v524_v47, %v540_v48  ;;  %v10338_v61 = vcombine.low %v525_v49, %v541_v50  ;;  %v10117_v47 = vcombine.high %v302_v41, %v318_v42  ;;  %v270_v49 = vld [vmem:[#allocation2 + $0x340] sm:$0xff] }
 0x150   :  { %v10307_v63 = vcombine.high %v493_v57, %v509_v59  ;;  %v286_v50 = vld [vmem:[#allocation2 + $0x3c0] sm:$0xff] }
 0x152   :  { %3507 = vmatpush1.bf16.msra.mxu0 %v10048_v2  ;;  %3550 = vmatpush1.bf16.msra.mxu1 %v10050_v3  ;;  %v461_v2 = vld [vmem:[#allocation2 + $0x938] sm:$0xff] }
 0x153   :  { %3508 = vmatprep.subr.bf16.mxu0 %v10017_v4  ;;  %3551 = vmatprep.subr.bf16.mxu1 %v10019_v5  ;;  %v477_v3 = vld [vmem:[#allocation2 + $0x9b8] sm:$0xff]  ;;  %v10304_v4 = vcombine.low %v492_v55, %v508_v56  ;;  %v10306_v5 = vcombine.low %v493_v57, %v509_v59  ;;  %v10085_v55 = vcombine.high %v270_v49, %v286_v50  ;;  %v238_v57 = vld [vmem:[#allocation2 + $0x240] sm:$0xff] }
 0x154   :  { %v10275_v7 = vcombine.high %v461_v2, %v477_v3  ;;  %v254_v59 = vld [vmem:[#allocation2 + $0x2c0] sm:$0xff] }
 0x156   :  { %3509 = vmatpush1.bf16.msra.mxu0 %v10016_v10  ;;  %3552 = vmatpush1.bf16.msra.mxu1 %v10018_v11  ;;  %v429_v10 = vld [vmem:[#allocation2 + $0x838] sm:$0xff] }
 0x157   :  { %3510 = vmatprep.subr.bf16.mxu0 %v9985_v12  ;;  %3553 = vmatprep.subr.bf16.mxu1 %v9987_v13  ;;  %v445_v11 = vld [vmem:[#allocation2 + $0x8b8] sm:$0xff]  ;;  %v10272_v12 = vcombine.low %v460_v0, %v476_v1  ;;  %v10274_v13 = vcombine.low %v461_v2, %v477_v3  ;;  %v10053_v0 = vcombine.high %v238_v57, %v254_v59  ;;  %v206_v2 = vld [vmem:[#allocation2 + $0x140] sm:$0xff] }
 0x158   :  { %v10243_v16 = vcombine.high %v429_v10, %v445_v11  ;;  %v222_v3 = vld [vmem:[#allocation2 + $0x1c0] sm:$0xff] }
 0x15a   :  { %3511 = vmatpush1.bf16.msra.mxu0 %v9984_v19  ;;  %3554 = vmatpush1.bf16.msra.mxu1 %v9986_v20  ;;  %v399_v19 = vld [vmem:[#allocation2 + $0x748] sm:$0xff] }
 0x15b   :  { %3512 = vmatprep.subr.bf16.mxu0 %v10465_v21  ;;  %3555 = vmatprep.subr.bf16.mxu1 %v10467_v22  ;;  %v415_v20 = vld [vmem:[#allocation2 + $0x7c8] sm:$0xff]  ;;  %v10240_v21 = vcombine.low %v428_v8, %v444_v9  ;;  %v10242_v22 = vcombine.low %v429_v10, %v445_v11  ;;  %v10021_v8 = vcombine.high %v206_v2, %v222_v3  ;;  %v174_v10 = vld [vmem:[#allocation2 + $0x40] sm:$0xff] }
 0x15c   :  { %v10215_v24 = vcombine.high %v399_v19, %v415_v20  ;;  %v190_v11 = vld [vmem:[#allocation2 + $0xc0] sm:$0xff] }
 0x15e   :  { %3513 = vmatpush2.bf16.msra.mxu0 %v10464_v27  ;;  %3556 = vmatpush2.bf16.msra.mxu1 %v10466_v28  ;;  %v367_v27 = vld [vmem:[#allocation2 + $0x648] sm:$0xff] }
 0x15f   :  { %3514 = vmatprep.subr.bf16.mxu0 %v10433_v29  ;;  %3557 = vmatprep.subr.bf16.mxu1 %v10435_v30  ;;  %v383_v28 = vld [vmem:[#allocation2 + $0x6c8] sm:$0xff]  ;;  %v10212_v29 = vcombine.low %v398_v17, %v414_v18  ;;  %v10214_v30 = vcombine.low %v399_v19, %v415_v20  ;;  %v9989_v17 = vcombine.high %v174_v10, %v190_v11  ;;  %v654_v19 = vld [vmem:[#allocation2 + $0xf40] sm:$0xff] }
 0x160   :  { %v10183_v32 = vcombine.high %v367_v27, %v383_v28  ;;  %v670_v20 = vld [vmem:[#allocation2 + $0xfc0] sm:$0xff] }
 0x162   :  { %3515 = vmatpush2.bf16.msra.mxu0 %v10432_v35  ;;  %3558 = vmatpush2.bf16.msra.mxu1 %v10434_v36  ;;  %v335_v35 = vld [vmem:[#allocation2 + $0x548] sm:$0xff] }
 0x163   :  { %3516 = vmatprep.subr.bf16.mxu0 %v10401_v37  ;;  %3559 = vmatprep.subr.bf16.mxu1 %v10403_v38  ;;  %v351_v36 = vld [vmem:[#allocation2 + $0x5c8] sm:$0xff]  ;;  %v10180_v37 = vcombine.low %v366_v25, %v382_v26  ;;  %v10182_v38 = vcombine.low %v367_v27, %v383_v28  ;;  %v10469_v25 = vcombine.high %v654_v19, %v670_v20  ;;  %v622_v27 = vld [vmem:[#allocation2 + $0xe40] sm:$0xff] }
 0x164   :  { %v10151_v40 = vcombine.high %v335_v35, %v351_v36  ;;  %v638_v28 = vld [vmem:[#allocation2 + $0xec0] sm:$0xff] }
 0x166   :  { %3517 = vmatpush2.bf16.msra.mxu0 %v10400_v43  ;;  %3560 = vmatpush2.bf16.msra.mxu1 %v10402_v44  ;;  %v303_v43 = vld [vmem:[#allocation2 + $0x448] sm:$0xff] }
 0x167   :  { %3518 = vmatprep.subr.bf16.mxu0 %v10369_v45  ;;  %3561 = vmatprep.subr.bf16.mxu1 %v10371_v46  ;;  %v319_v44 = vld [vmem:[#allocation2 + $0x4c8] sm:$0xff]  ;;  %v10148_v45 = vcombine.low %v334_v33, %v350_v34  ;;  %v10150_v46 = vcombine.low %v335_v35, %v351_v36  ;;  %v10437_v33 = vcombine.high %v622_v27, %v638_v28  ;;  %v590_v35 = vld [vmem:[#allocation2 + $0xd40] sm:$0xff] }
 0x168   :  { %v10119_v48 = vcombine.high %v303_v43, %v319_v44  ;;  %v606_v36 = vld [vmem:[#allocation2 + $0xdc0] sm:$0xff] }
 0x16a   :  { %3519 = vmatpush2.bf16.msra.mxu0 %v10368_v51  ;;  %3562 = vmatpush2.bf16.msra.mxu1 %v10370_v52  ;;  %v271_v51 = vld [vmem:[#allocation2 + $0x348] sm:$0xff] }
 0x16b   :  { %3520 = vmatprep.subr.bf16.mxu0 %v10337_v53  ;;  %3563 = vmatprep.subr.bf16.mxu1 %v10339_v54  ;;  %v287_v52 = vld [vmem:[#allocation2 + $0x3c8] sm:$0xff]  ;;  %v10116_v53 = vcombine.low %v302_v41, %v318_v42  ;;  %v10118_v54 = vcombine.low %v303_v43, %v319_v44  ;;  %v10405_v41 = vcombine.high %v590_v35, %v606_v36  ;;  %v558_v43 = vld [vmem:[#allocation2 + $0xc40] sm:$0xff] }
 0x16c   :  { %v10087_v56 = vcombine.high %v271_v51, %v287_v52  ;;  %v574_v44 = vld [vmem:[#allocation2 + $0xcc0] sm:$0xff] }
 0x16e   :  { %3521 = vmatpush2.bf16.msra.mxu0 %v10336_v60  ;;  %3564 = vmatpush2.bf16.msra.mxu1 %v10338_v61  ;;  %v239_v60 = vld [vmem:[#allocation2 + $0x248] sm:$0xff] }
 0x16f   :  { %3522 = vmatprep.subr.bf16.mxu0 %v10305_v62  ;;  %3565 = vmatprep.subr.bf16.mxu1 %v10307_v63  ;;  %v255_v61 = vld [vmem:[#allocation2 + $0x2c8] sm:$0xff]  ;;  %v10084_v62 = vcombine.low %v270_v49, %v286_v50  ;;  %v10086_v63 = vcombine.low %v271_v51, %v287_v52  ;;  %v10373_v49 = vcombine.high %v558_v43, %v574_v44  ;;  %v526_v51 = vld [vmem:[#allocation2 + $0xb40] sm:$0xff] }
 0x170   :  { %v10055_v1 = vcombine.high %v239_v60, %v255_v61  ;;  %v542_v52 = vld [vmem:[#allocation2 + $0xbc0] sm:$0xff] }
 0x172   :  { %3523 = vmatpush2.bf16.msra.mxu0 %v10304_v4  ;;  %3566 = vmatpush2.bf16.msra.mxu1 %v10306_v5  ;;  %v207_v4 = vld [vmem:[#allocation2 + $0x148] sm:$0xff] }
 0x173   :  { %3524 = vmatprep.subr.bf16.mxu0 %v10273_v6  ;;  %3567 = vmatprep.subr.bf16.mxu1 %v10275_v7  ;;  %v223_v5 = vld [vmem:[#allocation2 + $0x1c8] sm:$0xff]  ;;  %v10052_v6 = vcombine.low %v238_v57, %v254_v59  ;;  %v10054_v7 = vcombine.low %v239_v60, %v255_v61  ;;  %v10341_v57 = vcombine.high %v526_v51, %v542_v52  ;;  %v494_v60 = vld [vmem:[#allocation2 + $0xa40] sm:$0xff] }
 0x174   :  { %v10023_v9 = vcombine.high %v207_v4, %v223_v5  ;;  %v510_v61 = vld [vmem:[#allocation2 + $0xac0] sm:$0xff] }
 0x176   :  { %3525 = vmatpush2.bf16.msra.mxu0 %v10272_v12  ;;  %3568 = vmatpush2.bf16.msra.mxu1 %v10274_v13  ;;  %v175_v12 = vld [vmem:[#allocation2 + $0x48] sm:$0xff] }
 0x177   :  { %3526 = vmatprep.subr.bf16.mxu0 %v10241_v15  ;;  %3569 = vmatprep.subr.bf16.mxu1 %v10243_v16  ;;  %v191_v13 = vld [vmem:[#allocation2 + $0xc8] sm:$0xff]  ;;  %v10020_v15 = vcombine.low %v206_v2, %v222_v3  ;;  %v10022_v16 = vcombine.low %v207_v4, %v223_v5  ;;  %v10309_v2 = vcombine.high %v494_v60, %v510_v61  ;;  %v462_v4 = vld [vmem:[#allocation2 + $0x940] sm:$0xff] }
 0x178   :  { %v9991_v18 = vcombine.high %v175_v12, %v191_v13  ;;  %v478_v5 = vld [vmem:[#allocation2 + $0x9c0] sm:$0xff] }
 0x17a   :  { %3527 = vmatpush2.bf16.msra.mxu0 %v10240_v21  ;;  %3570 = vmatpush2.bf16.msra.mxu1 %v10242_v22  ;;  %v655_v21 = vld [vmem:[#allocation2 + $0xf48] sm:$0xff] }
 0x17b   :  { %3582 = vmatprep.subr.bf16.mxu0 %v10213_v23  ;;  %3625 = vmatprep.subr.bf16.mxu1 %v10215_v24  ;;  %v671_v22 = vld [vmem:[#allocation2 + $0xfc8] sm:$0xff]  ;;  %v9988_v23 = vcombine.low %v174_v10, %v190_v11  ;;  %v9990_v24 = vcombine.low %v175_v12, %v191_v13  ;;  %v10277_v10 = vcombine.high %v462_v4, %v478_v5  ;;  %v430_v12 = vld [vmem:[#allocation2 + $0x840] sm:$0xff] }
 0x17c   :  { %v10471_v26 = vcombine.high %v655_v21, %v671_v22  ;;  %v446_v13 = vld [vmem:[#allocation2 + $0x8c0] sm:$0xff] }
 0x17d   :  { %3529 = vmatmul.mubr.bf16.vlgmr.msra.gmra.mxu0 %v11567_v14  ;;  %3572 = vmatmul.mubr.bf16.vlgmr.msra.gmra.mxu1 %v11567_v14 }
 0x17e   :  { %3583 = vmatpush1.bf16.msra.mxu0 %v10212_v29  ;;  %3626 = vmatpush1.bf16.msra.mxu1 %v10214_v30  ;;  %v623_v29 = vld [vmem:[#allocation2 + $0xe48] sm:$0xff] }
 0x17f   :  { %3584 = vmatprep.subr.bf16.mxu0 %v10181_v31  ;;  %3627 = vmatprep.subr.bf16.mxu1 %v10183_v32  ;;  %v639_v30 = vld [vmem:[#allocation2 + $0xec8] sm:$0xff]  ;;  %v10468_v31 = vcombine.low %v654_v19, %v670_v20  ;;  %v10470_v32 = vcombine.low %v655_v21, %v671_v22  ;;  %v10245_v19 = vcombine.high %v430_v12, %v446_v13  ;;  %v400_v21 = vld [vmem:[#allocation2 + $0x750] sm:$0xff] }
 0x180   :  { %3657 = vmatprep.mubr.bf16.mxu1 %v11557_v58  ;;  %3614 = vmatprep.mubr.bf16.mxu0 %v11557_v58  ;;  %v10439_v34 = vcombine.high %v623_v29, %v639_v30  ;;  %v416_v22 = vld [vmem:[#allocation2 + $0x7d0] sm:$0xff] }
 0x182   :  { %3585 = vmatpush1.bf16.msra.mxu0 %v10180_v37  ;;  %3628 = vmatpush1.bf16.msra.mxu1 %v10182_v38  ;;  %v591_v37 = vld [vmem:[#allocation2 + $0xd48] sm:$0xff] }
 0x183   :  { %3586 = vmatprep.subr.bf16.mxu0 %v10149_v39  ;;  %3629 = vmatprep.subr.bf16.mxu1 %v10151_v40  ;;  %v607_v38 = vld [vmem:[#allocation2 + $0xdc8] sm:$0xff]  ;;  %v10436_v39 = vcombine.low %v622_v27, %v638_v28  ;;  %v10438_v40 = vcombine.low %v623_v29, %v639_v30  ;;  %v10217_v27 = vcombine.high %v400_v21, %v416_v22  ;;  %v368_v29 = vld [vmem:[#allocation2 + $0x650] sm:$0xff] }
 0x184   :  { %v10407_v42 = vcombine.high %v591_v37, %v607_v38  ;;  %v384_v30 = vld [vmem:[#allocation2 + $0x6d0] sm:$0xff] }
 0x186   :  { %3587 = vmatpush1.bf16.msra.mxu0 %v10148_v45  ;;  %3630 = vmatpush1.bf16.msra.mxu1 %v10150_v46  ;;  %v559_v45 = vld [vmem:[#allocation2 + $0xc48] sm:$0xff] }
 0x187   :  { %3588 = vmatprep.subr.bf16.mxu0 %v10117_v47  ;;  %3631 = vmatprep.subr.bf16.mxu1 %v10119_v48  ;;  %v575_v46 = vld [vmem:[#allocation2 + $0xcc8] sm:$0xff]  ;;  %v10404_v47 = vcombine.low %v590_v35, %v606_v36  ;;  %v10406_v48 = vcombine.low %v591_v37, %v607_v38  ;;  %v10185_v35 = vcombine.high %v368_v29, %v384_v30  ;;  %v336_v37 = vld [vmem:[#allocation2 + $0x550] sm:$0xff] }
 0x188   :  { %v10375_v50 = vcombine.high %v559_v45, %v575_v46  ;;  %v352_v38 = vld [vmem:[#allocation2 + $0x5d0] sm:$0xff] }
 0x18a   :  { %3589 = vmatpush1.bf16.msra.mxu0 %v10116_v53  ;;  %3632 = vmatpush1.bf16.msra.mxu1 %v10118_v54  ;;  %v527_v53 = vld [vmem:[#allocation2 + $0xb48] sm:$0xff] }
 0x18b   :  { %3590 = vmatprep.subr.bf16.mxu0 %v10085_v55  ;;  %3633 = vmatprep.subr.bf16.mxu1 %v10087_v56  ;;  %v543_v54 = vld [vmem:[#allocation2 + $0xbc8] sm:$0xff]  ;;  %v10372_v55 = vcombine.low %v558_v43, %v574_v44  ;;  %v10374_v56 = vcombine.low %v559_v45, %v575_v46  ;;  %v10153_v43 = vcombine.high %v336_v37, %v352_v38  ;;  %v304_v45 = vld [vmem:[#allocation2 + $0x450] sm:$0xff] }
 0x18c   :  { %v10343_v59 = vcombine.high %v527_v53, %v543_v54  ;;  %v320_v46 = vld [vmem:[#allocation2 + $0x4d0] sm:$0xff] }
 0x18e   :  { %3591 = vmatpush1.bf16.msra.mxu0 %v10084_v62  ;;  %3634 = vmatpush1.bf16.msra.mxu1 %v10086_v63  ;;  %v495_v62 = vld [vmem:[#allocation2 + $0xa48] sm:$0xff] }
 0x18f   :  { %3592 = vmatprep.subr.bf16.mxu0 %v10053_v0  ;;  %3635 = vmatprep.subr.bf16.mxu1 %v10055_v1  ;;  %v511_v63 = vld [vmem:[#allocation2 + $0xac8] sm:$0xff]  ;;  %v10340_v0 = vcombine.low %v526_v51, %v542_v52  ;;  %v10342_v1 = vcombine.low %v527_v53, %v543_v54  ;;  %v10121_v51 = vcombine.high %v304_v45, %v320_v46  ;;  %v272_v53 = vld [vmem:[#allocation2 + $0x350] sm:$0xff] }
 0x190   :  { %v10311_v3 = vcombine.high %v495_v62, %v511_v63  ;;  %v288_v54 = vld [vmem:[#allocation2 + $0x3d0] sm:$0xff] }
 0x192   :  { %3593 = vmatpush1.bf16.msra.mxu0 %v10052_v6  ;;  %3636 = vmatpush1.bf16.msra.mxu1 %v10054_v7  ;;  %v463_v6 = vld [vmem:[#allocation2 + $0x948] sm:$0xff] }
 0x193   :  { %3594 = vmatprep.subr.bf16.mxu0 %v10021_v8  ;;  %3637 = vmatprep.subr.bf16.mxu1 %v10023_v9  ;;  %v479_v7 = vld [vmem:[#allocation2 + $0x9c8] sm:$0xff]  ;;  %v10308_v8 = vcombine.low %v494_v60, %v510_v61  ;;  %v10310_v9 = vcombine.low %v495_v62, %v511_v63  ;;  %v10089_v60 = vcombine.high %v272_v53, %v288_v54  ;;  %v240_v62 = vld [vmem:[#allocation2 + $0x250] sm:$0xff] }
 0x194   :  { %v10279_v11 = vcombine.high %v463_v6, %v479_v7  ;;  %v256_v63 = vld [vmem:[#allocation2 + $0x2d0] sm:$0xff] }
 0x196   :  { %3595 = vmatpush1.bf16.msra.mxu0 %v10020_v15  ;;  %3638 = vmatpush1.bf16.msra.mxu1 %v10022_v16  ;;  %v431_v15 = vld [vmem:[#allocation2 + $0x848] sm:$0xff] }
 0x197   :  { %3596 = vmatprep.subr.bf16.mxu0 %v9989_v17  ;;  %3639 = vmatprep.subr.bf16.mxu1 %v9991_v18  ;;  %v447_v16 = vld [vmem:[#allocation2 + $0x8c8] sm:$0xff]  ;;  %v10276_v17 = vcombine.low %v462_v4, %v478_v5  ;;  %v10278_v18 = vcombine.low %v463_v6, %v479_v7  ;;  %v10057_v4 = vcombine.high %v240_v62, %v256_v63  ;;  %v208_v6 = vld [vmem:[#allocation2 + $0x150] sm:$0xff] }
 0x198   :  { %v10247_v20 = vcombine.high %v431_v15, %v447_v16  ;;  %v224_v7 = vld [vmem:[#allocation2 + $0x1d0] sm:$0xff] }
 0x19a   :  { %3597 = vmatpush1.bf16.msra.mxu0 %v9988_v23  ;;  %3640 = vmatpush1.bf16.msra.mxu1 %v9990_v24  ;;  %v401_v23 = vld [vmem:[#allocation2 + $0x758] sm:$0xff] }
 0x19b   :  { %3598 = vmatprep.subr.bf16.mxu0 %v10469_v25  ;;  %3641 = vmatprep.subr.bf16.mxu1 %v10471_v26  ;;  %v417_v24 = vld [vmem:[#allocation2 + $0x7d8] sm:$0xff]  ;;  %v10244_v25 = vcombine.low %v430_v12, %v446_v13  ;;  %v10246_v26 = vcombine.low %v431_v15, %v447_v16  ;;  %v10025_v12 = vcombine.high %v208_v6, %v224_v7  ;;  %v176_v15 = vld [vmem:[#allocation2 + $0x50] sm:$0xff] }
 0x19c   :  { %v10219_v28 = vcombine.high %v401_v23, %v417_v24  ;;  %v192_v16 = vld [vmem:[#allocation2 + $0xd0] sm:$0xff] }
 0x19e   :  { %3599 = vmatpush2.bf16.msra.mxu0 %v10468_v31  ;;  %3642 = vmatpush2.bf16.msra.mxu1 %v10470_v32  ;;  %v369_v31 = vld [vmem:[#allocation2 + $0x658] sm:$0xff] }
 0x19f   :  { %3600 = vmatprep.subr.bf16.mxu0 %v10437_v33  ;;  %3643 = vmatprep.subr.bf16.mxu1 %v10439_v34  ;;  %v385_v32 = vld [vmem:[#allocation2 + $0x6d8] sm:$0xff]  ;;  %v10216_v33 = vcombine.low %v400_v21, %v416_v22  ;;  %v10218_v34 = vcombine.low %v401_v23, %v417_v24  ;;  %v9993_v21 = vcombine.high %v176_v15, %v192_v16  ;;  %v656_v23 = vld [vmem:[#allocation2 + $0xf50] sm:$0xff] }
 0x1a0   :  { %v10187_v36 = vcombine.high %v369_v31, %v385_v32  ;;  %v672_v24 = vld [vmem:[#allocation2 + $0xfd0] sm:$0xff] }
 0x1a2   :  { %3601 = vmatpush2.bf16.msra.mxu0 %v10436_v39  ;;  %3644 = vmatpush2.bf16.msra.mxu1 %v10438_v40  ;;  %v337_v39 = vld [vmem:[#allocation2 + $0x558] sm:$0xff] }
 0x1a3   :  { %3602 = vmatprep.subr.bf16.mxu0 %v10405_v41  ;;  %3645 = vmatprep.subr.bf16.mxu1 %v10407_v42  ;;  %v353_v40 = vld [vmem:[#allocation2 + $0x5d8] sm:$0xff]  ;;  %v10184_v41 = vcombine.low %v368_v29, %v384_v30  ;;  %v10186_v42 = vcombine.low %v369_v31, %v385_v32  ;;  %v10473_v29 = vcombine.high %v656_v23, %v672_v24  ;;  %v624_v31 = vld [vmem:[#allocation2 + $0xe50] sm:$0xff] }
 0x1a4   :  { %v10155_v44 = vcombine.high %v337_v39, %v353_v40  ;;  %v640_v32 = vld [vmem:[#allocation2 + $0xed0] sm:$0xff] }
 0x1a6   :  { %3603 = vmatpush2.bf16.msra.mxu0 %v10404_v47  ;;  %3646 = vmatpush2.bf16.msra.mxu1 %v10406_v48  ;;  %v305_v47 = vld [vmem:[#allocation2 + $0x458] sm:$0xff] }
 0x1a7   :  { %3604 = vmatprep.subr.bf16.mxu0 %v10373_v49  ;;  %3647 = vmatprep.subr.bf16.mxu1 %v10375_v50  ;;  %v321_v48 = vld [vmem:[#allocation2 + $0x4d8] sm:$0xff]  ;;  %v10152_v49 = vcombine.low %v336_v37, %v352_v38  ;;  %v10154_v50 = vcombine.low %v337_v39, %v353_v40  ;;  %v10441_v37 = vcombine.high %v624_v31, %v640_v32  ;;  %v592_v39 = vld [vmem:[#allocation2 + $0xd50] sm:$0xff] }
 0x1a8   :  { %v10123_v52 = vcombine.high %v305_v47, %v321_v48  ;;  %v608_v40 = vld [vmem:[#allocation2 + $0xdd0] sm:$0xff] }
 0x1aa   :  { %3605 = vmatpush2.bf16.msra.mxu0 %v10372_v55  ;;  %3648 = vmatpush2.bf16.msra.mxu1 %v10374_v56  ;;  %v273_v55 = vld [vmem:[#allocation2 + $0x358] sm:$0xff] }
 0x1ab   :  { %3606 = vmatprep.subr.bf16.mxu0 %v10341_v57  ;;  %3649 = vmatprep.subr.bf16.mxu1 %v10343_v59  ;;  %v289_v56 = vld [vmem:[#allocation2 + $0x3d8] sm:$0xff]  ;;  %v10120_v57 = vcombine.low %v304_v45, %v320_v46  ;;  %v10122_v59 = vcombine.low %v305_v47, %v321_v48  ;;  %v10409_v45 = vcombine.high %v592_v39, %v608_v40  ;;  %v560_v47 = vld [vmem:[#allocation2 + $0xc50] sm:$0xff] }
 0x1ac   :  { %v10091_v61 = vcombine.high %v273_v55, %v289_v56  ;;  %v576_v48 = vld [vmem:[#allocation2 + $0xcd0] sm:$0xff] }
 0x1ae   :  { %3607 = vmatpush2.bf16.msra.mxu0 %v10340_v0  ;;  %3650 = vmatpush2.bf16.msra.mxu1 %v10342_v1  ;;  %v241_v0 = vld [vmem:[#allocation2 + $0x258] sm:$0xff] }
 0x1af   :  { %3608 = vmatprep.subr.bf16.mxu0 %v10309_v2  ;;  %3651 = vmatprep.subr.bf16.mxu1 %v10311_v3  ;;  %v257_v1 = vld [vmem:[#allocation2 + $0x2d8] sm:$0xff]  ;;  %v10088_v2 = vcombine.low %v272_v53, %v288_v54  ;;  %v10090_v3 = vcombine.low %v273_v55, %v289_v56  ;;  %v10377_v53 = vcombine.high %v560_v47, %v576_v48  ;;  %v528_v55 = vld [vmem:[#allocation2 + $0xb50] sm:$0xff] }
 0x1b0   :  { %v10059_v5 = vcombine.high %v241_v0, %v257_v1  ;;  %v544_v56 = vld [vmem:[#allocation2 + $0xbd0] sm:$0xff] }
 0x1b2   :  { %3609 = vmatpush2.bf16.msra.mxu0 %v10308_v8  ;;  %3652 = vmatpush2.bf16.msra.mxu1 %v10310_v9  ;;  %v209_v8 = vld [vmem:[#allocation2 + $0x158] sm:$0xff] }
 0x1b3   :  { %3610 = vmatprep.subr.bf16.mxu0 %v10277_v10  ;;  %3653 = vmatprep.subr.bf16.mxu1 %v10279_v11  ;;  %v225_v9 = vld [vmem:[#allocation2 + $0x1d8] sm:$0xff]  ;;  %v10056_v10 = vcombine.low %v240_v62, %v256_v63  ;;  %v10058_v11 = vcombine.low %v241_v0, %v257_v1  ;;  %v10345_v62 = vcombine.high %v528_v55, %v544_v56  ;;  %v496_v0 = vld [vmem:[#allocation2 + $0xa50] sm:$0xff] }
 0x1b4   :  { %v10027_v13 = vcombine.high %v209_v8, %v225_v9  ;;  %v512_v1 = vld [vmem:[#allocation2 + $0xad0] sm:$0xff] }
 0x1b6   :  { %3611 = vmatpush2.bf16.msra.mxu0 %v10276_v17  ;;  %3654 = vmatpush2.bf16.msra.mxu1 %v10278_v18  ;;  %v177_v17 = vld [vmem:[#allocation2 + $0x58] sm:$0xff] }
 0x1b7   :  { %3612 = vmatprep.subr.bf16.mxu0 %v10245_v19  ;;  %3655 = vmatprep.subr.bf16.mxu1 %v10247_v20  ;;  %v193_v18 = vld [vmem:[#allocation2 + $0xd8] sm:$0xff]  ;;  %v10024_v19 = vcombine.low %v208_v6, %v224_v7  ;;  %v10026_v20 = vcombine.low %v209_v8, %v225_v9  ;;  %v10313_v6 = vcombine.high %v496_v0, %v512_v1  ;;  %v464_v8 = vld [vmem:[#allocation2 + $0x950] sm:$0xff] }
 0x1b8   :  { %v9995_v22 = vcombine.high %v177_v17, %v193_v18  ;;  %v480_v9 = vld [vmem:[#allocation2 + $0x9d0] sm:$0xff] }
 0x1ba   :  { %3613 = vmatpush2.bf16.msra.mxu0 %v10244_v25  ;;  %3656 = vmatpush2.bf16.msra.mxu1 %v10246_v26  ;;  %v657_v25 = vld [vmem:[#allocation2 + $0xf58] sm:$0xff] }
 0x1bb   :  { %3668 = vmatprep.subr.bf16.mxu0 %v10217_v27  ;;  %3711 = vmatprep.subr.bf16.mxu1 %v10219_v28  ;;  %v673_v26 = vld [vmem:[#allocation2 + $0xfd8] sm:$0xff]  ;;  %v9992_v27 = vcombine.low %v176_v15, %v192_v16  ;;  %v9994_v28 = vcombine.low %v177_v17, %v193_v18  ;;  %v10281_v15 = vcombine.high %v464_v8, %v480_v9  ;;  %v432_v17 = vld [vmem:[#allocation2 + $0x850] sm:$0xff] }
 0x1bc   :  { %v10475_v30 = vcombine.high %v657_v25, %v673_v26  ;;  %v448_v18 = vld [vmem:[#allocation2 + $0x8d0] sm:$0xff] }
 0x1bd   :  { %3615 = vmatmul.mubr.bf16.vlgmr.msra.gmra.mxu0 %v11567_v14  ;;  %3658 = vmatmul.mubr.bf16.vlgmr.msra.gmra.mxu1 %v11567_v14 }
 0x1be   :  { %3669 = vmatpush1.bf16.msra.mxu0 %v10216_v33  ;;  %3712 = vmatpush1.bf16.msra.mxu1 %v10218_v34  ;;  %v625_v33 = vld [vmem:[#allocation2 + $0xe58] sm:$0xff] }
 0x1bf   :  { %3670 = vmatprep.subr.bf16.mxu0 %v10185_v35  ;;  %3713 = vmatprep.subr.bf16.mxu1 %v10187_v36  ;;  %v641_v34 = vld [vmem:[#allocation2 + $0xed8] sm:$0xff]  ;;  %v10472_v35 = vcombine.low %v656_v23, %v672_v24  ;;  %v10474_v36 = vcombine.low %v657_v25, %v673_v26  ;;  %v10249_v23 = vcombine.high %v432_v17, %v448_v18  ;;  %v402_v25 = vld [vmem:[#allocation2 + $0x760] sm:$0xff] }
 0x1c0   :  { %3743 = vmatprep.mubr.bf16.mxu1 %v11557_v58  ;;  %3700 = vmatprep.mubr.bf16.mxu0 %v11557_v58  ;;  %v10443_v38 = vcombine.high %v625_v33, %v641_v34  ;;  %v418_v26 = vld [vmem:[#allocation2 + $0x7e0] sm:$0xff] }
 0x1c2   :  { %3671 = vmatpush1.bf16.msra.mxu0 %v10184_v41  ;;  %3714 = vmatpush1.bf16.msra.mxu1 %v10186_v42  ;;  %v593_v41 = vld [vmem:[#allocation2 + $0xd58] sm:$0xff] }
 0x1c3   :  { %3672 = vmatprep.subr.bf16.mxu0 %v10153_v43  ;;  %3715 = vmatprep.subr.bf16.mxu1 %v10155_v44  ;;  %v609_v42 = vld [vmem:[#allocation2 + $0xdd8] sm:$0xff]  ;;  %v10440_v43 = vcombine.low %v624_v31, %v640_v32  ;;  %v10442_v44 = vcombine.low %v625_v33, %v641_v34  ;;  %v10221_v31 = vcombine.high %v402_v25, %v418_v26  ;;  %v370_v33 = vld [vmem:[#allocation2 + $0x660] sm:$0xff] }
 0x1c4   :  { %v10411_v46 = vcombine.high %v593_v41, %v609_v42  ;;  %v386_v34 = vld [vmem:[#allocation2 + $0x6e0] sm:$0xff] }
 0x1c6   :  { %3673 = vmatpush1.bf16.msra.mxu0 %v10152_v49  ;;  %3716 = vmatpush1.bf16.msra.mxu1 %v10154_v50  ;;  %v561_v49 = vld [vmem:[#allocation2 + $0xc58] sm:$0xff] }
 0x1c7   :  { %3674 = vmatprep.subr.bf16.mxu0 %v10121_v51  ;;  %3717 = vmatprep.subr.bf16.mxu1 %v10123_v52  ;;  %v577_v50 = vld [vmem:[#allocation2 + $0xcd8] sm:$0xff]  ;;  %v10408_v51 = vcombine.low %v592_v39, %v608_v40  ;;  %v10410_v52 = vcombine.low %v593_v41, %v609_v42  ;;  %v10189_v39 = vcombine.high %v370_v33, %v386_v34  ;;  %v338_v41 = vld [vmem:[#allocation2 + $0x560] sm:$0xff] }
 0x1c8   :  { %v10379_v54 = vcombine.high %v561_v49, %v577_v50  ;;  %v354_v42 = vld [vmem:[#allocation2 + $0x5e0] sm:$0xff] }
 0x1ca   :  { %3675 = vmatpush1.bf16.msra.mxu0 %v10120_v57  ;;  %3718 = vmatpush1.bf16.msra.mxu1 %v10122_v59  ;;  %v529_v57 = vld [vmem:[#allocation2 + $0xb58] sm:$0xff] }
 0x1cb   :  { %3676 = vmatprep.subr.bf16.mxu0 %v10089_v60  ;;  %3719 = vmatprep.subr.bf16.mxu1 %v10091_v61  ;;  %v545_v59 = vld [vmem:[#allocation2 + $0xbd8] sm:$0xff]  ;;  %v10376_v60 = vcombine.low %v560_v47, %v576_v48  ;;  %v10378_v61 = vcombine.low %v561_v49, %v577_v50  ;;  %v10157_v47 = vcombine.high %v338_v41, %v354_v42  ;;  %v306_v49 = vld [vmem:[#allocation2 + $0x460] sm:$0xff] }
 0x1cc   :  { %v10347_v63 = vcombine.high %v529_v57, %v545_v59  ;;  %v322_v50 = vld [vmem:[#allocation2 + $0x4e0] sm:$0xff] }
 0x1ce   :  { %3677 = vmatpush1.bf16.msra.mxu0 %v10088_v2  ;;  %3720 = vmatpush1.bf16.msra.mxu1 %v10090_v3  ;;  %v497_v2 = vld [vmem:[#allocation2 + $0xa58] sm:$0xff] }
 0x1cf   :  { %3678 = vmatprep.subr.bf16.mxu0 %v10057_v4  ;;  %3721 = vmatprep.subr.bf16.mxu1 %v10059_v5  ;;  %v513_v3 = vld [vmem:[#allocation2 + $0xad8] sm:$0xff]  ;;  %v10344_v4 = vcombine.low %v528_v55, %v544_v56  ;;  %v10346_v5 = vcombine.low %v529_v57, %v545_v59  ;;  %v10125_v55 = vcombine.high %v306_v49, %v322_v50  ;;  %v274_v57 = vld [vmem:[#allocation2 + $0x360] sm:$0xff] }
 0x1d0   :  { %v10315_v7 = vcombine.high %v497_v2, %v513_v3  ;;  %v290_v59 = vld [vmem:[#allocation2 + $0x3e0] sm:$0xff] }
 0x1d2   :  { %3679 = vmatpush1.bf16.msra.mxu0 %v10056_v10  ;;  %3722 = vmatpush1.bf16.msra.mxu1 %v10058_v11  ;;  %v465_v10 = vld [vmem:[#allocation2 + $0x958] sm:$0xff] }
 0x1d3   :  { %3680 = vmatprep.subr.bf16.mxu0 %v10025_v12  ;;  %3723 = vmatprep.subr.bf16.mxu1 %v10027_v13  ;;  %v481_v11 = vld [vmem:[#allocation2 + $0x9d8] sm:$0xff]  ;;  %v10312_v12 = vcombine.low %v496_v0, %v512_v1  ;;  %v10314_v13 = vcombine.low %v497_v2, %v513_v3  ;;  %v10093_v0 = vcombine.high %v274_v57, %v290_v59  ;;  %v242_v2 = vld [vmem:[#allocation2 + $0x260] sm:$0xff] }
 0x1d4   :  { %v10283_v16 = vcombine.high %v465_v10, %v481_v11  ;;  %v258_v3 = vld [vmem:[#allocation2 + $0x2e0] sm:$0xff] }
 0x1d6   :  { %3681 = vmatpush1.bf16.msra.mxu0 %v10024_v19  ;;  %3724 = vmatpush1.bf16.msra.mxu1 %v10026_v20  ;;  %v433_v19 = vld [vmem:[#allocation2 + $0x858] sm:$0xff] }
 0x1d7   :  { %3682 = vmatprep.subr.bf16.mxu0 %v9993_v21  ;;  %3725 = vmatprep.subr.bf16.mxu1 %v9995_v22  ;;  %v449_v20 = vld [vmem:[#allocation2 + $0x8d8] sm:$0xff]  ;;  %v10280_v21 = vcombine.low %v464_v8, %v480_v9  ;;  %v10282_v22 = vcombine.low %v465_v10, %v481_v11  ;;  %v10061_v8 = vcombine.high %v242_v2, %v258_v3  ;;  %v210_v10 = vld [vmem:[#allocation2 + $0x160] sm:$0xff] }
 0x1d8   :  { %v10251_v24 = vcombine.high %v433_v19, %v449_v20  ;;  %v226_v11 = vld [vmem:[#allocation2 + $0x1e0] sm:$0xff] }
 0x1da   :  { %3683 = vmatpush1.bf16.msra.mxu0 %v9992_v27  ;;  %3726 = vmatpush1.bf16.msra.mxu1 %v9994_v28  ;;  %v403_v27 = vld [vmem:[#allocation2 + $0x768] sm:$0xff] }
 0x1db   :  { %3684 = vmatprep.subr.bf16.mxu0 %v10473_v29  ;;  %3727 = vmatprep.subr.bf16.mxu1 %v10475_v30  ;;  %v419_v28 = vld [vmem:[#allocation2 + $0x7e8] sm:$0xff]  ;;  %v10248_v29 = vcombine.low %v432_v17, %v448_v18  ;;  %v10250_v30 = vcombine.low %v433_v19, %v449_v20  ;;  %v10029_v17 = vcombine.high %v210_v10, %v226_v11  ;;  %v178_v19 = vld [vmem:[#allocation2 + $0x60] sm:$0xff] }
 0x1dc   :  { %v10223_v32 = vcombine.high %v403_v27, %v419_v28  ;;  %v194_v20 = vld [vmem:[#allocation2 + $0xe0] sm:$0xff] }
 0x1de   :  { %3685 = vmatpush2.bf16.msra.mxu0 %v10472_v35  ;;  %3728 = vmatpush2.bf16.msra.mxu1 %v10474_v36  ;;  %v371_v35 = vld [vmem:[#allocation2 + $0x668] sm:$0xff] }
 0x1df   :  { %3686 = vmatprep.subr.bf16.mxu0 %v10441_v37  ;;  %3729 = vmatprep.subr.bf16.mxu1 %v10443_v38  ;;  %v387_v36 = vld [vmem:[#allocation2 + $0x6e8] sm:$0xff]  ;;  %v10220_v37 = vcombine.low %v402_v25, %v418_v26  ;;  %v10222_v38 = vcombine.low %v403_v27, %v419_v28  ;;  %v9997_v25 = vcombine.high %v178_v19, %v194_v20  ;;  %v658_v27 = vld [vmem:[#allocation2 + $0xf60] sm:$0xff] }
 0x1e0   :  { %v10191_v40 = vcombine.high %v371_v35, %v387_v36  ;;  %v674_v28 = vld [vmem:[#allocation2 + $0xfe0] sm:$0xff] }
 0x1e2   :  { %3687 = vmatpush2.bf16.msra.mxu0 %v10440_v43  ;;  %3730 = vmatpush2.bf16.msra.mxu1 %v10442_v44  ;;  %v339_v43 = vld [vmem:[#allocation2 + $0x568] sm:$0xff] }
 0x1e3   :  { %3688 = vmatprep.subr.bf16.mxu0 %v10409_v45  ;;  %3731 = vmatprep.subr.bf16.mxu1 %v10411_v46  ;;  %v355_v44 = vld [vmem:[#allocation2 + $0x5e8] sm:$0xff]  ;;  %v10188_v45 = vcombine.low %v370_v33, %v386_v34  ;;  %v10190_v46 = vcombine.low %v371_v35, %v387_v36  ;;  %v10477_v33 = vcombine.high %v658_v27, %v674_v28  ;;  %v626_v35 = vld [vmem:[#allocation2 + $0xe60] sm:$0xff] }
 0x1e4   :  { %v10159_v48 = vcombine.high %v339_v43, %v355_v44  ;;  %v642_v36 = vld [vmem:[#allocation2 + $0xee0] sm:$0xff] }
 0x1e6   :  { %3689 = vmatpush2.bf16.msra.mxu0 %v10408_v51  ;;  %3732 = vmatpush2.bf16.msra.mxu1 %v10410_v52  ;;  %v307_v51 = vld [vmem:[#allocation2 + $0x468] sm:$0xff] }
 0x1e7   :  { %3690 = vmatprep.subr.bf16.mxu0 %v10377_v53  ;;  %3733 = vmatprep.subr.bf16.mxu1 %v10379_v54  ;;  %v323_v52 = vld [vmem:[#allocation2 + $0x4e8] sm:$0xff]  ;;  %v10156_v53 = vcombine.low %v338_v41, %v354_v42  ;;  %v10158_v54 = vcombine.low %v339_v43, %v355_v44  ;;  %v10445_v41 = vcombine.high %v626_v35, %v642_v36  ;;  %v594_v43 = vld [vmem:[#allocation2 + $0xd60] sm:$0xff] }
 0x1e8   :  { %v10127_v56 = vcombine.high %v307_v51, %v323_v52  ;;  %v610_v44 = vld [vmem:[#allocation2 + $0xde0] sm:$0xff] }
 0x1ea   :  { %3691 = vmatpush2.bf16.msra.mxu0 %v10376_v60  ;;  %3734 = vmatpush2.bf16.msra.mxu1 %v10378_v61  ;;  %v275_v60 = vld [vmem:[#allocation2 + $0x368] sm:$0xff] }
 0x1eb   :  { %3692 = vmatprep.subr.bf16.mxu0 %v10345_v62  ;;  %3735 = vmatprep.subr.bf16.mxu1 %v10347_v63  ;;  %v291_v61 = vld [vmem:[#allocation2 + $0x3e8] sm:$0xff]  ;;  %v10124_v62 = vcombine.low %v306_v49, %v322_v50  ;;  %v10126_v63 = vcombine.low %v307_v51, %v323_v52  ;;  %v10413_v49 = vcombine.high %v594_v43, %v610_v44  ;;  %v562_v51 = vld [vmem:[#allocation2 + $0xc60] sm:$0xff] }
 0x1ec   :  { %v10095_v1 = vcombine.high %v275_v60, %v291_v61  ;;  %v578_v52 = vld [vmem:[#allocation2 + $0xce0] sm:$0xff] }
 0x1ee   :  { %3693 = vmatpush2.bf16.msra.mxu0 %v10344_v4  ;;  %3736 = vmatpush2.bf16.msra.mxu1 %v10346_v5  ;;  %v243_v4 = vld [vmem:[#allocation2 + $0x268] sm:$0xff] }
 0x1ef   :  { %3694 = vmatprep.subr.bf16.mxu0 %v10313_v6  ;;  %3737 = vmatprep.subr.bf16.mxu1 %v10315_v7  ;;  %v259_v5 = vld [vmem:[#allocation2 + $0x2e8] sm:$0xff]  ;;  %v10092_v6 = vcombine.low %v274_v57, %v290_v59  ;;  %v10094_v7 = vcombine.low %v275_v60, %v291_v61  ;;  %v10381_v57 = vcombine.high %v562_v51, %v578_v52  ;;  %v530_v60 = vld [vmem:[#allocation2 + $0xb60] sm:$0xff] }
 0x1f0   :  { %v10063_v9 = vcombine.high %v243_v4, %v259_v5  ;;  %v546_v61 = vld [vmem:[#allocation2 + $0xbe0] sm:$0xff] }
 0x1f2   :  { %3695 = vmatpush2.bf16.msra.mxu0 %v10312_v12  ;;  %3738 = vmatpush2.bf16.msra.mxu1 %v10314_v13  ;;  %v211_v12 = vld [vmem:[#allocation2 + $0x168] sm:$0xff] }
 0x1f3   :  { %3696 = vmatprep.subr.bf16.mxu0 %v10281_v15  ;;  %3739 = vmatprep.subr.bf16.mxu1 %v10283_v16  ;;  %v227_v13 = vld [vmem:[#allocation2 + $0x1e8] sm:$0xff]  ;;  %v10060_v15 = vcombine.low %v242_v2, %v258_v3  ;;  %v10062_v16 = vcombine.low %v243_v4, %v259_v5  ;;  %v10349_v2 = vcombine.high %v530_v60, %v546_v61  ;;  %v498_v4 = vld [vmem:[#allocation2 + $0xa60] sm:$0xff] }
 0x1f4   :  { %v10031_v18 = vcombine.high %v211_v12, %v227_v13  ;;  %v514_v5 = vld [vmem:[#allocation2 + $0xae0] sm:$0xff] }
 0x1f6   :  { %3697 = vmatpush2.bf16.msra.mxu0 %v10280_v21  ;;  %3740 = vmatpush2.bf16.msra.mxu1 %v10282_v22  ;;  %v179_v21 = vld [vmem:[#allocation2 + $0x68] sm:$0xff] }
 0x1f7   :  { %3698 = vmatprep.subr.bf16.mxu0 %v10249_v23  ;;  %3741 = vmatprep.subr.bf16.mxu1 %v10251_v24  ;;  %v195_v22 = vld [vmem:[#allocation2 + $0xe8] sm:$0xff]  ;;  %v10028_v23 = vcombine.low %v210_v10, %v226_v11  ;;  %v10030_v24 = vcombine.low %v211_v12, %v227_v13  ;;  %v10317_v10 = vcombine.high %v498_v4, %v514_v5  ;;  %v466_v12 = vld [vmem:[#allocation2 + $0x960] sm:$0xff] }
 0x1f8   :  { %v9999_v26 = vcombine.high %v179_v21, %v195_v22  ;;  %v482_v13 = vld [vmem:[#allocation2 + $0x9e0] sm:$0xff] }
 0x1fa   :  { %3699 = vmatpush2.bf16.msra.mxu0 %v10248_v29  ;;  %3742 = vmatpush2.bf16.msra.mxu1 %v10250_v30  ;;  %v659_v29 = vld [vmem:[#allocation2 + $0xf68] sm:$0xff] }
 0x1fb   :  { %3754 = vmatprep.subr.bf16.mxu0 %v10221_v31  ;;  %3797 = vmatprep.subr.bf16.mxu1 %v10223_v32  ;;  %v675_v30 = vld [vmem:[#allocation2 + $0xfe8] sm:$0xff]  ;;  %v9996_v31 = vcombine.low %v178_v19, %v194_v20  ;;  %v9998_v32 = vcombine.low %v179_v21, %v195_v22  ;;  %v10285_v19 = vcombine.high %v466_v12, %v482_v13  ;;  %v434_v21 = vld [vmem:[#allocation2 + $0x860] sm:$0xff] }
 0x1fc   :  { %v10479_v34 = vcombine.high %v659_v29, %v675_v30  ;;  %v450_v22 = vld [vmem:[#allocation2 + $0x8e0] sm:$0xff] }
 0x1fd   :  { %3701 = vmatmul.mubr.bf16.vlgmr.msra.gmra.mxu0 %v11567_v14  ;;  %3744 = vmatmul.mubr.bf16.vlgmr.msra.gmra.mxu1 %v11567_v14 }
 0x1fe   :  { %3755 = vmatpush1.bf16.msra.mxu0 %v10220_v37  ;;  %3798 = vmatpush1.bf16.msra.mxu1 %v10222_v38  ;;  %v627_v37 = vld [vmem:[#allocation2 + $0xe68] sm:$0xff] }
 0x1ff   :  { %3756 = vmatprep.subr.bf16.mxu0 %v10189_v39  ;;  %3799 = vmatprep.subr.bf16.mxu1 %v10191_v40  ;;  %v643_v38 = vld [vmem:[#allocation2 + $0xee8] sm:$0xff]  ;;  %v10476_v39 = vcombine.low %v658_v27, %v674_v28  ;;  %v10478_v40 = vcombine.low %v659_v29, %v675_v30  ;;  %v10253_v27 = vcombine.high %v434_v21, %v450_v22  ;;  %v404_v29 = vld [vmem:[#allocation2 + $0x770] sm:$0xff] }
 0x200   :  { %3829 = vmatprep.mubr.bf16.mxu1 %v11557_v58  ;;  %3786 = vmatprep.mubr.bf16.mxu0 %v11557_v58  ;;  %v10447_v42 = vcombine.high %v627_v37, %v643_v38  ;;  %v420_v30 = vld [vmem:[#allocation2 + $0x7f0] sm:$0xff] }
 0x202   :  { %3757 = vmatpush1.bf16.msra.mxu0 %v10188_v45  ;;  %3800 = vmatpush1.bf16.msra.mxu1 %v10190_v46  ;;  %v595_v45 = vld [vmem:[#allocation2 + $0xd68] sm:$0xff] }
 0x203   :  { %3758 = vmatprep.subr.bf16.mxu0 %v10157_v47  ;;  %3801 = vmatprep.subr.bf16.mxu1 %v10159_v48  ;;  %v611_v46 = vld [vmem:[#allocation2 + $0xde8] sm:$0xff]  ;;  %v10444_v47 = vcombine.low %v626_v35, %v642_v36  ;;  %v10446_v48 = vcombine.low %v627_v37, %v643_v38  ;;  %v10225_v35 = vcombine.high %v404_v29, %v420_v30  ;;  %v372_v37 = vld [vmem:[#allocation2 + $0x670] sm:$0xff] }
 0x204   :  { %v10415_v50 = vcombine.high %v595_v45, %v611_v46  ;;  %v388_v38 = vld [vmem:[#allocation2 + $0x6f0] sm:$0xff] }
 0x206   :  { %3759 = vmatpush1.bf16.msra.mxu0 %v10156_v53  ;;  %3802 = vmatpush1.bf16.msra.mxu1 %v10158_v54  ;;  %v563_v53 = vld [vmem:[#allocation2 + $0xc68] sm:$0xff] }
 0x207   :  { %3760 = vmatprep.subr.bf16.mxu0 %v10125_v55  ;;  %3803 = vmatprep.subr.bf16.mxu1 %v10127_v56  ;;  %v579_v54 = vld [vmem:[#allocation2 + $0xce8] sm:$0xff]  ;;  %v10412_v55 = vcombine.low %v594_v43, %v610_v44  ;;  %v10414_v56 = vcombine.low %v595_v45, %v611_v46  ;;  %v10193_v43 = vcombine.high %v372_v37, %v388_v38  ;;  %v340_v45 = vld [vmem:[#allocation2 + $0x570] sm:$0xff] }
 0x208   :  { %v10383_v59 = vcombine.high %v563_v53, %v579_v54  ;;  %v356_v46 = vld [vmem:[#allocation2 + $0x5f0] sm:$0xff] }
 0x20a   :  { %3761 = vmatpush1.bf16.msra.mxu0 %v10124_v62  ;;  %3804 = vmatpush1.bf16.msra.mxu1 %v10126_v63  ;;  %v531_v62 = vld [vmem:[#allocation2 + $0xb68] sm:$0xff] }
 0x20b   :  { %3762 = vmatprep.subr.bf16.mxu0 %v10093_v0  ;;  %3805 = vmatprep.subr.bf16.mxu1 %v10095_v1  ;;  %v547_v63 = vld [vmem:[#allocation2 + $0xbe8] sm:$0xff]  ;;  %v10380_v0 = vcombine.low %v562_v51, %v578_v52  ;;  %v10382_v1 = vcombine.low %v563_v53, %v579_v54  ;;  %v10161_v51 = vcombine.high %v340_v45, %v356_v46  ;;  %v308_v53 = vld [vmem:[#allocation2 + $0x470] sm:$0xff] }
 0x20c   :  { %v10351_v3 = vcombine.high %v531_v62, %v547_v63  ;;  %v324_v54 = vld [vmem:[#allocation2 + $0x4f0] sm:$0xff] }
 0x20e   :  { %3763 = vmatpush1.bf16.msra.mxu0 %v10092_v6  ;;  %3806 = vmatpush1.bf16.msra.mxu1 %v10094_v7  ;;  %v499_v6 = vld [vmem:[#allocation2 + $0xa68] sm:$0xff] }
 0x20f   :  { %3764 = vmatprep.subr.bf16.mxu0 %v10061_v8  ;;  %3807 = vmatprep.subr.bf16.mxu1 %v10063_v9  ;;  %v515_v7 = vld [vmem:[#allocation2 + $0xae8] sm:$0xff]  ;;  %v10348_v8 = vcombine.low %v530_v60, %v546_v61  ;;  %v10350_v9 = vcombine.low %v531_v62, %v547_v63  ;;  %v10129_v60 = vcombine.high %v308_v53, %v324_v54  ;;  %v276_v62 = vld [vmem:[#allocation2 + $0x370] sm:$0xff] }
 0x210   :  { %v10319_v11 = vcombine.high %v499_v6, %v515_v7  ;;  %v292_v63 = vld [vmem:[#allocation2 + $0x3f0] sm:$0xff] }
 0x212   :  { %3765 = vmatpush1.bf16.msra.mxu0 %v10060_v15  ;;  %3808 = vmatpush1.bf16.msra.mxu1 %v10062_v16  ;;  %v467_v15 = vld [vmem:[#allocation2 + $0x968] sm:$0xff] }
 0x213   :  { %3766 = vmatprep.subr.bf16.mxu0 %v10029_v17  ;;  %3809 = vmatprep.subr.bf16.mxu1 %v10031_v18  ;;  %v483_v16 = vld [vmem:[#allocation2 + $0x9e8] sm:$0xff]  ;;  %v10316_v17 = vcombine.low %v498_v4, %v514_v5  ;;  %v10318_v18 = vcombine.low %v499_v6, %v515_v7  ;;  %v244_v6 = vld [vmem:[#allocation2 + $0x270] sm:$0xff] }
 0x214   :  { %v10287_v20 = vcombine.high %v467_v15, %v483_v16  ;;  %v260_v7 = vld [vmem:[#allocation2 + $0x2f0] sm:$0xff] }
 0x216   :  { %3767 = vmatpush1.bf16.msra.mxu0 %v10028_v23  ;;  %3810 = vmatpush1.bf16.msra.mxu1 %v10030_v24  ;;  %v435_v23 = vld [vmem:[#allocation2 + $0x868] sm:$0xff] }
 0x217   :  { %3768 = vmatprep.subr.bf16.mxu0 %v9997_v25  ;;  %3811 = vmatprep.subr.bf16.mxu1 %v9999_v26  ;;  %v451_v24 = vld [vmem:[#allocation2 + $0x8e8] sm:$0xff]  ;;  %v10284_v25 = vcombine.low %v466_v12, %v482_v13  ;;  %v10286_v26 = vcombine.low %v467_v15, %v483_v16  ;;  %v10065_v13 = vcombine.high %v244_v6, %v260_v7  ;;  %v212_v16 = vld [vmem:[#allocation2 + $0x170] sm:$0xff] }
 0x218   :  { %v10255_v28 = vcombine.high %v435_v23, %v451_v24 }
 0x21a   :  { %3769 = vmatpush1.bf16.msra.mxu0 %v9996_v31  ;;  %3812 = vmatpush1.bf16.msra.mxu1 %v9998_v32  ;;  %v405_v31 = vld [vmem:[#allocation2 + $0x778] sm:$0xff] }
 0x21b   :  { %3770 = vmatprep.subr.bf16.mxu0 %v10477_v33  ;;  %3813 = vmatprep.subr.bf16.mxu1 %v10479_v34  ;;  %v421_v32 = vld [vmem:[#allocation2 + $0x7f8] sm:$0xff]  ;;  %v10252_v33 = vcombine.low %v434_v21, %v450_v22  ;;  %v10254_v34 = vcombine.low %v435_v23, %v451_v24  ;;  %v10064_v21 = vcombine.low %v244_v6, %v260_v7 }
 0x21c   :  { %v10227_v36 = vcombine.high %v405_v31, %v421_v32 }
 0x21e   :  { %3771 = vmatpush2.bf16.msra.mxu0 %v10476_v39  ;;  %3814 = vmatpush2.bf16.msra.mxu1 %v10478_v40  ;;  %v373_v39 = vld [vmem:[#allocation2 + $0x678] sm:$0xff] }
 0x21f   :  { %3772 = vmatprep.subr.bf16.mxu0 %v10445_v41  ;;  %3815 = vmatprep.subr.bf16.mxu1 %v10447_v42  ;;  %v389_v40 = vld [vmem:[#allocation2 + $0x6f8] sm:$0xff]  ;;  %v10224_v41 = vcombine.low %v404_v29, %v420_v30  ;;  %v10226_v42 = vcombine.low %v405_v31, %v421_v32 }
 0x220   :  { %v10195_v44 = vcombine.high %v373_v39, %v389_v40 }
 0x222   :  { %3773 = vmatpush2.bf16.msra.mxu0 %v10444_v47  ;;  %3816 = vmatpush2.bf16.msra.mxu1 %v10446_v48  ;;  %v341_v47 = vld [vmem:[#allocation2 + $0x578] sm:$0xff] }
 0x223   :  { %3774 = vmatprep.subr.bf16.mxu0 %v10413_v49  ;;  %3817 = vmatprep.subr.bf16.mxu1 %v10415_v50  ;;  %v357_v48 = vld [vmem:[#allocation2 + $0x5f8] sm:$0xff]  ;;  %v10192_v49 = vcombine.low %v372_v37, %v388_v38  ;;  %v10194_v50 = vcombine.low %v373_v39, %v389_v40 }
 0x224   :  { %v10163_v52 = vcombine.high %v341_v47, %v357_v48  ;;  %v661_v37 = vld [vmem:[#allocation2 + $0xf78] sm:$0xff] }
 0x225   :  { %v677_v38 = vld [vmem:[#allocation2 + $0xff8] sm:$0xff] }
 0x226   :  { %3775 = vmatpush2.bf16.msra.mxu0 %v10412_v55  ;;  %3818 = vmatpush2.bf16.msra.mxu1 %v10414_v56  ;;  %v309_v55 = vld [vmem:[#allocation2 + $0x478] sm:$0xff] }
 0x227   :  { %3776 = vmatprep.subr.bf16.mxu0 %v10381_v57  ;;  %3819 = vmatprep.subr.bf16.mxu1 %v10383_v59  ;;  %v325_v56 = vld [vmem:[#allocation2 + $0x4f8] sm:$0xff]  ;;  %v10160_v57 = vcombine.low %v340_v45, %v356_v46  ;;  %v10162_v59 = vcombine.low %v341_v47, %v357_v48  ;;  %v644_v45 = vld [vmem:[#allocation2 + $0xef0] sm:$0xff] }
 0x228   :  { %v10131_v61 = vcombine.high %v309_v55, %v325_v56  ;;  %v10130_v4 = vcombine.low %v309_v55, %v325_v56  ;;  %v629_v46 = vld [vmem:[#allocation2 + $0xe78] sm:$0xff] }
 0x229   :  { %v645_v47 = vld [vmem:[#allocation2 + $0xef8] sm:$0xff] }
 0x22a   :  { %3777 = vmatpush2.bf16.msra.mxu0 %v10380_v0  ;;  %3820 = vmatpush2.bf16.msra.mxu1 %v10382_v1  ;;  %v277_v0 = vld [vmem:[#allocation2 + $0x378] sm:$0xff] }
 0x22b   :  { %3778 = vmatprep.subr.bf16.mxu0 %v10349_v2  ;;  %3821 = vmatprep.subr.bf16.mxu1 %v10351_v3  ;;  %v293_v1 = vld [vmem:[#allocation2 + $0x3f8] sm:$0xff]  ;;  %v11597_v2 = vpop.f32.mrf.mxu1  ;;  %v10128_v3 = vcombine.low %v308_v53, %v324_v54  ;;  %v596_v53 = vld [vmem:[#allocation2 + $0xd70] sm:$0xff] }
 0x22c   :  { %v10099_v5 = vcombine.high %v277_v0, %v293_v1  ;;  %v10098_v12 = vcombine.low %v277_v0, %v293_v1  ;;  %v612_v54 = vld [vmem:[#allocation2 + $0xdf0] sm:$0xff]  ;;  %v597_v55 = vld [vmem:[#allocation2 + $0xd78] sm:$0xff] }
 0x22d   :  { %v613_v56 = vld [vmem:[#allocation2 + $0xdf8] sm:$0xff]  ;;  %v580_v0 = vld [vmem:[#allocation2 + $0xcf0] sm:$0xff] }
 0x22e   :  { %3779 = vmatpush2.bf16.msra.mxu0 %v10348_v8  ;;  %3822 = vmatpush2.bf16.msra.mxu1 %v10350_v9  ;;  %v245_v8 = vld [vmem:[#allocation2 + $0x278] sm:$0xff] }
 0x22f   :  { %3780 = vmatprep.subr.bf16.mxu0 %v10317_v10  ;;  %3823 = vmatprep.subr.bf16.mxu1 %v10319_v11  ;;  %v261_v9 = vld [vmem:[#allocation2 + $0x2f8] sm:$0xff]  ;;  %v11599_v10 = vpop.f32.mrf.mxu1  ;;  %v10096_v11 = vcombine.low %v276_v62, %v292_v63 }
 0x230   :  { %v10067_v15 = vcombine.high %v245_v8, %v261_v9  ;;  %v10066_v22 = vcombine.low %v245_v8, %v261_v9  ;;  %v565_v1 = vld [vmem:[#allocation2 + $0xc78] sm:$0xff]  ;;  %v532_v8 = vld [vmem:[#allocation2 + $0xb70] sm:$0xff] }
 0x231   :  { %v548_v9 = vld [vmem:[#allocation2 + $0xbf0] sm:$0xff] }
 0x232   :  { %3781 = vmatpush2.bf16.msra.mxu0 %v10316_v17  ;;  %3824 = vmatpush2.bf16.msra.mxu1 %v10318_v18  ;;  %v228_v17 = vld [vmem:[#allocation2 + $0x1f0] sm:$0xff]  ;;  %v213_v18 = vld [vmem:[#allocation2 + $0x178] sm:$0xff] }
 0x233   :  { %3782 = vmatprep.subr.bf16.mxu0 %v10285_v19  ;;  %3825 = vmatprep.subr.bf16.mxu1 %v10287_v20  ;;  %v229_v19 = vld [vmem:[#allocation2 + $0x1f8] sm:$0xff]  ;;  %v11601_v20 = vpop.f32.mrf.mxu1  ;;  %v10033_v23 = vcombine.high %v212_v16, %v228_v17  ;;  %v10032_v30 = vcombine.low %v212_v16, %v228_v17  ;;  %v10353_v17 = vcombine.high %v532_v8, %v548_v9 }
 0x234   :  { %v10035_v24 = vcombine.high %v213_v18, %v229_v19  ;;  %v10034_v31 = vcombine.low %v213_v18, %v229_v19  ;;  %v500_v19 = vld [vmem:[#allocation2 + $0xa70] sm:$0xff] }
 0x235   :  { %v11603_v29 = vpop.f32.mrf.mxu1 }
 0x236   :  { %3783 = vmatpush2.bf16.msra.mxu0 %v10284_v25  ;;  %3826 = vmatpush2.bf16.msra.mxu1 %v10286_v26  ;;  %v180_v25 = vld [vmem:[#allocation2 + $0x70] sm:$0xff] }
 0x237   :  { %3784 = vmatprep.subr.bf16.mxu0 %v10253_v27  ;;  %3827 = vmatprep.subr.bf16.mxu1 %v10255_v28  ;;  %v196_v26 = vld [vmem:[#allocation2 + $0xf0] sm:$0xff]  ;;  %v181_v27 = vld [vmem:[#allocation2 + $0x78] sm:$0xff] }
 0x238   :  { %v197_v28 = vld [vmem:[#allocation2 + $0xf8] sm:$0xff]  ;;  %v10001_v32 = vcombine.high %v180_v25, %v196_v26  ;;  %v10000_v39 = vcombine.low %v180_v25, %v196_v26  ;;  %v10352_v25 = vcombine.low %v532_v8, %v548_v9 }
 0x239   :  { %v10002_v40 = vcombine.low %v181_v27, %v197_v28 }
 0x23a   :  { %3785 = vmatpush2.bf16.msra.mxu0 %v10252_v33  ;;  %3828 = vmatpush2.bf16.msra.mxu1 %v10254_v34  ;;  %v11605_v33 = vpop.f32.mrf.mxu1  ;;  %v10003_v34 = vcombine.high %v181_v27, %v197_v28 }
 0x23b   :  { %3840 = vmatprep.subr.bf16.mxu0 %v10225_v35  ;;  %3883 = vmatprep.subr.bf16.mxu1 %v10227_v36  ;;  %v660_v35 = vld [vmem:[#allocation2 + $0xf70] sm:$0xff] }
 0x23c   :  { %v676_v36 = vld [vmem:[#allocation2 + $0xff0] sm:$0xff] }
 0x23d   :  { %3787 = vmatmul.mubr.bf16.vlgmr.msra.gmra.mxu0 %v11567_v14  ;;  %3830 = vmatmul.mubr.bf16.vlgmr.msra.gmra.mxu1 %v11567_v14  ;;  %v10480_v48 = vcombine.low %v660_v35, %v676_v36 }
 0x23e   :  { %3841 = vmatpush1.bf16.msra.mxu0 %v10224_v41  ;;  %3884 = vmatpush1.bf16.msra.mxu1 %v10226_v42  ;;  %v10481_v41 = vcombine.high %v660_v35, %v676_v36  ;;  %v11607_v42 = vpop.f32.mrf.mxu1 }
 0x23f   :  { %3842 = vmatprep.subr.bf16.mxu0 %v10193_v43  ;;  %3885 = vmatprep.subr.bf16.mxu1 %v10195_v44  ;;  %v10483_v43 = vcombine.high %v661_v37, %v677_v38  ;;  %v628_v44 = vld [vmem:[#allocation2 + $0xe70] sm:$0xff] }
 0x240   :  { %3872 = vmatprep.mubr.bf16.mxu0 %v11557_v58  ;;  %3915 = vmatprep.mubr.bf16.mxu1 %v11557_v58  ;;  %v10097_v58 = vcombine.high %v276_v62, %v292_v63  ;;  %v10419_v62 = vcombine.high %v597_v55, %v613_v56  ;;  %v564_v63 = vld [vmem:[#allocation2 + $0xc70] sm:$0xff] }
 0x241   :  { %v10385_v6 = vcombine.high %v564_v63, %v580_v0 }
 0x242   :  { %3843 = vmatpush1.bf16.msra.mxu0 %v10192_v49  ;;  %3886 = vmatpush1.bf16.msra.mxu1 %v10194_v50  ;;  %v10482_v49 = vcombine.low %v661_v37, %v677_v38  ;;  %v10449_v50 = vcombine.high %v628_v44, %v644_v45 }
 0x243   :  { %3844 = vmatprep.subr.bf16.mxu0 %v10161_v51  ;;  %3887 = vmatprep.subr.bf16.mxu1 %v10163_v52  ;;  %v11609_v51 = vpop.f32.mrf.mxu1  ;;  %v10451_v52 = vcombine.high %v629_v46, %v645_v47 }
 0x246   :  { %3845 = vmatpush1.bf16.msra.mxu0 %v10160_v57  ;;  %3888 = vmatpush1.bf16.msra.mxu1 %v10162_v59  ;;  %v10448_v57 = vcombine.low %v628_v44, %v644_v45  ;;  %v10450_v59 = vcombine.low %v629_v46, %v645_v47  ;;  %v437_v44 = vld [vmem:[#allocation2 + $0x878] sm:$0xff] }
 0x247   :  { %3846 = vmatprep.subr.bf16.mxu0 %v10129_v60  ;;  %3889 = vmatprep.subr.bf16.mxu1 %v10131_v61  ;;  %v10417_v60 = vcombine.high %v596_v53, %v612_v54  ;;  %v11611_v61 = vpop.f32.mrf.mxu1  ;;  %v453_v45 = vld [vmem:[#allocation2 + $0x8f8] sm:$0xff] }
 0x24a   :  { %3847 = vmatpush1.bf16.msra.mxu0 %v10128_v3  ;;  %3890 = vmatpush1.bf16.msra.mxu1 %v10130_v4  ;;  %v581_v3 = vld [vmem:[#allocation2 + $0xcf8] sm:$0xff]  ;;  %v11613_v4 = vpop.f32.mrf.mxu1 }
 0x24b   :  { %3848 = vmatprep.subr.bf16.mxu0 %v10097_v58  ;;  %3891 = vmatprep.subr.bf16.mxu1 %v10099_v5  ;;  %v10416_v58 = vcombine.low %v596_v53, %v612_v54  ;;  %v10418_v5 = vcombine.low %v597_v55, %v613_v56  ;;  %v10387_v7 = vcombine.high %v565_v1, %v581_v3  ;;  %v3272_v55 = vpop.f32.mrf.mxu0  ;;  %v11630_v56 = vld [vmem:[%s12470_s0 + $0x8] sm:$0xff] }
 0x24c   :  { %v10386_v16 = vcombine.low %v565_v1, %v581_v3  ;;  %v10258_v53 = vcombine.low %v437_v44, %v453_v45 }
 0x24e   :  { %3849 = vmatpush1.bf16.msra.mxu0 %v10096_v11  ;;  %3892 = vmatpush1.bf16.msra.mxu1 %v10098_v12  ;;  %v533_v11 = vld [vmem:[#allocation2 + $0xb78] sm:$0xff] }
 0x24f   :  { %3850 = vmatprep.subr.bf16.mxu0 %v10065_v13  ;;  %3893 = vmatprep.subr.bf16.mxu1 %v10067_v15  ;;  %v549_v12 = vld [vmem:[#allocation2 + $0xbf8] sm:$0xff]  ;;  %v11615_v13 = vpop.f32.mrf.mxu1  ;;  %v10384_v15 = vcombine.low %v564_v63, %v580_v0 }
 0x250   :  { %v10355_v18 = vcombine.high %v533_v11, %v549_v12  ;;  %v10354_v26 = vcombine.low %v533_v11, %v549_v12 }
 0x252   :  { %3851 = vmatpush1.bf16.msra.mxu0 %v10064_v21  ;;  %3894 = vmatpush1.bf16.msra.mxu1 %v10066_v22  ;;  %v516_v21 = vld [vmem:[#allocation2 + $0xaf0] sm:$0xff]  ;;  %v501_v22 = vld [vmem:[#allocation2 + $0xa78] sm:$0xff] }
 0x253   :  { %3852 = vmatprep.subr.bf16.mxu0 %v10033_v23  ;;  %3895 = vmatprep.subr.bf16.mxu1 %v10035_v24  ;;  %v517_v23 = vld [vmem:[#allocation2 + $0xaf8] sm:$0xff]  ;;  %v11617_v24 = vpop.f32.mrf.mxu1  ;;  %v10321_v27 = vcombine.high %v500_v19, %v516_v21  ;;  %v10320_v36 = vcombine.low %v500_v19, %v516_v21 }
 0x254   :  { %v10323_v28 = vcombine.high %v501_v22, %v517_v23  ;;  %v10322_v37 = vcombine.low %v501_v22, %v517_v23 }
 0x255   :  { %v11619_v35 = vpop.f32.mrf.mxu1 }
 0x256   :  { %3853 = vmatpush1.bf16.msra.mxu0 %v10032_v30  ;;  %3896 = vmatpush1.bf16.msra.mxu1 %v10034_v31  ;;  %v468_v30 = vld [vmem:[#allocation2 + $0x970] sm:$0xff] }
 0x257   :  { %3854 = vmatprep.subr.bf16.mxu0 %v10001_v32  ;;  %3897 = vmatprep.subr.bf16.mxu1 %v10003_v34  ;;  %v484_v31 = vld [vmem:[#allocation2 + $0x9f0] sm:$0xff]  ;;  %v469_v32 = vld [vmem:[#allocation2 + $0x978] sm:$0xff] }
 0x258   :  { %v485_v34 = vld [vmem:[#allocation2 + $0x9f8] sm:$0xff]  ;;  %v10289_v38 = vcombine.high %v468_v30, %v484_v31  ;;  %v10288_v46 = vcombine.low %v468_v30, %v484_v31 }
 0x259   :  { %v10290_v47 = vcombine.low %v469_v32, %v485_v34 }
 0x25a   :  { %3855 = vmatpush1.bf16.msra.mxu0 %v10000_v39  ;;  %3898 = vmatpush1.bf16.msra.mxu1 %v10002_v40  ;;  %v11621_v39 = vpop.f32.mrf.mxu1  ;;  %v10291_v40 = vcombine.high %v469_v32, %v485_v34 }
 0x25b   :  { %3856 = vmatprep.subr.bf16.mxu0 %v10481_v41  ;;  %3899 = vmatprep.subr.bf16.mxu1 %v10483_v43  ;;  %v436_v41 = vld [vmem:[#allocation2 + $0x870] sm:$0xff] }
 0x25c   :  { %v452_v43 = vld [vmem:[#allocation2 + $0x8f0] sm:$0xff] }
 0x25e   :  { %3857 = vmatpush2.bf16.msra.mxu0 %v10480_v48  ;;  %3900 = vmatpush2.bf16.msra.mxu1 %v10482_v49  ;;  %v10257_v48 = vcombine.high %v436_v41, %v452_v43  ;;  %v11623_v49 = vpop.f32.mrf.mxu1 }
 0x25f   :  { %3858 = vmatprep.subr.bf16.mxu0 %v10449_v50  ;;  %3901 = vmatprep.subr.bf16.mxu1 %v10451_v52  ;;  %v10259_v50 = vcombine.high %v437_v44, %v453_v45  ;;  %v10256_v52 = vcombine.low %v436_v41, %v452_v43 }
 0x260   :  { %v11625_v54 = vpop.f32.mrf.mxu1 }
 0x262   :  { %3859 = vmatpush2.bf16.msra.mxu0 %v10448_v57  ;;  %3902 = vmatpush2.bf16.msra.mxu1 %v10450_v59  ;;  %v11633_v57 = vpop.f32.mrf.mxu1  ;;  %v3274_v59 = vpop.f32.mrf.mxu0 }
 0x263   :  { %3860 = vmatprep.subr.bf16.mxu0 %v10417_v60  ;;  %3903 = vmatprep.subr.bf16.mxu1 %v10419_v62  ;;  %v11641_v62 = vld [vmem:[%s12470_s0] sm:$0xff] }
 0x266   :  { %3861 = vmatpush2.bf16.msra.mxu0 %v10416_v58  ;;  %3904 = vmatpush2.bf16.msra.mxu1 %v10418_v5 }
 0x267   :  { %3862 = vmatprep.subr.bf16.mxu0 %v10385_v6  ;;  %3905 = vmatprep.subr.bf16.mxu1 %v10387_v7 }
 0x26a   :  { %3863 = vmatpush2.bf16.msra.mxu0 %v10384_v15  ;;  %3906 = vmatpush2.bf16.msra.mxu1 %v10386_v16 }
 0x26b   :  { %3864 = vmatprep.subr.bf16.mxu0 %v10353_v17  ;;  %3907 = vmatprep.subr.bf16.mxu1 %v10355_v18 }
 0x26e   :  { %3865 = vmatpush2.bf16.msra.mxu0 %v10352_v25  ;;  %3908 = vmatpush2.bf16.msra.mxu1 %v10354_v26 }
 0x26f   :  { %3866 = vmatprep.subr.bf16.mxu0 %v10321_v27  ;;  %3909 = vmatprep.subr.bf16.mxu1 %v10323_v28 }
 0x272   :  { %3867 = vmatpush2.bf16.msra.mxu0 %v10320_v36  ;;  %3910 = vmatpush2.bf16.msra.mxu1 %v10322_v37 }
 0x273   :  { %3868 = vmatprep.subr.bf16.mxu0 %v10289_v38  ;;  %3911 = vmatprep.subr.bf16.mxu1 %v10291_v40 }
 0x276   :  { %3869 = vmatpush2.bf16.msra.mxu0 %v10288_v46  ;;  %3912 = vmatpush2.bf16.msra.mxu1 %v10290_v47 }
 0x277   :  { %3870 = vmatprep.subr.bf16.mxu0 %v10257_v48  ;;  %3913 = vmatprep.subr.bf16.mxu1 %v10259_v50 }
 0x27a   :  { %3871 = vmatpush2.bf16.msra.mxu0 %v10256_v52  ;;  %3914 = vmatpush2.bf16.msra.mxu1 %v10258_v53 }
 0x27b   :  { %3956 = vmatprep.subr.mxu0 %v11630_v56  ;;  %4038 = vmatprep.subr.mxu1 %v11630_v56 }
 0x27d   :  { %3873 = vmatmul.mubr.bf16.vlgmr.msra.gmra.mxu0 %v11567_v14  ;;  %v3659_v60 = vpop.f32.mrf.mxu1  ;;  %3916 = vmatmul.mubr.bf16.vlgmr.msra.gmra.mxu1 %v11567_v14  ;;  %v11648_v14 = vpop.f32.mrf.mxu0 }
 0x27e   :  { %3957 = vmatpush1.xpose.msra.mxu0 %v11641_v62  ;;  %4039 = vmatpush1.xpose.msra.mxu1 %v11641_v62 }
 0x27f   :  { %4072 = vmatprep.mubr.f32.mxu1 %v11599_v10  ;;  %v3661_v63 = vpop.f32.mrf.mxu1  ;;  %3990 = vmatprep.mubr.f32.mxu0 %v3274_v59  ;;  %v11650_v0 = vpop.f32.mrf.mxu0 }
 0x280   :  { %4122 = vmatprep.subr.mxu0 %v3661_v63 }
 0x281   :  { %v11652_v1 = vpop.f32.mrf.mxu0  ;;  %v11682_v22 = vpop.f32.mrf.mxu1 }
 0x283   :  { %v11654_v3 = vpop.f32.mrf.mxu0  ;;  %v11684_v23 = vpop.f32.mrf.mxu1 }
 0x285   :  { %3991 = vmatmul.mubr.f32.vlgmr.msra.gmra.mxu0 %v3272_v55  ;;  %4073 = vmatmul.mubr.f32.vlgmr.msra.gmra.mxu1 %v11597_v2  ;;  %v11656_v58 = vpop.f32.mrf.mxu0 }
 0x286   :  { %4123 = vmatpush1.msra.mxu0 %v3659_v60 }
 0x287   :  { %4267 = vmatprep.subr.mxu0 %v11630_v56  ;;  %v11658_v10 = vpop.f32.mrf.mxu0 }
 0x289   :  { %v11660_v5 = vpop.f32.mrf.mxu0 }
 0x28b   :  { %v11662_v6 = vpop.f32.mrf.mxu0 }
 0x28d   :  { %v11664_v2 = vpop.f32.mrf.mxu0 }
 0x28f   :  { %v11666_v7 = vpop.f32.mrf.mxu0 }
 0x291   :  { %v11668_v8 = vpop.f32.mrf.mxu0 }
 0x293   :  { %v11670_v9 = vpop.f32.mrf.mxu0 }
 0x295   :  { %v11672_v11 = vpop.f32.mrf.mxu0 }
 0x297   :  { %v11674_v12 = vpop.f32.mrf.mxu0 }
 0x299   :  { %v3616_v15 = vpop.f32.mrf.mxu0 }
 0x29b   :  { %v3618_v16 = vpop.f32.mrf.mxu0 }
 0x29c   :  { %4196 = vmatprep.subr.mxu1 %v3618_v16 }
 0x29d   :  { %v11676_v17 = vpop.f32.mrf.mxu0  ;;  %4197 = vmatpush1.msra.mxu1 %v3616_v15 }
 0x29f   :  { %v11678_v18 = vpop.f32.mrf.mxu0 }
 0x2bd   :  { %v11680_v19 = vpop.f32.mrf.mxu0  ;;  %v11686_v25 = vpop.f32.mrf.mxu1 }
 0x2bf   :  { %v3704_v21 = vpop.f32.mrf.mxu0  ;;  %v11690_v27 = vpop.f32.mrf.mxu1 }
 0x2c0   :  { %4351 = vmatprep.subr.mxu1 %v3704_v21 }
 0x2c1   :  { %v11688_v26 = vpop.f32.mrf.mxu0  ;;  %v11694_v30 = vpop.f32.mrf.mxu1 }
 0x2c3   :  { %v11692_v28 = vpop.f32.mrf.mxu0  ;;  %v11698_v32 = vpop.f32.mrf.mxu1 }
 0x2fd   :  { %v11696_v31 = vpop.f32.mrf.mxu0  ;;  %v11700_v34 = vpop.f32.mrf.mxu1 }
 0x2ff   :  { %v11702_v36 = vpop.f32.mrf.mxu0  ;;  %v11704_v37 = vpop.f32.mrf.mxu1 }
 0x301   :  { %v11706_v38 = vpop.f32.mrf.mxu0  ;;  %v11708_v40 = vpop.f32.mrf.mxu1 }
 0x302   :  { %12486 = vst [vmem:[#allocation24_spill] sm:$0xff] %v11706_v38  ;;  %12487 = vst [vmem:[#allocation25_spill] sm:$0xff] %v11708_v40 }
 0x303   :  { %v11710_v41 = vpop.f32.mrf.mxu0  ;;  %v11712_v43 = vpop.f32.mrf.mxu1 }
 0x304   :  { %12488 = vst [vmem:[#allocation26_spill] sm:$0xff] %v11712_v43 }
 0x33d   :  { %v11714_v44 = vpop.f32.mrf.mxu0  ;;  %v11716_v45 = vpop.f32.mrf.mxu1 }
 0x33f   :  { %v11718_v46 = vpop.f32.mrf.mxu0  ;;  %v11720_v47 = vpop.f32.mrf.mxu1 }
 0x341   :  { %v11722_v48 = vpop.f32.mrf.mxu0  ;;  %v11724_v50 = vpop.f32.mrf.mxu1 }
 0x342   :  { %12489 = vst [vmem:[#allocation27_spill] sm:$0xff] %v11722_v48  ;;  %12490 = vst [vmem:[#allocation28_spill] sm:$0xff] %v11724_v50 }
 0x343   :  { %v11726_v52 = vpop.f32.mrf.mxu0  ;;  %v11728_v53 = vpop.f32.mrf.mxu1 }
 0x344   :  { %12491 = vst [vmem:[#allocation29_spill] sm:$0xff] %v11726_v52  ;;  %12492 = vst [vmem:[#allocation30_spill] sm:$0xff] %v11728_v53  ;;  %v11460_v53 = vmov 0.0  }
 0x345   :  { %v3992_v55 = vpop.f32.mrf.mxu0  ;;  %v4074_v59 = vpop.f32.mrf.mxu1  ;;  %4156 = vmatprep.mubr.f32.mxu0 %v11460_v53  ;;  %4230 = vmatprep.mubr.f32.mxu1 %v11460_v53 }
 0x346   :  { %v3997_v60 = vsel %vm3996_vm0, %v3992_v55, -inf  ;;  %v4078_v63 = vsel %vm3996_vm0, %v4074_v59, -inf }
 0x347   :  { %3998 = vmax.xlane.f32.xlu1 %v3997_v60  ;;  %v3994_v15 = vpop.f32.mrf.mxu0  ;;  %4079 = vmax.xlane.f32.xlu0 %v4078_v63  ;;  %v4076_v16 = vpop.f32.mrf.mxu1 }
 0x3d0   :  { %v4080_v21 = vpop.xlane.xlu0 %4079 }
 0x3d1   :  { %v4081_v40 = vsub.f32 %v4074_v59, %v4080_v21 }
 0x3d3   :  { %v4082_v48 = vmul.f32 1.442695, %v4081_v40 }
 0x3d5   :  { %11092 = vpow2.f32 %v4082_v48 }
 0x3e2   :  { %v11093_v50 = vpop.eup %11092 }
 0x3e3   :  { %v4084_v52 = vsel %vm3996_vm0, %v11093_v50, 0.0 }
 0x3e4   :  { %4085 = vadd.xlane.f32.xlu0 %v4084_v52 }
 0x46d   :  { %v4086_v43 = vpop.xlane.xlu0 %4085 }
 0x46e   :  { %11094 = vrcp.f32 %v4086_v43 }
 0x47b   :  { %v11095_v38 = vpop.eup %11094 }
 0x47c   :  { %v4088_v60 = vmul.f32 %v11095_v38, %v11093_v50 }
 0x47e   :  { %10484 = vmatmul.mubr.msk.f32.vlgmr.msra.gmra.mxu0 %vm3996_vm0, %v4088_v60 }
 0x47f   :  { %4268 = vmatpush1.xpose.msra.mxu0 %v11641_v62  ;;  %4301 = vmatprep.mubr.f32.mxu0 %v11654_v3 }
 0x480   :  { %4424 = vmatprep.subr.mxu0 %v11630_v56 }
 0x482   :  { %4302 = vmatmul.mubr.f32.vlgmr.msra.gmra.mxu0 %v11652_v1 }
 0x483   :  { %4425 = vmatpush1.xpose.msra.mxu0 %v11641_v62  ;;  %4458 = vmatprep.mubr.f32.mxu0 %v11607_v42  ;;  %v11768_v42 = vld [vmem:[%s12470_s0 + $0x10] sm:$0xff] }
 0x484   :  { %4581 = vmatprep.subr.mxu0 %v11630_v56 }
 0x486   :  { %4459 = vmatmul.mubr.f32.vlgmr.msra.gmra.mxu0 %v11605_v33  ;;  %v11761_v33 = vld [vmem:[%s12470_s0 + $0x18] sm:$0xff] }
 0x487   :  { %4582 = vmatpush1.xpose.msra.mxu0 %v11641_v62  ;;  %4615 = vmatprep.mubr.f32.mxu0 %v11662_v6 }
 0x488   :  { %4738 = vmatprep.subr.mxu0 %v11630_v56 }
 0x48a   :  { %4616 = vmatmul.mubr.f32.vlgmr.msra.gmra.mxu0 %v11660_v5 }
 0x48b   :  { %4739 = vmatpush1.xpose.msra.mxu0 %v11641_v62  ;;  %4772 = vmatprep.mubr.f32.mxu0 %v11615_v13 }
 0x48c   :  { %4895 = vmatprep.subr.mxu0 %v11630_v56 }
 0x48e   :  { %4773 = vmatmul.mubr.f32.vlgmr.msra.gmra.mxu0 %v11613_v4  ;;  %v3999_v4 = vpop.xlane.xlu1 %3998 }
 0x48f   :  { %4896 = vmatpush1.xpose.msra.mxu0 %v11641_v62  ;;  %4929 = vmatprep.mubr.f32.mxu0 %v11670_v9 }
 0x490   :  { %5052 = vmatprep.subr.mxu0 %v11630_v56 }
 0x492   :  { %4930 = vmatmul.mubr.f32.vlgmr.msra.gmra.mxu0 %v11668_v8 }
 0x493   :  { %5053 = vmatpush1.xpose.msra.mxu0 %v11641_v62  ;;  %5086 = vmatprep.mubr.f32.mxu0 %v11623_v49 }
 0x494   :  { %5209 = vmatprep.subr.mxu0 %v11761_v33 }
 0x496   :  { %5087 = vmatmul.mubr.f32.vlgmr.msra.gmra.mxu0 %v11621_v39  ;;  %v4000_v39 = vsub.f32 %v3992_v55, %v3999_v4 }
 0x497   :  { %5210 = vmatpush1.xpose.msra.mxu0 %v11768_v42  ;;  %5243 = vmatprep.mubr.f32.mxu0 %v11650_v0 }
 0x498   :  { %5374 = vmatprep.subr.mxu0 %v11684_v23  ;;  %v4001_v62 = vmul.f32 1.442695, %v4000_v39 }
 0x49a   :  { %5244 = vmatmul.mubr.f32.vlgmr.msra.gmra.mxu0 %v11648_v14  ;;  %11096 = vpow2.f32 %v4001_v62 }
 0x49b   :  { %5375 = vmatpush1.msra.mxu0 %v11682_v22  ;;  %5408 = vmatprep.mubr.f32.mxu0 %v11460_v53 }
 0x49c   :  { %5519 = vmatprep.subr.mxu0 %v11761_v33 }
 0x4a7   :  { %v11097_v48 = vpop.eup %11096 }
 0x4a8   :  { %v4003_v55 = vsel %vm3996_vm0, %v11097_v48, 0.0 }
 0x53e   :  { %v11777_v13 = vpop.f32.mrf.mxu0 }
 0x540   :  { %v11779_v49 = vpop.f32.mrf.mxu0 }
 0x542   :  { %v4303_v56 = vpop.f32.mrf.mxu0 }
 0x543   :  { %v4307_v0 = vsel %vm3996_vm0, %v4303_v56, -inf }
 0x544   :  { %4308 = vmax.xlane.f32.xlu1 %v4307_v0  ;;  %v4305_v1 = vpop.f32.mrf.mxu0 }
 0x546   :  { %v4460_v3 = vpop.f32.mrf.mxu0 }
 0x547   :  { %v4464_v14 = vsel %vm3996_vm0, %v4460_v3, -inf }
 0x548   :  { %4465 = vmax.xlane.f32.xlu0 %v4464_v14  ;;  %v4462_v5 = vpop.f32.mrf.mxu0 }
 0x54a   :  { %v4617_v6 = vpop.f32.mrf.mxu0 }
 0x54b   :  { %v4621_v8 = vsel %vm3996_vm0, %v4617_v6, -inf }
 0x54c   :  { %4622 = vmax.xlane.f32.xlu1 %v4621_v8  ;;  %v4619_v9 = vpop.f32.mrf.mxu0 }
 0x54e   :  { %v4774_v22 = vpop.f32.mrf.mxu0 }
 0x54f   :  { %v4778_v23 = vsel %vm3996_vm0, %v4774_v22, -inf }
 0x550   :  { %4779 = vmax.xlane.f32.xlu0 %v4778_v23  ;;  %v4776_v38 = vpop.f32.mrf.mxu0 }
 0x552   :  { %v4931_v40 = vpop.f32.mrf.mxu0 }
 0x553   :  { %v4935_v43 = vsel %vm3996_vm0, %v4931_v40, -inf }
 0x554   :  { %4936 = vmax.xlane.f32.xlu1 %v4935_v43  ;;  %v4933_v50 = vpop.f32.mrf.mxu0 }
 0x556   :  { %v5088_v52 = vpop.f32.mrf.mxu0 }
 0x557   :  { %v5092_v59 = vsel %vm3996_vm0, %v5088_v52, -inf }
 0x558   :  { %4004 = vadd.xlane.f32.xlu1 %v4003_v55  ;;  %5093 = vmax.xlane.f32.xlu0 %v5092_v59  ;;  %v5090_v63 = vpop.f32.mrf.mxu0 }
 0x55a   :  { %v11788_v15 = vpop.f32.mrf.mxu0 }
 0x55c   :  { %v5247_v16 = vpop.f32.mrf.mxu0 }
 0x5cd   :  { %v4309_v21 = vpop.xlane.xlu1 %4308 }
 0x5ce   :  { %v4310_v60 = vsub.f32 %v4303_v56, %v4309_v21 }
 0x5d0   :  { %v4311_v4 = vmul.f32 1.442695, %v4310_v60 }
 0x5d1   :  { %v4466_v39 = vpop.xlane.xlu0 %4465 }
 0x5d2   :  { %11098 = vpow2.f32 %v4311_v4  ;;  %v4467_v62 = vsub.f32 %v4460_v3, %v4466_v39 }
 0x5d4   :  { %v4468_v0 = vmul.f32 1.442695, %v4467_v62 }
 0x5d5   :  { %v4623_v1 = vpop.xlane.xlu1 %4622 }
 0x5d6   :  { %11100 = vpow2.f32 %v4468_v0  ;;  %v4624_v14 = vsub.f32 %v4617_v6, %v4623_v1 }
 0x5d8   :  { %v4625_v5 = vmul.f32 1.442695, %v4624_v14 }
 0x5d9   :  { %v4780_v8 = vpop.xlane.xlu0 %4779 }
 0x5da   :  { %11102 = vpow2.f32 %v4625_v5  ;;  %v4781_v9 = vsub.f32 %v4774_v22, %v4780_v8 }
 0x5dc   :  { %v4782_v23 = vmul.f32 1.442695, %v4781_v9 }
 0x5dd   :  { %v4937_v38 = vpop.xlane.xlu1 %4936 }
 0x5de   :  { %11104 = vpow2.f32 %v4782_v23  ;;  %v4938_v43 = vsub.f32 %v4931_v40, %v4937_v38 }
 0x5df   :  { %v11099_v50 = vpop.eup %11098 }
 0x5e0   :  { %v4939_v55 = vmul.f32 1.442695, %v4938_v43  ;;  %v4313_v56 = vsel %vm3996_vm0, %v11099_v50, 0.0 }
 0x5e1   :  { %v4005_v59 = vpop.xlane.xlu1 %4004  ;;  %4314 = vadd.xlane.f32.xlu0 %v4313_v56  ;;  %v5094_v63 = vpop.xlane.xlu0 %5093 }
 0x5e2   :  { %11106 = vpow2.f32 %v4939_v55  ;;  %v5095_v3 = vsub.f32 %v5088_v52, %v5094_v63 }
 0x5e3   :  { %v11101_v16 = vpop.eup %11100  ;;  %11108 = vrcp.f32 %v4005_v59 }
 0x5e4   :  { %v5096_v6 = vmul.f32 1.442695, %v5095_v3  ;;  %v4470_v21 = vsel %vm3996_vm0, %v11101_v16, 0.0 }
 0x5e5   :  { %4471 = vadd.xlane.f32.xlu1 %v4470_v21 }
 0x5e6   :  { %11110 = vpow2.f32 %v5096_v6 }
 0x5e7   :  { %v11103_v22 = vpop.eup %11102 }
 0x5e8   :  { %v4627_v60 = vsel %vm3996_vm0, %v11103_v22, 0.0 }
 0x5e9   :  { %4628 = vadd.xlane.f32.xlu0 %v4627_v60 }
 0x5eb   :  { %v11105_v40 = vpop.eup %11104 }
 0x5ec   :  { %v4784_v4 = vsel %vm3996_vm0, %v11105_v40, 0.0 }
 0x5ed   :  { %4785 = vadd.xlane.f32.xlu1 %v4784_v4 }
 0x5ef   :  { %v11107_v39 = vpop.eup %11106 }
 0x5f0   :  { %v11109_v62 = vpop.eup %11108  ;;  %v4941_v0 = vsel %vm3996_vm0, %v11107_v39, 0.0 }
 0x5f1   :  { %4942 = vadd.xlane.f32.xlu0 %v4941_v0  ;;  %v4007_v52 = vmul.f32 %v11109_v62, %v11097_v48 }
 0x5f3   :  { %v11111_v1 = vpop.eup %11110  ;;  %10485 = vmatmul.mubr.msk.f32.vlgmr.msra.gmra.mxu1 %vm3996_vm0, %v4007_v52 }
 0x5f4   :  { %4352 = vmatpush1.msra.mxu1 %v11680_v19  ;;  %v5098_v14 = vsel %vm3996_vm0, %v11111_v1, 0.0  ;;  %4385 = vmatprep.mubr.f32.mxu1 %v11460_v53 }
 0x5f5   :  { %4508 = vmatprep.subr.mxu1 %v11690_v27  ;;  %5099 = vadd.xlane.f32.xlu1 %v5098_v14 }
 0x66a   :  { %v4315_v5 = vpop.xlane.xlu0 %4314 }
 0x66b   :  { %11112 = vrcp.f32 %v4315_v5 }
 0x66e   :  { %v4472_v8 = vpop.xlane.xlu1 %4471 }
 0x66f   :  { %11114 = vrcp.f32 %v4472_v8 }
 0x672   :  { %v4629_v9 = vpop.xlane.xlu0 %4628 }
 0x673   :  { %11116 = vrcp.f32 %v4629_v9 }
 0x676   :  { %v4786_v23 = vpop.xlane.xlu1 %4785 }
 0x677   :  { %11118 = vrcp.f32 %v4786_v23 }
 0x678   :  { %v11113_v48 = vpop.eup %11112 }
 0x679   :  { %v4317_v38 = vmul.f32 %v11113_v48, %v11099_v50 }
 0x67a   :  { %v4943_v43 = vpop.xlane.xlu0 %4942 }
 0x67b   :  { %11120 = vrcp.f32 %v4943_v43  ;;  %10486 = vmatmul.mubr.msk.f32.vlgmr.msra.gmra.mxu1 %vm3996_vm0, %v4317_v38  ;;  %v5249_v38 = vsel %vm3996_vm0, %v11788_v15, -inf }
 0x67c   :  { %v11115_v19 = vpop.eup %11114  ;;  %4509 = vmatpush1.msra.mxu1 %v11686_v25  ;;  %4542 = vmatprep.mubr.f32.mxu1 %v11460_v53 }
 0x67d   :  { %4665 = vmatprep.subr.mxu1 %v11702_v36  ;;  %v4474_v27 = vmul.f32 %v11115_v19, %v11101_v16 }
 0x67e   :  { %v5100_v55 = vpop.xlane.xlu1 %5099 }
 0x67f   :  { %11122 = vrcp.f32 %v5100_v55  ;;  %10487 = vmatmul.mubr.msk.f32.vlgmr.msra.gmra.mxu1 %vm3996_vm0, %v4474_v27 }
 0x680   :  { %v11117_v56 = vpop.eup %11116  ;;  %4666 = vmatpush1.msra.mxu1 %v11696_v31  ;;  %4699 = vmatprep.mubr.f32.mxu1 %v11460_v53 }
 0x681   :  { %4822 = vmatprep.subr.mxu1 %v11704_v37  ;;  %v4631_v50 = vmul.f32 %v11117_v56, %v11103_v22 }
 0x683   :  { %10488 = vmatmul.mubr.msk.f32.vlgmr.msra.gmra.mxu1 %vm3996_vm0, %v4631_v50 }
 0x684   :  { %v11119_v25 = vpop.eup %11118  ;;  %4823 = vmatpush1.msra.mxu1 %v11700_v34  ;;  %4856 = vmatprep.mubr.f32.mxu1 %v11460_v53 }
 0x685   :  { %4979 = vmatprep.subr.mxu1 %v11718_v46  ;;  %v4788_v36 = vmul.f32 %v11119_v25, %v11105_v40 }
 0x687   :  { %10489 = vmatmul.mubr.msk.f32.vlgmr.msra.gmra.mxu1 %vm3996_vm0, %v4788_v36 }
 0x688   :  { %v11121_v59 = vpop.eup %11120  ;;  %4980 = vmatpush1.msra.mxu1 %v11714_v44  ;;  %5013 = vmatprep.mubr.f32.mxu1 %v11460_v53 }
 0x689   :  { %5136 = vmatprep.subr.mxu1 %v11720_v47  ;;  %v4945_v31 = vmul.f32 %v11121_v59, %v11107_v39 }
 0x68b   :  { %10490 = vmatmul.mubr.msk.f32.vlgmr.msra.gmra.mxu1 %vm3996_vm0, %v4945_v31 }
 0x68c   :  { %v11123_v37 = vpop.eup %11122  ;;  %5137 = vmatpush1.msra.mxu1 %v11716_v45  ;;  %5170 = vmatprep.mubr.f32.mxu1 %v11460_v53 }
 0x68d   :  { %5290 = vmatprep.subr.mxu1 %v11761_v33  ;;  %v5102_v34 = vmul.f32 %v11123_v37, %v11111_v1 }
 0x68f   :  { %10491 = vmatmul.mubr.msk.f32.vlgmr.msra.gmra.mxu1 %vm3996_vm0, %v5102_v34 }
 0x690   :  { %5291 = vmatpush1.xpose.msra.mxu1 %v11768_v42  ;;  %5324 = vmatprep.mubr.f32.mxu1 %v11603_v29 }
 0x691   :  { %5448 = vmatprep.subr.mxu1 %v11678_v18 }
 0x693   :  { %5325 = vmatmul.mubr.f32.vlgmr.msra.gmra.mxu1 %v11601_v20 }
 0x694   :  { %5449 = vmatpush1.msra.mxu1 %v11676_v17  ;;  %5482 = vmatprep.mubr.f32.mxu1 %v11460_v53 }
 0x695   :  { %5603 = vmatprep.subr.mxu1 %v11692_v28 }
 0x6b3   :  { %v4232_v44 = vpop.f32.mrf.mxu1 }
 0x6b4   :  { %v4233_v46 = vadd.f32 %v4232_v44, %v11777_v13 }
 0x6b5   :  { %v4234_v45 = vpop.f32.mrf.mxu1 }
 0x6b6   :  { %v4235_v16 = vadd.f32 %v4234_v45, %v11779_v49 }
 0x73b   :  { %v4387_v47 = vpop.f32.mrf.mxu1 }
 0x73c   :  { %v4392_v63 = vadd.f32 %v4387_v47, %v4233_v46 }
 0x73d   :  { %v4389_v3 = vpop.f32.mrf.mxu1 }
 0x73e   :  { %v4393_v6 = vadd.f32 %v4389_v3, %v4235_v16 }
 0x73f   :  { %v4544_v29 = vpop.f32.mrf.mxu1 }
 0x740   :  { %v4549_v18 = vadd.f32 %v4544_v29, %v4392_v63 }
 0x741   :  { %v4546_v21 = vpop.f32.mrf.mxu1 }
 0x742   :  { %v4550_v20 = vadd.f32 %v4546_v21, %v4393_v6 }
 0x743   :  { %v4701_v22 = vpop.f32.mrf.mxu1 }
 0x744   :  { %v4706_v17 = vadd.f32 %v4701_v22, %v4549_v18 }
 0x745   :  { %v4703_v60 = vpop.f32.mrf.mxu1 }
 0x746   :  { %v4707_v40 = vadd.f32 %v4703_v60, %v4550_v20 }
 0x747   :  { %v4858_v4 = vpop.f32.mrf.mxu1 }
 0x748   :  { %v4863_v28 = vadd.f32 %v4858_v4, %v4706_v17 }
 0x749   :  { %v4860_v39 = vpop.f32.mrf.mxu1 }
 0x74a   :  { %v4864_v62 = vadd.f32 %v4860_v39, %v4707_v40  ;;  %v6433_v39 = vlaneseq }
 0x74b   :  { %v5015_v0 = vpop.f32.mrf.mxu1 }
 0x74c   :  { %v5020_v13 = vadd.f32 %v5015_v0, %v4863_v28 }
 0x74d   :  { %v5017_v52 = vpop.f32.mrf.mxu1 }
 0x74e   :  { %v5021_v1 = vadd.f32 %v5017_v52, %v4864_v62 }
 0x74f   :  { %v5172_v14 = vpop.f32.mrf.mxu1 }
 0x750   :  { %v11830_v5 = vadd.f32 %v5172_v14, %v5020_v13  ;;  %v11875_v14 = vshrl.u32 %v6433_v39, 7 }
 0x751   :  { %v5174_v49 = vpop.f32.mrf.mxu1 }
 0x752   :  { %v11832_v8 = vadd.f32 %v5174_v49, %v5021_v1 }
 0x753   :  { %v5326_v9 = vpop.f32.mrf.mxu1 }
 0x754   :  { %v5330_v23 = vsel %vm3996_vm0, %v5326_v9, -inf }
 0x755   :  { %5331 = vmax.xlane.f32.xlu0 %v5330_v23  ;;  %v5328_v48 = vpop.f32.mrf.mxu1 }
 0x759   :  { %5250 = vmax.xlane.f32.xlu0 %v5249_v38  ;;  %v11878_v38 = vsub.s32 1, %v11875_v14 }
 0x75b   :  { %12493 = vst [vmem:[#allocation31_spill] sm:$0xff] %v11878_v38 }
 0x7de   :  { %v5332_v43 = vpop.xlane.xlu0 %5331 }
 0x7df   :  { %v5333_v19 = vsub.f32 %v5326_v9, %v5332_v43 }
 0x7e1   :  { %v5334_v27 = vmul.f32 1.442695, %v5333_v19 }
 0x7e3   :  { %11124 = vpow2.f32 %v5334_v27  ;;  %v11882_v27 = vsub.s32 0, %v11875_v14 }
 0x7e5   :  { %12494 = vst [vmem:[#allocation32_spill] sm:$0xff] %v11882_v27 }
 0x7f0   :  { %v11125_v55 = vpop.eup %11124 }
 0x7f1   :  { %v5336_v56 = vsel %vm3996_vm0, %v11125_v55, 0.0 }
 0x7f2   :  { %5337 = vadd.xlane.f32.xlu1 %v5336_v56 }
 0x87b   :  { %v5338_v50 = vpop.xlane.xlu1 %5337 }
 0x87c   :  { %11126 = vrcp.f32 %v5338_v50 }
 0x889   :  { %v11127_v25 = vpop.eup %11126 }
 0x88a   :  { %v5340_v36 = vmul.f32 %v11127_v25, %v11125_v55  ;;  %v6431_v55 = vld [vmem:[#allocation7] sm:$0x3] }
 0x88b   :  { %v11885_v50 = vrot.slane %v6431_v55, %v11878_v38 }
 0x88c   :  { %10492 = vmatmul.mubr.msk.f32.vlgmr.msra.gmra.mxu0 %vm3996_vm0, %v5340_v36  ;;  %v11889_v36 = vrot.slane %v6431_v55, %v11882_v27 }
 0x88d   :  { %5520 = vmatpush1.xpose.msra.mxu0 %v11768_v42  ;;  %5553 = vmatprep.mubr.f32.mxu0 %v11658_v10 }
 0x88e   :  { %5676 = vmatprep.subr.mxu0 %v11761_v33 }
 0x890   :  { %5554 = vmatmul.mubr.f32.vlgmr.msra.gmra.mxu0 %v11656_v58 }
 0x891   :  { %5677 = vmatpush1.xpose.msra.mxu0 %v11768_v42  ;;  %5710 = vmatprep.mubr.f32.mxu0 %v11611_v61 }
 0x892   :  { %5833 = vmatprep.subr.mxu0 %v11761_v33 }
 0x894   :  { %5711 = vmatmul.mubr.f32.vlgmr.msra.gmra.mxu0 %v11609_v51  ;;  %v5251_v51 = vpop.xlane.xlu0 %5250 }
 0x895   :  { %5834 = vmatpush1.xpose.msra.mxu0 %v11768_v42  ;;  %5867 = vmatprep.mubr.f32.mxu0 %v11666_v7 }
 0x896   :  { %5990 = vmatprep.subr.mxu0 %v11761_v33 }
 0x898   :  { %5868 = vmatmul.mubr.f32.vlgmr.msra.gmra.mxu0 %v11664_v2 }
 0x899   :  { %5991 = vmatpush1.xpose.msra.mxu0 %v11768_v42  ;;  %6024 = vmatprep.mubr.f32.mxu0 %v11619_v35  ;;  %v5252_v35 = vsub.f32 %v11788_v15, %v5251_v51 }
 0x89a   :  { %6147 = vmatprep.subr.mxu0 %v11761_v33 }
 0x89b   :  { %v5253_v10 = vmul.f32 1.442695, %v5252_v35  ;;  %v6444_v35 = vadd.f32 %v11885_v50, %v11832_v8 }
 0x89c   :  { %6025 = vmatmul.mubr.f32.vlgmr.msra.gmra.mxu0 %v11617_v24 }
 0x89d   :  { %6148 = vmatpush1.xpose.msra.mxu0 %v11768_v42  ;;  %6181 = vmatprep.mubr.f32.mxu0 %v11674_v12  ;;  %11128 = vpow2.f32 %v5253_v10  ;;  %v6443_v10 = vadd.f32 %v11889_v36, %v11830_v5 }
 0x89e   :  { %6304 = vmatprep.subr.mxu0 %v11761_v33 }
 0x8a0   :  { %6182 = vmatmul.mubr.f32.vlgmr.msra.gmra.mxu0 %v11672_v11 }
 0x8a1   :  { %6305 = vmatpush1.xpose.msra.mxu0 %v11768_v42  ;;  %6338 = vmatprep.mubr.f32.mxu0 %v11633_v57 }
 0x8a4   :  { %6339 = vmatmul.mubr.f32.vlgmr.msra.gmra.mxu0 %v11625_v54 }
 0x8aa   :  { %v11129_v44 = vpop.eup %11128 }
 0x8ab   :  { %v5255_v47 = vsel %vm3996_vm0, %v11129_v44, 0.0 }
 0x94c   :  { %v11862_v61 = vpop.f32.mrf.mxu0 }
 0x94e   :  { %v11865_v24 = vpop.f32.mrf.mxu0 }
 0x950   :  { %v5555_v58 = vpop.f32.mrf.mxu0 }
 0x951   :  { %v5559_v2 = vsel %vm3996_vm0, %v5555_v58, -inf }
 0x952   :  { %5560 = vmax.xlane.f32.xlu1 %v5559_v2  ;;  %v5557_v7 = vpop.f32.mrf.mxu0 }
 0x953   :  { %v6448_v7 = vmul.f32 2.0, %v6444_v35 }
 0x954   :  { %v5712_v11 = vpop.f32.mrf.mxu0 }
 0x955   :  { %v5716_v12 = vsel %vm3996_vm0, %v5712_v11, -inf }
 0x956   :  { %5717 = vmax.xlane.f32.xlu0 %v5716_v12  ;;  %v5714_v57 = vpop.f32.mrf.mxu0 }
 0x957   :  { %v6447_v57 = vmul.f32 2.0, %v6443_v10 }
 0x958   :  { %v5869_v54 = vpop.f32.mrf.mxu0 }
 0x959   :  { %v5873_v33 = vsel %vm3996_vm0, %v5869_v54, -inf }
 0x95a   :  { %5874 = vmax.xlane.f32.xlu1 %v5873_v33  ;;  %v5871_v42 = vpop.f32.mrf.mxu0 }
 0x95b   :  { %v6453_v42 = vadd.f32 %v6448_v7, %v6447_v57 }
 0x95c   :  { %v6026_v15 = vpop.f32.mrf.mxu0 }
 0x95d   :  { %v6030_v59 = vsel %vm3996_vm0, %v6026_v15, -inf }
 0x95e   :  { %6031 = vmax.xlane.f32.xlu0 %v6030_v59  ;;  %v6028_v31 = vpop.f32.mrf.mxu0 }
 0x960   :  { %v6183_v37 = vpop.f32.mrf.mxu0 }
 0x961   :  { %v6187_v34 = vsel %vm3996_vm0, %v6183_v37, -inf }
 0x962   :  { %6188 = vmax.xlane.f32.xlu1 %v6187_v34  ;;  %v6185_v45 = vpop.f32.mrf.mxu0 }
 0x964   :  { %v6340_v46 = vpop.f32.mrf.mxu0 }
 0x965   :  { %v6344_v63 = vsel %vm3996_vm0, %v6340_v46, -inf }
 0x966   :  { %5256 = vadd.xlane.f32.xlu1 %v5255_v47  ;;  %6345 = vmax.xlane.f32.xlu0 %v6344_v63  ;;  %v6342_v3 = vpop.f32.mrf.mxu0 }
 0x967   :  { %v12495_v3 = vld [vmem:[#allocation24_spill] sm:$0xff] }
 0x9db   :  { %v5561_v16 = vpop.xlane.xlu1 %5560 }
 0x9dc   :  { %v5562_v29 = vsub.f32 %v5555_v58, %v5561_v16 }
 0x9de   :  { %v5563_v6 = vmul.f32 1.442695, %v5562_v29 }
 0x9df   :  { %v5718_v18 = vpop.xlane.xlu0 %5717 }
 0x9e0   :  { %11130 = vpow2.f32 %v5563_v6  ;;  %v5719_v21 = vsub.f32 %v5712_v11, %v5718_v18 }
 0x9e2   :  { %v5720_v20 = vmul.f32 1.442695, %v5719_v21 }
 0x9e3   :  { %v5875_v22 = vpop.xlane.xlu1 %5874 }
 0x9e4   :  { %11132 = vpow2.f32 %v5720_v20  ;;  %v5876_v17 = vsub.f32 %v5869_v54, %v5875_v22  ;;  %v12497_v20 = vld [vmem:[#allocation25_spill] sm:$0xff] }
 0x9e5   :  { %v12498_v22 = vld [vmem:[#allocation29_spill] sm:$0xff] }
 0x9e6   :  { %v5877_v60 = vmul.f32 1.442695, %v5876_v17 }
 0x9e7   :  { %v6032_v40 = vpop.xlane.xlu0 %6031 }
 0x9e8   :  { %11134 = vpow2.f32 %v5877_v60  ;;  %v6033_v4 = vsub.f32 %v6026_v15, %v6032_v40 }
 0x9ea   :  { %v6034_v28 = vmul.f32 1.442695, %v6033_v4  ;;  %v12499_v4 = vld [vmem:[#allocation27_spill] sm:$0xff] }
 0x9eb   :  { %v6189_v62 = vpop.xlane.xlu1 %6188 }
 0x9ec   :  { %11136 = vpow2.f32 %v6034_v28  ;;  %v6190_v0 = vsub.f32 %v6183_v37, %v6189_v62  ;;  %v12500_v28 = vld [vmem:[#allocation30_spill] sm:$0xff]  ;;  %v12501_v62 = vld [vmem:[#allocation28_spill] sm:$0xff] }
 0x9ed   :  { %v11131_v13 = vpop.eup %11130 }
 0x9ee   :  { %v6191_v52 = vmul.f32 1.442695, %v6190_v0  ;;  %v5565_v1 = vsel %vm3996_vm0, %v11131_v13, 0.0 }
 0x9ef   :  { %v5257_v49 = vpop.xlane.xlu1 %5256  ;;  %5566 = vadd.xlane.f32.xlu0 %v5565_v1  ;;  %v6346_v9 = vpop.xlane.xlu0 %6345 }
 0x9f0   :  { %11138 = vpow2.f32 %v6191_v52  ;;  %v6347_v23 = vsub.f32 %v6340_v46, %v6346_v9 }
 0x9f1   :  { %v11133_v48 = vpop.eup %11132  ;;  %11140 = vrcp.f32 %v5257_v49 }
 0x9f2   :  { %v6348_v43 = vmul.f32 1.442695, %v6347_v23  ;;  %v5722_v19 = vsel %vm3996_vm0, %v11133_v48, 0.0 }
 0x9f3   :  { %5723 = vadd.xlane.f32.xlu1 %v5722_v19 }
 0x9f4   :  { %11142 = vpow2.f32 %v6348_v43 }
 0x9f5   :  { %v11135_v56 = vpop.eup %11134 }
 0x9f6   :  { %v5879_v25 = vsel %vm3996_vm0, %v11135_v56, 0.0 }
 0x9f7   :  { %5880 = vadd.xlane.f32.xlu0 %v5879_v25 }
 0x9f9   :  { %v11137_v51 = vpop.eup %11136 }
 0x9fa   :  { %v6036_v58 = vsel %vm3996_vm0, %v11137_v51, 0.0 }
 0x9fb   :  { %6037 = vadd.xlane.f32.xlu1 %v6036_v58 }
 0x9fd   :  { %v11139_v2 = vpop.eup %11138 }
 0x9fe   :  { %v11141_v11 = vpop.eup %11140  ;;  %v6193_v12 = vsel %vm3996_vm0, %v11139_v2, 0.0 }
 0x9ff   :  { %6194 = vadd.xlane.f32.xlu0 %v6193_v12  ;;  %v5259_v54 = vmul.f32 %v11141_v11, %v11129_v44 }
 0xa01   :  { %v11143_v33 = vpop.eup %11142  ;;  %10493 = vmatmul.mubr.msk.f32.vlgmr.msra.gmra.mxu1 %vm3996_vm0, %v5259_v54 }
 0xa02   :  { %5604 = vmatpush1.msra.mxu1 %v11688_v26  ;;  %v6350_v8 = vsel %vm3996_vm0, %v11143_v33, 0.0  ;;  %5637 = vmatprep.mubr.f32.mxu1 %v11460_v53 }
 0xa03   :  { %5760 = vmatprep.subr.mxu1 %v11698_v32  ;;  %6454 = vadd.xlane.f32.xlu0 %v6453_v42 }
 0xa04   :  { %6351 = vadd.xlane.f32.xlu1 %v6350_v8 }
 0xa78   :  { %v5567_v5 = vpop.xlane.xlu0 %5566 }
 0xa79   :  { %11144 = vrcp.f32 %v5567_v5 }
 0xa7c   :  { %v5724_v15 = vpop.xlane.xlu1 %5723 }
 0xa7d   :  { %11146 = vrcp.f32 %v5724_v15 }
 0xa80   :  { %v5881_v59 = vpop.xlane.xlu0 %5880 }
 0xa81   :  { %11148 = vrcp.f32 %v5881_v59 }
 0xa84   :  { %v6038_v31 = vpop.xlane.xlu1 %6037 }
 0xa85   :  { %11150 = vrcp.f32 %v6038_v31 }
 0xa86   :  { %v11145_v37 = vpop.eup %11144 }
 0xa87   :  { %v5569_v34 = vmul.f32 %v11145_v37, %v11131_v13 }
 0xa88   :  { %v6195_v44 = vpop.xlane.xlu0 %6194 }
 0xa89   :  { %11152 = vrcp.f32 %v6195_v44  ;;  %10494 = vmatmul.mubr.msk.f32.vlgmr.msra.gmra.mxu1 %vm3996_vm0, %v5569_v34  ;;  %v6630_v44 = vld [vmem:[#allocation4 + $0x380] sm:$0xff] }
 0xa8a   :  { %v11147_v26 = vpop.eup %11146  ;;  %5761 = vmatpush1.msra.mxu1 %v11694_v30  ;;  %5794 = vmatprep.mubr.f32.mxu1 %v11460_v53  ;;  %v12496_v30 = vld [vmem:[#allocation26_spill] sm:$0xff] }
 0xa8b   :  { %5917 = vmatprep.subr.mxu1 %v11710_v41  ;;  %v5726_v32 = vmul.f32 %v11147_v26, %v11133_v48  ;;  %v6638_v26 = vld [vmem:[#allocation4 + $0x3c0] sm:$0xff] }
 0xa8c   :  { %v6455_v45 = vpop.xlane.xlu0 %6454 }
 0xa8d   :  { %v6352_v46 = vpop.xlane.xlu1 %6351  ;;  %v6460_v47 = vmul.f32 0.00390625, %v6455_v45  ;;  %10495 = vmatmul.mubr.msk.f32.vlgmr.msra.gmra.mxu1 %vm3996_vm0, %v5726_v32  ;;  %v6631_v32 = vld [vmem:[#allocation4 + $0x388] sm:$0xff]  ;;  %v10612_v45 = vcombine.low %v6630_v44, %v6638_v26 }
 0xa8e   :  { %v11149_v63 = vpop.eup %11148  ;;  %11154 = vrcp.f32 %v6352_v46  ;;  %5918 = vmatpush1.msra.mxu1 %v12495_v3  ;;  %5951 = vmatprep.mubr.f32.mxu1 %v11460_v53  ;;  %v10613_v46 = vcombine.high %v6630_v44, %v6638_v26  ;;  %v6622_v3 = vld [vmem:[#allocation4 + $0x340] sm:$0xff]  ;;  %v6527_v44 = vld [vmem:[#allocation4 + $0x48] sm:$0xff] }
 0xa8f   :  { %v11909_v16 = vsub.f32 %v6447_v57, %v6460_v47  ;;  %v11911_v29 = vsub.f32 %v6448_v7, %v6460_v47  ;;  %6074 = vmatprep.subr.mxu1 %v12496_v30  ;;  %v5883_v6 = vmul.f32 %v11149_v63, %v11135_v56  ;;  %v6639_v47 = vld [vmem:[#allocation4 + $0x3c8] sm:$0xff]  ;;  %v6614_v63 = vld [vmem:[#allocation4 + $0x300] sm:$0xff] }
 0xa90   :  { %v10615_v30 = vcombine.high %v6631_v32, %v6639_v47  ;;  %8138 = vmatprep.subr.bf16.mxu0 %v10613_v46 }
 0xa91   :  { %10496 = vmatmul.mubr.msk.f32.vlgmr.msra.gmra.mxu1 %vm3996_vm0, %v5883_v6  ;;  %v6466_v41 = vmul.f32 %v11909_v16, %v11909_v16  ;;  %v6467_v18 = vmul.f32 %v11911_v29, %v11911_v29  ;;  %v10597_v6 = vcombine.high %v6614_v63, %v6622_v3  ;;  %8139 = vmatpush1.bf16.msra.mxu0 %v10612_v45 }
 0xa92   :  { %v11151_v21 = vpop.eup %11150  ;;  %6075 = vmatpush1.msra.mxu1 %v12497_v20  ;;  %6108 = vmatprep.mubr.f32.mxu1 %v11460_v53  ;;  %v6606_v20 = vld [vmem:[#allocation4 + $0x2c0] sm:$0xff] }
 0xa93   :  { %6231 = vmatprep.subr.mxu1 %v12498_v22  ;;  %v6040_v17 = vmul.f32 %v11151_v21, %v11137_v51  ;;  %v6470_v60 = vadd.f32 %v6467_v18, %v6466_v41  ;;  %v6623_v41 = vld [vmem:[#allocation4 + $0x348] sm:$0xff]  ;;  %v6598_v18 = vld [vmem:[#allocation4 + $0x280] sm:$0xff]  ;;  %8140 = vmatprep.subr.bf16.mxu0 %v10597_v6 }
 0xa94   :  { %v6599_v22 = vld [vmem:[#allocation4 + $0x288] sm:$0xff] }
 0xa95   :  { %10497 = vmatmul.mubr.msk.f32.vlgmr.msra.gmra.mxu1 %vm3996_vm0, %v6040_v17  ;;  %6471 = vadd.xlane.f32.xlu0 %v6470_v60  ;;  %v6607_v17 = vld [vmem:[#allocation4 + $0x2c8] sm:$0xff]  ;;  %v10596_v60 = vcombine.low %v6614_v63, %v6622_v3  ;;  %v6766_v63 = vld [vmem:[#allocation4 + $0x7c0] sm:$0xff] }
 0xa96   :  { %v11153_v40 = vpop.eup %11152  ;;  %6232 = vmatpush1.msra.mxu1 %v12499_v4  ;;  %6265 = vmatprep.mubr.f32.mxu1 %v11460_v53  ;;  %v10581_v4 = vcombine.high %v6598_v18, %v6606_v20  ;;  %v6759_v3 = vld [vmem:[#allocation4 + $0x788] sm:$0xff] }
 0xa97   :  { %6388 = vmatprep.subr.mxu1 %v12500_v28  ;;  %v6197_v39 = vmul.f32 %v11153_v40, %v11139_v2  ;;  %v10583_v28 = vcombine.high %v6599_v22, %v6607_v17  ;;  %8141 = vmatpush1.bf16.msra.mxu0 %v10596_v60 }
 0xa98   :  { %8142 = vmatprep.subr.bf16.mxu0 %v10581_v4 }
 0xa99   :  { %10498 = vmatmul.mubr.msk.f32.vlgmr.msra.gmra.mxu1 %vm3996_vm0, %v6197_v39  ;;  %v6582_v39 = vld [vmem:[#allocation4 + $0x200] sm:$0xff] }
 0xa9a   :  { %6389 = vmatpush1.msra.mxu1 %v12501_v62  ;;  %6422 = vmatprep.mubr.f32.mxu1 %v11460_v53  ;;  %v6590_v62 = vld [vmem:[#allocation4 + $0x240] sm:$0xff] }
 0xa9b   :  { %v11155_v0 = vpop.eup %11154  ;;  %8181 = vmatprep.subr.bf16.mxu1 %v10615_v30 }
 0xa9c   :  { %v6354_v13 = vmul.f32 %v11155_v0, %v11143_v33  ;;  %v6583_v0 = vld [vmem:[#allocation4 + $0x208] sm:$0xff] }
 0xa9e   :  { %10499 = vmatmul.mubr.msk.f32.vlgmr.msra.gmra.mxu1 %vm3996_vm0, %v6354_v13  ;;  %v6591_v13 = vld [vmem:[#allocation4 + $0x248] sm:$0xff] }
 0xac1   :  { %v5484_v52 = vpop.f32.mrf.mxu1 }
 0xac2   :  { %v5485_v19 = vadd.f32 %v5484_v52, %v11862_v61  ;;  %v10580_v52 = vcombine.low %v6598_v18, %v6606_v20  ;;  %v6742_v18 = vld [vmem:[#allocation4 + $0x700] sm:$0xff]  ;;  %v6743_v20 = vld [vmem:[#allocation4 + $0x708] sm:$0xff] }
 0xac3   :  { %v5486_v1 = vpop.f32.mrf.mxu1 }
 0xac4   :  { %v5487_v56 = vadd.f32 %v5486_v1, %v11865_v24  ;;  %v10582_v1 = vcombine.low %v6599_v22, %v6607_v17  ;;  %8143 = vmatpush1.bf16.msra.mxu0 %v10580_v52  ;;  %v6751_v22 = vld [vmem:[#allocation4 + $0x748] sm:$0xff] }
 0xac5   :  { %v10727_v4 = vcombine.high %v6743_v20, %v6751_v22 }
 0xb49   :  { %v5639_v49 = vpop.f32.mrf.mxu1 }
 0xb4a   :  { %v5644_v25 = vadd.f32 %v5639_v49, %v5485_v19  ;;  %v10565_v49 = vcombine.high %v6582_v39, %v6590_v62  ;;  %v6575_v19 = vld [vmem:[#allocation4 + $0x1c8] sm:$0xff] }
 0xb4b   :  { %v5641_v9 = vpop.f32.mrf.mxu1 }
 0xb4c   :  { %v5645_v35 = vadd.f32 %v5641_v9, %v5487_v56  ;;  %v10567_v9 = vcombine.high %v6583_v0, %v6591_v13  ;;  %8144 = vmatprep.subr.bf16.mxu0 %v10565_v49  ;;  %v10566_v56 = vcombine.low %v6583_v0, %v6591_v13 }
 0xb4d   :  { %v5796_v23 = vpop.f32.mrf.mxu1 }
 0xb4e   :  { %v5801_v53 = vadd.f32 %v5796_v23, %v5644_v25  ;;  %v6566_v23 = vld [vmem:[#allocation4 + $0x180] sm:$0xff] }
 0xb4f   :  { %v5798_v48 = vpop.f32.mrf.mxu1 }
 0xb50   :  { %v5802_v10 = vadd.f32 %v5798_v48, %v5645_v35  ;;  %v6574_v48 = vld [vmem:[#allocation4 + $0x1c0] sm:$0xff] }
 0xb51   :  { %v5953_v43 = vpop.f32.mrf.mxu1  ;;  %v10549_v25 = vcombine.high %v6566_v23, %v6574_v48  ;;  %v6550_v35 = vld [vmem:[#allocation4 + $0x100] sm:$0xff] }
 0xb52   :  { %v5958_v2 = vadd.f32 %v5953_v43, %v5801_v53  ;;  %v6567_v43 = vld [vmem:[#allocation4 + $0x188] sm:$0xff]  ;;  %v6558_v53 = vld [vmem:[#allocation4 + $0x140] sm:$0xff] }
 0xb53   :  { %v5955_v55 = vpop.f32.mrf.mxu1 }
 0xb54   :  { %v5959_v11 = vadd.f32 %v5955_v55, %v5802_v10  ;;  %v10564_v55 = vcombine.low %v6582_v39, %v6590_v62  ;;  %v6559_v10 = vld [vmem:[#allocation4 + $0x148] sm:$0xff]  ;;  %v10726_v39 = vcombine.low %v6743_v20, %v6751_v22 }
 0xb55   :  { %v6110_v51 = vpop.f32.mrf.mxu1  ;;  %v6655_v20 = vld [vmem:[#allocation4 + $0x448] sm:$0xff] }
 0xb56   :  { %v6115_v12 = vadd.f32 %v6110_v51, %v5958_v2  ;;  %v10551_v51 = vcombine.high %v6567_v43, %v6575_v19  ;;  %8145 = vmatpush1.bf16.msra.mxu0 %v10564_v55  ;;  %v10548_v2 = vcombine.low %v6566_v23, %v6574_v48  ;;  %v6726_v23 = vld [vmem:[#allocation4 + $0x680] sm:$0xff]  ;;  %v6735_v55 = vld [vmem:[#allocation4 + $0x6c8] sm:$0xff] }
 0xb57   :  { %v6112_v58 = vpop.f32.mrf.mxu1  ;;  %8146 = vmatprep.subr.bf16.mxu0 %v10549_v25  ;;  %v6734_v48 = vld [vmem:[#allocation4 + $0x6c0] sm:$0xff] }
 0xb58   :  { %v6116_v54 = vadd.f32 %v6112_v58, %v5959_v11  ;;  %v6551_v58 = vld [vmem:[#allocation4 + $0x108] sm:$0xff]  ;;  %v10533_v11 = vcombine.high %v6550_v35, %v6558_v53 }
 0xb59   :  { %v6267_v7 = vpop.f32.mrf.mxu1 }
 0xb5a   :  { %v6272_v33 = vadd.f32 %v6267_v7, %v6115_v12  ;;  %v10550_v7 = vcombine.low %v6567_v43, %v6575_v19  ;;  %v10535_v12 = vcombine.high %v6551_v58, %v6559_v10  ;;  %8147 = vmatpush1.bf16.msra.mxu0 %v10548_v2  ;;  %v6727_v43 = vld [vmem:[#allocation4 + $0x688] sm:$0xff]  ;;  %v10709_v19 = vcombine.high %v6726_v23, %v6734_v48 }
 0xb5b   :  { %v6269_v57 = vpop.f32.mrf.mxu1  ;;  %8148 = vmatprep.subr.bf16.mxu0 %v10533_v11  ;;  %v10710_v25 = vcombine.low %v6727_v43, %v6735_v55  ;;  %v6694_v11 = vld [vmem:[#allocation4 + $0x580] sm:$0xff] }
 0xb5c   :  { %v6273_v8 = vadd.f32 %v6269_v57, %v6116_v54  ;;  %v6534_v57 = vld [vmem:[#allocation4 + $0x80] sm:$0xff] }
 0xb5d   :  { %v6542_v54 = vld [vmem:[#allocation4 + $0xc0] sm:$0xff] }
 0xb5e   :  { %v6424_v42 = vpop.f32.mrf.mxu1  ;;  %v10516_v26 = vcombine.low %v6534_v57, %v6542_v54 }
 0xb5f   :  { %v6429_v5 = vadd.f32 %v6424_v42, %v6272_v33  ;;  %v6535_v33 = vld [vmem:[#allocation4 + $0x88] sm:$0xff] }
 0xb60   :  { %v6426_v61 = vpop.f32.mrf.mxu1  ;;  %v6543_v42 = vld [vmem:[#allocation4 + $0xc8] sm:$0xff] }
 0xb61   :  { %v6445_v15 = vadd.f32 %v11889_v36, %v6429_v5  ;;  %v6430_v24 = vadd.f32 %v6426_v61, %v6273_v8  ;;  %v10614_v36 = vcombine.low %v6631_v32, %v6639_v47  ;;  %v10532_v8 = vcombine.low %v6550_v35, %v6558_v53  ;;  %v6758_v47 = vld [vmem:[#allocation4 + $0x780] sm:$0xff]  ;;  %v6711_v35 = vld [vmem:[#allocation4 + $0x608] sm:$0xff] }
 0xb62   :  { %v10534_v5 = vcombine.low %v6551_v58, %v6559_v10  ;;  %v10517_v61 = vcombine.high %v6534_v57, %v6542_v54  ;;  %v10518_v32 = vcombine.low %v6535_v33, %v6543_v42  ;;  %v10740_v17 = vcombine.low %v6758_v47, %v6766_v63  ;;  %v6719_v58 = vld [vmem:[#allocation4 + $0x648] sm:$0xff] }
 0xb63   :  { %v6446_v59 = vadd.f32 %v11885_v50, %v6430_v24  ;;  %v11934_v31 = vmul.f32 2.0, %v6445_v15  ;;  %v6615_v50 = vld [vmem:[#allocation4 + $0x308] sm:$0xff]  ;;  %8182 = vmatpush1.bf16.msra.mxu1 %v10614_v36  ;;  %v10519_v15 = vcombine.high %v6535_v33, %v6543_v42  ;;  %v6518_v24 = vld [vmem:[#allocation4] sm:$0xff]  ;;  %8149 = vmatpush1.bf16.msra.mxu0 %v10532_v8  ;;  %v10694_v2 = vcombine.low %v6711_v35, %v6719_v58 }
 0xb64   :  { %v10599_v21 = vcombine.high %v6615_v50, %v6623_v41  ;;  %v10598_v40 = vcombine.low %v6615_v50, %v6623_v41  ;;  %8150 = vmatprep.subr.bf16.mxu0 %v10517_v61  ;;  %v6767_v36 = vld [vmem:[#allocation4 + $0x7c8] sm:$0xff]  ;;  %v10741_v50 = vcombine.high %v6758_v47, %v6766_v63  ;;  %v6678_v61 = vld [vmem:[#allocation4 + $0x500] sm:$0xff] }
 0xb65   :  { %v11936_v37 = vmul.f32 2.0, %v6446_v59  ;;  %v6526_v59 = vld [vmem:[#allocation4 + $0x40] sm:$0xff]  ;;  %v10743_v41 = vcombine.high %v6759_v3, %v6767_v36  ;;  %v10742_v60 = vcombine.low %v6759_v3, %v6767_v36  ;;  %v6695_v57 = vld [vmem:[#allocation4 + $0x588] sm:$0xff] }
 0xb66   :  { %8183 = vmatprep.subr.bf16.mxu1 %v10599_v21  ;;  %v10501_v45 = vcombine.high %v6518_v24, %v6526_v59  ;;  %v10500_v30 = vcombine.low %v6518_v24, %v6526_v59  ;;  %v6750_v21 = vld [vmem:[#allocation4 + $0x740] sm:$0xff]  ;;  %v6703_v33 = vld [vmem:[#allocation4 + $0x5c8] sm:$0xff] }
 0xb67   :  { %v6456_v34 = vadd.f32 %v11936_v37, %v11934_v31  ;;  %8184 = vmatpush1.bf16.msra.mxu1 %v10598_v40  ;;  %8151 = vmatpush1.bf16.msra.mxu0 %v10516_v26  ;;  %v10725_v40 = vcombine.high %v6742_v18, %v6750_v21  ;;  %v10678_v8 = vcombine.low %v6695_v57, %v6703_v33  ;;  %v6679_v24 = vld [vmem:[#allocation4 + $0x508] sm:$0xff] }
 0xb68   :  { %8185 = vmatprep.subr.bf16.mxu1 %v10583_v28  ;;  %8152 = vmatprep.subr.bf16.mxu0 %v10501_v45  ;;  %v10724_v28 = vcombine.low %v6742_v18, %v6750_v21  ;;  %v6662_v45 = vld [vmem:[#allocation4 + $0x480] sm:$0xff]  ;;  %v6663_v47 = vld [vmem:[#allocation4 + $0x488] sm:$0xff] }
 0xb69   :  { %6457 = vadd.xlane.f32.xlu1 %v6456_v34  ;;  %v6519_v34 = vld [vmem:[#allocation4 + $0x8] sm:$0xff] }
 0xb6a   :  { %v10503_v46 = vcombine.high %v6519_v34, %v6527_v44  ;;  %v10502_v6 = vcombine.low %v6519_v34, %v6527_v44  ;;  %v6687_v34 = vld [vmem:[#allocation4 + $0x548] sm:$0xff] }
 0xb6b   :  { %8186 = vmatpush1.bf16.msra.mxu1 %v10582_v1  ;;  %8153 = vmatpush1.bf16.msra.mxu0 %v10500_v30  ;;  %v10662_v26 = vcombine.low %v6679_v24, %v6687_v34  ;;  %v6671_v3 = vld [vmem:[#allocation4 + $0x4c8] sm:$0xff] }
 0xb6c   :  { %8187 = vmatprep.subr.bf16.mxu1 %v10567_v9  ;;  %8154 = vmatprep.subr.bf16.mxu0 %v10741_v50  ;;  %v10646_v30 = vcombine.low %v6663_v47, %v6671_v3  ;;  %v6646_v50 = vld [vmem:[#allocation4 + $0x400] sm:$0xff]  ;;  %v6647_v18 = vld [vmem:[#allocation4 + $0x408] sm:$0xff] }
 0xb6f   :  { %8188 = vmatpush1.bf16.msra.mxu1 %v10566_v56  ;;  %8155 = vmatpush2.bf16.msra.mxu0 %v10740_v17  ;;  %v10708_v56 = vcombine.low %v6726_v23, %v6734_v48  ;;  %v10630_v17 = vcombine.low %v6647_v18, %v6655_v20 }
 0xb70   :  { %8189 = vmatprep.subr.bf16.mxu1 %v10551_v51  ;;  %8156 = vmatprep.subr.bf16.mxu0 %v10725_v40  ;;  %v6718_v51 = vld [vmem:[#allocation4 + $0x640] sm:$0xff]  ;;  %v6632_v40 = vld [vmem:[#allocation4 + $0x390] sm:$0xff] }
 0xb73   :  { %8190 = vmatpush1.bf16.msra.mxu1 %v10550_v7  ;;  %8157 = vmatpush2.bf16.msra.mxu0 %v10724_v28  ;;  %v10695_v7 = vcombine.high %v6711_v35, %v6719_v58  ;;  %v6633_v28 = vld [vmem:[#allocation4 + $0x398] sm:$0xff] }
 0xb74   :  { %8191 = vmatprep.subr.bf16.mxu1 %v10535_v12  ;;  %8158 = vmatprep.subr.bf16.mxu0 %v10709_v19  ;;  %v6702_v12 = vld [vmem:[#allocation4 + $0x5c0] sm:$0xff] }
 0xb75   :  { %v10677_v54 = vcombine.high %v6694_v11, %v6702_v12  ;;  %v10676_v42 = vcombine.low %v6694_v11, %v6702_v12 }
 0xb77   :  { %8192 = vmatpush1.bf16.msra.mxu1 %v10534_v5  ;;  %8159 = vmatpush2.bf16.msra.mxu0 %v10708_v56  ;;  %v10679_v5 = vcombine.high %v6695_v57, %v6703_v33 }
 0xb78   :  { %8193 = vmatprep.subr.bf16.mxu1 %v10519_v15  ;;  %v6686_v15 = vld [vmem:[#allocation4 + $0x540] sm:$0xff] }
 0xb79   :  { %v10661_v59 = vcombine.high %v6678_v61, %v6686_v15  ;;  %v10660_v44 = vcombine.low %v6678_v61, %v6686_v15  ;;  %v6624_v15 = vld [vmem:[#allocation4 + $0x350] sm:$0xff] }
 0xb7b   :  { %8194 = vmatpush1.bf16.msra.mxu1 %v10518_v32  ;;  %v10663_v32 = vcombine.high %v6679_v24, %v6687_v34  ;;  %v6625_v24 = vld [vmem:[#allocation4 + $0x358] sm:$0xff] }
 0xb7c   :  { %8195 = vmatprep.subr.bf16.mxu1 %v10503_v46  ;;  %v6670_v46 = vld [vmem:[#allocation4 + $0x4c0] sm:$0xff] }
 0xb7d   :  { %v10645_v63 = vcombine.high %v6662_v45, %v6670_v46  ;;  %v10644_v36 = vcombine.low %v6662_v45, %v6670_v46  ;;  %v6609_v45 = vld [vmem:[#allocation4 + $0x2d8] sm:$0xff] }
 0xb7f   :  { %8196 = vmatpush1.bf16.msra.mxu1 %v10502_v6  ;;  %v10647_v6 = vcombine.high %v6663_v47, %v6671_v3 }
 0xb80   :  { %8197 = vmatprep.subr.bf16.mxu1 %v10743_v41  ;;  %v6654_v41 = vld [vmem:[#allocation4 + $0x440] sm:$0xff] }
 0xb81   :  { %v10629_v21 = vcombine.high %v6646_v50, %v6654_v41  ;;  %v10628_v22 = vcombine.low %v6646_v50, %v6654_v41  ;;  %v6593_v50 = vld [vmem:[#allocation4 + $0x258] sm:$0xff] }
 0xb83   :  { %8198 = vmatpush2.bf16.msra.mxu1 %v10742_v60  ;;  %v10631_v60 = vcombine.high %v6647_v18, %v6655_v20 }
 0xb84   :  { %8199 = vmatprep.subr.bf16.mxu1 %v10727_v4  ;;  %v6640_v4 = vld [vmem:[#allocation4 + $0x3d0] sm:$0xff] }
 0xb87   :  { %8200 = vmatpush2.bf16.msra.mxu1 %v10726_v39  ;;  %v10617_v39 = vcombine.high %v6632_v40, %v6640_v4 }
 0xbf2   :  { %v6458_v62 = vpop.xlane.xlu1 %6457 }
 0xbf3   :  { %v6461_v0 = vmul.f32 0.00390625, %v6458_v62  ;;  %v6641_v62 = vld [vmem:[#allocation4 + $0x3d8] sm:$0xff] }
 0xbf5   :  { %v11941_v13 = vsub.f32 %v11934_v31, %v6461_v0  ;;  %v11944_v52 = vsub.f32 %v11936_v37, %v6461_v0  ;;  %v10711_v31 = vcombine.high %v6727_v43, %v6735_v55  ;;  %v6710_v37 = vld [vmem:[#allocation4 + $0x600] sm:$0xff]  ;;  %v10616_v0 = vcombine.low %v6632_v40, %v6640_v4  ;;  %v6577_v40 = vld [vmem:[#allocation4 + $0x1d8] sm:$0xff] }
 0xbf6   :  { %v10693_v53 = vcombine.high %v6710_v37, %v6718_v51  ;;  %v10692_v10 = vcombine.low %v6710_v37, %v6718_v51 }
 0xbf7   :  { %v6468_v1 = vmul.f32 %v11941_v13, %v11941_v13  ;;  %v6469_v49 = vmul.f32 %v11944_v52, %v11944_v52  ;;  %8201 = vmatprep.subr.bf16.mxu1 %v10711_v31  ;;  %v6452_v31 = vld [vmem:[#allocation10] sm:$0x3] }
 0xbf8   :  { %8202 = vmatpush2.bf16.msra.mxu1 %v10710_v25  ;;  %8160 = vmatprep.subr.bf16.mxu0 %v10693_v53  ;;  %v6451_v25 = vld [vmem:[#allocation9] sm:$0x3] }
 0xbf9   :  { %v6473_v9 = vadd.f32 %v6469_v49, %v6468_v1  ;;  %8203 = vmatprep.subr.bf16.mxu1 %v10695_v7  ;;  %8161 = vmatpush2.bf16.msra.mxu0 %v10692_v10  ;;  %v10618_v1 = vcombine.low %v6633_v28, %v6641_v62  ;;  %v10619_v49 = vcombine.high %v6633_v28, %v6641_v62 }
 0xbfa   :  { %8162 = vmatprep.subr.bf16.mxu0 %v10677_v54  ;;  %v6490_v37 = vrot.slane %v6451_v25, %v11882_v27  ;;  %v6494_v51 = vrot.slane %v6451_v25, %v11878_v38  ;;  %v6505_v10 = vrot.slane %v6452_v31, %v11882_v27  ;;  %v6537_v25 = vld [vmem:[#allocation4 + $0x98] sm:$0xff] }
 0xbfb   :  { %6474 = vadd.xlane.f32.xlu1 %v6473_v9  ;;  %v6472_v9 = vpop.xlane.xlu0 %6471 }
 0xbfc   :  { %8204 = vmatpush2.bf16.msra.mxu1 %v10694_v2  ;;  %v6476_v23 = vmul.f32 0.00390625, %v6472_v9  ;;  %v6509_v2 = vrot.slane %v6452_v31, %v11878_v38  ;;  %v6561_v9 = vld [vmem:[#allocation4 + $0x158] sm:$0xff] }
 0xbfd   :  { %8205 = vmatprep.subr.bf16.mxu1 %v10679_v5  ;;  %8163 = vmatpush2.bf16.msra.mxu0 %v10676_v42  ;;  %v6545_v31 = vld [vmem:[#allocation4 + $0xd8] sm:$0xff] }
 0xbfe   :  { %8164 = vmatprep.subr.bf16.mxu0 %v10661_v59  ;;  %v6478_v48 = vadd.f32 1e-05, %v6476_v23 }
 0xc00   :  { %8206 = vmatpush2.bf16.msra.mxu1 %v10678_v8  ;;  %11156 = vrsqrt.f32 %v6478_v48 }
 0xc01   :  { %8207 = vmatprep.subr.bf16.mxu1 %v10663_v32  ;;  %8165 = vmatpush2.bf16.msra.mxu0 %v10660_v44  ;;  %v6600_v44 = vld [vmem:[#allocation4 + $0x290] sm:$0xff]  ;;  %v6601_v32 = vld [vmem:[#allocation4 + $0x298] sm:$0xff] }
 0xc02   :  { %8166 = vmatprep.subr.bf16.mxu0 %v10645_v63  ;;  %v10587_v3 = vcombine.high %v6601_v32, %v6609_v45  ;;  %v10586_v18 = vcombine.low %v6601_v32, %v6609_v45 }
 0xc04   :  { %8208 = vmatpush2.bf16.msra.mxu1 %v10662_v26  ;;  %v6608_v26 = vld [vmem:[#allocation4 + $0x2d0] sm:$0xff] }
 0xc05   :  { %8209 = vmatprep.subr.bf16.mxu1 %v10647_v6  ;;  %8167 = vmatpush2.bf16.msra.mxu0 %v10644_v36  ;;  %v10585_v63 = vcombine.high %v6600_v44, %v6608_v26  ;;  %v6584_v36 = vld [vmem:[#allocation4 + $0x210] sm:$0xff]  ;;  %v6585_v6 = vld [vmem:[#allocation4 + $0x218] sm:$0xff]  ;;  %v10584_v41 = vcombine.low %v6600_v44, %v6608_v26 }
 0xc06   :  { %8168 = vmatprep.subr.bf16.mxu0 %v10629_v21  ;;  %v10571_v20 = vcombine.high %v6585_v6, %v6593_v50  ;;  %v10570_v28 = vcombine.low %v6585_v6, %v6593_v50  ;;  %v6752_v44 = vld [vmem:[#allocation4 + $0x750] sm:$0xff] }
 0xc08   :  { %8210 = vmatpush2.bf16.msra.mxu1 %v10646_v30  ;;  %v6592_v30 = vld [vmem:[#allocation4 + $0x250] sm:$0xff] }
 0xc09   :  { %8211 = vmatprep.subr.bf16.mxu1 %v10631_v60  ;;  %8169 = vmatpush2.bf16.msra.mxu0 %v10628_v22  ;;  %v10569_v21 = vcombine.high %v6584_v36, %v6592_v30  ;;  %v6568_v22 = vld [vmem:[#allocation4 + $0x190] sm:$0xff]  ;;  %v6569_v60 = vld [vmem:[#allocation4 + $0x198] sm:$0xff]  ;;  %v10568_v4 = vcombine.low %v6584_v36, %v6592_v30 }
 0xc0a   :  { %8224 = vmatprep.subr.bf16.mxu0 %v10617_v39  ;;  %v10555_v62 = vcombine.high %v6569_v60, %v6577_v40  ;;  %v10554_v48 = vcombine.low %v6569_v60, %v6577_v40  ;;  %v6737_v36 = vld [vmem:[#allocation4 + $0x6d8] sm:$0xff] }
 0xc0c   :  { %8212 = vmatpush2.bf16.msra.mxu1 %v10630_v17  ;;  %v6576_v17 = vld [vmem:[#allocation4 + $0x1d0] sm:$0xff] }
 0xc0d   :  { %8267 = vmatprep.subr.bf16.mxu1 %v10619_v49  ;;  %v11157_v56 = vpop.eup %11156  ;;  %v10553_v39 = vcombine.high %v6568_v22, %v6576_v17  ;;  %v6553_v49 = vld [vmem:[#allocation4 + $0x118] sm:$0xff]  ;;  %v10552_v23 = vcombine.low %v6568_v22, %v6576_v17 }
 0xc0e   :  { %v6482_v35 = vmul.f32 %v11157_v56, %v11909_v16  ;;  %v6483_v53 = vmul.f32 %v11157_v56, %v11911_v29  ;;  %v6616_v16 = vld [vmem:[#allocation4 + $0x310] sm:$0xff]  ;;  %v6617_v29 = vld [vmem:[#allocation4 + $0x318] sm:$0xff] }
 0xc0f   :  { %v10600_v46 = vcombine.low %v6616_v16, %v6624_v15  ;;  %v10602_v47 = vcombine.low %v6617_v29, %v6625_v24  ;;  %v6544_v56 = vld [vmem:[#allocation4 + $0xd0] sm:$0xff]  ;;  %v6721_v22 = vld [vmem:[#allocation4 + $0x658] sm:$0xff] }
 0xc10   :  { %v6497_v7 = vmul.f32 %v6490_v37, %v6482_v35  ;;  %v6498_v11 = vmul.f32 %v6494_v51, %v6483_v53  ;;  %v10523_v53 = vcombine.high %v6537_v25, %v6545_v31 }
 0xc12   :  { %v6512_v42 = vadd.f32 %v6505_v10, %v6497_v7  ;;  %v6513_v8 = vadd.f32 %v6509_v2, %v6498_v11  ;;  %v6529_v7 = vld [vmem:[#allocation4 + $0x58] sm:$0xff] }
 0xc84   :  { %v6475_v43 = vpop.xlane.xlu1 %6474 }
 0xc85   :  { %v6477_v19 = vmul.f32 0.00390625, %v6475_v43 }
 0xc87   :  { %v6479_v55 = vadd.f32 1e-05, %v6477_v19  ;;  %v10539_v19 = vcombine.high %v6553_v49, %v6561_v9 }
 0xc89   :  { %11158 = vrsqrt.f32 %v6479_v55  ;;  %v6536_v55 = vld [vmem:[#allocation4 + $0x90] sm:$0xff] }
 0xc8a   :  { %v10521_v35 = vcombine.high %v6536_v55, %v6544_v56  ;;  %v10520_v11 = vcombine.low %v6536_v55, %v6544_v56  ;;  %v6689_v55 = vld [vmem:[#allocation4 + $0x558] sm:$0xff] }
 0xc96   :  { %v11159_v58 = vpop.eup %11158 }
 0xc97   :  { %v6484_v12 = vmul.f32 %v11159_v58, %v11941_v13  ;;  %v6485_v57 = vmul.f32 %v11159_v58, %v11944_v52  ;;  %v10601_v13 = vcombine.high %v6616_v16, %v6624_v15  ;;  %v10603_v52 = vcombine.high %v6617_v29, %v6625_v24  ;;  %v6520_v58 = vld [vmem:[#allocation4 + $0x10] sm:$0xff] }
 0xc98   :  { %v6744_v24 = vld [vmem:[#allocation4 + $0x710] sm:$0xff] }
 0xc99   :  { %v6499_v54 = vmul.f32 %v6490_v37, %v6484_v12  ;;  %v6500_v33 = vmul.f32 %v6494_v51, %v6485_v57  ;;  %v10538_v51 = vcombine.low %v6553_v49, %v6561_v9  ;;  %v10522_v12 = vcombine.low %v6537_v25, %v6545_v31 }
 0xc9a   :  { %v10729_v45 = vcombine.high %v6744_v24, %v6752_v44  ;;  %v10728_v30 = vcombine.low %v6744_v24, %v6752_v44  ;;  %v6643_v24 = vld [vmem:[#allocation4 + $0x3e8] sm:$0xff] }
 0xc9b   :  { %v6514_v5 = vadd.f32 %v6505_v10, %v6499_v54  ;;  %v6515_v61 = vadd.f32 %v6509_v2, %v6500_v33  ;;  %v6528_v10 = vld [vmem:[#allocation4 + $0x50] sm:$0xff]  ;;  %v6521_v2 = vld [vmem:[#allocation4 + $0x18] sm:$0xff] }
 0xc9c   :  { %v10505_v57 = vcombine.high %v6520_v58, %v6528_v10  ;;  %v10507_v54 = vcombine.high %v6521_v2, %v6529_v7  ;;  %v6760_v33 = vld [vmem:[#allocation4 + $0x790] sm:$0xff]  ;;  %v10506_v16 = vcombine.low %v6521_v2, %v6529_v7 }
 0xc9d   :  { %v11958_v59 = vpack.c.bf16 %v6514_v5, %v6512_v42  ;;  %v11960_v34 = vpack.c.bf16 %v6515_v61, %v6513_v8  ;;  %v6768_v42 = vld [vmem:[#allocation4 + $0x7d0] sm:$0xff]  ;;  %v6761_v8 = vld [vmem:[#allocation4 + $0x798] sm:$0xff]  ;;  %v10504_v61 = vcombine.low %v6520_v58, %v6528_v10 }
 0xc9e   :  { %v6769_v5 = vld [vmem:[#allocation4 + $0x7d8] sm:$0xff]  ;;  %v10745_v15 = vcombine.high %v6760_v33, %v6768_v42  ;;  %v10744_v26 = vcombine.low %v6760_v33, %v6768_v42 }
 0xc9f   :  { %8170 = vmatprep.mubr.bf16.mxu0 %v11960_v34  ;;  %8213 = vmatprep.mubr.bf16.mxu1 %v11960_v34  ;;  %v10747_v29 = vcombine.high %v6761_v8, %v6769_v5  ;;  %v10746_v32 = vcombine.low %v6761_v8, %v6769_v5  ;;  %v6673_v58 = vld [vmem:[#allocation4 + $0x4d8] sm:$0xff] }
 0xca0   :  { %8171 = vmatmul.mubr.bf16.vlgmr.msra.gmra.mxu0 %v11958_v59  ;;  %8214 = vmatmul.mubr.bf16.vlgmr.msra.gmra.mxu1 %v11958_v59  ;;  %v6657_v33 = vld [vmem:[#allocation4 + $0x458] sm:$0xff] }
 0xca1   :  { %8225 = vmatpush1.bf16.msra.mxu0 %v10616_v0  ;;  %8268 = vmatpush1.bf16.msra.mxu1 %v10618_v1  ;;  %v6552_v0 = vld [vmem:[#allocation4 + $0x110] sm:$0xff] }
 0xca2   :  { %8256 = vmatprep.mubr.bf16.mxu0 %v11960_v34  ;;  %8299 = vmatprep.mubr.bf16.mxu1 %v11960_v34  ;;  %v6560_v1 = vld [vmem:[#allocation4 + $0x150] sm:$0xff] }
 0xca3   :  { %8226 = vmatprep.subr.bf16.mxu0 %v10601_v13  ;;  %8269 = vmatprep.subr.bf16.mxu1 %v10603_v52  ;;  %v10537_v43 = vcombine.high %v6552_v0, %v6560_v1  ;;  %v10536_v37 = vcombine.low %v6552_v0, %v6560_v1  ;;  %v6745_v13 = vld [vmem:[#allocation4 + $0x718] sm:$0xff] }
 0xca4   :  { %v6753_v52 = vld [vmem:[#allocation4 + $0x758] sm:$0xff] }
 0xca5   :  { %8227 = vmatpush1.bf16.msra.mxu0 %v10600_v46  ;;  %8270 = vmatpush1.bf16.msra.mxu1 %v10602_v47  ;;  %v10731_v46 = vcombine.high %v6745_v13, %v6753_v52  ;;  %v6728_v47 = vld [vmem:[#allocation4 + $0x690] sm:$0xff]  ;;  %v10730_v6 = vcombine.low %v6745_v13, %v6753_v52  ;;  %v6705_v0 = vld [vmem:[#allocation4 + $0x5d8] sm:$0xff] }
 0xca6   :  { %8228 = vmatprep.subr.bf16.mxu0 %v10585_v63  ;;  %8271 = vmatprep.subr.bf16.mxu1 %v10587_v3  ;;  %v6736_v63 = vld [vmem:[#allocation4 + $0x6d0] sm:$0xff]  ;;  %v6729_v3 = vld [vmem:[#allocation4 + $0x698] sm:$0xff] }
 0xca7   :  { %v10713_v50 = vcombine.high %v6728_v47, %v6736_v63  ;;  %v10712_v17 = vcombine.low %v6728_v47, %v6736_v63  ;;  %v10714_v60 = vcombine.low %v6729_v3, %v6737_v36  ;;  %v6627_v47 = vld [vmem:[#allocation4 + $0x368] sm:$0xff] }
 0xca9   :  { %8229 = vmatpush1.bf16.msra.mxu0 %v10584_v41  ;;  %8272 = vmatpush1.bf16.msra.mxu1 %v10586_v18  ;;  %v10715_v41 = vcombine.high %v6729_v3, %v6737_v36  ;;  %v6712_v18 = vld [vmem:[#allocation4 + $0x610] sm:$0xff] }
 0xcaa   :  { %8230 = vmatprep.subr.bf16.mxu0 %v10569_v21  ;;  %8273 = vmatprep.subr.bf16.mxu1 %v10571_v20  ;;  %v6720_v21 = vld [vmem:[#allocation4 + $0x650] sm:$0xff]  ;;  %v6713_v20 = vld [vmem:[#allocation4 + $0x618] sm:$0xff] }
 0xcab   :  { %v10697_v40 = vcombine.high %v6712_v18, %v6720_v21  ;;  %v10696_v1 = vcombine.low %v6712_v18, %v6720_v21  ;;  %v10698_v49 = vcombine.low %v6713_v20, %v6721_v22  ;;  %v6611_v18 = vld [vmem:[#allocation4 + $0x2e8] sm:$0xff] }
 0xcad   :  { %8231 = vmatpush1.bf16.msra.mxu0 %v10568_v4  ;;  %8274 = vmatpush1.bf16.msra.mxu1 %v10570_v28  ;;  %v10699_v4 = vcombine.high %v6713_v20, %v6721_v22  ;;  %v6696_v28 = vld [vmem:[#allocation4 + $0x590] sm:$0xff] }
 0xcae   :  { %8232 = vmatprep.subr.bf16.mxu0 %v10553_v39  ;;  %8275 = vmatprep.subr.bf16.mxu1 %v10555_v62  ;;  %v6704_v39 = vld [vmem:[#allocation4 + $0x5d0] sm:$0xff]  ;;  %v6697_v62 = vld [vmem:[#allocation4 + $0x598] sm:$0xff] }
 0xcaf   :  { %v10681_v9 = vcombine.high %v6696_v28, %v6704_v39  ;;  %v10680_v56 = vcombine.low %v6696_v28, %v6704_v39  ;;  %v10682_v25 = vcombine.low %v6697_v62, %v6705_v0  ;;  %v6595_v28 = vld [vmem:[#allocation4 + $0x268] sm:$0xff] }
 0xcb1   :  { %8233 = vmatpush1.bf16.msra.mxu0 %v10552_v23  ;;  %8276 = vmatpush1.bf16.msra.mxu1 %v10554_v48  ;;  %v10683_v23 = vcombine.high %v6697_v62, %v6705_v0  ;;  %v6680_v48 = vld [vmem:[#allocation4 + $0x510] sm:$0xff] }
 0xcb2   :  { %8234 = vmatprep.subr.bf16.mxu0 %v10537_v43  ;;  %8277 = vmatprep.subr.bf16.mxu1 %v10539_v19  ;;  %v6688_v43 = vld [vmem:[#allocation4 + $0x550] sm:$0xff]  ;;  %v6681_v19 = vld [vmem:[#allocation4 + $0x518] sm:$0xff] }
 0xcb3   :  { %v10665_v31 = vcombine.high %v6680_v48, %v6688_v43  ;;  %v10664_v10 = vcombine.low %v6680_v48, %v6688_v43  ;;  %v10666_v2 = vcombine.low %v6681_v19, %v6689_v55  ;;  %v6579_v48 = vld [vmem:[#allocation4 + $0x1e8] sm:$0xff] }
 0xcb5   :  { %8235 = vmatpush1.bf16.msra.mxu0 %v10536_v37  ;;  %8278 = vmatpush1.bf16.msra.mxu1 %v10538_v51  ;;  %v10667_v37 = vcombine.high %v6681_v19, %v6689_v55  ;;  %v6664_v51 = vld [vmem:[#allocation4 + $0x490] sm:$0xff] }
 0xcb6   :  { %8236 = vmatprep.subr.bf16.mxu0 %v10521_v35  ;;  %8279 = vmatprep.subr.bf16.mxu1 %v10523_v53  ;;  %v6672_v35 = vld [vmem:[#allocation4 + $0x4d0] sm:$0xff]  ;;  %v6665_v53 = vld [vmem:[#allocation4 + $0x498] sm:$0xff] }
 0xcb7   :  { %v10649_v7 = vcombine.high %v6664_v51, %v6672_v35  ;;  %v10648_v42 = vcombine.low %v6664_v51, %v6672_v35  ;;  %v10650_v8 = vcombine.low %v6665_v53, %v6673_v58  ;;  %v6563_v51 = vld [vmem:[#allocation4 + $0x168] sm:$0xff] }
 0xcb9   :  { %8237 = vmatpush1.bf16.msra.mxu0 %v10520_v11  ;;  %8280 = vmatpush1.bf16.msra.mxu1 %v10522_v12  ;;  %v10651_v11 = vcombine.high %v6665_v53, %v6673_v58  ;;  %v6648_v12 = vld [vmem:[#allocation4 + $0x410] sm:$0xff] }
 0xcba   :  { %8238 = vmatprep.subr.bf16.mxu0 %v10505_v57  ;;  %8281 = vmatprep.subr.bf16.mxu1 %v10507_v54  ;;  %v6656_v57 = vld [vmem:[#allocation4 + $0x450] sm:$0xff]  ;;  %v6649_v54 = vld [vmem:[#allocation4 + $0x418] sm:$0xff] }
 0xcbb   :  { %v10633_v5 = vcombine.high %v6648_v12, %v6656_v57  ;;  %v10632_v44 = vcombine.low %v6648_v12, %v6656_v57  ;;  %v10634_v13 = vcombine.low %v6649_v54, %v6657_v33  ;;  %v6547_v12 = vld [vmem:[#allocation4 + $0xe8] sm:$0xff] }
 0xcbd   :  { %8239 = vmatpush1.bf16.msra.mxu0 %v10504_v61  ;;  %8282 = vmatpush1.bf16.msra.mxu1 %v10506_v16  ;;  %v10635_v61 = vcombine.high %v6649_v54, %v6657_v33  ;;  %v6634_v16 = vld [vmem:[#allocation4 + $0x3a0] sm:$0xff] }
 0xcbe   :  { %8240 = vmatprep.subr.bf16.mxu0 %v10745_v15  ;;  %8283 = vmatprep.subr.bf16.mxu1 %v10747_v29  ;;  %v6642_v15 = vld [vmem:[#allocation4 + $0x3e0] sm:$0xff]  ;;  %v6635_v29 = vld [vmem:[#allocation4 + $0x3a8] sm:$0xff] }
 0xcbf   :  { %v10621_v52 = vcombine.high %v6634_v16, %v6642_v15  ;;  %v10620_v63 = vcombine.low %v6634_v16, %v6642_v15  ;;  %v10622_v3 = vcombine.low %v6635_v29, %v6643_v24  ;;  %v6531_v16 = vld [vmem:[#allocation4 + $0x68] sm:$0xff] }
 0xcc1   :  { %8241 = vmatpush2.bf16.msra.mxu0 %v10744_v26  ;;  %8284 = vmatpush2.bf16.msra.mxu1 %v10746_v32  ;;  %v10623_v26 = vcombine.high %v6635_v29, %v6643_v24  ;;  %v6618_v32 = vld [vmem:[#allocation4 + $0x320] sm:$0xff] }
 0xcc2   :  { %8242 = vmatprep.subr.bf16.mxu0 %v10729_v45  ;;  %8285 = vmatprep.subr.bf16.mxu1 %v10731_v46  ;;  %v6626_v45 = vld [vmem:[#allocation4 + $0x360] sm:$0xff]  ;;  %v6619_v46 = vld [vmem:[#allocation4 + $0x328] sm:$0xff] }
 0xcc3   :  { %v10605_v36 = vcombine.high %v6618_v32, %v6626_v45  ;;  %v10604_v21 = vcombine.low %v6618_v32, %v6626_v45  ;;  %v10606_v20 = vcombine.low %v6619_v46, %v6627_v47  ;;  %v6771_v32 = vld [vmem:[#allocation4 + $0x7e8] sm:$0xff] }
 0xcc5   :  { %8243 = vmatpush2.bf16.msra.mxu0 %v10728_v30  ;;  %8286 = vmatpush2.bf16.msra.mxu1 %v10730_v6  ;;  %v10607_v30 = vcombine.high %v6619_v46, %v6627_v47  ;;  %v6602_v6 = vld [vmem:[#allocation4 + $0x2a0] sm:$0xff] }
 0xcc6   :  { %8244 = vmatprep.subr.bf16.mxu0 %v10713_v50  ;;  %8287 = vmatprep.subr.bf16.mxu1 %v10715_v41  ;;  %v6610_v50 = vld [vmem:[#allocation4 + $0x2e0] sm:$0xff]  ;;  %v6603_v41 = vld [vmem:[#allocation4 + $0x2a8] sm:$0xff] }
 0xcc7   :  { %v10589_v22 = vcombine.high %v6602_v6, %v6610_v50  ;;  %v10588_v39 = vcombine.low %v6602_v6, %v6610_v50  ;;  %v10590_v62 = vcombine.low %v6603_v41, %v6611_v18  ;;  %v6755_v6 = vld [vmem:[#allocation4 + $0x768] sm:$0xff] }
 0xcc9   :  { %8245 = vmatpush2.bf16.msra.mxu0 %v10712_v17  ;;  %8288 = vmatpush2.bf16.msra.mxu1 %v10714_v60  ;;  %v10591_v17 = vcombine.high %v6603_v41, %v6611_v18  ;;  %v6586_v60 = vld [vmem:[#allocation4 + $0x220] sm:$0xff] }
 0xcca   :  { %8246 = vmatprep.subr.bf16.mxu0 %v10697_v40  ;;  %8289 = vmatprep.subr.bf16.mxu1 %v10699_v4  ;;  %v6594_v40 = vld [vmem:[#allocation4 + $0x260] sm:$0xff]  ;;  %v6587_v4 = vld [vmem:[#allocation4 + $0x228] sm:$0xff] }
 0xccb   :  { %v10573_v0 = vcombine.high %v6586_v60, %v6594_v40  ;;  %v10572_v43 = vcombine.low %v6586_v60, %v6594_v40  ;;  %v10574_v19 = vcombine.low %v6587_v4, %v6595_v28  ;;  %v6739_v60 = vld [vmem:[#allocation4 + $0x6e8] sm:$0xff] }
 0xccd   :  { %8247 = vmatpush2.bf16.msra.mxu0 %v10696_v1  ;;  %8290 = vmatpush2.bf16.msra.mxu1 %v10698_v49  ;;  %v10575_v1 = vcombine.high %v6587_v4, %v6595_v28  ;;  %v6570_v49 = vld [vmem:[#allocation4 + $0x1a0] sm:$0xff] }
 0xcce   :  { %8248 = vmatprep.subr.bf16.mxu0 %v10681_v9  ;;  %8291 = vmatprep.subr.bf16.mxu1 %v10683_v23  ;;  %v6578_v9 = vld [vmem:[#allocation4 + $0x1e0] sm:$0xff]  ;;  %v6571_v23 = vld [vmem:[#allocation4 + $0x1a8] sm:$0xff] }
 0xccf   :  { %v10557_v55 = vcombine.high %v6570_v49, %v6578_v9  ;;  %v10556_v35 = vcombine.low %v6570_v49, %v6578_v9  ;;  %v10558_v53 = vcombine.low %v6571_v23, %v6579_v48  ;;  %v6723_v49 = vld [vmem:[#allocation4 + $0x668] sm:$0xff] }
 0xcd1   :  { %8249 = vmatpush2.bf16.msra.mxu0 %v10680_v56  ;;  %8292 = vmatpush2.bf16.msra.mxu1 %v10682_v25  ;;  %v10559_v56 = vcombine.high %v6571_v23, %v6579_v48  ;;  %v6554_v25 = vld [vmem:[#allocation4 + $0x120] sm:$0xff] }
 0xcd2   :  { %8250 = vmatprep.subr.bf16.mxu0 %v10665_v31  ;;  %8293 = vmatprep.subr.bf16.mxu1 %v10667_v37  ;;  %v6562_v31 = vld [vmem:[#allocation4 + $0x160] sm:$0xff]  ;;  %v6555_v37 = vld [vmem:[#allocation4 + $0x128] sm:$0xff] }
 0xcd3   :  { %v10541_v58 = vcombine.high %v6554_v25, %v6562_v31  ;;  %v10540_v57 = vcombine.low %v6554_v25, %v6562_v31  ;;  %v10542_v54 = vcombine.low %v6555_v37, %v6563_v51  ;;  %v6707_v25 = vld [vmem:[#allocation4 + $0x5e8] sm:$0xff] }
 0xcd5   :  { %8251 = vmatpush2.bf16.msra.mxu0 %v10664_v10  ;;  %8294 = vmatpush2.bf16.msra.mxu1 %v10666_v2  ;;  %v10543_v10 = vcombine.high %v6555_v37, %v6563_v51  ;;  %v6538_v2 = vld [vmem:[#allocation4 + $0xa0] sm:$0xff] }
 0xcd6   :  { %8252 = vmatprep.subr.bf16.mxu0 %v10649_v7  ;;  %8295 = vmatprep.subr.bf16.mxu1 %v10651_v11  ;;  %v6546_v7 = vld [vmem:[#allocation4 + $0xe0] sm:$0xff]  ;;  %v6539_v11 = vld [vmem:[#allocation4 + $0xa8] sm:$0xff] }
 0xcd7   :  { %v10525_v33 = vcombine.high %v6538_v2, %v6546_v7  ;;  %v10524_v15 = vcombine.low %v6538_v2, %v6546_v7  ;;  %v10526_v29 = vcombine.low %v6539_v11, %v6547_v12  ;;  %v6691_v2 = vld [vmem:[#allocation4 + $0x568] sm:$0xff] }
 0xcd9   :  { %8253 = vmatpush2.bf16.msra.mxu0 %v10648_v42  ;;  %8296 = vmatpush2.bf16.msra.mxu1 %v10650_v8  ;;  %v10527_v42 = vcombine.high %v6539_v11, %v6547_v12  ;;  %v6522_v8 = vld [vmem:[#allocation4 + $0x20] sm:$0xff] }
 0xcda   :  { %8254 = vmatprep.subr.bf16.mxu0 %v10633_v5  ;;  %8297 = vmatprep.subr.bf16.mxu1 %v10635_v61  ;;  %v6530_v5 = vld [vmem:[#allocation4 + $0x60] sm:$0xff]  ;;  %v6523_v61 = vld [vmem:[#allocation4 + $0x28] sm:$0xff] }
 0xcdb   :  { %v10509_v24 = vcombine.high %v6522_v8, %v6530_v5  ;;  %v10508_v45 = vcombine.low %v6522_v8, %v6530_v5  ;;  %v10510_v46 = vcombine.low %v6523_v61, %v6531_v16  ;;  %v6675_v8 = vld [vmem:[#allocation4 + $0x4e8] sm:$0xff] }
 0xcdd   :  { %8255 = vmatpush2.bf16.msra.mxu0 %v10632_v44  ;;  %8298 = vmatpush2.bf16.msra.mxu1 %v10634_v13  ;;  %v10511_v44 = vcombine.high %v6523_v61, %v6531_v16  ;;  %v6762_v13 = vld [vmem:[#allocation4 + $0x7a0] sm:$0xff] }
 0xcde   :  { %8310 = vmatprep.subr.bf16.mxu0 %v10621_v52  ;;  %8353 = vmatprep.subr.bf16.mxu1 %v10623_v26  ;;  %v6770_v52 = vld [vmem:[#allocation4 + $0x7e0] sm:$0xff]  ;;  %v6763_v26 = vld [vmem:[#allocation4 + $0x7a8] sm:$0xff] }
 0xcdf   :  { %v10749_v47 = vcombine.high %v6762_v13, %v6770_v52  ;;  %v10748_v50 = vcombine.low %v6762_v13, %v6770_v52  ;;  %v10750_v41 = vcombine.low %v6763_v26, %v6771_v32  ;;  %v6659_v13 = vld [vmem:[#allocation4 + $0x468] sm:$0xff] }
 0xce0   :  { %8257 = vmatmul.mubr.bf16.vlgmr.msra.gmra.mxu0 %v11958_v59  ;;  %8300 = vmatmul.mubr.bf16.vlgmr.msra.gmra.mxu1 %v11958_v59 }
 0xce1   :  { %8311 = vmatpush1.bf16.msra.mxu0 %v10620_v63  ;;  %8342 = vmatprep.mubr.bf16.mxu0 %v11960_v34  ;;  %v10751_v63 = vcombine.high %v6763_v26, %v6771_v32 }
 0xce2   :  { %8354 = vmatpush1.bf16.msra.mxu1 %v10622_v3  ;;  %8385 = vmatprep.mubr.bf16.mxu1 %v11960_v34  ;;  %v6746_v3 = vld [vmem:[#allocation4 + $0x720] sm:$0xff] }
 0xce3   :  { %8312 = vmatprep.subr.bf16.mxu0 %v10605_v36  ;;  %8355 = vmatprep.subr.bf16.mxu1 %v10607_v30  ;;  %v6754_v36 = vld [vmem:[#allocation4 + $0x760] sm:$0xff]  ;;  %v6747_v30 = vld [vmem:[#allocation4 + $0x728] sm:$0xff] }
 0xce4   :  { %v10733_v18 = vcombine.high %v6746_v3, %v6754_v36  ;;  %v10732_v40 = vcombine.low %v6746_v3, %v6754_v36  ;;  %v10734_v4 = vcombine.low %v6747_v30, %v6755_v6  ;;  %v6645_v3 = vld [vmem:[#allocation4 + $0x3f8] sm:$0xff] }
 0xce5   :  { %8313 = vmatpush1.bf16.msra.mxu0 %v10604_v21  ;;  %v10735_v21 = vcombine.high %v6747_v30, %v6755_v6 }
 0xce6   :  { %8356 = vmatpush1.bf16.msra.mxu1 %v10606_v20  ;;  %8314 = vmatprep.subr.bf16.mxu0 %v10589_v22  ;;  %v6730_v20 = vld [vmem:[#allocation4 + $0x6a0] sm:$0xff] }
 0xce7   :  { %8357 = vmatprep.subr.bf16.mxu1 %v10591_v17  ;;  %v6738_v22 = vld [vmem:[#allocation4 + $0x6e0] sm:$0xff]  ;;  %v6731_v17 = vld [vmem:[#allocation4 + $0x6a8] sm:$0xff] }
 0xce8   :  { %v10717_v28 = vcombine.high %v6730_v20, %v6738_v22  ;;  %v10716_v9 = vcombine.low %v6730_v20, %v6738_v22  ;;  %v10718_v23 = vcombine.low %v6731_v17, %v6739_v60  ;;  %v6621_v20 = vld [vmem:[#allocation4 + $0x338] sm:$0xff] }
 0xce9   :  { %8315 = vmatpush1.bf16.msra.mxu0 %v10588_v39  ;;  %v10719_v39 = vcombine.high %v6731_v17, %v6739_v60  ;;  %v6629_v22 = vld [vmem:[#allocation4 + $0x378] sm:$0xff] }
 0xcea   :  { %8358 = vmatpush1.bf16.msra.mxu1 %v10590_v62  ;;  %8316 = vmatprep.subr.bf16.mxu0 %v10573_v0  ;;  %v6714_v62 = vld [vmem:[#allocation4 + $0x620] sm:$0xff] }
 0xceb   :  { %8359 = vmatprep.subr.bf16.mxu1 %v10575_v1  ;;  %v6722_v0 = vld [vmem:[#allocation4 + $0x660] sm:$0xff]  ;;  %v6715_v1 = vld [vmem:[#allocation4 + $0x628] sm:$0xff] }
 0xcec   :  { %v10701_v48 = vcombine.high %v6714_v62, %v6722_v0  ;;  %v10700_v31 = vcombine.low %v6714_v62, %v6722_v0  ;;  %v10702_v37 = vcombine.low %v6715_v1, %v6723_v49  ;;  %v6613_v62 = vld [vmem:[#allocation4 + $0x2f8] sm:$0xff] }
 0xced   :  { %8317 = vmatpush1.bf16.msra.mxu0 %v10572_v43  ;;  %v10703_v43 = vcombine.high %v6715_v1, %v6723_v49  ;;  %v10610_v1 = vcombine.low %v6621_v20, %v6629_v22 }
 0xcee   :  { %8360 = vmatpush1.bf16.msra.mxu1 %v10574_v19  ;;  %8318 = vmatprep.subr.bf16.mxu0 %v10557_v55  ;;  %v6698_v19 = vld [vmem:[#allocation4 + $0x5a0] sm:$0xff] }
 0xcef   :  { %8361 = vmatprep.subr.bf16.mxu1 %v10559_v56  ;;  %v6706_v55 = vld [vmem:[#allocation4 + $0x5e0] sm:$0xff]  ;;  %v6699_v56 = vld [vmem:[#allocation4 + $0x5a8] sm:$0xff] }
 0xcf0   :  { %v10685_v51 = vcombine.high %v6698_v19, %v6706_v55  ;;  %v10684_v7 = vcombine.low %v6698_v19, %v6706_v55  ;;  %v10686_v11 = vcombine.low %v6699_v56, %v6707_v25  ;;  %v6597_v19 = vld [vmem:[#allocation4 + $0x278] sm:$0xff] }
 0xcf1   :  { %8319 = vmatpush1.bf16.msra.mxu0 %v10556_v35  ;;  %v10687_v35 = vcombine.high %v6699_v56, %v6707_v25 }
 0xcf2   :  { %8362 = vmatpush1.bf16.msra.mxu1 %v10558_v53  ;;  %8320 = vmatprep.subr.bf16.mxu0 %v10541_v58  ;;  %v6682_v53 = vld [vmem:[#allocation4 + $0x520] sm:$0xff] }
 0xcf3   :  { %8363 = vmatprep.subr.bf16.mxu1 %v10543_v10  ;;  %v6690_v58 = vld [vmem:[#allocation4 + $0x560] sm:$0xff]  ;;  %v6683_v10 = vld [vmem:[#allocation4 + $0x528] sm:$0xff] }
 0xcf4   :  { %v10669_v12 = vcombine.high %v6682_v53, %v6690_v58  ;;  %v10668_v5 = vcombine.low %v6682_v53, %v6690_v58  ;;  %v10670_v61 = vcombine.low %v6683_v10, %v6691_v2  ;;  %v6581_v53 = vld [vmem:[#allocation4 + $0x1f8] sm:$0xff] }
 0xcf5   :  { %8321 = vmatpush1.bf16.msra.mxu0 %v10540_v57  ;;  %v10671_v57 = vcombine.high %v6683_v10, %v6691_v2 }
 0xcf6   :  { %8364 = vmatpush1.bf16.msra.mxu1 %v10542_v54  ;;  %8322 = vmatprep.subr.bf16.mxu0 %v10525_v33  ;;  %v6666_v54 = vld [vmem:[#allocation4 + $0x4a0] sm:$0xff] }
 0xcf7   :  { %8365 = vmatprep.subr.bf16.mxu1 %v10527_v42  ;;  %v6674_v33 = vld [vmem:[#allocation4 + $0x4e0] sm:$0xff]  ;;  %v6667_v42 = vld [vmem:[#allocation4 + $0x4a8] sm:$0xff] }
 0xcf8   :  { %v10653_v16 = vcombine.high %v6666_v54, %v6674_v33  ;;  %v10652_v52 = vcombine.low %v6666_v54, %v6674_v33  ;;  %v10654_v26 = vcombine.low %v6667_v42, %v6675_v8 }
 0xcf9   :  { %8323 = vmatpush1.bf16.msra.mxu0 %v10524_v15  ;;  %v10655_v15 = vcombine.high %v6667_v42, %v6675_v8 }
 0xcfa   :  { %8366 = vmatpush1.bf16.msra.mxu1 %v10526_v29  ;;  %8324 = vmatprep.subr.bf16.mxu0 %v10509_v24  ;;  %v6650_v29 = vld [vmem:[#allocation4 + $0x420] sm:$0xff] }
 0xcfb   :  { %8367 = vmatprep.subr.bf16.mxu1 %v10511_v44  ;;  %v6658_v24 = vld [vmem:[#allocation4 + $0x460] sm:$0xff]  ;;  %v6651_v44 = vld [vmem:[#allocation4 + $0x428] sm:$0xff] }
 0xcfc   :  { %v10637_v32 = vcombine.high %v6650_v29, %v6658_v24  ;;  %v10636_v36 = vcombine.low %v6650_v29, %v6658_v24  ;;  %v10638_v30 = vcombine.low %v6651_v44, %v6659_v13 }
 0xcfd   :  { %8325 = vmatpush1.bf16.msra.mxu0 %v10508_v45  ;;  %v10639_v45 = vcombine.high %v6651_v44, %v6659_v13 }
 0xcfe   :  { %8368 = vmatpush1.bf16.msra.mxu1 %v10510_v46  ;;  %8326 = vmatprep.subr.bf16.mxu0 %v10749_v47  ;;  %v6636_v46 = vld [vmem:[#allocation4 + $0x3b0] sm:$0xff] }
 0xcff   :  { %8369 = vmatprep.subr.bf16.mxu1 %v10751_v63  ;;  %v6644_v47 = vld [vmem:[#allocation4 + $0x3f0] sm:$0xff]  ;;  %v6637_v63 = vld [vmem:[#allocation4 + $0x3b8] sm:$0xff] }
 0xd00   :  { %v10625_v6 = vcombine.high %v6636_v46, %v6644_v47  ;;  %v10626_v17 = vcombine.low %v6637_v63, %v6645_v3 }
 0xd01   :  { %8327 = vmatpush2.bf16.msra.mxu0 %v10748_v50  ;;  %v10627_v50 = vcombine.high %v6637_v63, %v6645_v3 }
 0xd02   :  { %8370 = vmatpush2.bf16.msra.mxu1 %v10750_v41  ;;  %8328 = vmatprep.subr.bf16.mxu0 %v10733_v18  ;;  %v6620_v41 = vld [vmem:[#allocation4 + $0x330] sm:$0xff] }
 0xd03   :  { %8371 = vmatprep.subr.bf16.mxu1 %v10735_v21  ;;  %v6628_v18 = vld [vmem:[#allocation4 + $0x370] sm:$0xff]  ;;  %v10624_v21 = vcombine.low %v6636_v46, %v6644_v47 }
 0xd04   :  { %v10609_v60 = vcombine.high %v6620_v41, %v6628_v18  ;;  %v10608_v0 = vcombine.low %v6620_v41, %v6628_v18 }
 0xd05   :  { %8329 = vmatpush2.bf16.msra.mxu0 %v10732_v40  ;;  %v6604_v40 = vld [vmem:[#allocation4 + $0x2b0] sm:$0xff] }
 0xd06   :  { %8372 = vmatpush2.bf16.msra.mxu1 %v10734_v4  ;;  %8330 = vmatprep.subr.bf16.mxu0 %v10717_v28  ;;  %v6612_v4 = vld [vmem:[#allocation4 + $0x2f0] sm:$0xff]  ;;  %v10611_v28 = vcombine.high %v6621_v20, %v6629_v22 }
 0xd07   :  { %8373 = vmatprep.subr.bf16.mxu1 %v10719_v39  ;;  %v6605_v39 = vld [vmem:[#allocation4 + $0x2b8] sm:$0xff]  ;;  %v10593_v49 = vcombine.high %v6604_v40, %v6612_v4  ;;  %v10592_v55 = vcombine.low %v6604_v40, %v6612_v4  ;;  %v6748_v22 = vld [vmem:[#allocation4 + $0x730] sm:$0xff] }
 0xd08   :  { %v10594_v56 = vcombine.low %v6605_v39, %v6613_v62  ;;  %v6757_v40 = vld [vmem:[#allocation4 + $0x778] sm:$0xff] }
 0xd09   :  { %8331 = vmatpush2.bf16.msra.mxu0 %v10716_v9  ;;  %v10595_v9 = vcombine.high %v6605_v39, %v6613_v62 }
 0xd0a   :  { %8374 = vmatpush2.bf16.msra.mxu1 %v10718_v23  ;;  %8332 = vmatprep.subr.bf16.mxu0 %v10701_v48  ;;  %v6588_v23 = vld [vmem:[#allocation4 + $0x230] sm:$0xff] }
 0xd0b   :  { %8375 = vmatprep.subr.bf16.mxu1 %v10703_v43  ;;  %v6596_v48 = vld [vmem:[#allocation4 + $0x270] sm:$0xff]  ;;  %v6589_v43 = vld [vmem:[#allocation4 + $0x238] sm:$0xff] }
 0xd0c   :  { %v10577_v25 = vcombine.high %v6588_v23, %v6596_v48  ;;  %v10578_v58 = vcombine.low %v6589_v43, %v6597_v19 }
 0xd0d   :  { %8333 = vmatpush2.bf16.msra.mxu0 %v10700_v31  ;;  %v10579_v31 = vcombine.high %v6589_v43, %v6597_v19 }
 0xd0e   :  { %8376 = vmatpush2.bf16.msra.mxu1 %v10702_v37  ;;  %8334 = vmatprep.subr.bf16.mxu0 %v10685_v51  ;;  %v6572_v37 = vld [vmem:[#allocation4 + $0x1b0] sm:$0xff] }
 0xd0f   :  { %8377 = vmatprep.subr.bf16.mxu1 %v10687_v35  ;;  %v6580_v51 = vld [vmem:[#allocation4 + $0x1f0] sm:$0xff]  ;;  %v6573_v35 = vld [vmem:[#allocation4 + $0x1b8] sm:$0xff] }
 0xd10   :  { %v10561_v10 = vcombine.high %v6572_v37, %v6580_v51  ;;  %v10563_v2 = vcombine.high %v6573_v35, %v6581_v53  ;;  %v10560_v54 = vcombine.low %v6572_v37, %v6580_v51  ;;  %v10562_v33 = vcombine.low %v6573_v35, %v6581_v53 }
 0xd11   :  { %8335 = vmatpush2.bf16.msra.mxu0 %v10684_v7  ;;  %v6556_v7 = vld [vmem:[#allocation4 + $0x130] sm:$0xff] }
 0xd12   :  { %8378 = vmatpush2.bf16.msra.mxu1 %v10686_v11  ;;  %8336 = vmatprep.subr.bf16.mxu0 %v10669_v12  ;;  %v6564_v11 = vld [vmem:[#allocation4 + $0x170] sm:$0xff]  ;;  %v6557_v12 = vld [vmem:[#allocation4 + $0x138] sm:$0xff] }
 0xd13   :  { %8379 = vmatprep.subr.bf16.mxu1 %v10671_v57  ;;  %v6565_v57 = vld [vmem:[#allocation4 + $0x178] sm:$0xff]  ;;  %v10545_v42 = vcombine.high %v6556_v7, %v6564_v11  ;;  %v10544_v29 = vcombine.low %v6556_v7, %v6564_v11 }
 0xd14   :  { %v10547_v8 = vcombine.high %v6557_v12, %v6565_v57  ;;  %v10546_v24 = vcombine.low %v6557_v12, %v6565_v57 }
 0xd15   :  { %8337 = vmatpush2.bf16.msra.mxu0 %v10668_v5  ;;  %v6540_v5 = vld [vmem:[#allocation4 + $0xb0] sm:$0xff] }
 0xd16   :  { %8380 = vmatpush2.bf16.msra.mxu1 %v10670_v61  ;;  %8338 = vmatprep.subr.bf16.mxu0 %v10653_v16  ;;  %v6548_v61 = vld [vmem:[#allocation4 + $0xf0] sm:$0xff]  ;;  %v6541_v16 = vld [vmem:[#allocation4 + $0xb8] sm:$0xff] }
 0xd17   :  { %8381 = vmatprep.subr.bf16.mxu1 %v10655_v15  ;;  %v6549_v15 = vld [vmem:[#allocation4 + $0xf8] sm:$0xff]  ;;  %v10529_v44 = vcombine.high %v6540_v5, %v6548_v61  ;;  %v10528_v46 = vcombine.low %v6540_v5, %v6548_v61 }
 0xd18   :  { %v10531_v13 = vcombine.high %v6541_v16, %v6549_v15  ;;  %v10530_v47 = vcombine.low %v6541_v16, %v6549_v15 }
 0xd19   :  { %8339 = vmatpush2.bf16.msra.mxu0 %v10652_v52  ;;  %v6524_v52 = vld [vmem:[#allocation4 + $0x30] sm:$0xff] }
 0xd1a   :  { %8382 = vmatpush2.bf16.msra.mxu1 %v10654_v26  ;;  %8340 = vmatprep.subr.bf16.mxu0 %v10637_v32  ;;  %v6532_v26 = vld [vmem:[#allocation4 + $0x70] sm:$0xff]  ;;  %v6525_v32 = vld [vmem:[#allocation4 + $0x38] sm:$0xff] }
 0xd1b   :  { %8383 = vmatprep.subr.bf16.mxu1 %v10639_v45  ;;  %v6533_v45 = vld [vmem:[#allocation4 + $0x78] sm:$0xff]  ;;  %v10513_v63 = vcombine.high %v6524_v52, %v6532_v26  ;;  %v10512_v41 = vcombine.low %v6524_v52, %v6532_v26 }
 0xd1c   :  { %v10515_v3 = vcombine.high %v6525_v32, %v6533_v45  ;;  %v10514_v18 = vcombine.low %v6525_v32, %v6533_v45 }
 0xd1d   :  { %8341 = vmatpush2.bf16.msra.mxu0 %v10636_v36  ;;  %v6764_v36 = vld [vmem:[#allocation4 + $0x7b0] sm:$0xff] }
 0xd1e   :  { %8384 = vmatpush2.bf16.msra.mxu1 %v10638_v30  ;;  %8396 = vmatprep.subr.bf16.mxu0 %v10625_v6  ;;  %v6772_v30 = vld [vmem:[#allocation4 + $0x7f0] sm:$0xff]  ;;  %v6765_v6 = vld [vmem:[#allocation4 + $0x7b8] sm:$0xff] }
 0xd1f   :  { %8439 = vmatprep.subr.bf16.mxu1 %v10627_v50  ;;  %v6773_v50 = vld [vmem:[#allocation4 + $0x7f8] sm:$0xff]  ;;  %v10752_v4 = vcombine.low %v6764_v36, %v6772_v30 }
 0xd20   :  { %8343 = vmatmul.mubr.bf16.vlgmr.msra.gmra.mxu0 %v11958_v59  ;;  %v10755_v20 = vcombine.high %v6765_v6, %v6773_v50 }
 0xd21   :  { %8386 = vmatmul.mubr.bf16.vlgmr.msra.gmra.mxu1 %v11958_v59  ;;  %8397 = vmatpush1.bf16.msra.mxu0 %v10624_v21  ;;  %v10753_v21 = vcombine.high %v6764_v36, %v6772_v30 }
 0xd22   :  { %8428 = vmatprep.mubr.bf16.mxu0 %v11960_v34  ;;  %8440 = vmatpush1.bf16.msra.mxu1 %v10626_v17  ;;  %v6756_v17 = vld [vmem:[#allocation4 + $0x770] sm:$0xff] }
 0xd23   :  { %8471 = vmatprep.mubr.bf16.mxu1 %v11960_v34  ;;  %8398 = vmatprep.subr.bf16.mxu0 %v10609_v60  ;;  %v10576_v34 = vcombine.low %v6588_v23, %v6596_v48  ;;  %v6749_v60 = vld [vmem:[#allocation4 + $0x738] sm:$0xff]  ;;  %v10737_v39 = vcombine.high %v6748_v22, %v6756_v17  ;;  %v10736_v23 = vcombine.low %v6748_v22, %v6756_v17 }
 0xd24   :  { %8441 = vmatprep.subr.bf16.mxu1 %v10611_v28  ;;  %v10754_v28 = vcombine.low %v6765_v6, %v6773_v50  ;;  %v10739_v62 = vcombine.high %v6749_v60, %v6757_v40  ;;  %v10738_v48 = vcombine.low %v6749_v60, %v6757_v40  ;;  %v10900_v22 = vld [vmem:[#allocation6 + $0x70] ss:$8 sps:$4 sm:$0xff]   ;;  %v10908_v60 = vld [vmem:[#allocation6 + $0x64] ss:$8 sps:$4 sm:$0xff]  }
 0xd25   :  { %8399 = vmatpush1.bf16.msra.mxu0 %v10608_v0  ;;  %v6732_v0 = vld [vmem:[#allocation4 + $0x6b0] sm:$0xff]  ;;  %v10911_v40 = vld [vmem:[#allocation6 + $0x164] ss:$8 sps:$4 sm:$0xff]  }
 0xd26   :  { %8442 = vmatpush1.bf16.msra.mxu1 %v10610_v1  ;;  %8400 = vmatprep.subr.bf16.mxu0 %v10593_v49  ;;  %v6740_v1 = vld [vmem:[#allocation4 + $0x6f0] sm:$0xff]  ;;  %v6733_v49 = vld [vmem:[#allocation4 + $0x6b8] sm:$0xff] }
 0xd27   :  { %8443 = vmatprep.subr.bf16.mxu1 %v10595_v9  ;;  %v6741_v9 = vld [vmem:[#allocation4 + $0x6f8] sm:$0xff]  ;;  %v10721_v43 = vcombine.high %v6732_v0, %v6740_v1  ;;  %v10720_v37 = vcombine.low %v6732_v0, %v6740_v1  ;;  %v10920_v1 = vld [vmem:[#allocation6 + $0x44] ss:$8 sps:$4 sm:$0xff]  }
 0xd28   :  { %v10723_v19 = vcombine.high %v6733_v49, %v6741_v9  ;;  %v10722_v51 = vcombine.low %v6733_v49, %v6741_v9  ;;  %v10903_v17 = vld [vmem:[#allocation6 + $0x170] ss:$8 sps:$4 sm:$0xff]   ;;  %v10923_v49 = vld [vmem:[#allocation6 + $0x144] ss:$8 sps:$4 sm:$0xff]   ;;  %v10918_v9 = vld [vmem:[#allocation6 + $0x40] ss:$8 sps:$4 sm:$0xff]  }
 0xd29   :  { %8401 = vmatpush1.bf16.msra.mxu0 %v10592_v55  ;;  %v6716_v55 = vld [vmem:[#allocation4 + $0x630] sm:$0xff] }
 0xd2a   :  { %8444 = vmatpush1.bf16.msra.mxu1 %v10594_v56  ;;  %8402 = vmatprep.subr.bf16.mxu0 %v10577_v25  ;;  %v6724_v56 = vld [vmem:[#allocation4 + $0x670] sm:$0xff]  ;;  %v6717_v25 = vld [vmem:[#allocation4 + $0x638] sm:$0xff] }
 0xd2b   :  { %8445 = vmatprep.subr.bf16.mxu1 %v10579_v31  ;;  %v6725_v31 = vld [vmem:[#allocation4 + $0x678] sm:$0xff]  ;;  %v10705_v35 = vcombine.high %v6716_v55, %v6724_v56  ;;  %v10704_v7 = vcombine.low %v6716_v55, %v6724_v56  ;;  %v10932_v56 = vld [vmem:[#allocation6 + $0x24] ss:$8 sps:$4 sm:$0xff]  }
 0xd2c   :  { %v10707_v53 = vcombine.high %v6717_v25, %v6725_v31  ;;  %v10706_v11 = vcombine.low %v6717_v25, %v6725_v31  ;;  %v10912_v0 = vld [vmem:[#allocation6 + $0x50] ss:$8 sps:$4 sm:$0xff]   ;;  %v10935_v25 = vld [vmem:[#allocation6 + $0x124] ss:$8 sps:$4 sm:$0xff]   ;;  %v10930_v31 = vld [vmem:[#allocation6 + $0x20] ss:$8 sps:$4 sm:$0xff]  }
 0xd2d   :  { %8403 = vmatpush1.bf16.msra.mxu0 %v10576_v34  ;;  %v6700_v34 = vld [vmem:[#allocation4 + $0x5b0] sm:$0xff] }
 0xd2e   :  { %8446 = vmatpush1.bf16.msra.mxu1 %v10578_v58  ;;  %8404 = vmatprep.subr.bf16.mxu0 %v10561_v10  ;;  %v6708_v58 = vld [vmem:[#allocation4 + $0x5f0] sm:$0xff]  ;;  %v6701_v10 = vld [vmem:[#allocation4 + $0x5b8] sm:$0xff] }
 0xd2f   :  { %8447 = vmatprep.subr.bf16.mxu1 %v10563_v2  ;;  %v6709_v2 = vld [vmem:[#allocation4 + $0x5f8] sm:$0xff]  ;;  %v10689_v12 = vcombine.high %v6700_v34, %v6708_v58  ;;  %v10688_v5 = vcombine.low %v6700_v34, %v6708_v58  ;;  %v10944_v58 = vld [vmem:[#allocation6 + $0x4] ss:$8 sps:$4 sm:$0xff]  }
 0xd30   :  { %v10691_v57 = vcombine.high %v6701_v10, %v6709_v2  ;;  %v10690_v61 = vcombine.low %v6701_v10, %v6709_v2  ;;  %v10927_v55 = vld [vmem:[#allocation6 + $0x130] ss:$8 sps:$4 sm:$0xff]   ;;  %v10947_v10 = vld [vmem:[#allocation6 + $0x104] ss:$8 sps:$4 sm:$0xff]   ;;  %v10942_v2 = vld [vmem:[#allocation6] ss:$8 sps:$4 sm:$0xff]  }
 0xd31   :  { %8405 = vmatpush1.bf16.msra.mxu0 %v10560_v54  ;;  %v6684_v54 = vld [vmem:[#allocation4 + $0x530] sm:$0xff] }
 0xd32   :  { %8448 = vmatpush1.bf16.msra.mxu1 %v10562_v33  ;;  %8406 = vmatprep.subr.bf16.mxu0 %v10545_v42  ;;  %v6692_v33 = vld [vmem:[#allocation4 + $0x570] sm:$0xff]  ;;  %v6685_v42 = vld [vmem:[#allocation4 + $0x538] sm:$0xff] }
 0xd33   :  { %8449 = vmatprep.subr.bf16.mxu1 %v10547_v8  ;;  %v6693_v8 = vld [vmem:[#allocation4 + $0x578] sm:$0xff]  ;;  %v10673_v16 = vcombine.high %v6684_v54, %v6692_v33  ;;  %v10672_v52 = vcombine.low %v6684_v54, %v6692_v33  ;;  %v10956_v33 = vld [vmem:[#allocation6 + $0xe4] ss:$8 sps:$4 sm:$0xff]  }
 0xd34   :  { %v10675_v15 = vcombine.high %v6685_v42, %v6693_v8  ;;  %v10674_v26 = vcombine.low %v6685_v42, %v6693_v8  ;;  %v10939_v34 = vld [vmem:[#allocation6 + $0x110] ss:$8 sps:$4 sm:$0xff]   ;;  %v10959_v42 = vld [vmem:[#allocation6 + $0x1e4] ss:$8 sps:$4 sm:$0xff]   ;;  %v10954_v8 = vld [vmem:[#allocation6 + $0xe0] ss:$8 sps:$4 sm:$0xff]  }
 0xd35   :  { %8407 = vmatpush1.bf16.msra.mxu0 %v10544_v29  ;;  %v6668_v29 = vld [vmem:[#allocation4 + $0x4b0] sm:$0xff] }
 0xd36   :  { %8450 = vmatpush1.bf16.msra.mxu1 %v10546_v24  ;;  %8408 = vmatprep.subr.bf16.mxu0 %v10529_v44  ;;  %v6676_v24 = vld [vmem:[#allocation4 + $0x4f0] sm:$0xff]  ;;  %v6669_v44 = vld [vmem:[#allocation4 + $0x4b8] sm:$0xff] }
 0xd37   :  { %8451 = vmatprep.subr.bf16.mxu1 %v10531_v13  ;;  %v6677_v13 = vld [vmem:[#allocation4 + $0x4f8] sm:$0xff]  ;;  %v10657_v32 = vcombine.high %v6668_v29, %v6676_v24  ;;  %v10656_v36 = vcombine.low %v6668_v29, %v6676_v24  ;;  %v10968_v24 = vld [vmem:[#allocation6 + $0xc4] ss:$8 sps:$4 sm:$0xff]  }
 0xd38   :  { %v10659_v45 = vcombine.high %v6669_v44, %v6677_v13  ;;  %v10658_v30 = vcombine.low %v6669_v44, %v6677_v13  ;;  %v10951_v54 = vld [vmem:[#allocation6 + $0x1f0] ss:$8 sps:$4 sm:$0xff]   ;;  %v10971_v44 = vld [vmem:[#allocation6 + $0x1c4] ss:$8 sps:$4 sm:$0xff]   ;;  %v10966_v13 = vld [vmem:[#allocation6 + $0xc0] ss:$8 sps:$4 sm:$0xff]  }
 0xd39   :  { %8409 = vmatpush1.bf16.msra.mxu0 %v10528_v46  ;;  %v6652_v46 = vld [vmem:[#allocation4 + $0x430] sm:$0xff] }
 0xd3a   :  { %8452 = vmatpush1.bf16.msra.mxu1 %v10530_v47  ;;  %8410 = vmatprep.subr.bf16.mxu0 %v10513_v63  ;;  %v6660_v47 = vld [vmem:[#allocation4 + $0x470] sm:$0xff]  ;;  %v6653_v63 = vld [vmem:[#allocation4 + $0x438] sm:$0xff] }
 0xd3b   :  { %8453 = vmatprep.subr.bf16.mxu1 %v10515_v3  ;;  %v6661_v3 = vld [vmem:[#allocation4 + $0x478] sm:$0xff]  ;;  %v10641_v6 = vcombine.high %v6652_v46, %v6660_v47 }
 0xd3c   :  { %v10643_v50 = vcombine.high %v6653_v63, %v6661_v3  ;;  %v10963_v29 = vld [vmem:[#allocation6 + $0x1d0] ss:$8 sps:$4 sm:$0xff]  }
 0xd3d   :  { %8411 = vmatpush1.bf16.msra.mxu0 %v10512_v41  ;;  %v10640_v41 = vcombine.low %v6652_v46, %v6660_v47  ;;  %v10975_v46 = vld [vmem:[#allocation6 + $0x1b0] ss:$8 sps:$4 sm:$0xff]   ;;  %v10980_v47 = vld [vmem:[#allocation6 + $0xa4] ss:$8 sps:$4 sm:$0xff]  }
 0xd3e   :  { %8454 = vmatpush1.bf16.msra.mxu1 %v10514_v18  ;;  %8412 = vmatprep.subr.bf16.mxu0 %v10753_v21  ;;  %v10642_v18 = vcombine.low %v6653_v63, %v6661_v3  ;;  %v10902_v21 = vld [vmem:[#allocation6 + $0x74] ss:$8 sps:$4 sm:$0xff]   ;;  %v10983_v63 = vld [vmem:[#allocation6 + $0x1a4] ss:$8 sps:$4 sm:$0xff]   ;;  %v10978_v3 = vld [vmem:[#allocation6 + $0xa0] ss:$8 sps:$4 sm:$0xff]  }
 0xd3f   :  { %8455 = vmatprep.subr.bf16.mxu1 %v10755_v20  ;;  %v10905_v20 = vld [vmem:[#allocation6 + $0x174] ss:$8 sps:$4 sm:$0xff]  }
 0xd41   :  { %8413 = vmatpush2.bf16.msra.mxu0 %v10752_v4  ;;  %v10906_v4 = vld [vmem:[#allocation6 + $0x60] ss:$8 sps:$4 sm:$0xff]  }
 0xd42   :  { %8456 = vmatpush2.bf16.msra.mxu1 %v10754_v28  ;;  %8414 = vmatprep.subr.bf16.mxu0 %v10737_v39  ;;  %v10909_v28 = vld [vmem:[#allocation6 + $0x160] ss:$8 sps:$4 sm:$0xff]   ;;  %v10914_v39 = vld [vmem:[#allocation6 + $0x54] ss:$8 sps:$4 sm:$0xff]  }
 0xd43   :  { %8457 = vmatprep.subr.bf16.mxu1 %v10739_v62  ;;  %v10917_v62 = vld [vmem:[#allocation6 + $0x154] ss:$8 sps:$4 sm:$0xff]  }
 0xd45   :  { %8415 = vmatpush2.bf16.msra.mxu0 %v10736_v23  ;;  %v10921_v23 = vld [vmem:[#allocation6 + $0x140] ss:$8 sps:$4 sm:$0xff]  }
 0xd46   :  { %8458 = vmatpush2.bf16.msra.mxu1 %v10738_v48  ;;  %8416 = vmatprep.subr.bf16.mxu0 %v10721_v43  ;;  %v10926_v48 = vld [vmem:[#allocation6 + $0x34] ss:$8 sps:$4 sm:$0xff]  }
 0xd47   :  { %8459 = vmatprep.subr.bf16.mxu1 %v10723_v19  ;;  %v10929_v43 = vld [vmem:[#allocation6 + $0x134] ss:$8 sps:$4 sm:$0xff]   ;;  %v10924_v19 = vld [vmem:[#allocation6 + $0x30] ss:$8 sps:$4 sm:$0xff]  }
 0xd49   :  { %8417 = vmatpush2.bf16.msra.mxu0 %v10720_v37  ;;  %v10933_v37 = vld [vmem:[#allocation6 + $0x120] ss:$8 sps:$4 sm:$0xff]  }
 0xd4a   :  { %8460 = vmatpush2.bf16.msra.mxu1 %v10722_v51  ;;  %8418 = vmatprep.subr.bf16.mxu0 %v10705_v35  ;;  %v10938_v51 = vld [vmem:[#allocation6 + $0x14] ss:$8 sps:$4 sm:$0xff]  }
 0xd4b   :  { %8461 = vmatprep.subr.bf16.mxu1 %v10707_v53  ;;  %v10941_v35 = vld [vmem:[#allocation6 + $0x114] ss:$8 sps:$4 sm:$0xff]   ;;  %v10936_v53 = vld [vmem:[#allocation6 + $0x10] ss:$8 sps:$4 sm:$0xff]  }
 0xd4d   :  { %8419 = vmatpush2.bf16.msra.mxu0 %v10704_v7  ;;  %v10945_v7 = vld [vmem:[#allocation6 + $0x100] ss:$8 sps:$4 sm:$0xff]  }
 0xd4e   :  { %8462 = vmatpush2.bf16.msra.mxu1 %v10706_v11  ;;  %8420 = vmatprep.subr.bf16.mxu0 %v10689_v12  ;;  %v10950_v11 = vld [vmem:[#allocation6 + $0xf4] ss:$8 sps:$4 sm:$0xff]  }
 0xd4f   :  { %8463 = vmatprep.subr.bf16.mxu1 %v10691_v57  ;;  %v10953_v12 = vld [vmem:[#allocation6 + $0x1f4] ss:$8 sps:$4 sm:$0xff]   ;;  %v10948_v57 = vld [vmem:[#allocation6 + $0xf0] ss:$8 sps:$4 sm:$0xff]  }
 0xd51   :  { %8421 = vmatpush2.bf16.msra.mxu0 %v10688_v5  ;;  %v10957_v5 = vld [vmem:[#allocation6 + $0x1e0] ss:$8 sps:$4 sm:$0xff]  }
 0xd52   :  { %8464 = vmatpush2.bf16.msra.mxu1 %v10690_v61  ;;  %8422 = vmatprep.subr.bf16.mxu0 %v10673_v16  ;;  %v10962_v61 = vld [vmem:[#allocation6 + $0xd4] ss:$8 sps:$4 sm:$0xff]  }
 0xd53   :  { %8465 = vmatprep.subr.bf16.mxu1 %v10675_v15  ;;  %v10965_v16 = vld [vmem:[#allocation6 + $0x1d4] ss:$8 sps:$4 sm:$0xff]   ;;  %v10960_v15 = vld [vmem:[#allocation6 + $0xd0] ss:$8 sps:$4 sm:$0xff]  }
 0xd55   :  { %8423 = vmatpush2.bf16.msra.mxu0 %v10672_v52  ;;  %v10969_v52 = vld [vmem:[#allocation6 + $0x1c0] ss:$8 sps:$4 sm:$0xff]  }
 0xd56   :  { %8466 = vmatpush2.bf16.msra.mxu1 %v10674_v26  ;;  %8424 = vmatprep.subr.bf16.mxu0 %v10657_v32  ;;  %v10974_v26 = vld [vmem:[#allocation6 + $0xb4] ss:$8 sps:$4 sm:$0xff]  }
 0xd57   :  { %8467 = vmatprep.subr.bf16.mxu1 %v10659_v45  ;;  %v10977_v32 = vld [vmem:[#allocation6 + $0x1b4] ss:$8 sps:$4 sm:$0xff]   ;;  %v10972_v45 = vld [vmem:[#allocation6 + $0xb0] ss:$8 sps:$4 sm:$0xff]  }
 0xd59   :  { %8425 = vmatpush2.bf16.msra.mxu0 %v10656_v36  ;;  %v10981_v36 = vld [vmem:[#allocation6 + $0x1a0] ss:$8 sps:$4 sm:$0xff]  }
 0xd5a   :  { %8468 = vmatpush2.bf16.msra.mxu1 %v10658_v30  ;;  %8426 = vmatprep.subr.bf16.mxu0 %v10641_v6  ;;  %v10986_v30 = vld [vmem:[#allocation6 + $0x94] ss:$8 sps:$4 sm:$0xff]  }
 0xd5b   :  { %8469 = vmatprep.subr.bf16.mxu1 %v10643_v50  ;;  %v10989_v6 = vld [vmem:[#allocation6 + $0x194] ss:$8 sps:$4 sm:$0xff]   ;;  %v10984_v50 = vld [vmem:[#allocation6 + $0x90] ss:$8 sps:$4 sm:$0xff]  }
 0xd5d   :  { %8427 = vmatpush2.bf16.msra.mxu0 %v10640_v41  ;;  %v10987_v41 = vld [vmem:[#allocation6 + $0x190] ss:$8 sps:$4 sm:$0xff]  }
 0xd5e   :  { %8470 = vmatpush2.bf16.msra.mxu1 %v10642_v18  ;;  %9718 = vmatprep.subr.bf16.mxu0 %v10902_v21  ;;  %v10990_v18 = vld [vmem:[#allocation6 + $0x80] ss:$8 sps:$4 sm:$0xff]   ;;  %v10992_v21 = vld [vmem:[#allocation6 + $0x84] ss:$8 sps:$4 sm:$0xff]  }
 0xd5f   :  { %9761 = vmatprep.subr.bf16.mxu1 %v10905_v20  ;;  %v10993_v20 = vld [vmem:[#allocation6 + $0x180] ss:$8 sps:$4 sm:$0xff]  }
 0xd60   :  { %8429 = vmatmul.mubr.bf16.vlgmr.msra.gmra.mxu0 %v11958_v59 }
 0xd61   :  { %8472 = vmatmul.mubr.bf16.vlgmr.msra.gmra.mxu1 %v11958_v59  ;;  %9719 = vmatpush1.bf16.msra.mxu0 %v10900_v22  ;;  %v10915_v59 = vld [vmem:[#allocation6 + $0x150] ss:$8 sps:$4 sm:$0xff]   ;;  %v10995_v22 = vld [vmem:[#allocation6 + $0x184] ss:$8 sps:$4 sm:$0xff]  }
 0xd62   :  { %9762 = vmatpush1.bf16.msra.mxu1 %v10903_v17  ;;  %9720 = vmatprep.subr.bf16.mxu0 %v10908_v60  ;;  %v10998_v17 = vld [vmem:[#allocation6 + $0x274] ss:$8 sps:$4 sm:$0xff]  }
 0xd63   :  { %9763 = vmatprep.subr.bf16.mxu1 %v10911_v40  ;;  %v11001_v60 = vld [vmem:[#allocation6 + $0x374] ss:$8 sps:$4 sm:$0xff]   ;;  %v11978_v40 = vpop.f32.mrf.mxu0 }
 0xd65   :  { %9721 = vmatpush1.bf16.msra.mxu0 %v10906_v4  ;;  %v11980_v4 = vpop.f32.mrf.mxu1 }
 0xd66   :  { %9764 = vmatpush1.bf16.msra.mxu1 %v10909_v28  ;;  %9722 = vmatprep.subr.bf16.mxu0 %v10914_v39  ;;  %v11982_v28 = vpop.f32.mrf.mxu0 }
 0xd67   :  { %9765 = vmatprep.subr.bf16.mxu1 %v10917_v62  ;;  %v11984_v39 = vpop.f32.mrf.mxu1 }
 0xd68   :  { %v11986_v62 = vpop.f32.mrf.mxu0 }
 0xd69   :  { %9723 = vmatpush1.bf16.msra.mxu0 %v10912_v0  ;;  %v11988_v0 = vpop.f32.mrf.mxu1 }
 0xd6a   :  { %9766 = vmatpush1.bf16.msra.mxu1 %v10915_v59  ;;  %9724 = vmatprep.subr.bf16.mxu0 %v10920_v1  ;;  %v11990_v59 = vpop.f32.mrf.mxu0 }
 0xd6b   :  { %9767 = vmatprep.subr.bf16.mxu1 %v10923_v49  ;;  %v11992_v1 = vpop.f32.mrf.mxu1 }
 0xd6d   :  { %9725 = vmatpush1.bf16.msra.mxu0 %v10918_v9 }
 0xd6e   :  { %9768 = vmatpush1.bf16.msra.mxu1 %v10921_v23  ;;  %9726 = vmatprep.subr.bf16.mxu0 %v10926_v48 }
 0xd6f   :  { %9769 = vmatprep.subr.bf16.mxu1 %v10929_v43 }
 0xd71   :  { %9727 = vmatpush1.bf16.msra.mxu0 %v10924_v19  ;;  %v12004_v19 = vld [vmem:[#allocation12 + $0x8] sm:$0xff] }
 0xd72   :  { %9770 = vmatpush1.bf16.msra.mxu1 %v10927_v55  ;;  %9728 = vmatprep.subr.bf16.mxu0 %v10932_v56  ;;  %v6788_v56 = vsub.s32 2, %v11875_v14 }
 0xd73   :  { %9771 = vmatprep.subr.bf16.mxu1 %v10935_v25  ;;  %v6813_v25 = vrot.slane %v12004_v19, %v11882_v27 }
 0xd75   :  { %9729 = vmatpush1.bf16.msra.mxu0 %v10930_v31  ;;  %v6792_v31 = vsub.s32 3, %v11875_v14 }
 0xd76   :  { %9772 = vmatpush1.bf16.msra.mxu1 %v10933_v37  ;;  %9730 = vmatprep.subr.bf16.mxu0 %v10938_v51  ;;  %v6821_v51 = vrot.slane %v12004_v19, %v6788_v56 }
 0xd77   :  { %9773 = vmatprep.subr.bf16.mxu1 %v10941_v35 }
 0xd79   :  { %9731 = vmatpush1.bf16.msra.mxu0 %v10936_v53  ;;  %v6817_v53 = vrot.slane %v12004_v19, %v11878_v38 }
 0xd7a   :  { %9774 = vmatpush1.bf16.msra.mxu1 %v10939_v34  ;;  %9732 = vmatprep.subr.bf16.mxu0 %v10944_v58  ;;  %v6825_v58 = vrot.slane %v12004_v19, %v6792_v31 }
 0xd7b   :  { %9775 = vmatprep.subr.bf16.mxu1 %v10947_v10 }
 0xd7d   :  { %9733 = vmatpush1.bf16.msra.mxu0 %v10942_v2 }
 0xd7e   :  { %9776 = vmatpush1.bf16.msra.mxu1 %v10945_v7  ;;  %9734 = vmatprep.subr.bf16.mxu0 %v10950_v11 }
 0xd7f   :  { %9777 = vmatprep.subr.bf16.mxu1 %v10953_v12 }
 0xd81   :  { %9735 = vmatpush2.bf16.msra.mxu0 %v10948_v57 }
 0xd82   :  { %9778 = vmatpush2.bf16.msra.mxu1 %v10951_v54  ;;  %9736 = vmatprep.subr.bf16.mxu0 %v10956_v33 }
 0xd83   :  { %9779 = vmatprep.subr.bf16.mxu1 %v10959_v42 }
 0xd85   :  { %9737 = vmatpush2.bf16.msra.mxu0 %v10954_v8 }
 0xd86   :  { %9780 = vmatpush2.bf16.msra.mxu1 %v10957_v5  ;;  %9738 = vmatprep.subr.bf16.mxu0 %v10962_v61 }
 0xd87   :  { %9781 = vmatprep.subr.bf16.mxu1 %v10965_v16 }
 0xd89   :  { %9739 = vmatpush2.bf16.msra.mxu0 %v10960_v15 }
 0xd8a   :  { %9782 = vmatpush2.bf16.msra.mxu1 %v10963_v29  ;;  %9740 = vmatprep.subr.bf16.mxu0 %v10968_v24 }
 0xd8b   :  { %9783 = vmatprep.subr.bf16.mxu1 %v10971_v44 }
 0xd8d   :  { %9741 = vmatpush2.bf16.msra.mxu0 %v10966_v13 }
 0xd8e   :  { %9784 = vmatpush2.bf16.msra.mxu1 %v10969_v52  ;;  %9742 = vmatprep.subr.bf16.mxu0 %v10974_v26 }
 0xd8f   :  { %9785 = vmatprep.subr.bf16.mxu1 %v10977_v32 }
 0xd91   :  { %9743 = vmatpush2.bf16.msra.mxu0 %v10972_v45 }
 0xd92   :  { %9786 = vmatpush2.bf16.msra.mxu1 %v10975_v46  ;;  %9744 = vmatprep.subr.bf16.mxu0 %v10980_v47 }
 0xd93   :  { %9787 = vmatprep.subr.bf16.mxu1 %v10983_v63 }
 0xd95   :  { %9745 = vmatpush2.bf16.msra.mxu0 %v10978_v3 }
 0xd96   :  { %9788 = vmatpush2.bf16.msra.mxu1 %v10981_v36  ;;  %9746 = vmatprep.subr.bf16.mxu0 %v10986_v30 }
 0xd97   :  { %9789 = vmatprep.subr.bf16.mxu1 %v10989_v6 }
 0xd99   :  { %9747 = vmatpush2.bf16.msra.mxu0 %v10984_v50 }
 0xd9a   :  { %9790 = vmatpush2.bf16.msra.mxu1 %v10987_v41  ;;  %9748 = vmatprep.subr.bf16.mxu0 %v10992_v21  ;;  %v12058_v21 = vld [vmem:[#allocation12] sm:$0xff] }
 0xd9b   :  { %9791 = vmatprep.subr.bf16.mxu1 %v10995_v22 }
 0xd9d   :  { %9749 = vmatpush2.bf16.msra.mxu0 %v10990_v18 }
 0xd9e   :  { %9792 = vmatpush2.bf16.msra.mxu1 %v10993_v20  ;;  %9804 = vmatprep.subr.bf16.mxu0 %v10998_v17 }
 0xd9f   :  { %9847 = vmatprep.subr.bf16.mxu1 %v11001_v60 }
 0xda0   :  { %v11994_v49 = vpop.f32.mrf.mxu0  ;;  %v11996_v9 = vpop.f32.mrf.mxu1 }
 0xda2   :  { %v11998_v23 = vpop.f32.mrf.mxu0  ;;  %v12000_v48 = vpop.f32.mrf.mxu1 }
 0xda3   :  { %12502 = vst [vmem:[#allocation24_spill] sm:$0xff] %v11998_v23  ;;  %12503 = vst [vmem:[#allocation26_spill] sm:$0xff] %v12000_v48 }
 0xda4   :  { %v12002_v43 = vpop.f32.mrf.mxu0  ;;  %v12006_v55 = vpop.f32.mrf.mxu1 }
 0xda5   :  { %12504 = vst [vmem:[#allocation25_spill] sm:$0xff] %v12006_v55 }
 0xda6   :  { %v12012_v37 = vpop.f32.mrf.mxu0  ;;  %v12015_v35 = vpop.f32.mrf.mxu1 }
 0xda7   :  { %12505 = vst [vmem:[#allocation29_spill] sm:$0xff] %v12012_v37  ;;  %12506 = vst [vmem:[#allocation27_spill] sm:$0xff] %v12015_v35 }
 0xde0   :  { %v8344_v34 = vpop.f32.mrf.mxu0 }
 0xde1   :  { %v12020_v10 = vadd.f32 %v8344_v34, %v6813_v25  ;;  %v8387_v2 = vpop.f32.mrf.mxu1  ;;  %v6781_v34 = vrot.slane %v12058_v21, %v11882_v27 }
 0xde2   :  { %v12022_v7 = vadd.f32 %v8387_v2, %v6821_v51  ;;  %v8346_v11 = vpop.f32.mrf.mxu0 }
 0xde3   :  { %v12025_v12 = vmul.f32 0.70710677, %v12020_v10  ;;  %v12027_v57 = vadd.f32 %v8346_v11, %v6817_v53  ;;  %v8389_v54 = vpop.f32.mrf.mxu1  ;;  %v6789_v11 = vrot.slane %v12058_v21, %v6788_v56 }
 0xde4   :  { %v12030_v33 = vmul.f32 0.70710677, %v12022_v7  ;;  %v12032_v42 = vadd.f32 %v8389_v54, %v6825_v58  ;;  %v8348_v24 = vpop.f32.mrf.mxu0 }
 0xde5   :  { %v8514_v8 = vand.u32 2147483647, %v12025_v12  ;;  %v12036_v5 = vmul.f32 0.70710677, %v12027_v57  ;;  %v8391_v52 = vpop.f32.mrf.mxu1  ;;  %v12047_v30 = vadd.f32 %v8348_v24, %v6813_v25  ;;  %vm8834_vm1 = vcmp.ge.f32.partialorder %v12025_v12, 0.0 }
 0xde6   :  { %v8516_v61 = vand.u32 2147483647, %v12030_v33  ;;  %v12040_v16 = vmul.f32 0.70710677, %v12032_v42  ;;  %v8350_v63 = vpop.f32.mrf.mxu0  ;;  %v12049_v6 = vadd.f32 %v8391_v52, %v6821_v51  ;;  %vm8836_vm2 = vcmp.ge.f32.partialorder %v12030_v33, 0.0 }
 0xde7   :  { %v8530_v15 = vmul.f32 0.3275911, %v8514_v8  ;;  %v8515_v29 = vand.u32 2147483647, %v12036_v5  ;;  %v8393_v3 = vpop.f32.mrf.mxu1  ;;  %v12051_v50 = vadd.f32 %v8350_v63, %v6817_v53  ;;  %v12054_v41 = vmul.f32 0.70710677, %v12047_v30 }
 0xde8   :  { %v8532_v44 = vmul.f32 0.3275911, %v8516_v61  ;;  %v12044_v13 = vand.u32 2147483647, %v12040_v16  ;;  %v12056_v18 = vadd.f32 %v8393_v3, %v6825_v58  ;;  %v8738_v20 = vsub.f32 0.0, %v8514_v8 }
 0xde9   :  { %v8546_v26 = vadd.f32 1.0, %v8530_v15  ;;  %v8531_v32 = vmul.f32 0.3275911, %v8515_v29  ;;  %v12061_v22 = vmul.f32 0.70710677, %v12049_v6  ;;  %v8740_v25 = vsub.f32 0.0, %v8516_v61 }
 0xdea   :  { %v8548_v45 = vadd.f32 1.0, %v8532_v44  ;;  %v8533_v46 = vmul.f32 0.3275911, %v12044_v13  ;;  %v12064_v17 = vmul.f32 0.70710677, %v12051_v50  ;;  %v8754_v54 = vmul.f32 %v8738_v20, %v8514_v8 }
 0xdeb   :  { %11160 = vrcp.f32 %v8546_v26  ;;  %v8547_v47 = vadd.f32 1.0, %v8531_v32  ;;  %v8522_v60 = vand.u32 2147483647, %v12054_v41  ;;  %v12068_v51 = vand.u32 2147483647, %v12061_v22 }
 0xdec   :  { %11162 = vrcp.f32 %v8548_v45  ;;  %v8549_v36 = vadd.f32 1.0, %v8533_v46  ;;  %v12071_v53 = vand.u32 2147483647, %v12064_v17  ;;  %v12076_v2 = vmul.f32 0.70710677, %v12056_v18 }
 0xded   :  { %11164 = vrcp.f32 %v8547_v47  ;;  %v8538_v58 = vmul.f32 0.3275911, %v8522_v60  ;;  %v8540_v15 = vmul.f32 0.3275911, %v12068_v51  ;;  %v6785_v44 = vrot.slane %v12058_v21, %v11878_v38 }
 0xdee   :  { %11166 = vrcp.f32 %v8549_v36  ;;  %v8539_v24 = vmul.f32 0.3275911, %v12071_v53  ;;  %v8739_v52 = vsub.f32 0.0, %v8515_v29  ;;  %v12084_v32 = vand.u32 2147483647, %v12076_v2 }
 0xdef   :  { %v8554_v26 = vadd.f32 1.0, %v8538_v58  ;;  %v12087_v45 = vrot.slane %v12058_v21, %v6792_v31  ;;  %v8756_v47 = vmul.f32 %v8740_v25, %v8516_v61  ;;  %v8556_v56 = vadd.f32 1.0, %v8540_v15 }
 0xdf0   :  { %v8555_v63 = vadd.f32 1.0, %v8539_v24  ;;  %v8541_v3 = vmul.f32 0.3275911, %v12084_v32  ;;  %v8770_v58 = vmul.f32 1.442695, %v8754_v54  ;;  %v8741_v38 = vsub.f32 0.0, %v12044_v13 }
 0xdf1   :  { %11168 = vrcp.f32 %v8554_v26  ;;  %v8755_v25 = vmul.f32 %v8739_v52, %v8515_v29  ;;  %v12101_v24 = vadd.f32 %v11978_v40, %v6781_v34  ;;  %v12104_v26 = vadd.f32 %v11980_v4, %v6789_v11 }
 0xdf2   :  { %11170 = vrcp.f32 %v8556_v56  ;;  %v8557_v15 = vadd.f32 1.0, %v8541_v3  ;;  %v8774_v54 = vmul.f32 1.442695, %v8756_v47  ;;  %v12108_v8 = vadd.f32 %v11982_v28, %v6785_v44 }
 0xdf3   :  { %v12111_v56 = vadd.f32 %v11986_v62, %v6781_v34  ;;  %11172 = vrcp.f32 %v8555_v63  ;;  %v8757_v40 = vmul.f32 %v8741_v38, %v12044_v13  ;;  %v8746_v52 = vsub.f32 0.0, %v8522_v60 }
 0xdf4   :  { %11174 = vpow2.f32 %v8770_v58  ;;  %v8772_v47 = vmul.f32 1.442695, %v8755_v25  ;;  %v8748_v34 = vsub.f32 0.0, %v12068_v51  ;;  %v8747_v63 = vsub.f32 0.0, %v12071_v53 }
 0xdf5   :  { %11176 = vrcp.f32 %v8557_v15  ;;  %v12128_v58 = vadd.f32 %v11990_v59, %v6785_v44  ;;  %v8776_v25 = vmul.f32 1.442695, %v8757_v40  ;;  %v8762_v15 = vmul.f32 %v8746_v52, %v8522_v60 }
 0xdf6   :  { %11178 = vpow2.f32 %v8774_v54  ;;  %v12508_v52 = vsub.s32 6, %v11875_v14  ;;  %vm8835_vm3 = vcmp.ge.f32.partialorder %v12036_v5, 0.0  ;;  %vm8837_vm4 = vcmp.ge.f32.partialorder %v12040_v16, 0.0 }
 0xdf7   :  { %11180 = vpow2.f32 %v8772_v47  ;;  %vm8842_vm5 = vcmp.ge.f32.partialorder %v12054_v41, 0.0  ;;  %vm8844_vm6 = vcmp.ge.f32.partialorder %v12061_v22, 0.0  ;;  %vm8843_vm7 = vcmp.ge.f32.partialorder %v12064_v17, 0.0 }
 0xdf8   :  { %v12092_v36 = vpop.eup %11160  ;;  %11182 = vpow2.f32 %v8776_v25  ;;  %vm8845_vm8 = vcmp.ge.f32.partialorder %v12076_v2, 0.0 }
 0xdf9   :  { %v12096_v31 = vpop.eup %11162  ;;  %v8594_v61 = vmul.f32 1.0614054, %v12092_v36 }
 0xdfa   :  { %v8596_v20 = vmul.f32 1.0614054, %v12096_v31  ;;  %v12113_v27 = vpop.eup %11164 }
 0xdfb   :  { %v8610_v46 = vadd.f32 -1.4531521, %v8594_v61  ;;  %v8595_v3 = vmul.f32 1.0614054, %v12113_v27  ;;  %v12118_v28 = vpop.eup %11166 }
 0xdfc   :  { %v8612_v29 = vadd.f32 -1.4531521, %v8596_v20  ;;  %v12124_v20 = vadd.f32 %v11988_v0, %v6789_v11  ;;  %v8764_v0 = vmul.f32 %v8748_v34, %v12068_v51  ;;  %v8763_v11 = vmul.f32 %v8747_v63, %v12071_v53 }
 0xdfd   :  { %v8626_v4 = vmul.f32 %v12092_v36, %v8610_v46  ;;  %v8611_v13 = vadd.f32 -1.4531521, %v8595_v3  ;;  %v8597_v46 = vmul.f32 1.0614054, %v12118_v28  ;;  %v12144_v3 = vrot.slane %v12004_v19, %v12508_v52 }
 0xdfe   :  { %v8628_v62 = vmul.f32 %v12096_v31, %v8612_v29  ;;  %v12146_v47 = vpop.eup %11168  ;;  %v8786_v51 = vmul.f32 1.442695, %v8762_v15  ;;  %v8749_v53 = vsub.f32 0.0, %v12084_v32 }
 0xdff   :  { %v8642_v38 = vadd.f32 1.4214138, %v8626_v4  ;;  %v8627_v54 = vmul.f32 %v12113_v27, %v8611_v13  ;;  %v8613_v35 = vadd.f32 -1.4531521, %v8597_v46  ;;  %v12507_v4 = vsub.s32 4, %v11875_v14  ;;  %v12149_v34 = vpop.eup %11170 }
 0xe00   :  { %v8644_v61 = vadd.f32 1.4214138, %v8628_v62  ;;  %v12157_v52 = vpop.eup %11172  ;;  %11184 = vpow2.f32 %v8786_v51 }
 0xe01   :  { %v8658_v29 = vmul.f32 %v12092_v36, %v8642_v38  ;;  %v12138_v59 = vrot.slane %v12004_v19, %v12507_v4  ;;  %v8643_v40 = vadd.f32 1.4214138, %v8627_v54  ;;  %v8629_v60 = vmul.f32 %v12118_v28, %v8613_v35 }
 0xe02   :  { %v8660_v48 = vmul.f32 %v12096_v31, %v8644_v61  ;;  %v8602_v35 = vmul.f32 1.0614054, %v12146_v47  ;;  %v8604_v61 = vmul.f32 1.0614054, %v12149_v34  ;;  %v8788_v54 = vmul.f32 1.442695, %v8763_v11 }
 0xe03   :  { %v8674_v44 = vadd.f32 -0.28449672, %v8658_v29  ;;  %v8659_v38 = vmul.f32 %v12113_v27, %v8643_v40  ;;  %v8645_v13 = vadd.f32 1.4214138, %v8629_v60  ;;  %v8790_v29 = vmul.f32 1.442695, %v8764_v0  ;;  %v11175_v60 = vpop.eup %11174 }
 0xe04   :  { %v8676_v62 = vadd.f32 -0.28449672, %v8660_v48  ;;  %v8618_v4 = vadd.f32 -1.4531521, %v8602_v35  ;;  %v8765_v40 = vmul.f32 %v8749_v53, %v12084_v32  ;;  %v12163_v11 = vpop.eup %11176  ;;  %v8603_v51 = vmul.f32 1.0614054, %v12157_v52 }
 0xe05   :  { %v8690_v63 = vmul.f32 %v12092_v36, %v8674_v44  ;;  %v8675_v25 = vadd.f32 -0.28449672, %v8659_v38  ;;  %v8661_v15 = vmul.f32 %v12118_v28, %v8645_v13  ;;  %v8620_v44 = vadd.f32 -1.4531521, %v8604_v61  ;;  %v11179_v13 = vpop.eup %11178 }
 0xe06   :  { %v8692_v46 = vmul.f32 %v12096_v31, %v8676_v62  ;;  %v8634_v0 = vmul.f32 %v12146_v47, %v8618_v4  ;;  %11186 = vpow2.f32 %v8790_v29  ;;  %v11181_v29 = vpop.eup %11180 }
 0xe07   :  { %v8706_v48 = vadd.f32 0.2548296, %v8690_v63  ;;  %v8691_v62 = vmul.f32 %v12113_v27, %v8675_v25  ;;  %v8677_v23 = vadd.f32 -0.28449672, %v8661_v15  ;;  %v8636_v38 = vmul.f32 %v12149_v34, %v8620_v44 }
 0xe08   :  { %v8708_v37 = vadd.f32 0.2548296, %v8692_v46  ;;  %v8605_v25 = vmul.f32 1.0614054, %v12163_v11  ;;  %11188 = vpow2.f32 %v8788_v54 }
 0xe09   :  { %v8722_v55 = vmul.f32 %v12092_v36, %v8706_v48  ;;  %v8707_v32 = vadd.f32 0.2548296, %v8691_v62  ;;  %v8693_v53 = vmul.f32 %v12118_v28, %v8677_v23  ;;  %v8650_v36 = vadd.f32 1.4214138, %v8634_v0 }
 0xe0a   :  { %v8724_v63 = vmul.f32 %v12096_v31, %v8708_v37  ;;  %v8652_v61 = vadd.f32 1.4214138, %v8636_v38  ;;  %v8619_v48 = vadd.f32 -1.4531521, %v8603_v51 }
 0xe0b   :  { %v8802_v35 = vmul.f32 %v11175_v60, %v8722_v55  ;;  %v8723_v4 = vmul.f32 %v12113_v27, %v8707_v32  ;;  %v8709_v37 = vadd.f32 0.2548296, %v8693_v53  ;;  %v8666_v31 = vmul.f32 %v12146_v47, %v8650_v36  ;;  %v11183_v32 = vpop.eup %11182 }
 0xe0c   :  { %v8804_v46 = vmul.f32 %v11179_v13, %v8724_v63  ;;  %v8668_v44 = vmul.f32 %v12149_v34, %v8652_v61  ;;  %v8635_v55 = vmul.f32 %v12157_v52, %v8619_v48  ;;  %v8621_v60 = vadd.f32 -1.4531521, %v8605_v25 }
 0xe0d   :  { %v8818_v15 = vsub.f32 1.0, %v8802_v35  ;;  %v8803_v62 = vmul.f32 %v11181_v29, %v8723_v4  ;;  %v8682_v0 = vadd.f32 -0.28449672, %v8666_v31  ;;  %v8792_v63 = vmul.f32 1.442695, %v8765_v40 }
 0xe0e   :  { %v8820_v23 = vsub.f32 1.0, %v8804_v46  ;;  %v8684_v38 = vadd.f32 -0.28449672, %v8668_v44  ;;  %v8651_v51 = vadd.f32 1.4214138, %v8635_v55  ;;  %v8637_v13 = vmul.f32 %v12163_v11, %v8621_v60 }
 0xe0f   :  { %v12509_v27 = vsub.s32 5, %v11875_v14  ;;  %v8482_v53 = vmul.f32 0.5, %v12020_v10  ;;  %v8850_v36 = vsub.f32 0.0, %v8818_v15  ;;  %v8725_v54 = vmul.f32 %v12118_v28, %v8709_v37  ;;  %v11185_v37 = vpop.eup %11184 }
 0xe10   :  { %v8698_v46 = vmul.f32 %v12146_v47, %v8682_v0  ;;  %v8484_v40 = vmul.f32 0.5, %v12022_v7  ;;  %v8700_v61 = vmul.f32 %v12149_v34, %v8684_v38  ;;  %v8667_v48 = vmul.f32 %v12157_v52, %v8651_v51 }
 0xe11   :  { %v12178_v35 = vrot.slane %v12004_v19, %v12509_v27  ;;  %v8852_v25 = vsub.f32 0.0, %v8820_v23  ;;  %v8819_v4 = vsub.f32 1.0, %v8803_v62  ;;  %11190 = vpow2.f32 %v8792_v63 }
 0xe12   :  { %v8714_v31 = vadd.f32 0.2548296, %v8698_v46  ;;  %v8716_v29 = vadd.f32 0.2548296, %v8700_v61  ;;  %v8683_v44 = vadd.f32 -0.28449672, %v8667_v48  ;;  %v8866_v12 = vsel %vm8834_vm1, %v8818_v15, %v8850_v36 }
 0xe13   :  { %v8653_v10 = vadd.f32 1.4214138, %v8637_v13  ;;  %v12510_v55 = vsub.s32 7, %v11875_v14  ;;  %v8483_v7 = vmul.f32 0.5, %v12027_v57  ;;  %v8805_v60 = vmul.f32 %v11183_v32, %v8725_v54  ;;  %v11187_v51 = vpop.eup %11186 }
 0xe14   :  { %v8730_v0 = vmul.f32 %v12146_v47, %v8714_v31  ;;  %v12196_v62 = vmul.f32 0.5, %v12032_v42  ;;  %v8732_v63 = vmul.f32 %v12149_v34, %v8716_v29  ;;  %v8699_v38 = vmul.f32 %v12157_v52, %v8683_v44 }
 0xe15   :  { %v12190_v28 = vrot.slane %v12004_v19, %v12510_v55  ;;  %v8868_v13 = vsel %vm8836_vm2, %v8820_v23, %v8852_v25  ;;  %v8669_v15 = vmul.f32 %v12163_v11, %v8653_v10  ;;  %v8882_v57 = vadd.f32 1.0, %v8866_v12  ;;  %v11189_v61 = vpop.eup %11188 }
 0xe16   :  { %v8810_v19 = vmul.f32 %v11185_v37, %v8730_v0  ;;  %v8851_v27 = vsub.f32 0.0, %v8819_v4  ;;  %v8812_v32 = vmul.f32 %v11187_v51, %v8732_v63  ;;  %v8715_v47 = vadd.f32 0.2548296, %v8699_v38 }
 0xe17   :  { %v8821_v36 = vsub.f32 1.0, %v8805_v60  ;;  %v8685_v42 = vadd.f32 -0.28449672, %v8669_v15  ;;  %v8884_v54 = vadd.f32 1.0, %v8868_v13  ;;  %v8490_v34 = vmul.f32 0.5, %v12047_v30 }
 0xe18   :  { %v8826_v33 = vsub.f32 1.0, %v8810_v19  ;;  %v8828_v46 = vsub.f32 1.0, %v8812_v32  ;;  %v8731_v23 = vmul.f32 %v12157_v52, %v8715_v47  ;;  %v8492_v25 = vmul.f32 0.5, %v12049_v6 }
 0xe19   :  { %v8701_v31 = vmul.f32 %v12163_v11, %v8685_v42  ;;  %v8898_v29 = vmul.f32 %v8882_v57, %v8482_v53  ;;  %v8867_v44 = vsel %vm8835_vm3, %v8819_v4, %v8851_v27  ;;  %v8853_v37 = vsub.f32 0.0, %v8821_v36 }
 0xe1a   :  { %v8858_v48 = vsub.f32 0.0, %v8826_v33  ;;  %v8860_v10 = vsub.f32 0.0, %v8828_v46  ;;  %v8811_v55 = vmul.f32 %v11189_v61, %v8731_v23  ;;  %v8900_v52 = vmul.f32 %v8884_v54, %v8484_v40 }
 0xe1b   :  { %v8717_v30 = vadd.f32 0.2548296, %v8701_v31  ;;  %v8883_v63 = vadd.f32 1.0, %v8867_v44  ;;  %v8491_v6 = vmul.f32 0.5, %v12051_v50  ;;  %v8914_v5 = vmul.f32 %v8898_v29, %v12101_v24 }
 0xe1c   :  { %v8874_v12 = vsel %vm8842_vm5, %v8826_v33, %v8858_v48  ;;  %v8876_v0 = vsel %vm8844_vm6, %v8828_v46, %v8860_v10  ;;  %v8827_v41 = vsub.f32 1.0, %v8811_v55  ;;  %v8869_v22 = vsel %vm8837_vm4, %v8821_v36, %v8853_v37 }
 0xe1d   :  { %v8890_v60 = vadd.f32 1.0, %v8874_v12  ;;  %v8892_v38 = vadd.f32 1.0, %v8876_v0  ;;  %v8733_v53 = vmul.f32 %v12163_v11, %v8717_v30  ;;  %v12221_v50 = vmul.f32 %v8900_v52, %v12104_v26  ;;  %v10996_v52 = vld [vmem:[#allocation6 + $0x270] ss:$8 sps:$4 sm:$0xff]  }
 0xe1e   :  { %v11191_v51 = vpop.eup %11190  ;;  %v8859_v13 = vsub.f32 0.0, %v8827_v41  ;;  %v8899_v47 = vmul.f32 %v8883_v63, %v8483_v7  ;;  %v8885_v42 = vadd.f32 1.0, %v8869_v22  ;;  %v8493_v7 = vmul.f32 0.5, %v12056_v18  ;;  %v11004_v63 = vld [vmem:[#allocation6 + $0x264] ss:$8 sps:$4 sm:$0xff]  }
 0xe1f   :  { %v8906_v4 = vmul.f32 %v8890_v60, %v8490_v34  ;;  %v8908_v40 = vmul.f32 %v8892_v38, %v8492_v25  ;;  %v8813_v15 = vmul.f32 %v11191_v51, %v8733_v53  ;;  %v8218_v12 = vadd.f32 %v11984_v39, %v12087_v45 }
 0xe20   :  { %v8430_v19 = vpop.f32.mrf.mxu0  ;;  %v8875_v24 = vsel %vm8843_vm7, %v8827_v41, %v8859_v13  ;;  %v8915_v31 = vmul.f32 %v8899_v47, %v12108_v8  ;;  %v8901_v10 = vmul.f32 %v8885_v42, %v12196_v62  ;;  %v8222_v60 = vadd.f32 %v11992_v1, %v12087_v45  ;;  %v11002_v45 = vld [vmem:[#allocation6 + $0x260] ss:$8 sps:$4 sm:$0xff]   ;;  %v10999_v13 = vld [vmem:[#allocation6 + $0x370] ss:$8 sps:$4 sm:$0xff]  }
 0xe21   :  { %v12218_v57 = vadd.f32 %v8430_v19, %v12138_v59  ;;  %v8473_v27 = vpop.f32.mrf.mxu1  ;;  %v8922_v11 = vmul.f32 %v8906_v4, %v12111_v56  ;;  %v8924_v16 = vmul.f32 %v8908_v40, %v12124_v20  ;;  %v8891_v36 = vadd.f32 1.0, %v8875_v24  ;;  %v11010_v40 = vld [vmem:[#allocation6 + $0x254] ss:$8 sps:$4 sm:$0xff]   ;;  %v11005_v24 = vld [vmem:[#allocation6 + $0x360] ss:$8 sps:$4 sm:$0xff]  }
 0xe22   :  { %v12225_v32 = vadd.f32 %v8473_v27, %v12144_v3  ;;  %v8432_v17 = vpop.f32.mrf.mxu0  ;;  %v8829_v33 = vsub.f32 1.0, %v8813_v15  ;;  %v8917_v39 = vmul.f32 %v8901_v10, %v8218_v12  ;;  %v11007_v27 = vld [vmem:[#allocation6 + $0x364] ss:$8 sps:$4 sm:$0xff]  }
 0xe23   :  { %v12229_v54 = vmul.f32 0.70710677, %v12218_v57  ;;  %v8930_v26 = vpack.c.bf16 %v8922_v11, %v8914_v5  ;;  %v8907_v46 = vmul.f32 %v8891_v36, %v8491_v6  ;;  %v8932_v23 = vpack.c.bf16 %v8924_v16, %v12221_v50  ;;  %v8475_v37 = vpop.f32.mrf.mxu1  ;;  %v11008_v36 = vld [vmem:[#allocation6 + $0x250] ss:$8 sps:$4 sm:$0xff]  }
 0xe24   :  { %v12232_v34 = vmul.f32 0.70710677, %v12225_v32  ;;  %v8861_v56 = vsub.f32 0.0, %v8829_v33  ;;  %v12236_v61 = vadd.f32 %v8432_v17, %v12178_v35  ;;  %v12263_v6 = vadd.f32 %v8475_v37, %v12190_v28 }
 0xe25   :  { %v12241_v20 = vand.u32 2147483647, %v12229_v54  ;;  %v8923_v29 = vmul.f32 %v8907_v46, %v12128_v58  ;;  %v8434_v58 = vpop.f32.mrf.mxu0  ;;  %v8477_v1 = vpop.f32.mrf.mxu1  ;;  %vm8838_vm9 = vcmp.ge.f32.partialorder %v12229_v54, 0.0 }
 0xe26   :  { %v12244_v48 = vand.u32 2147483647, %v12232_v34  ;;  %v8877_v25 = vsel %vm8845_vm8, %v8829_v33, %v8861_v56  ;;  %v12249_v44 = vmul.f32 0.70710677, %v12236_v61  ;;  %v12266_v51 = vadd.f32 %v8434_v58, %v12138_v59  ;;  %v11013_v56 = vld [vmem:[#allocation6 + $0x354] ss:$8 sps:$4 sm:$0xff]  }
 0xe27   :  { %v8893_v55 = vadd.f32 1.0, %v8877_v25  ;;  %v8534_v18 = vmul.f32 0.3275911, %v12241_v20  ;;  %v8931_v30 = vpack.c.bf16 %v8923_v29, %v8915_v31  ;;  %v12269_v19 = vmul.f32 0.70710677, %v12263_v6  ;;  %v8436_v22 = vpop.f32.mrf.mxu0 }
 0xe28   :  { %v8536_v2 = vmul.f32 0.3275911, %v12244_v48  ;;  %v12257_v8 = vand.u32 2147483647, %v12249_v44  ;;  %v12272_v15 = vmul.f32 0.70710677, %v12266_v51  ;;  %v12279_v11 = vadd.f32 %v8477_v1, %v12144_v3 }
 0xe29   :  { %v8909_v0 = vmul.f32 %v8893_v55, %v8493_v7  ;;  %v8550_v62 = vadd.f32 1.0, %v8534_v18  ;;  %9750 = vmatprep.mubr.bf16.mxu0 %v8931_v30  ;;  %v8742_v59 = vsub.f32 0.0, %v12241_v20  ;;  %v12276_v50 = vand.u32 2147483647, %v12269_v19  ;;  %v11016_v3 = vld [vmem:[#allocation6 + $0x244] ss:$8 sps:$4 sm:$0xff]   ;;  %v8479_v55 = vpop.f32.mrf.mxu1 }
 0xe2a   :  { %v8552_v41 = vadd.f32 1.0, %v8536_v2  ;;  %v8535_v38 = vmul.f32 0.3275911, %v12257_v8  ;;  %9751 = vmatmul.mubr.bf16.vlgmr.msra.gmra.mxu0 %v8930_v26  ;;  %v8744_v17 = vsub.f32 0.0, %v12244_v48  ;;  %v12283_v47 = vand.u32 2147483647, %v12272_v15 }
 0xe2b   :  { %11192 = vrcp.f32 %v8550_v62  ;;  %v8925_v53 = vmul.f32 %v8909_v0, %v8222_v60  ;;  %9805 = vmatpush1.bf16.msra.mxu0 %v10996_v52  ;;  %v12286_v16 = vadd.f32 %v8436_v22, %v12178_v35  ;;  %v8537_v33 = vmul.f32 0.3275911, %v12276_v50  ;;  %v11011_v25 = vld [vmem:[#allocation6 + $0x350] ss:$8 sps:$4 sm:$0xff]   ;;  %v11014_v18 = vld [vmem:[#allocation6 + $0x240] ss:$8 sps:$4 sm:$0xff]  }
 0xe2c   :  { %11194 = vrcp.f32 %v8552_v41  ;;  %v8551_v5 = vadd.f32 1.0, %v8535_v38  ;;  %9806 = vmatprep.subr.bf16.mxu0 %v11004_v63  ;;  %v12290_v42 = vmul.f32 0.70710677, %v12279_v11  ;;  %v8542_v26 = vmul.f32 0.3275911, %v12283_v47 }
 0xe2d   :  { %v8933_v4 = vpack.c.bf16 %v8925_v53, %v8917_v39  ;;  %v12294_v46 = vmul.f32 0.70710677, %v12286_v16  ;;  %v8758_v35 = vmul.f32 %v8742_v59, %v12241_v20  ;;  %v8760_v31 = vmul.f32 %v8744_v17, %v12244_v48  ;;  %v11022_v20 = vld [vmem:[#allocation6 + $0x234] ss:$8 sps:$4 sm:$0xff]   ;;  %v11019_v48 = vld [vmem:[#allocation6 + $0x344] ss:$8 sps:$4 sm:$0xff]  }
 0xe2e   :  { %11196 = vrcp.f32 %v8551_v5  ;;  %v12298_v7 = vand.u32 2147483647, %v12290_v42  ;;  %v8558_v29 = vadd.f32 1.0, %v8542_v26  ;;  %v8743_v2 = vsub.f32 0.0, %v12257_v8  ;;  %v11017_v60 = vld [vmem:[#allocation6 + $0x340] ss:$8 sps:$4 sm:$0xff]  }
 0xe2f   :  { %9793 = vmatprep.mubr.bf16.mxu1 %v8933_v4  ;;  %9807 = vmatpush1.bf16.msra.mxu0 %v11002_v45  ;;  %v12302_v10 = vand.u32 2147483647, %v12294_v46  ;;  %v8778_v30 = vmul.f32 1.442695, %v8758_v35  ;;  %v12308_v58 = vadd.f32 %v8479_v55, %v12190_v28  ;;  %v8782_v62 = vmul.f32 1.442695, %v8760_v31 }
 0xe30   :  { %9794 = vmatmul.mubr.bf16.vlgmr.msra.gmra.mxu1 %v8932_v23  ;;  %9808 = vmatprep.subr.bf16.mxu0 %v11010_v40  ;;  %v8553_v23 = vadd.f32 1.0, %v8537_v33  ;;  %v8544_v37 = vmul.f32 0.3275911, %v12298_v7  ;;  %v11020_v63 = vld [vmem:[#allocation6 + $0x230] ss:$8 sps:$4 sm:$0xff]   ;;  %v8759_v5 = vmul.f32 %v8743_v2, %v12257_v8  ;;  %v8745_v1 = vsub.f32 0.0, %v12276_v50 }
 0xe31   :  { %9848 = vmatpush1.bf16.msra.mxu1 %v10999_v13  ;;  %v8543_v12 = vmul.f32 0.3275911, %v12302_v10  ;;  %v11025_v38 = vld [vmem:[#allocation6 + $0x334] ss:$8 sps:$4 sm:$0xff]   ;;  %v11028_v28 = vld [vmem:[#allocation6 + $0x224] ss:$8 sps:$4 sm:$0xff]  }
 0xe32   :  { %9849 = vmatprep.subr.bf16.mxu1 %v11007_v27  ;;  %11198 = vrcp.f32 %v8553_v23  ;;  %v8560_v52 = vadd.f32 1.0, %v8544_v37  ;;  %v8750_v4 = vsub.f32 0.0, %v12283_v47  ;;  %v12320_v13 = vmul.f32 0.70710677, %v12308_v58  ;;  %v11023_v40 = vld [vmem:[#allocation6 + $0x330] ss:$8 sps:$4 sm:$0xff]  }
 0xe33   :  { %9809 = vmatpush1.bf16.msra.mxu0 %v11008_v36  ;;  %11200 = vrcp.f32 %v8558_v29  ;;  %v8559_v41 = vadd.f32 1.0, %v8543_v12  ;;  %v11026_v27 = vld [vmem:[#allocation6 + $0x220] ss:$8 sps:$4 sm:$0xff]   ;;  %v8761_v26 = vmul.f32 %v8745_v1, %v12276_v50  ;;  %v11031_v29 = vld [vmem:[#allocation6 + $0x324] ss:$8 sps:$4 sm:$0xff]   ;;  %vm8840_vm10 = vcmp.ge.f32.partialorder %v12232_v34, 0.0 }
 0xe34   :  { %9810 = vmatprep.subr.bf16.mxu0 %v11016_v3  ;;  %11202 = vrcp.f32 %v8560_v52  ;;  %v12326_v17 = vand.u32 2147483647, %v12320_v13  ;;  %v8780_v3 = vmul.f32 1.442695, %v8759_v5  ;;  %v8766_v23 = vmul.f32 %v8750_v4, %v12283_v47  ;;  %v11032_v50 = vld [vmem:[#allocation6 + $0x210] ss:$8 sps:$4 sm:$0xff]  }
 0xe35   :  { %9850 = vmatpush1.bf16.msra.mxu1 %v11005_v24  ;;  %11204 = vrcp.f32 %v8559_v41  ;;  %v8752_v24 = vsub.f32 0.0, %v12298_v7  ;;  %v8784_v47 = vmul.f32 1.442695, %v8761_v26  ;;  %v11040_v52 = vld [vmem:[#allocation6 + $0x204] ss:$8 sps:$4 sm:$0xff]   ;;  %v12511_v5 = vsub.s32 4, %v11875_v14 }
 0xe36   :  { %9851 = vmatprep.subr.bf16.mxu1 %v11013_v56  ;;  %11206 = vpow2.f32 %v8778_v30  ;;  %v11034_v56 = vld [vmem:[#allocation6 + $0x214] ss:$8 sps:$4 sm:$0xff]   ;;  %v8545_v31 = vmul.f32 0.3275911, %v12326_v17  ;;  %v11029_v30 = vld [vmem:[#allocation6 + $0x320] ss:$8 sps:$4 sm:$0xff]  }
 0xe37   :  { %9811 = vmatpush1.bf16.msra.mxu0 %v11014_v18  ;;  %11208 = vpow2.f32 %v8782_v62  ;;  %v8768_v37 = vmul.f32 %v8752_v24, %v12298_v7  ;;  %v8794_v41 = vmul.f32 1.442695, %v8766_v23  ;;  %v12347_v1 = vrot.slane %v12058_v21, %v12511_v5  ;;  %v11046_v26 = vld [vmem:[#allocation6 + $0x2f4] ss:$8 sps:$4 sm:$0xff]   ;;  %v11068_v34 = vld [vmem:[#allocation6 + $0x2b0] ss:$8 sps:$4 sm:$0xff]  }
 0xe38   :  { %v12310_v0 = vpop.eup %11192  ;;  %9812 = vmatprep.subr.bf16.mxu0 %v11022_v20  ;;  %v8561_v20 = vadd.f32 1.0, %v8545_v31  ;;  %11210 = vpow2.f32 %v8780_v3  ;;  %v11035_v3 = vld [vmem:[#allocation6 + $0x310] ss:$8 sps:$4 sm:$0xff]   ;;  %v11043_v31 = vld [vmem:[#allocation6 + $0x304] ss:$8 sps:$4 sm:$0xff]   ;;  %vm8839_vm11 = vcmp.ge.f32.partialorder %v12249_v44, 0.0 }
 0xe39   :  { %v12312_v39 = vpop.eup %11194  ;;  %v8598_v53 = vmul.f32 1.0614054, %v12310_v0  ;;  %9852 = vmatpush1.bf16.msra.mxu1 %v11011_v25  ;;  %v8751_v25 = vsub.f32 0.0, %v12302_v10  ;;  %v11065_v44 = vld [vmem:[#allocation6 + $0x3c0] ss:$8 sps:$4 sm:$0xff]   ;;  %vm8846_vm12 = vcmp.ge.f32.partialorder %v12272_v15, 0.0 }
 0xe3a   :  { %v8600_v45 = vmul.f32 1.0614054, %v12312_v39  ;;  %9853 = vmatprep.subr.bf16.mxu1 %v11019_v48  ;;  %11212 = vrcp.f32 %v8561_v20  ;;  %v11041_v20 = vld [vmem:[#allocation6 + $0x300] ss:$8 sps:$4 sm:$0xff]   ;;  %vm8848_vm13 = vcmp.ge.f32.partialorder %v12290_v42, 0.0  ;;  %vm8847_vm14 = vcmp.ge.f32.partialorder %v12294_v46, 0.0 }
 0xe3b   :  { %v8614_v22 = vadd.f32 -1.4531521, %v8598_v53  ;;  %v12322_v8 = vpop.eup %11196  ;;  %9813 = vmatpush1.bf16.msra.mxu0 %v11020_v63  ;;  %v8767_v7 = vmul.f32 %v8751_v25, %v12302_v10  ;;  %v11037_v63 = vld [vmem:[#allocation6 + $0x314] ss:$8 sps:$4 sm:$0xff]   ;;  %11214 = vpow2.f32 %v8784_v47  ;;  %v11080_v42 = vld [vmem:[#allocation6 + $0x290] ss:$8 sps:$4 sm:$0xff]  }
 0xe3c   :  { %v8616_v59 = vadd.f32 -1.4531521, %v8600_v45  ;;  %v8599_v33 = vmul.f32 1.0614054, %v12322_v8  ;;  %9814 = vmatprep.subr.bf16.mxu0 %v11028_v28  ;;  %11216 = vpow2.f32 %v8794_v41  ;;  %vm8841_vm15 = vcmp.ge.f32.partialorder %v12269_v19, 0.0 }
 0xe3d   :  { %v8630_v36 = vmul.f32 %v12310_v0, %v8614_v22  ;;  %9854 = vmatpush1.bf16.msra.mxu1 %v11017_v60  ;;  %v12512_v22 = vsub.s32 6, %v11875_v14  ;;  %v8796_v25 = vmul.f32 1.442695, %v8767_v7  ;;  %v11089_v19 = vld [vmem:[#allocation6 + $0x380] ss:$8 sps:$4 sm:$0xff]   ;;  %vm8849_vm0 = vcmp.ge.f32.partialorder %v12320_v13, 0.0 }
 0xe3e   :  { %v8632_v35 = vmul.f32 %v12312_v39, %v8616_v59  ;;  %9855 = vmatprep.subr.bf16.mxu1 %v11025_v38  ;;  %v8615_v18 = vadd.f32 -1.4531521, %v8599_v33  ;;  %v11038_v38 = vld [vmem:[#allocation6 + $0x200] ss:$8 sps:$4 sm:$0xff]   ;;  %v8798_v59 = vmul.f32 1.442695, %v8768_v37 }
 0xe3f   :  { %v8646_v55 = vadd.f32 1.4214138, %v8630_v36  ;;  %9815 = vmatpush1.bf16.msra.mxu0 %v11026_v27  ;;  %v12338_v60 = vpop.eup %11198 }
 0xe40   :  { %v8648_v2 = vadd.f32 1.4214138, %v8632_v35  ;;  %v8631_v48 = vmul.f32 %v12322_v8, %v8615_v18  ;;  %9816 = vmatprep.subr.bf16.mxu0 %v11034_v56  ;;  %v12342_v53 = vpop.eup %11200  ;;  %v8601_v4 = vmul.f32 1.0614054, %v12338_v60  ;;  %11218 = vpow2.f32 %v8798_v59 }
 0xe41   :  { %v8662_v12 = vmul.f32 %v12310_v0, %v8646_v55  ;;  %9856 = vmatpush1.bf16.msra.mxu1 %v11023_v40  ;;  %v12353_v40 = vrot.slane %v12058_v21, %v12512_v22  ;;  %v8606_v27 = vmul.f32 1.0614054, %v12342_v53  ;;  %v12358_v56 = vpop.eup %11202  ;;  %11220 = vpow2.f32 %v8796_v25 }
 0xe42   :  { %v8664_v62 = vmul.f32 %v12312_v39, %v8648_v2  ;;  %9857 = vmatprep.subr.bf16.mxu1 %v11031_v29  ;;  %v8647_v45 = vadd.f32 1.4214138, %v8631_v48  ;;  %v8617_v33 = vadd.f32 -1.4531521, %v8601_v4  ;;  %v12361_v29 = vpop.eup %11204  ;;  %v8608_v37 = vmul.f32 1.0614054, %v12358_v56 }
 0xe43   :  { %v8678_v28 = vadd.f32 -0.28449672, %v8662_v12  ;;  %9817 = vmatpush1.bf16.msra.mxu0 %v11032_v50  ;;  %v8622_v23 = vadd.f32 -1.4531521, %v8606_v27  ;;  %v11207_v50 = vpop.eup %11206  ;;  %v8607_v47 = vmul.f32 1.0614054, %v12361_v29 }
 0xe44   :  { %v8680_v10 = vadd.f32 -0.28449672, %v8664_v62  ;;  %v8663_v36 = vmul.f32 %v12322_v8, %v8647_v45  ;;  %9818 = vmatprep.subr.bf16.mxu0 %v11040_v52  ;;  %v8633_v2 = vmul.f32 %v12338_v60, %v8617_v33  ;;  %v11049_v52 = vld [vmem:[#allocation6 + $0x3f4] ss:$8 sps:$4 sm:$0xff]   ;;  %v11209_v62 = vpop.eup %11208  ;;  %v8624_v5 = vadd.f32 -1.4531521, %v8608_v37 }
 0xe45   :  { %v8694_v24 = vmul.f32 %v12310_v0, %v8678_v28  ;;  %9858 = vmatpush1.bf16.msra.mxu1 %v11029_v30  ;;  %v8638_v48 = vmul.f32 %v12342_v53, %v8622_v23  ;;  %v11044_v30 = vld [vmem:[#allocation6 + $0x2f0] ss:$8 sps:$4 sm:$0xff]   ;;  %v11052_v28 = vld [vmem:[#allocation6 + $0x2e4] ss:$8 sps:$4 sm:$0xff]   ;;  %v8623_v22 = vadd.f32 -1.4531521, %v8607_v47 }
 0xe46   :  { %v8696_v35 = vmul.f32 %v12312_v39, %v8680_v10  ;;  %9859 = vmatprep.subr.bf16.mxu1 %v11037_v63  ;;  %v8679_v18 = vadd.f32 -0.28449672, %v8663_v36  ;;  %v8649_v63 = vadd.f32 1.4214138, %v8633_v2  ;;  %v8753_v10 = vsub.f32 0.0, %v12326_v17 }
 0xe47   :  { %v8710_v55 = vadd.f32 0.2548296, %v8694_v24  ;;  %9819 = vmatpush1.bf16.msra.mxu0 %v11038_v38  ;;  %v8654_v4 = vadd.f32 1.4214138, %v8638_v48  ;;  %v8639_v33 = vmul.f32 %v12361_v29, %v8623_v22  ;;  %v12383_v2 = vadd.f32 %v11994_v49, %v12347_v1  ;;  %v11055_v48 = vld [vmem:[#allocation6 + $0x3e4] ss:$8 sps:$4 sm:$0xff]  }
 0xe48   :  { %v8712_v12 = vadd.f32 0.2548296, %v8696_v35  ;;  %v8695_v7 = vmul.f32 %v12322_v8, %v8679_v18  ;;  %9820 = vmatprep.subr.bf16.mxu0 %v11046_v26  ;;  %v8665_v59 = vmul.f32 %v12338_v60, %v8649_v63  ;;  %v11058_v26 = vld [vmem:[#allocation6 + $0x2d4] ss:$8 sps:$4 sm:$0xff]   ;;  %v11211_v18 = vpop.eup %11210  ;;  %v12513_v37 = vsub.s32 5, %v11875_v14 }
 0xe49   :  { %v8726_v41 = vmul.f32 %v12310_v0, %v8710_v55  ;;  %9860 = vmatpush1.bf16.msra.mxu1 %v11035_v3  ;;  %v8640_v0 = vmul.f32 %v12358_v56, %v8624_v5  ;;  %v8670_v36 = vmul.f32 %v12342_v53, %v8654_v4  ;;  %v11050_v3 = vld [vmem:[#allocation6 + $0x2e0] ss:$8 sps:$4 sm:$0xff]   ;;  %v12390_v47 = vpop.eup %11212  ;;  %v8769_v49 = vmul.f32 %v8753_v10, %v12326_v17  ;;  %v11061_v5 = vld [vmem:[#allocation6 + $0x3d4] ss:$8 sps:$4 sm:$0xff]  }
 0xe4a   :  { %v8728_v45 = vmul.f32 %v12312_v39, %v8712_v12  ;;  %9861 = vmatprep.subr.bf16.mxu1 %v11043_v31  ;;  %v8711_v27 = vadd.f32 0.2548296, %v8695_v7  ;;  %v11047_v39 = vld [vmem:[#allocation6 + $0x3f0] ss:$8 sps:$4 sm:$0xff]   ;;  %v8681_v31 = vadd.f32 -0.28449672, %v8665_v59  ;;  %v12388_v25 = vrot.slane %v12058_v21, %v12513_v37  ;;  %v11215_v17 = vpop.eup %11214 }
 0xe4b   :  { %v12371_v38 = vmul.f32 %v11207_v50, %v8726_v41  ;;  %9821 = vmatpush2.bf16.msra.mxu0 %v11044_v30  ;;  %v8656_v55 = vadd.f32 1.4214138, %v8640_v0  ;;  %v8686_v50 = vadd.f32 -0.28449672, %v8670_v36  ;;  %v8655_v12 = vadd.f32 1.4214138, %v8639_v33 }
 0xe4c   :  { %v12375_v24 = vmul.f32 %v11209_v62, %v8728_v45  ;;  %v8727_v23 = vmul.f32 %v12322_v8, %v8711_v27  ;;  %9822 = vmatprep.subr.bf16.mxu0 %v11052_v28  ;;  %v11053_v62 = vld [vmem:[#allocation6 + $0x3e0] ss:$8 sps:$4 sm:$0xff]   ;;  %v11056_v41 = vld [vmem:[#allocation6 + $0x2d0] ss:$8 sps:$4 sm:$0xff]   ;;  %v11064_v28 = vld [vmem:[#allocation6 + $0x2c4] ss:$8 sps:$4 sm:$0xff]   ;;  %v12404_v10 = vadd.f32 %v12002_v43, %v12347_v1 }
 0xe4d   :  { %v8822_v35 = vsub.f32 1.0, %v12371_v38  ;;  %9862 = vmatpush1.bf16.msra.mxu1 %v11041_v20  ;;  %v8697_v20 = vmul.f32 %v12338_v60, %v8681_v31  ;;  %v8672_v30 = vmul.f32 %v12358_v56, %v8656_v55  ;;  %v8702_v21 = vmul.f32 %v12342_v53, %v8686_v50 }
 0xe4e   :  { %9863 = vmatprep.subr.bf16.mxu1 %v11049_v52  ;;  %v12392_v8 = vmul.f32 %v11211_v18, %v8727_v23  ;;  %v8824_v7 = vsub.f32 1.0, %v12375_v24  ;;  %v8671_v63 = vmul.f32 %v12361_v29, %v8655_v12  ;;  %v8609_v52 = vmul.f32 1.0614054, %v12390_v47  ;;  %v11217_v24 = vpop.eup %11216 }
 0xe4f   :  { %9823 = vmatpush2.bf16.msra.mxu0 %v11050_v3  ;;  %v8854_v45 = vsub.f32 0.0, %v8822_v35  ;;  %v8713_v22 = vadd.f32 0.2548296, %v8697_v20  ;;  %v8688_v38 = vadd.f32 -0.28449672, %v8672_v30  ;;  %v8486_v27 = vmul.f32 0.5, %v12218_v57  ;;  %v11219_v31 = vpop.eup %11218 }
 0xe50   :  { %v8823_v4 = vsub.f32 1.0, %v12392_v8  ;;  %9824 = vmatprep.subr.bf16.mxu0 %v11058_v26  ;;  %v8718_v59 = vadd.f32 0.2548296, %v8702_v21  ;;  %v8687_v0 = vadd.f32 -0.28449672, %v8671_v63  ;;  %v12409_v36 = vmul.f32 0.5, %v12225_v32 }
 0xe51   :  { %9864 = vmatpush2.bf16.msra.mxu1 %v11047_v39  ;;  %v8704_v33 = vmul.f32 %v12358_v56, %v8688_v38  ;;  %v8800_v39 = vmul.f32 1.442695, %v8769_v49  ;;  %v11059_v3 = vld [vmem:[#allocation6 + $0x3d0] ss:$8 sps:$4 sm:$0xff]   ;;  %v8856_v26 = vsub.f32 0.0, %v8824_v7  ;;  %v8870_v55 = vsel %vm8838_vm9, %v8822_v35, %v8854_v45 }
 0xe52   :  { %9865 = vmatprep.subr.bf16.mxu1 %v11055_v48  ;;  %v8734_v23 = vmul.f32 %v12342_v53, %v8718_v59  ;;  %v8703_v43 = vmul.f32 %v12361_v29, %v8687_v0  ;;  %v8625_v1 = vadd.f32 -1.4531521, %v8609_v52  ;;  %v11062_v57 = vld [vmem:[#allocation6 + $0x2c0] ss:$8 sps:$4 sm:$0xff]   ;;  %v8855_v18 = vsub.f32 0.0, %v8823_v4 }
 0xe53   :  { %9825 = vmatpush2.bf16.msra.mxu0 %v11056_v41  ;;  %v8729_v54 = vmul.f32 %v12338_v60, %v8713_v22  ;;  %v8720_v37 = vadd.f32 0.2548296, %v8704_v33  ;;  %v11070_v32 = vld [vmem:[#allocation6 + $0x2b4] ss:$8 sps:$4 sm:$0xff]   ;;  %v8487_v50 = vmul.f32 0.5, %v12236_v61  ;;  %11222 = vpow2.f32 %v8800_v39 }
 0xe54   :  { %9826 = vmatprep.subr.bf16.mxu0 %v11064_v28  ;;  %v8814_v12 = vmul.f32 %v11217_v24, %v8734_v23  ;;  %v8719_v53 = vadd.f32 0.2548296, %v8703_v43  ;;  %v11067_v48 = vld [vmem:[#allocation6 + $0x3c4] ss:$8 sps:$4 sm:$0xff]   ;;  %v8641_v35 = vmul.f32 %v12390_v47, %v8625_v1  ;;  %v8886_v60 = vadd.f32 1.0, %v8870_v55 }
 0xe55   :  { %9866 = vmatpush2.bf16.msra.mxu1 %v11053_v62  ;;  %v8736_v8 = vmul.f32 %v12358_v56, %v8720_v37  ;;  %v8872_v20 = vsel %vm8840_vm10, %v8824_v7, %v8856_v26  ;;  %v11221_v62 = vpop.eup %11220  ;;  %v8871_v61 = vsel %vm8839_vm11, %v8823_v4, %v8855_v18  ;;  %v12421_v41 = vmul.f32 %v11215_v17, %v8729_v54  ;;  %v11076_v56 = vld [vmem:[#allocation6 + $0x2a4] ss:$8 sps:$4 sm:$0xff]   ;;  %v11071_v38 = vld [vmem:[#allocation6 + $0x3b0] ss:$8 sps:$4 sm:$0xff]   ;;  %v11074_v33 = vld [vmem:[#allocation6 + $0x2a0] ss:$8 sps:$4 sm:$0xff]  }
 0xe56   :  { %9867 = vmatprep.subr.bf16.mxu1 %v11061_v5  ;;  %v8830_v30 = vsub.f32 1.0, %v8814_v12  ;;  %v8735_v49 = vmul.f32 %v12361_v29, %v8719_v53  ;;  %v8657_v63 = vadd.f32 1.4214138, %v8641_v35  ;;  %v8494_v52 = vmul.f32 0.5, %v12266_v51  ;;  %v11073_v29 = vld [vmem:[#allocation6 + $0x3b4] ss:$8 sps:$4 sm:$0xff]  }
 0xe57   :  { %9827 = vmatpush2.bf16.msra.mxu0 %v11062_v57  ;;  %v8816_v21 = vmul.f32 %v11219_v31, %v8736_v8  ;;  %v8888_v28 = vadd.f32 1.0, %v8872_v20  ;;  %v8496_v45 = vmul.f32 0.5, %v12279_v11  ;;  %v8902_v17 = vmul.f32 %v8886_v60, %v8486_v27  ;;  %v11082_v51 = vld [vmem:[#allocation6 + $0x294] ss:$8 sps:$4 sm:$0xff]   ;;  %v11079_v23 = vld [vmem:[#allocation6 + $0x3a4] ss:$8 sps:$4 sm:$0xff]  }
 0xe58   :  { %9828 = vmatprep.subr.bf16.mxu0 %v11070_v32  ;;  %v8862_v7 = vsub.f32 0.0, %v8830_v30  ;;  %v8815_v5 = vmul.f32 %v11221_v62, %v8735_v49  ;;  %v8673_v22 = vmul.f32 %v12390_v47, %v8657_v63  ;;  %v8887_v59 = vadd.f32 1.0, %v8871_v61  ;;  %v11077_v32 = vld [vmem:[#allocation6 + $0x3a0] ss:$8 sps:$4 sm:$0xff]   ;;  %v11085_v20 = vld [vmem:[#allocation6 + $0x394] ss:$8 sps:$4 sm:$0xff]  }
 0xe59   :  { %9868 = vmatpush2.bf16.msra.mxu1 %v11059_v3  ;;  %v8832_v4 = vsub.f32 1.0, %v8816_v21  ;;  %v8825_v15 = vsub.f32 1.0, %v12421_v41  ;;  %v8495_v11 = vmul.f32 0.5, %v12286_v16  ;;  %v8904_v43 = vmul.f32 %v8888_v28, %v12409_v36  ;;  %v11088_v36 = vld [vmem:[#allocation6 + $0x284] ss:$8 sps:$4 sm:$0xff]   ;;  %v12514_v8 = vld [vmem:[#allocation24_spill] sm:$0xff] }
 0xe5a   :  { %9869 = vmatprep.subr.bf16.mxu1 %v11067_v48  ;;  %v8878_v0 = vsel %vm8846_vm12, %v8830_v30, %v8862_v7  ;;  %v8831_v24 = vsub.f32 1.0, %v8815_v5  ;;  %v8689_v26 = vadd.f32 -0.28449672, %v8673_v22  ;;  %v8918_v55 = vmul.f32 %v8902_v17, %v12383_v2  ;;  %v12516_v30 = vld [vmem:[#allocation29_spill] sm:$0xff] }
 0xe5b   :  { %9829 = vmatpush2.bf16.msra.mxu0 %v11068_v34  ;;  %v8894_v39 = vadd.f32 1.0, %v8878_v0  ;;  %v8864_v3 = vsub.f32 0.0, %v8832_v4  ;;  %v8903_v18 = vmul.f32 %v8887_v59, %v8487_v50  ;;  %v8857_v16 = vsub.f32 0.0, %v8825_v15  ;;  %v12515_v50 = vld [vmem:[#allocation25_spill] sm:$0xff] }
 0xe5c   :  { %9830 = vmatprep.subr.bf16.mxu0 %v11076_v56  ;;  %v8863_v27 = vsub.f32 0.0, %v8831_v24  ;;  %v8705_v31 = vmul.f32 %v12390_v47, %v8689_v26  ;;  %v8302_v48 = vadd.f32 %v11996_v9, %v12353_v40  ;;  %v8261_v2 = vadd.f32 %v12514_v8, %v12388_v25  ;;  %v11086_v21 = vld [vmem:[#allocation6 + $0x280] ss:$8 sps:$4 sm:$0xff]   ;;  %v11083_v56 = vld [vmem:[#allocation6 + $0x390] ss:$8 sps:$4 sm:$0xff]  }
 0xe5d   :  { %9870 = vmatpush2.bf16.msra.mxu1 %v11065_v44  ;;  %v8910_v1 = vmul.f32 %v8894_v39, %v8494_v52  ;;  %v8880_v57 = vsel %vm8848_vm13, %v8832_v4, %v8864_v3  ;;  %v8306_v35 = vadd.f32 %v12515_v50, %v12353_v40  ;;  %v8873_v44 = vsel %vm8841_vm15, %v8825_v15, %v8857_v16  ;;  %v12519_v15 = vld [vmem:[#allocation27_spill] sm:$0xff] }
 0xe5e   :  { %9871 = vmatprep.subr.bf16.mxu1 %v11073_v29  ;;  %v8896_v54 = vadd.f32 1.0, %v8880_v57  ;;  %v8879_v37 = vsel %vm8847_vm14, %v8831_v24, %v8863_v27  ;;  %v8721_v53 = vadd.f32 0.2548296, %v8705_v31  ;;  %v8920_v41 = vmul.f32 %v8904_v43, %v8302_v48  ;;  %v9066_v27 = vld [vmem:[#allocation13] sm:$0x3] }
 0xe5f   :  { %9831 = vmatpush2.bf16.msra.mxu0 %v11074_v33  ;;  %v8926_v46 = vmul.f32 %v8910_v1, %v12404_v10  ;;  %v8895_v12 = vadd.f32 1.0, %v8879_v37  ;;  %v8265_v10 = vadd.f32 %v12516_v30, %v12388_v25  ;;  %v8919_v63 = vmul.f32 %v8903_v18, %v8261_v2  ;;  %v11091_v25 = vld [vmem:[#allocation6 + $0x384] ss:$8 sps:$4 sm:$0xff]   ;;  %v12520_v1 = vld [vmem:[#allocation32_spill] sm:$0xff]  ;;  %v12521_v31 = vld [vmem:[#allocation31_spill] sm:$0xff] }
 0xe60   :  { %9832 = vmatprep.subr.bf16.mxu0 %v11082_v51  ;;  %v8912_v60 = vmul.f32 %v8896_v54, %v8496_v45  ;;  %v8737_v34 = vmul.f32 %v12390_v47, %v8721_v53  ;;  %v11223_v61 = vpop.eup %11222  ;;  %v8889_v29 = vadd.f32 1.0, %v8873_v44  ;;  %v11232_v45 = vld [vmem:[#allocation12] sm:$0xff]  ;;  %v12517_v4 = vsub.s32 7, %v11875_v14 }
 0xe61   :  { %9872 = vmatpush2.bf16.msra.mxu1 %v11071_v38  ;;  %v8911_v49 = vmul.f32 %v8895_v12, %v8495_v11  ;;  %v8934_v62 = vpack.c.bf16 %v8926_v46, %v8918_v55  ;;  %v8489_v38 = vmul.f32 0.5, %v12263_v6  ;;  %v8497_v0 = vmul.f32 0.5, %v12308_v58  ;;  %v12518_v33 = vld [vmem:[#allocation26_spill] sm:$0xff] }
 0xe62   :  { %9873 = vmatprep.subr.bf16.mxu1 %v11079_v23  ;;  %v8928_v9 = vmul.f32 %v8912_v60, %v8306_v35  ;;  %v8817_v40 = vmul.f32 %v11223_v61, %v8737_v34  ;;  %v6809_v22 = vrot.slane %v11232_v45, %v12517_v4  ;;  %v9071_v57 = vrot.slane %v9066_v27, %v12520_v1 }
 0xe63   :  { %9833 = vmatpush2.bf16.msra.mxu0 %v11080_v42  ;;  %v8927_v52 = vmul.f32 %v8911_v49, %v8265_v10  ;;  %v8905_v59 = vmul.f32 %v8889_v29, %v8489_v38  ;;  %v9075_v55 = vrot.slane %v9066_v27, %v12521_v31 }
 0xe64   :  { %9834 = vmatprep.subr.bf16.mxu0 %v11088_v36  ;;  %v8936_v7 = vpack.c.bf16 %v8928_v9, %v8920_v41  ;;  %v8833_v5 = vsub.f32 1.0, %v8817_v40  ;;  %v8304_v51 = vadd.f32 %v12518_v33, %v6809_v22  ;;  %v8308_v39 = vadd.f32 %v12519_v15, %v6809_v22 }
 0xe65   :  { %9874 = vmatpush2.bf16.msra.mxu1 %v11077_v32  ;;  %v8935_v47 = vpack.c.bf16 %v8927_v52, %v8919_v63 }
 0xe66   :  { %9875 = vmatprep.subr.bf16.mxu1 %v11085_v20  ;;  %v8865_v28 = vsub.f32 0.0, %v8833_v5  ;;  %v8921_v26 = vmul.f32 %v8905_v59, %v8304_v51 }
 0xe67   :  { %9835 = vmatpush2.bf16.msra.mxu0 %v11086_v21  ;;  %9836 = vmatprep.mubr.bf16.mxu0 %v8935_v47 }
 0xe68   :  { %v8881_v17 = vsel %vm8849_vm0, %v8833_v5, %v8865_v28 }
 0xe69   :  { %9876 = vmatpush2.bf16.msra.mxu1 %v11083_v56  ;;  %v8897_v24 = vadd.f32 1.0, %v8881_v17 }
 0xe6a   :  { %9877 = vmatprep.subr.bf16.mxu1 %v11091_v25  ;;  %9837 = vmatmul.mubr.bf16.vlgmr.msra.gmra.mxu0 %v8934_v62 }
 0xe6b   :  { %v8913_v3 = vmul.f32 %v8897_v24, %v8497_v0 }
 0xe6d   :  { %9878 = vmatpush2.bf16.msra.mxu1 %v11089_v19  ;;  %v8929_v14 = vmul.f32 %v8913_v3, %v8308_v39 }
 0xe6f   :  { %v8937_v11 = vpack.c.bf16 %v8929_v14, %v8921_v26 }
 0xe71   :  { %9879 = vmatprep.mubr.bf16.mxu1 %v8937_v11  ;;  %v9894_v11 = vld [vmem:[#allocation15] sm:$0x3] }
 0xe72   :  { %9880 = vmatmul.mubr.bf16.vlgmr.msra.gmra.mxu1 %v8936_v7  ;;  %v9936_v27 = vrot.slane %v9894_v11, %v12521_v31 }
 0xeea   :  { %v9752_v6 = vpop.f32.mrf.mxu0 }
 0xeeb   :  { %v9753_v37 = vadd.f32 %v9752_v6, %v9071_v57  ;;  %v9895_v6 = vld [vmem:[#allocation16] sm:$0x3] }
 0xeec   :  { %v9754_v13 = vpop.f32.mrf.mxu0 }
 0xeed   :  { %v9755_v42 = vadd.f32 %v9754_v13, %v9075_v55  ;;  %v9932_v13 = vrot.slane %v9894_v11, %v12520_v1 }
 0xeee   :  { %v9756_v23 = vpop.f32.mrf.mxu0 }
 0xeef   :  { %v9757_v12 = vadd.f32 %v9756_v23, %v9071_v57  ;;  %v9951_v57 = vrot.slane %v9895_v6, %v12521_v31 }
 0xef0   :  { %v9795_v43 = vpop.f32.mrf.mxu1  ;;  %v9758_v58 = vpop.f32.mrf.mxu0 }
 0xef1   :  { %v9796_v46 = vadd.f32 %v9795_v43, %v9753_v37  ;;  %v9759_v48 = vadd.f32 %v9758_v58, %v9075_v55  ;;  %v9947_v43 = vrot.slane %v9895_v6, %v12520_v1 }
 0xef2   :  { %v9797_v18 = vpop.f32.mrf.mxu1 }
 0xef3   :  { %v9798_v36 = vadd.f32 %v9797_v18, %v9755_v42 }
 0xef4   :  { %v9799_v16 = vpop.f32.mrf.mxu1 }
 0xef5   :  { %v9800_v50 = vadd.f32 %v9799_v16, %v9757_v12 }
 0xef6   :  { %v9801_v2 = vpop.f32.mrf.mxu1 }
 0xef7   :  { %v9802_v30 = vadd.f32 %v9801_v2, %v9759_v48 }
 0xf2a   :  { %v9838_v54 = vpop.f32.mrf.mxu0 }
 0xf2b   :  { %v9839_v8 = vadd.f32 %v9838_v54, %v9796_v46 }
 0xf2c   :  { %v9840_v32 = vpop.f32.mrf.mxu0 }
 0xf2d   :  { %v9841_v35 = vadd.f32 %v9840_v32, %v9798_v36 }
 0xf2e   :  { %v9842_v53 = vpop.f32.mrf.mxu0 }
 0xf2f   :  { %v9843_v49 = vadd.f32 %v9842_v53, %v9800_v50 }
 0xf30   :  { %v9844_v20 = vpop.f32.mrf.mxu0 }
 0xf31   :  { %v9845_v61 = vadd.f32 %v9844_v20, %v9802_v30 }
 0xf32   :  { %v9881_v60 = vpop.f32.mrf.mxu1 }
 0xf33   :  { %v9882_v10 = vadd.f32 %v9881_v60, %v9839_v8 }
 0xf34   :  { %v9883_v34 = vpop.f32.mrf.mxu1 }
 0xf35   :  { %v9884_v62 = vadd.f32 %v9883_v34, %v9841_v35  ;;  %v9890_v9 = vmul.f32 2.0, %v9882_v10 }
 0xf36   :  { %v9885_v41 = vpop.f32.mrf.mxu1 }
 0xf37   :  { %v9891_v21 = vmul.f32 2.0, %v9884_v62  ;;  %v9886_v63 = vadd.f32 %v9885_v41, %v9843_v49 }
 0xf38   :  { %v9887_v44 = vpop.f32.mrf.mxu1 }
 0xf39   :  { %v9888_v40 = vadd.f32 %v9887_v44, %v9845_v61  ;;  %v9896_v56 = vadd.f32 %v9891_v21, %v9890_v9  ;;  %v9892_v52 = vmul.f32 2.0, %v9886_v63 }
 0xf3b   :  { %v9893_v25 = vmul.f32 2.0, %v9888_v40  ;;  %9897 = vadd.xlane.f32.xlu0 %v9896_v56 }
 0xf3d   :  { %v9899_v7 = vadd.f32 %v9893_v25, %v9892_v52 }
 0xf3f   :  { %9900 = vadd.xlane.f32.xlu1 %v9899_v7 }
 0xfc4   :  { %v9898_v5 = vpop.xlane.xlu0 %9897 }
 0xfc5   :  { %v9902_v47 = vmul.f32 0.00390625, %v9898_v5 }
 0xfc7   :  { %v9904_v29 = vsub.f32 %v9890_v9, %v9902_v47  ;;  %v9905_v28 = vsub.f32 %v9891_v21, %v9902_v47 }
 0xfc8   :  { %v9901_v19 = vpop.xlane.xlu1 %9900 }
 0xfc9   :  { %v9903_v45 = vmul.f32 0.00390625, %v9901_v19  ;;  %v9908_v4 = vmul.f32 %v9904_v29, %v9904_v29  ;;  %v9909_v22 = vmul.f32 %v9905_v28, %v9905_v28 }
 0xfcb   :  { %v9906_v38 = vsub.f32 %v9892_v52, %v9903_v45  ;;  %v9907_v17 = vsub.f32 %v9893_v25, %v9903_v45  ;;  %v9912_v59 = vadd.f32 %v9909_v22, %v9908_v4 }
 0xfcd   :  { %9913 = vadd.xlane.f32.xlu0 %v9912_v59  ;;  %v9910_v0 = vmul.f32 %v9906_v38, %v9906_v38  ;;  %v9911_v24 = vmul.f32 %v9907_v17, %v9907_v17 }
 0xfcf   :  { %v9915_v33 = vadd.f32 %v9911_v24, %v9910_v0 }
 0xfd1   :  { %9916 = vadd.xlane.f32.xlu1 %v9915_v33 }
0x1056   :  { %v9914_v51 = vpop.xlane.xlu0 %9913 }
0x1057   :  { %v9918_v15 = vmul.f32 0.00390625, %v9914_v51 }
0x1059   :  { %v9920_v39 = vadd.f32 1e-05, %v9918_v15 }
0x105a   :  { %v9917_v3 = vpop.xlane.xlu1 %9916 }
0x105b   :  { %11224 = vrsqrt.f32 %v9920_v39  ;;  %v9919_v26 = vmul.f32 0.00390625, %v9917_v3 }
0x105d   :  { %v9921_v14 = vadd.f32 1e-05, %v9919_v26 }
0x105f   :  { %11226 = vrsqrt.f32 %v9921_v14 }
0x1068   :  { %v11225_v23 = vpop.eup %11224 }
0x1069   :  { %v9924_v58 = vmul.f32 %v11225_v23, %v9904_v29  ;;  %v9925_v55 = vmul.f32 %v11225_v23, %v9905_v28 }
0x106b   :  { %v9939_v18 = vmul.f32 %v9932_v13, %v9924_v58  ;;  %v9940_v54 = vmul.f32 %v9936_v27, %v9925_v55 }
0x106c   :  { %v11227_v37 = vpop.eup %11226 }
0x106d   :  { %v9954_v32 = vadd.f32 %v9947_v43, %v9939_v18  ;;  %v9955_v42 = vadd.f32 %v9951_v57, %v9940_v54  ;;  %v9926_v16 = vmul.f32 %v11227_v37, %v9906_v38  ;;  %v9927_v46 = vmul.f32 %v11227_v37, %v9907_v17 }
0x106f   :  { %9958 = vst [vmem:[%s12481_s11] sm:$0xff] %v9954_v32  ;;  %9959 = vst [vmem:[%s12481_s11 + $0x8] sm:$0xff] %v9955_v42  ;;  %v9941_v1 = vmul.f32 %v9932_v13, %v9926_v16  ;;  %v9942_v12 = vmul.f32 %v9936_v27, %v9927_v46 }
0x1071   :  { %v9956_v31 = vadd.f32 %v9947_v43, %v9941_v1  ;;  %v9957_v53 = vadd.f32 %v9951_v57, %v9942_v12 }
0x1073   :  { %9960 = vst [vmem:[%s12481_s11 + $0x10] sm:$0xff] %v9956_v31  ;;  %9961 = vst [vmem:[%s12481_s11 + $0x18] sm:$0xff] %v9957_v53 }
0x1074   :  { %9966 = vsyncpa [#allocation3], 1 }
0x1075   :  { %9967 = vsyncpa [#allocation5], 1 }
0x1076   :  { %9968 = vsyncpa [#allocation8], 1 }
0x1077   :  { %9969 = vsyncpa [#allocation11], 1 }
0x1078   :  { %9970 = vsyncpa [#allocation14], 1 }
0x1079   :  { %9971 = vsyncpa [#allocation17], 1 }

</bundles_post_ra>
